<compile_context>
chip_gen: v6e
topology: v6e:2x2x1
jax: 0.10.0
libtpu: 0.0.40
codegen_flags: <defaults>
</compile_context>

<pallas_src>
import functools
import math

import jax
import jax.numpy as jnp
from jax.experimental import pallas as pl
from jax.experimental.pallas import tpu as pltpu


def _layernorm(v, g, b, eps):
    mu = jnp.mean(v, axis=-1, keepdims=True)
    var = jnp.mean((v - mu) ** 2, axis=-1, keepdims=True)
    return (v - mu) * jax.lax.rsqrt(var + eps) * g + b


def _gelu_tanh(x):
    c = math.sqrt(2.0 / math.pi)
    return 0.5 * x * (1.0 + jnp.tanh(c * (x + 0.044715 * x * x * x)))


def _mha(q, k, v, *, batch, q_len, kv_len, num_heads, causal):
    """Multi-head attention on row-flattened activations.

    q: (batch*q_len, D) f32 (1/sqrt(hd) already folded into the q projection),
    k, v: (batch*kv_len, D) f32. Returns (batch*q_len, D) f32.

    Heads are taken with static lane slices and the per-(batch, head)
    score / PV matmuls are unrolled at trace time (what a head-batched
    dot_general lowers to anyway), so only one (q_len, kv_len) f32 score
    tile is live at a time and no activation broadcast/relayout is needed.
    """
    D = q.shape[-1]
    hd = D // num_heads
    bf = jnp.bfloat16
    f32 = jnp.float32

    mask = None
    if causal:
        row = jax.lax.broadcasted_iota(jnp.int32, (q_len, kv_len), 0)
        col = jax.lax.broadcasted_iota(jnp.int32, (q_len, kv_len), 1)
        mask = row >= col

    batch_outs = []
    for b in range(batch):
        qb = q[b * q_len:(b + 1) * q_len, :]
        kb = k[b * kv_len:(b + 1) * kv_len, :]
        vb = v[b * kv_len:(b + 1) * kv_len, :]
        head_outs = []
        for h in range(num_heads):
            sl = slice(h * hd, (h + 1) * hd)
            qh = qb[:, sl].astype(bf)
            kh = kb[:, sl].astype(bf)
            vh = vb[:, sl].astype(bf)
            # scores (q_len, kv_len): contraction over hd, no k transpose needed.
            s = jax.lax.dot_general(qh, kh, (((1,), (1,)), ((), ())),
                                    preferred_element_type=f32)
            if causal:
                s = jnp.where(mask, s, jnp.float32(-1e30))
            s = s - jnp.max(s, axis=-1, keepdims=True)
            p = jnp.exp(s)                                                # EUP
            p = p * pl.reciprocal(jnp.sum(p, axis=-1, keepdims=True), approx=True)
            head_outs.append(jnp.dot(p.astype(bf), vh,
                                     preferred_element_type=f32))
        batch_outs.append(jnp.concatenate(head_outs, axis=-1))            # (q_len, D)
    return jnp.concatenate(batch_outs, axis=0)                            # (batch*q_len, D)


def gpt2_block_kernel(x_ref, enc_ref,
                      ln1_g, ln1_b, ln2_g, ln2_b, ln3_g, ln3_b,
                      w_qkv, b_qkv, w_ao, b_ao,
                      w_cq, b_cq, w_ckv, b_ckv, w_co, b_co,
                      w_fc, b_fc, w_po, b_po,
                      out_ref, *, num_heads, shortcut, eps):
    bf = jnp.bfloat16
    f32 = jnp.float32
    Bt, T, D = x_ref.shape
    S = enc_ref.shape[1]
    R = Bt * T

    # Rows of all batch elements in this tile are flattened so every dense
    # matmul sees M = Bt*T rows instead of M = T per batch element.
    x_in = x_ref[...].reshape(R, D).astype(f32)
    enc = enc_ref[...].reshape(Bt * S, D)            # bf16, feeds the K/V matmul only

    x = x_in

    # ---- causal self-attention : x = x + attn(ln_1(x)) ----
    h1 = _layernorm(x, ln1_g[...], ln1_b[...], eps).astype(bf)
    qkv = jnp.dot(h1, w_qkv[...], preferred_element_type=f32) + b_qkv[...]     # (R, 3D)
    a = _mha(qkv[:, :D], qkv[:, D:2 * D], qkv[:, 2 * D:],
             batch=Bt, q_len=T, kv_len=T, num_heads=num_heads, causal=True)
    x = x + (jnp.dot(a.astype(bf), w_ao[...], preferred_element_type=f32) + b_ao[...])

    # ---- cross-attention : x = x + cross_attn(ln_2(x), enc_out, enc_out) ----
    h2 = _layernorm(x, ln2_g[...], ln2_b[...], eps).astype(bf)
    cq = jnp.dot(h2, w_cq[...], preferred_element_type=f32) + b_cq[...]        # (R, D)
    ckv = jnp.dot(enc, w_ckv[...], preferred_element_type=f32) + b_ckv[...]    # (Bt*S, 2D)
    c = _mha(cq, ckv[:, :D], ckv[:, D:],
             batch=Bt, q_len=T, kv_len=S, num_heads=num_heads, causal=False)
    x = x + (jnp.dot(c.astype(bf), w_co[...], preferred_element_type=f32) + b_co[...])

    # ---- MLP : x = x + mlp(ln_3(x)) ----
    h3 = _layernorm(x, ln3_g[...], ln3_b[...], eps).astype(bf)
    hfc = _gelu_tanh(jnp.dot(h3, w_fc[...], preferred_element_type=f32) + b_fc[...])
    x = x + (jnp.dot(hfc.astype(bf), w_po[...], preferred_element_type=f32) + b_po[...])

    if shortcut:        # args.shortcut: extra residual of the block input
        x = x + x_in

    # single lane-dense (Bt, T, D) store
    out_ref[...] = x.reshape(Bt, T, D).astype(out_ref.dtype)


def _prepare_weights(params, num_heads):
    """Trace-time prep: keep projections in their lane-dense (D, N) layouts,
    fold 1/sqrt(hd) into the q projections, fuse cross-attn K/V into a single
    (D, 2D) matmul, cast matmul weights to bf16 (biases / LN params stay f32)."""
    D = params["w_ao"].shape[0]
    hd = D // num_heads
    scale = jnp.float32(1.0 / math.sqrt(hd))
    bf = jnp.bfloat16
    f32 = jnp.float32

    w_qkv, b_qkv = params["w_qkv"], params["b_qkv"]
    w_qkv = jnp.concatenate([w_qkv[:, :D] * scale, w_qkv[:, D:]], axis=1)
    b_qkv = jnp.concatenate([b_qkv[:, :D] * scale, b_qkv[:, D:]], axis=1)
    w_ckv = jnp.concatenate([params["w_k"], params["w_v"]], axis=1)
    b_ckv = jnp.concatenate([params["b_k"], params["b_v"]], axis=1)

    return [
        params["ln1_g"].astype(f32), params["ln1_b"].astype(f32),
        params["ln2_g"].astype(f32), params["ln2_b"].astype(f32),
        params["ln3_g"].astype(f32), params["ln3_b"].astype(f32),
        w_qkv.astype(bf), b_qkv.astype(f32),
        params["w_ao"].astype(bf), params["b_ao"].astype(f32),
        (params["w_q"] * scale).astype(bf), (params["b_q"] * scale).astype(f32),
        w_ckv.astype(bf), b_ckv.astype(f32),
        params["w_co"].astype(bf), params["b_co"].astype(f32),
        params["w_fc"].astype(bf), params["b_fc"].astype(f32),
        params["w_po"].astype(bf), params["b_po"].astype(f32),
    ]


def _pick_batch_tile(B, T):
    """Aim for >= 128 LHS rows per matmul while evenly dividing the batch."""
    bt = min(B, max(1, 128 // max(T, 1)))
    while B % bt:
        bt -= 1
    return max(bt, 1)


def _vmem_limit_bytes(bt, T, S, D, F, weights):
    wbytes = sum(int(w.size) * w.dtype.itemsize for w in weights)
    R = bt * T
    io = 2 * (2 * (R + bt * S) * D + 4 * R * D)        # dbl-buffered bf16 in + f32 out
    act = 4 * (10 * R * D + 2 * bt * S * D + 2 * R * F + T * max(T, S))
    demand = 2 * wbytes + io + act + (8 << 20)          # headroom for Mosaic scratch
    try:
        cap = int(pltpu.get_tpu_info().vmem_capacity_bytes)   # generation-aware
    except Exception:
        cap = 64 * 2 ** 20                                    # v7x-safe fallback
    return int(max(16 * 2 ** 20, min(cap - (8 << 20), demand)))


def _cost_estimate(B, T, S, D, F, H, weights):
    flops_b = (12 * T * D * D + 4 * S * D * D
               + 4 * T * T * D + 4 * T * S * D + 4 * T * D * F)
    transc_b = H * T * (T + S) + T * F + 6 * T
    wbytes = sum(int(w.size) * w.dtype.itemsize for w in weights)
    bytes_acc = B * (2 * (T * D + S * D) + 4 * T * D) + wbytes
    return pl.CostEstimate(flops=B * flops_b, transcendentals=B * transc_b,
                           bytes_accessed=bytes_acc)


def gpt2_block(x, enc_out, params, *, num_heads, shortcut, eps=1e-5, batch_tile=None):
    B, T, D = x.shape
    S = enc_out.shape[1]
    F = params["w_fc"].shape[1]
    assert D % num_heads == 0
    bt = batch_tile or _pick_batch_tile(B, T)
    assert B % bt == 0

    weights = _prepare_weights(params, num_heads)
    x_bf = x.astype(jnp.bfloat16)          # halve input HBM traffic / VMEM
    enc_bf = enc_out.astype(jnp.bfloat16)

    kernel = functools.partial(gpt2_block_kernel, num_heads=num_heads,
                               shortcut=shortcut, eps=eps)

    def build(single_buffer_weights):
        def wspec(w):
            kw = {}
            if single_buffer_weights:
                # grid-invariant windows: one buffer is enough, halves weight VMEM.
                kw["pipeline_mode"] = pl.Buffered(1)
            return pl.BlockSpec(w.shape, lambda b, _nd=w.ndim: (0,) * _nd, **kw)

        in_specs = [pl.BlockSpec((bt, T, D), lambda b: (b, 0, 0)),
                    pl.BlockSpec((bt, S, D), lambda b: (b, 0, 0))]
        in_specs += [wspec(w) for w in weights]
        return pl.pallas_call(
            kernel,
            out_shape=jax.ShapeDtypeStruct((B, T, D), x.dtype),
            grid=(B // bt,),
            in_specs=in_specs,
            out_specs=pl.BlockSpec((bt, T, D), lambda b: (b, 0, 0)),
            compiler_params=pltpu.CompilerParams(
                dimension_semantics=("parallel",),
                vmem_limit_bytes=_vmem_limit_bytes(bt, T, S, D, F, weights)),
            cost_estimate=_cost_estimate(B, T, S, D, F, num_heads, weights),
        )

    try:
        return build(True)(x_bf, enc_bf, *weights)
    except Exception:
        # pipeline_mode=pl.Buffered(1) not accepted by this jax/Mosaic version;
        # fall back to default double-buffered weight windows (same semantics).
        return build(False)(x_bf, enc_bf, *weights)


# ----------------------------- reference + demo -----------------------------

def _reference_gpt2_block(x, enc, p, *, num_heads, shortcut, eps=1e-5):
    """Pure-JAX f32 reference of the PyTorch GPT2Block forward (inference)."""
    D = x.shape[-1]
    H = num_heads
    hd = D // H
    scale = 1.0 / math.sqrt(hd)

    def ln(v, g, b):
        mu = v.mean(-1, keepdims=True)
        var = ((v - mu) ** 2).mean(-1, keepdims=True)
        return (v - mu) / jnp.sqrt(var + eps) * g + b

    def heads(v):
        B, L, _ = v.shape
        return v.reshape(B, L, H, hd).transpose(0, 2, 1, 3)

    def attn(xq, xkv, wq, bq, wk, bk, wv, bv, wo, bo, causal):
        q, k, v = heads(xq @ wq + bq), heads(xkv @ wk + bk), heads(xkv @ wv + bv)
        s = jnp.einsum("bhtf,bhsf->bhts", q, k) * scale
        if causal:
            t, sl = s.shape[-2:]
            s = jnp.where(jnp.tril(jnp.ones((t, sl), bool)), s, -1e30)
        o = jnp.einsum("bhts,bhsf->bhtf", jax.nn.softmax(s, axis=-1), v)
        B, _, L, _ = o.shape
        return o.transpose(0, 2, 1, 3).reshape(B, L, D) @ wo + bo

    wq, wk, wv = (p["w_qkv"][:, i * D:(i + 1) * D] for i in range(3))
    bq, bk, bv = (p["b_qkv"][:, i * D:(i + 1) * D] for i in range(3))

    x_in = x
    h1 = ln(x, p["ln1_g"], p["ln1_b"])
    x = x + attn(h1, h1, wq, bq, wk, bk, wv, bv, p["w_ao"], p["b_ao"], True)
    h2 = ln(x, p["ln2_g"], p["ln2_b"])
    x = x + attn(h2, enc, p["w_q"], p["b_q"], p["w_k"], p["b_k"],
                 p["w_v"], p["b_v"], p["w_co"], p["b_co"], False)
    h3 = ln(x, p["ln3_g"], p["ln3_b"])
    x = x + _gelu_tanh(h3 @ p["w_fc"] + p["b_fc"]) @ p["w_po"] + p["b_po"]
    if shortcut:
        x = x + x_in
    return x


def init_params(key, embed_dim, mlp_hidden, std=0.1):
    D, F = embed_dim, mlp_hidden
    keys = jax.random.split(key, 12)

    def lin(k, din, dout):
        kw, kb = jax.random.split(k)
        return (jax.random.normal(kw, (din, dout), jnp.float32) * std,
                jax.random.normal(kb, (1, dout), jnp.float32) * std)

    p = {}
    for i, k in zip((1, 2, 3), keys[:3]):
        kg, kb = jax.random.split(k)
        p[f"ln{i}_g"] = 1.0 + 0.1 * jax.random.normal(kg, (1, D), jnp.float32)
        p[f"ln{i}_b"] = 0.1 * jax.random.normal(kb, (1, D), jnp.float32)
    p["w_qkv"], p["b_qkv"] = lin(keys[3], D, 3 * D)    # self-attn c_attn
    p["w_ao"], p["b_ao"] = lin(keys[4], D, D)          # self-attn c_proj
    p["w_q"], p["b_q"] = lin(keys[5], D, D)            # cross-attn q
    p["w_k"], p["b_k"] = lin(keys[6], D, D)            # cross-attn k
    p["w_v"], p["b_v"] = lin(keys[7], D, D)            # cross-attn v
    p["w_co"], p["b_co"] = lin(keys[8], D, D)          # cross-attn c_proj
    p["w_fc"], p["b_fc"] = lin(keys[9], D, F)          # mlp c_fc
    p["w_po"], p["b_po"] = lin(keys[10], F, D)         # mlp c_proj
    return p


if __name__ == "__main__":
    # x: [B, T, D] decoder tokens, enc_out: [B, S, D] ViT encoder tokens.
    B, T, S, D, H = 2, 8, 16, 128, 4
    mlp_hidden = 4 * D

    key = jax.random.PRNGKey(0)
    kx, kenc, kp = jax.random.split(key, 3)
    x = jax.random.normal(kx, (B, T, D), jnp.float32)
    enc_out = jax.random.normal(kenc, (B, S, D), jnp.float32)
    params = init_params(kp, D, mlp_hidden)

    out = gpt2_block(x, enc_out, params, num_heads=H, shortcut=True)
    out = jax.block_until_ready(out)
    assert out.shape == (B, T, D) and out.dtype == x.dtype
    assert bool(jnp.isfinite(out).all())

    # pure-JAX f32 reference check (kernel uses bf16 inputs/weights -> loose tol)
    ref = _reference_gpt2_block(x, enc_out, params, num_heads=H, shortcut=True)
    rel_err = float(jnp.max(jnp.abs(out - ref)) / (jnp.max(jnp.abs(ref)) + 1e-6))
    assert rel_err < 5e-2, f"kernel vs reference mismatch: rel_err={rel_err:.4f}"

    print("KERNEL_OK")
</pallas_src>

<mosaic_0001>
module attributes {stable_mosaic.version = 11 : i64} {
  func.func @gpt2_block_kernel(%arg0: i32, %arg1: memref<2x8x128xbf16, #tpu.memory_space<vmem>>, %arg2: memref<2x16x128xbf16, #tpu.memory_space<vmem>>, %arg3: memref<1x128xf32, #tpu.memory_space<vmem>>, %arg4: memref<1x128xf32, #tpu.memory_space<vmem>>, %arg5: memref<1x128xf32, #tpu.memory_space<vmem>>, %arg6: memref<1x128xf32, #tpu.memory_space<vmem>>, %arg7: memref<1x128xf32, #tpu.memory_space<vmem>>, %arg8: memref<1x128xf32, #tpu.memory_space<vmem>>, %arg9: memref<128x384xbf16, #tpu.memory_space<vmem>>, %arg10: memref<1x384xf32, #tpu.memory_space<vmem>>, %arg11: memref<128x128xbf16, #tpu.memory_space<vmem>>, %arg12: memref<1x128xf32, #tpu.memory_space<vmem>>, %arg13: memref<128x128xbf16, #tpu.memory_space<vmem>>, %arg14: memref<1x128xf32, #tpu.memory_space<vmem>>, %arg15: memref<128x256xbf16, #tpu.memory_space<vmem>>, %arg16: memref<1x256xf32, #tpu.memory_space<vmem>>, %arg17: memref<128x128xbf16, #tpu.memory_space<vmem>>, %arg18: memref<1x128xf32, #tpu.memory_space<vmem>>, %arg19: memref<128x512xbf16, #tpu.memory_space<vmem>>, %arg20: memref<1x512xf32, #tpu.memory_space<vmem>>, %arg21: memref<512x128xbf16, #tpu.memory_space<vmem>>, %arg22: memref<1x128xf32, #tpu.memory_space<vmem>>, %arg23: memref<2x8x128xf32, #tpu.memory_space<vmem>>) attributes {dimension_semantics = [#tpu.dimension_semantics<parallel>], iteration_bounds = array<i64: 1>, scalar_prefetch = 0 : i64, scratch_operands = 0 : i64, tpu.core_type = #tpu.core_type<tc>, window_params = [{transform_indices = @transform_0, window_bounds = array<i64: 2, 8, 128>}, {transform_indices = @transform_1, window_bounds = array<i64: 2, 16, 128>}, {pipeline_mode = #tpu.pipeline_mode<synchronous>, transform_indices = @transform_2, window_bounds = array<i64: 1, 128>}, {pipeline_mode = #tpu.pipeline_mode<synchronous>, transform_indices = @transform_3, window_bounds = array<i64: 1, 128>}, {pipeline_mode = #tpu.pipeline_mode<synchronous>, transform_indices = @transform_4, window_bounds = array<i64: 1, 128>}, {pipeline_mode = #tpu.pipeline_mode<synchronous>, transform_indices = @transform_5, window_bounds = array<i64: 1, 128>}, {pipeline_mode = #tpu.pipeline_mode<synchronous>, transform_indices = @transform_6, window_bounds = array<i64: 1, 128>}, {pipeline_mode = #tpu.pipeline_mode<synchronous>, transform_indices = @transform_7, window_bounds = array<i64: 1, 128>}, {pipeline_mode = #tpu.pipeline_mode<synchronous>, transform_indices = @transform_8, window_bounds = array<i64: 128, 384>}, {pipeline_mode = #tpu.pipeline_mode<synchronous>, transform_indices = @transform_9, window_bounds = array<i64: 1, 384>}, {pipeline_mode = #tpu.pipeline_mode<synchronous>, transform_indices = @transform_10, window_bounds = array<i64: 128, 128>}, {pipeline_mode = #tpu.pipeline_mode<synchronous>, transform_indices = @transform_11, window_bounds = array<i64: 1, 128>}, {pipeline_mode = #tpu.pipeline_mode<synchronous>, transform_indices = @transform_12, window_bounds = array<i64: 128, 128>}, {pipeline_mode = #tpu.pipeline_mode<synchronous>, transform_indices = @transform_13, window_bounds = array<i64: 1, 128>}, {pipeline_mode = #tpu.pipeline_mode<synchronous>, transform_indices = @transform_14, window_bounds = array<i64: 128, 256>}, {pipeline_mode = #tpu.pipeline_mode<synchronous>, transform_indices = @transform_15, window_bounds = array<i64: 1, 256>}, {pipeline_mode = #tpu.pipeline_mode<synchronous>, transform_indices = @transform_16, window_bounds = array<i64: 128, 128>}, {pipeline_mode = #tpu.pipeline_mode<synchronous>, transform_indices = @transform_17, window_bounds = array<i64: 1, 128>}, {pipeline_mode = #tpu.pipeline_mode<synchronous>, transform_indices = @transform_18, window_bounds = array<i64: 128, 512>}, {pipeline_mode = #tpu.pipeline_mode<synchronous>, transform_indices = @transform_19, window_bounds = array<i64: 1, 512>}, {pipeline_mode = #tpu.pipeline_mode<synchronous>, transform_indices = @transform_20, window_bounds = array<i64: 512, 128>}, {pipeline_mode = #tpu.pipeline_mode<synchronous>, transform_indices = @transform_21, window_bounds = array<i64: 1, 128>}, {transform_indices = @transform_22, window_bounds = array<i64: 2, 8, 128>}]} {
    %c0 = arith.constant 0 : index
    %c0_0 = arith.constant 0 : index
    %c0_1 = arith.constant 0 : index
    %0 = vector.load %arg1[%c0, %c0_0, %c0_1] : memref<2x8x128xbf16, #tpu.memory_space<vmem>>, vector<2x8x128xbf16>
    %1 = vector.shape_cast %0 : vector<2x8x128xbf16> to vector<16x128xbf16>
    %2 = arith.extf %1 : vector<16x128xbf16> to vector<16x128xf32>
    %c0_2 = arith.constant 0 : index
    %c0_3 = arith.constant 0 : index
    %c0_4 = arith.constant 0 : index
    %3 = vector.load %arg2[%c0_2, %c0_3, %c0_4] : memref<2x16x128xbf16, #tpu.memory_space<vmem>>, vector<2x16x128xbf16>
    %4 = vector.shape_cast %3 : vector<2x16x128xbf16> to vector<32x128xbf16>
    %c0_5 = arith.constant 0 : index
    %c0_6 = arith.constant 0 : index
    %5 = vector.load %arg3[%c0_5, %c0_6] : memref<1x128xf32, #tpu.memory_space<vmem>>, vector<1x128xf32>
    %c0_7 = arith.constant 0 : index
    %c0_8 = arith.constant 0 : index
    %6 = vector.load %arg4[%c0_7, %c0_8] : memref<1x128xf32, #tpu.memory_space<vmem>>, vector<1x128xf32>
    %cst = arith.constant dense<0.000000e+00> : vector<16xf32>
    %7 = vector.multi_reduction <add>, %2, %cst [1] : vector<16x128xf32> to vector<16xf32>
    %8 = vector.shape_cast %7 : vector<16xf32> to vector<16x1xf32>
    %cst_9 = arith.constant 1.280000e+02 : f32
    %9 = vector.broadcast %cst_9 : f32 to vector<16x1xf32>
    %10 = arith.divf %8, %9 : vector<16x1xf32>
    %11 = vector.broadcast %10 : vector<16x1xf32> to vector<16x128xf32>
    %12 = arith.subf %2, %11 : vector<16x128xf32>
    %13 = arith.mulf %12, %12 : vector<16x128xf32>
    %cst_10 = arith.constant dense<0.000000e+00> : vector<16xf32>
    %14 = vector.multi_reduction <add>, %13, %cst_10 [1] : vector<16x128xf32> to vector<16xf32>
    %15 = vector.shape_cast %14 : vector<16xf32> to vector<16x1xf32>
    %cst_11 = arith.constant 1.280000e+02 : f32
    %16 = vector.broadcast %cst_11 : f32 to vector<16x1xf32>
    %17 = arith.divf %15, %16 : vector<16x1xf32>
    %18 = vector.broadcast %10 : vector<16x1xf32> to vector<16x128xf32>
    %19 = arith.subf %2, %18 : vector<16x128xf32>
    %cst_12 = arith.constant 9.99999974E-6 : f32
    %20 = vector.broadcast %cst_12 : f32 to vector<16x1xf32>
    %21 = arith.addf %17, %20 : vector<16x1xf32>
    %22 = math.rsqrt %21 : vector<16x1xf32>
    %23 = vector.broadcast %22 : vector<16x1xf32> to vector<16x128xf32>
    %24 = arith.mulf %19, %23 : vector<16x128xf32>
    %25 = vector.broadcast %5 : vector<1x128xf32> to vector<16x128xf32>
    %26 = arith.mulf %24, %25 : vector<16x128xf32>
    %27 = vector.broadcast %6 : vector<1x128xf32> to vector<16x128xf32>
    %28 = arith.addf %26, %27 : vector<16x128xf32>
    %29 = arith.truncf %28 : vector<16x128xf32> to vector<16x128xbf16>
    %c0_13 = arith.constant 0 : index
    %c0_14 = arith.constant 0 : index
    %30 = vector.load %arg9[%c0_13, %c0_14] : memref<128x384xbf16, #tpu.memory_space<vmem>>, vector<128x384xbf16>
    %cst_15 = arith.constant dense<0.000000e+00> : vector<16x384xf32>
    %31 = tpu.matmul %29, %30, %cst_15 {dimension_numbers = #tpu.dot_dimension_numbers<[1], [0], [0], [1], [0, 0, 1, 1], [], []>} : vector<16x128xbf16>, vector<128x384xbf16>, vector<16x384xf32> -> vector<16x384xf32>
    %c0_16 = arith.constant 0 : index
    %c0_17 = arith.constant 0 : index
    %32 = vector.load %arg10[%c0_16, %c0_17] : memref<1x384xf32, #tpu.memory_space<vmem>>, vector<1x384xf32>
    %33 = vector.broadcast %32 : vector<1x384xf32> to vector<16x384xf32>
    %34 = arith.addf %31, %33 : vector<16x384xf32>
    %35 = vector.extract_strided_slice %34 {offsets = [0, 0], sizes = [16, 128], strides = [1, 1]} : vector<16x384xf32> to vector<16x128xf32>
    %36 = vector.extract_strided_slice %34 {offsets = [0, 128], sizes = [16, 128], strides = [1, 1]} : vector<16x384xf32> to vector<16x128xf32>
    %37 = vector.extract_strided_slice %34 {offsets = [0, 256], sizes = [16, 128], strides = [1, 1]} : vector<16x384xf32> to vector<16x128xf32>
    %38 = tpu.iota {dimensions = array<i32: 0>} : vector<8x8xi32>
    %39 = tpu.iota {dimensions = array<i32: 1>} : vector<8x8xi32>
    %40 = arith.cmpi sge, %38, %39 : vector<8x8xi32>
    %41 = vector.extract_strided_slice %35 {offsets = [0, 0], sizes = [8, 128], strides = [1, 1]} : vector<16x128xf32> to vector<8x128xf32>
    %42 = vector.extract_strided_slice %36 {offsets = [0, 0], sizes = [8, 128], strides = [1, 1]} : vector<16x128xf32> to vector<8x128xf32>
    %43 = vector.extract_strided_slice %37 {offsets = [0, 0], sizes = [8, 128], strides = [1, 1]} : vector<16x128xf32> to vector<8x128xf32>
    %44 = vector.extract_strided_slice %41 {offsets = [0, 0], sizes = [8, 32], strides = [1, 1]} : vector<8x128xf32> to vector<8x32xf32>
    %45 = arith.truncf %44 : vector<8x32xf32> to vector<8x32xbf16>
    %46 = vector.extract_strided_slice %42 {offsets = [0, 0], sizes = [8, 32], strides = [1, 1]} : vector<8x128xf32> to vector<8x32xf32>
    %47 = arith.truncf %46 : vector<8x32xf32> to vector<8x32xbf16>
    %48 = vector.extract_strided_slice %43 {offsets = [0, 0], sizes = [8, 32], strides = [1, 1]} : vector<8x128xf32> to vector<8x32xf32>
    %49 = arith.truncf %48 : vector<8x32xf32> to vector<8x32xbf16>
    %cst_18 = arith.constant dense<0.000000e+00> : vector<8x8xf32>
    %50 = tpu.matmul %45, %47, %cst_18 {dimension_numbers = #tpu.dot_dimension_numbers<[1], [1], [0], [0], [0, 0, 1, 0], [], []>} : vector<8x32xbf16>, vector<8x32xbf16>, vector<8x8xf32> -> vector<8x8xf32>
    %cst_19 = arith.constant -1.000000e+30 : f32
    %51 = vector.broadcast %cst_19 : f32 to vector<8x8xf32>
    %52 = arith.select %40, %50, %51 : vector<8x8xi1>, vector<8x8xf32>
    %cst_20 = arith.constant dense<0xFF800000> : vector<8xf32>
    %53 = vector.multi_reduction <maximumf>, %52, %cst_20 [1] : vector<8x8xf32> to vector<8xf32>
    %54 = vector.shape_cast %53 : vector<8xf32> to vector<8x1xf32>
    %55 = vector.broadcast %54 : vector<8x1xf32> to vector<8x8xf32>
    %56 = arith.subf %52, %55 : vector<8x8xf32>
    %57 = math.exp %56 : vector<8x8xf32>
    %cst_21 = arith.constant dense<0.000000e+00> : vector<8xf32>
    %58 = vector.multi_reduction <add>, %57, %cst_21 [1] : vector<8x8xf32> to vector<8xf32>
    %59 = vector.shape_cast %58 : vector<8xf32> to vector<8x1xf32>
    %60 = tpu.reciprocal %59 {approx = true} : vector<8x1xf32> -> vector<8x1xf32>
    %61 = vector.broadcast %60 : vector<8x1xf32> to vector<8x8xf32>
    %62 = arith.mulf %57, %61 : vector<8x8xf32>
    %63 = arith.truncf %62 : vector<8x8xf32> to vector<8x8xbf16>
    %cst_22 = arith.constant dense<0.000000e+00> : vector<8x32xf32>
    %64 = tpu.matmul %63, %49, %cst_22 {dimension_numbers = #tpu.dot_dimension_numbers<[1], [0], [0], [1], [0, 0, 1, 1], [], []>} : vector<8x8xbf16>, vector<8x32xbf16>, vector<8x32xf32> -> vector<8x32xf32>
    %65 = vector.extract_strided_slice %41 {offsets = [0, 32], sizes = [8, 32], strides = [1, 1]} : vector<8x128xf32> to vector<8x32xf32>
    %66 = arith.truncf %65 : vector<8x32xf32> to vector<8x32xbf16>
    %67 = vector.extract_strided_slice %42 {offsets = [0, 32], sizes = [8, 32], strides = [1, 1]} : vector<8x128xf32> to vector<8x32xf32>
    %68 = arith.truncf %67 : vector<8x32xf32> to vector<8x32xbf16>
    %69 = vector.extract_strided_slice %43 {offsets = [0, 32], sizes = [8, 32], strides = [1, 1]} : vector<8x128xf32> to vector<8x32xf32>
    %70 = arith.truncf %69 : vector<8x32xf32> to vector<8x32xbf16>
    %cst_23 = arith.constant dense<0.000000e+00> : vector<8x8xf32>
    %71 = tpu.matmul %66, %68, %cst_23 {dimension_numbers = #tpu.dot_dimension_numbers<[1], [1], [0], [0], [0, 0, 1, 0], [], []>} : vector<8x32xbf16>, vector<8x32xbf16>, vector<8x8xf32> -> vector<8x8xf32>
    %cst_24 = arith.constant -1.000000e+30 : f32
    %72 = vector.broadcast %cst_24 : f32 to vector<8x8xf32>
    %73 = arith.select %40, %71, %72 : vector<8x8xi1>, vector<8x8xf32>
    %cst_25 = arith.constant dense<0xFF800000> : vector<8xf32>
    %74 = vector.multi_reduction <maximumf>, %73, %cst_25 [1] : vector<8x8xf32> to vector<8xf32>
    %75 = vector.shape_cast %74 : vector<8xf32> to vector<8x1xf32>
    %76 = vector.broadcast %75 : vector<8x1xf32> to vector<8x8xf32>
    %77 = arith.subf %73, %76 : vector<8x8xf32>
    %78 = math.exp %77 : vector<8x8xf32>
    %cst_26 = arith.constant dense<0.000000e+00> : vector<8xf32>
    %79 = vector.multi_reduction <add>, %78, %cst_26 [1] : vector<8x8xf32> to vector<8xf32>
    %80 = vector.shape_cast %79 : vector<8xf32> to vector<8x1xf32>
    %81 = tpu.reciprocal %80 {approx = true} : vector<8x1xf32> -> vector<8x1xf32>
    %82 = vector.broadcast %81 : vector<8x1xf32> to vector<8x8xf32>
    %83 = arith.mulf %78, %82 : vector<8x8xf32>
    %84 = arith.truncf %83 : vector<8x8xf32> to vector<8x8xbf16>
    %cst_27 = arith.constant dense<0.000000e+00> : vector<8x32xf32>
    %85 = tpu.matmul %84, %70, %cst_27 {dimension_numbers = #tpu.dot_dimension_numbers<[1], [0], [0], [1], [0, 0, 1, 1], [], []>} : vector<8x8xbf16>, vector<8x32xbf16>, vector<8x32xf32> -> vector<8x32xf32>
    %86 = vector.extract_strided_slice %41 {offsets = [0, 64], sizes = [8, 32], strides = [1, 1]} : vector<8x128xf32> to vector<8x32xf32>
    %87 = arith.truncf %86 : vector<8x32xf32> to vector<8x32xbf16>
    %88 = vector.extract_strided_slice %42 {offsets = [0, 64], sizes = [8, 32], strides = [1, 1]} : vector<8x128xf32> to vector<8x32xf32>
    %89 = arith.truncf %88 : vector<8x32xf32> to vector<8x32xbf16>
    %90 = vector.extract_strided_slice %43 {offsets = [0, 64], sizes = [8, 32], strides = [1, 1]} : vector<8x128xf32> to vector<8x32xf32>
    %91 = arith.truncf %90 : vector<8x32xf32> to vector<8x32xbf16>
    %cst_28 = arith.constant dense<0.000000e+00> : vector<8x8xf32>
    %92 = tpu.matmul %87, %89, %cst_28 {dimension_numbers = #tpu.dot_dimension_numbers<[1], [1], [0], [0], [0, 0, 1, 0], [], []>} : vector<8x32xbf16>, vector<8x32xbf16>, vector<8x8xf32> -> vector<8x8xf32>
    %cst_29 = arith.constant -1.000000e+30 : f32
    %93 = vector.broadcast %cst_29 : f32 to vector<8x8xf32>
    %94 = arith.select %40, %92, %93 : vector<8x8xi1>, vector<8x8xf32>
    %cst_30 = arith.constant dense<0xFF800000> : vector<8xf32>
    %95 = vector.multi_reduction <maximumf>, %94, %cst_30 [1] : vector<8x8xf32> to vector<8xf32>
    %96 = vector.shape_cast %95 : vector<8xf32> to vector<8x1xf32>
    %97 = vector.broadcast %96 : vector<8x1xf32> to vector<8x8xf32>
    %98 = arith.subf %94, %97 : vector<8x8xf32>
    %99 = math.exp %98 : vector<8x8xf32>
    %cst_31 = arith.constant dense<0.000000e+00> : vector<8xf32>
    %100 = vector.multi_reduction <add>, %99, %cst_31 [1] : vector<8x8xf32> to vector<8xf32>
    %101 = vector.shape_cast %100 : vector<8xf32> to vector<8x1xf32>
    %102 = tpu.reciprocal %101 {approx = true} : vector<8x1xf32> -> vector<8x1xf32>
    %103 = vector.broadcast %102 : vector<8x1xf32> to vector<8x8xf32>
    %104 = arith.mulf %99, %103 : vector<8x8xf32>
    %105 = arith.truncf %104 : vector<8x8xf32> to vector<8x8xbf16>
    %cst_32 = arith.constant dense<0.000000e+00> : vector<8x32xf32>
    %106 = tpu.matmul %105, %91, %cst_32 {dimension_numbers = #tpu.dot_dimension_numbers<[1], [0], [0], [1], [0, 0, 1, 1], [], []>} : vector<8x8xbf16>, vector<8x32xbf16>, vector<8x32xf32> -> vector<8x32xf32>
    %107 = vector.extract_strided_slice %41 {offsets = [0, 96], sizes = [8, 32], strides = [1, 1]} : vector<8x128xf32> to vector<8x32xf32>
    %108 = arith.truncf %107 : vector<8x32xf32> to vector<8x32xbf16>
    %109 = vector.extract_strided_slice %42 {offsets = [0, 96], sizes = [8, 32], strides = [1, 1]} : vector<8x128xf32> to vector<8x32xf32>
    %110 = arith.truncf %109 : vector<8x32xf32> to vector<8x32xbf16>
    %111 = vector.extract_strided_slice %43 {offsets = [0, 96], sizes = [8, 32], strides = [1, 1]} : vector<8x128xf32> to vector<8x32xf32>
    %112 = arith.truncf %111 : vector<8x32xf32> to vector<8x32xbf16>
    %cst_33 = arith.constant dense<0.000000e+00> : vector<8x8xf32>
    %113 = tpu.matmul %108, %110, %cst_33 {dimension_numbers = #tpu.dot_dimension_numbers<[1], [1], [0], [0], [0, 0, 1, 0], [], []>} : vector<8x32xbf16>, vector<8x32xbf16>, vector<8x8xf32> -> vector<8x8xf32>
    %cst_34 = arith.constant -1.000000e+30 : f32
    %114 = vector.broadcast %cst_34 : f32 to vector<8x8xf32>
    %115 = arith.select %40, %113, %114 : vector<8x8xi1>, vector<8x8xf32>
    %cst_35 = arith.constant dense<0xFF800000> : vector<8xf32>
    %116 = vector.multi_reduction <maximumf>, %115, %cst_35 [1] : vector<8x8xf32> to vector<8xf32>
    %117 = vector.shape_cast %116 : vector<8xf32> to vector<8x1xf32>
    %118 = vector.broadcast %117 : vector<8x1xf32> to vector<8x8xf32>
    %119 = arith.subf %115, %118 : vector<8x8xf32>
    %120 = math.exp %119 : vector<8x8xf32>
    %cst_36 = arith.constant dense<0.000000e+00> : vector<8xf32>
    %121 = vector.multi_reduction <add>, %120, %cst_36 [1] : vector<8x8xf32> to vector<8xf32>
    %122 = vector.shape_cast %121 : vector<8xf32> to vector<8x1xf32>
    %123 = tpu.reciprocal %122 {approx = true} : vector<8x1xf32> -> vector<8x1xf32>
    %124 = vector.broadcast %123 : vector<8x1xf32> to vector<8x8xf32>
    %125 = arith.mulf %120, %124 : vector<8x8xf32>
    %126 = arith.truncf %125 : vector<8x8xf32> to vector<8x8xbf16>
    %cst_37 = arith.constant dense<0.000000e+00> : vector<8x32xf32>
    %127 = tpu.matmul %126, %112, %cst_37 {dimension_numbers = #tpu.dot_dimension_numbers<[1], [0], [0], [1], [0, 0, 1, 1], [], []>} : vector<8x8xbf16>, vector<8x32xbf16>, vector<8x32xf32> -> vector<8x32xf32>
    %128 = tpu.concatenate %64, %85, %106, %127 in 1 : vector<8x32xf32>, vector<8x32xf32>, vector<8x32xf32>, vector<8x32xf32> -> vector<8x128xf32>
    %129 = vector.extract_strided_slice %35 {offsets = [8, 0], sizes = [8, 128], strides = [1, 1]} : vector<16x128xf32> to vector<8x128xf32>
    %130 = vector.extract_strided_slice %36 {offsets = [8, 0], sizes = [8, 128], strides = [1, 1]} : vector<16x128xf32> to vector<8x128xf32>
    %131 = vector.extract_strided_slice %37 {offsets = [8, 0], sizes = [8, 128], strides = [1, 1]} : vector<16x128xf32> to vector<8x128xf32>
    %132 = vector.extract_strided_slice %129 {offsets = [0, 0], sizes = [8, 32], strides = [1, 1]} : vector<8x128xf32> to vector<8x32xf32>
    %133 = arith.truncf %132 : vector<8x32xf32> to vector<8x32xbf16>
    %134 = vector.extract_strided_slice %130 {offsets = [0, 0], sizes = [8, 32], strides = [1, 1]} : vector<8x128xf32> to vector<8x32xf32>
    %135 = arith.truncf %134 : vector<8x32xf32> to vector<8x32xbf16>
    %136 = vector.extract_strided_slice %131 {offsets = [0, 0], sizes = [8, 32], strides = [1, 1]} : vector<8x128xf32> to vector<8x32xf32>
    %137 = arith.truncf %136 : vector<8x32xf32> to vector<8x32xbf16>
    %cst_38 = arith.constant dense<0.000000e+00> : vector<8x8xf32>
    %138 = tpu.matmul %133, %135, %cst_38 {dimension_numbers = #tpu.dot_dimension_numbers<[1], [1], [0], [0], [0, 0, 1, 0], [], []>} : vector<8x32xbf16>, vector<8x32xbf16>, vector<8x8xf32> -> vector<8x8xf32>
    %cst_39 = arith.constant -1.000000e+30 : f32
    %139 = vector.broadcast %cst_39 : f32 to vector<8x8xf32>
    %140 = arith.select %40, %138, %139 : vector<8x8xi1>, vector<8x8xf32>
    %cst_40 = arith.constant dense<0xFF800000> : vector<8xf32>
    %141 = vector.multi_reduction <maximumf>, %140, %cst_40 [1] : vector<8x8xf32> to vector<8xf32>
    %142 = vector.shape_cast %141 : vector<8xf32> to vector<8x1xf32>
    %143 = vector.broadcast %142 : vector<8x1xf32> to vector<8x8xf32>
    %144 = arith.subf %140, %143 : vector<8x8xf32>
    %145 = math.exp %144 : vector<8x8xf32>
    %cst_41 = arith.constant dense<0.000000e+00> : vector<8xf32>
    %146 = vector.multi_reduction <add>, %145, %cst_41 [1] : vector<8x8xf32> to vector<8xf32>
    %147 = vector.shape_cast %146 : vector<8xf32> to vector<8x1xf32>
    %148 = tpu.reciprocal %147 {approx = true} : vector<8x1xf32> -> vector<8x1xf32>
    %149 = vector.broadcast %148 : vector<8x1xf32> to vector<8x8xf32>
    %150 = arith.mulf %145, %149 : vector<8x8xf32>
    %151 = arith.truncf %150 : vector<8x8xf32> to vector<8x8xbf16>
    %cst_42 = arith.constant dense<0.000000e+00> : vector<8x32xf32>
    %152 = tpu.matmul %151, %137, %cst_42 {dimension_numbers = #tpu.dot_dimension_numbers<[1], [0], [0], [1], [0, 0, 1, 1], [], []>} : vector<8x8xbf16>, vector<8x32xbf16>, vector<8x32xf32> -> vector<8x32xf32>
    %153 = vector.extract_strided_slice %129 {offsets = [0, 32], sizes = [8, 32], strides = [1, 1]} : vector<8x128xf32> to vector<8x32xf32>
    %154 = arith.truncf %153 : vector<8x32xf32> to vector<8x32xbf16>
    %155 = vector.extract_strided_slice %130 {offsets = [0, 32], sizes = [8, 32], strides = [1, 1]} : vector<8x128xf32> to vector<8x32xf32>
    %156 = arith.truncf %155 : vector<8x32xf32> to vector<8x32xbf16>
    %157 = vector.extract_strided_slice %131 {offsets = [0, 32], sizes = [8, 32], strides = [1, 1]} : vector<8x128xf32> to vector<8x32xf32>
    %158 = arith.truncf %157 : vector<8x32xf32> to vector<8x32xbf16>
    %cst_43 = arith.constant dense<0.000000e+00> : vector<8x8xf32>
    %159 = tpu.matmul %154, %156, %cst_43 {dimension_numbers = #tpu.dot_dimension_numbers<[1], [1], [0], [0], [0, 0, 1, 0], [], []>} : vector<8x32xbf16>, vector<8x32xbf16>, vector<8x8xf32> -> vector<8x8xf32>
    %cst_44 = arith.constant -1.000000e+30 : f32
    %160 = vector.broadcast %cst_44 : f32 to vector<8x8xf32>
    %161 = arith.select %40, %159, %160 : vector<8x8xi1>, vector<8x8xf32>
    %cst_45 = arith.constant dense<0xFF800000> : vector<8xf32>
    %162 = vector.multi_reduction <maximumf>, %161, %cst_45 [1] : vector<8x8xf32> to vector<8xf32>
    %163 = vector.shape_cast %162 : vector<8xf32> to vector<8x1xf32>
    %164 = vector.broadcast %163 : vector<8x1xf32> to vector<8x8xf32>
    %165 = arith.subf %161, %164 : vector<8x8xf32>
    %166 = math.exp %165 : vector<8x8xf32>
    %cst_46 = arith.constant dense<0.000000e+00> : vector<8xf32>
    %167 = vector.multi_reduction <add>, %166, %cst_46 [1] : vector<8x8xf32> to vector<8xf32>
    %168 = vector.shape_cast %167 : vector<8xf32> to vector<8x1xf32>
    %169 = tpu.reciprocal %168 {approx = true} : vector<8x1xf32> -> vector<8x1xf32>
    %170 = vector.broadcast %169 : vector<8x1xf32> to vector<8x8xf32>
    %171 = arith.mulf %166, %170 : vector<8x8xf32>
    %172 = arith.truncf %171 : vector<8x8xf32> to vector<8x8xbf16>
    %cst_47 = arith.constant dense<0.000000e+00> : vector<8x32xf32>
    %173 = tpu.matmul %172, %158, %cst_47 {dimension_numbers = #tpu.dot_dimension_numbers<[1], [0], [0], [1], [0, 0, 1, 1], [], []>} : vector<8x8xbf16>, vector<8x32xbf16>, vector<8x32xf32> -> vector<8x32xf32>
    %174 = vector.extract_strided_slice %129 {offsets = [0, 64], sizes = [8, 32], strides = [1, 1]} : vector<8x128xf32> to vector<8x32xf32>
    %175 = arith.truncf %174 : vector<8x32xf32> to vector<8x32xbf16>
    %176 = vector.extract_strided_slice %130 {offsets = [0, 64], sizes = [8, 32], strides = [1, 1]} : vector<8x128xf32> to vector<8x32xf32>
    %177 = arith.truncf %176 : vector<8x32xf32> to vector<8x32xbf16>
    %178 = vector.extract_strided_slice %131 {offsets = [0, 64], sizes = [8, 32], strides = [1, 1]} : vector<8x128xf32> to vector<8x32xf32>
    %179 = arith.truncf %178 : vector<8x32xf32> to vector<8x32xbf16>
    %cst_48 = arith.constant dense<0.000000e+00> : vector<8x8xf32>
    %180 = tpu.matmul %175, %177, %cst_48 {dimension_numbers = #tpu.dot_dimension_numbers<[1], [1], [0], [0], [0, 0, 1, 0], [], []>} : vector<8x32xbf16>, vector<8x32xbf16>, vector<8x8xf32> -> vector<8x8xf32>
    %cst_49 = arith.constant -1.000000e+30 : f32
    %181 = vector.broadcast %cst_49 : f32 to vector<8x8xf32>
    %182 = arith.select %40, %180, %181 : vector<8x8xi1>, vector<8x8xf32>
    %cst_50 = arith.constant dense<0xFF800000> : vector<8xf32>
    %183 = vector.multi_reduction <maximumf>, %182, %cst_50 [1] : vector<8x8xf32> to vector<8xf32>
    %184 = vector.shape_cast %183 : vector<8xf32> to vector<8x1xf32>
    %185 = vector.broadcast %184 : vector<8x1xf32> to vector<8x8xf32>
    %186 = arith.subf %182, %185 : vector<8x8xf32>
    %187 = math.exp %186 : vector<8x8xf32>
    %cst_51 = arith.constant dense<0.000000e+00> : vector<8xf32>
    %188 = vector.multi_reduction <add>, %187, %cst_51 [1] : vector<8x8xf32> to vector<8xf32>
    %189 = vector.shape_cast %188 : vector<8xf32> to vector<8x1xf32>
    %190 = tpu.reciprocal %189 {approx = true} : vector<8x1xf32> -> vector<8x1xf32>
    %191 = vector.broadcast %190 : vector<8x1xf32> to vector<8x8xf32>
    %192 = arith.mulf %187, %191 : vector<8x8xf32>
    %193 = arith.truncf %192 : vector<8x8xf32> to vector<8x8xbf16>
    %cst_52 = arith.constant dense<0.000000e+00> : vector<8x32xf32>
    %194 = tpu.matmul %193, %179, %cst_52 {dimension_numbers = #tpu.dot_dimension_numbers<[1], [0], [0], [1], [0, 0, 1, 1], [], []>} : vector<8x8xbf16>, vector<8x32xbf16>, vector<8x32xf32> -> vector<8x32xf32>
    %195 = vector.extract_strided_slice %129 {offsets = [0, 96], sizes = [8, 32], strides = [1, 1]} : vector<8x128xf32> to vector<8x32xf32>
    %196 = arith.truncf %195 : vector<8x32xf32> to vector<8x32xbf16>
    %197 = vector.extract_strided_slice %130 {offsets = [0, 96], sizes = [8, 32], strides = [1, 1]} : vector<8x128xf32> to vector<8x32xf32>
    %198 = arith.truncf %197 : vector<8x32xf32> to vector<8x32xbf16>
    %199 = vector.extract_strided_slice %131 {offsets = [0, 96], sizes = [8, 32], strides = [1, 1]} : vector<8x128xf32> to vector<8x32xf32>
    %200 = arith.truncf %199 : vector<8x32xf32> to vector<8x32xbf16>
    %cst_53 = arith.constant dense<0.000000e+00> : vector<8x8xf32>
    %201 = tpu.matmul %196, %198, %cst_53 {dimension_numbers = #tpu.dot_dimension_numbers<[1], [1], [0], [0], [0, 0, 1, 0], [], []>} : vector<8x32xbf16>, vector<8x32xbf16>, vector<8x8xf32> -> vector<8x8xf32>
    %cst_54 = arith.constant -1.000000e+30 : f32
    %202 = vector.broadcast %cst_54 : f32 to vector<8x8xf32>
    %203 = arith.select %40, %201, %202 : vector<8x8xi1>, vector<8x8xf32>
    %cst_55 = arith.constant dense<0xFF800000> : vector<8xf32>
    %204 = vector.multi_reduction <maximumf>, %203, %cst_55 [1] : vector<8x8xf32> to vector<8xf32>
    %205 = vector.shape_cast %204 : vector<8xf32> to vector<8x1xf32>
    %206 = vector.broadcast %205 : vector<8x1xf32> to vector<8x8xf32>
    %207 = arith.subf %203, %206 : vector<8x8xf32>
    %208 = math.exp %207 : vector<8x8xf32>
    %cst_56 = arith.constant dense<0.000000e+00> : vector<8xf32>
    %209 = vector.multi_reduction <add>, %208, %cst_56 [1] : vector<8x8xf32> to vector<8xf32>
    %210 = vector.shape_cast %209 : vector<8xf32> to vector<8x1xf32>
    %211 = tpu.reciprocal %210 {approx = true} : vector<8x1xf32> -> vector<8x1xf32>
    %212 = vector.broadcast %211 : vector<8x1xf32> to vector<8x8xf32>
    %213 = arith.mulf %208, %212 : vector<8x8xf32>
    %214 = arith.truncf %213 : vector<8x8xf32> to vector<8x8xbf16>
    %cst_57 = arith.constant dense<0.000000e+00> : vector<8x32xf32>
    %215 = tpu.matmul %214, %200, %cst_57 {dimension_numbers = #tpu.dot_dimension_numbers<[1], [0], [0], [1], [0, 0, 1, 1], [], []>} : vector<8x8xbf16>, vector<8x32xbf16>, vector<8x32xf32> -> vector<8x32xf32>
    %216 = tpu.concatenate %152, %173, %194, %215 in 1 : vector<8x32xf32>, vector<8x32xf32>, vector<8x32xf32>, vector<8x32xf32> -> vector<8x128xf32>
    %217 = tpu.concatenate %128, %216 in 0 : vector<8x128xf32>, vector<8x128xf32> -> vector<16x128xf32>
    %218 = arith.truncf %217 : vector<16x128xf32> to vector<16x128xbf16>
    %c0_58 = arith.constant 0 : index
    %c0_59 = arith.constant 0 : index
    %219 = vector.load %arg11[%c0_58, %c0_59] : memref<128x128xbf16, #tpu.memory_space<vmem>>, vector<128x128xbf16>
    %cst_60 = arith.constant dense<0.000000e+00> : vector<16x128xf32>
    %220 = tpu.matmul %218, %219, %cst_60 {dimension_numbers = #tpu.dot_dimension_numbers<[1], [0], [0], [1], [0, 0, 1, 1], [], []>} : vector<16x128xbf16>, vector<128x128xbf16>, vector<16x128xf32> -> vector<16x128xf32>
    %c0_61 = arith.constant 0 : index
    %c0_62 = arith.constant 0 : index
    %221 = vector.load %arg12[%c0_61, %c0_62] : memref<1x128xf32, #tpu.memory_space<vmem>>, vector<1x128xf32>
    %222 = vector.broadcast %221 : vector<1x128xf32> to vector<16x128xf32>
    %223 = arith.addf %220, %222 : vector<16x128xf32>
    %224 = arith.addf %2, %223 : vector<16x128xf32>
    %c0_63 = arith.constant 0 : index
    %c0_64 = arith.constant 0 : index
    %225 = vector.load %arg5[%c0_63, %c0_64] : memref<1x128xf32, #tpu.memory_space<vmem>>, vector<1x128xf32>
    %c0_65 = arith.constant 0 : index
    %c0_66 = arith.constant 0 : index
    %226 = vector.load %arg6[%c0_65, %c0_66] : memref<1x128xf32, #tpu.memory_space<vmem>>, vector<1x128xf32>
    %cst_67 = arith.constant dense<0.000000e+00> : vector<16xf32>
    %227 = vector.multi_reduction <add>, %224, %cst_67 [1] : vector<16x128xf32> to vector<16xf32>
    %228 = vector.shape_cast %227 : vector<16xf32> to vector<16x1xf32>
    %cst_68 = arith.constant 1.280000e+02 : f32
    %229 = vector.broadcast %cst_68 : f32 to vector<16x1xf32>
    %230 = arith.divf %228, %229 : vector<16x1xf32>
    %231 = vector.broadcast %230 : vector<16x1xf32> to vector<16x128xf32>
    %232 = arith.subf %224, %231 : vector<16x128xf32>
    %233 = arith.mulf %232, %232 : vector<16x128xf32>
    %cst_69 = arith.constant dense<0.000000e+00> : vector<16xf32>
    %234 = vector.multi_reduction <add>, %233, %cst_69 [1] : vector<16x128xf32> to vector<16xf32>
    %235 = vector.shape_cast %234 : vector<16xf32> to vector<16x1xf32>
    %cst_70 = arith.constant 1.280000e+02 : f32
    %236 = vector.broadcast %cst_70 : f32 to vector<16x1xf32>
    %237 = arith.divf %235, %236 : vector<16x1xf32>
    %238 = vector.broadcast %230 : vector<16x1xf32> to vector<16x128xf32>
    %239 = arith.subf %224, %238 : vector<16x128xf32>
    %cst_71 = arith.constant 9.99999974E-6 : f32
    %240 = vector.broadcast %cst_71 : f32 to vector<16x1xf32>
    %241 = arith.addf %237, %240 : vector<16x1xf32>
    %242 = math.rsqrt %241 : vector<16x1xf32>
    %243 = vector.broadcast %242 : vector<16x1xf32> to vector<16x128xf32>
    %244 = arith.mulf %239, %243 : vector<16x128xf32>
    %245 = vector.broadcast %225 : vector<1x128xf32> to vector<16x128xf32>
    %246 = arith.mulf %244, %245 : vector<16x128xf32>
    %247 = vector.broadcast %226 : vector<1x128xf32> to vector<16x128xf32>
    %248 = arith.addf %246, %247 : vector<16x128xf32>
    %249 = arith.truncf %248 : vector<16x128xf32> to vector<16x128xbf16>
    %c0_72 = arith.constant 0 : index
    %c0_73 = arith.constant 0 : index
    %250 = vector.load %arg13[%c0_72, %c0_73] : memref<128x128xbf16, #tpu.memory_space<vmem>>, vector<128x128xbf16>
    %cst_74 = arith.constant dense<0.000000e+00> : vector<16x128xf32>
    %251 = tpu.matmul %249, %250, %cst_74 {dimension_numbers = #tpu.dot_dimension_numbers<[1], [0], [0], [1], [0, 0, 1, 1], [], []>} : vector<16x128xbf16>, vector<128x128xbf16>, vector<16x128xf32> -> vector<16x128xf32>
    %c0_75 = arith.constant 0 : index
    %c0_76 = arith.constant 0 : index
    %252 = vector.load %arg14[%c0_75, %c0_76] : memref<1x128xf32, #tpu.memory_space<vmem>>, vector<1x128xf32>
    %253 = vector.broadcast %252 : vector<1x128xf32> to vector<16x128xf32>
    %254 = arith.addf %251, %253 : vector<16x128xf32>
    %c0_77 = arith.constant 0 : index
    %c0_78 = arith.constant 0 : index
    %255 = vector.load %arg15[%c0_77, %c0_78] : memref<128x256xbf16, #tpu.memory_space<vmem>>, vector<128x256xbf16>
    %cst_79 = arith.constant dense<0.000000e+00> : vector<32x256xf32>
    %256 = tpu.matmul %4, %255, %cst_79 {dimension_numbers = #tpu.dot_dimension_numbers<[1], [0], [0], [1], [0, 0, 1, 1], [], []>} : vector<32x128xbf16>, vector<128x256xbf16>, vector<32x256xf32> -> vector<32x256xf32>
    %c0_80 = arith.constant 0 : index
    %c0_81 = arith.constant 0 : index
    %257 = vector.load %arg16[%c0_80, %c0_81] : memref<1x256xf32, #tpu.memory_space<vmem>>, vector<1x256xf32>
    %258 = vector.broadcast %257 : vector<1x256xf32> to vector<32x256xf32>
    %259 = arith.addf %256, %258 : vector<32x256xf32>
    %260 = vector.extract_strided_slice %259 {offsets = [0, 0], sizes = [32, 128], strides = [1, 1]} : vector<32x256xf32> to vector<32x128xf32>
    %261 = vector.extract_strided_slice %259 {offsets = [0, 128], sizes = [32, 128], strides = [1, 1]} : vector<32x256xf32> to vector<32x128xf32>
    %262 = vector.extract_strided_slice %254 {offsets = [0, 0], sizes = [8, 128], strides = [1, 1]} : vector<16x128xf32> to vector<8x128xf32>
    %263 = vector.extract_strided_slice %260 {offsets = [0, 0], sizes = [16, 128], strides = [1, 1]} : vector<32x128xf32> to vector<16x128xf32>
    %264 = vector.extract_strided_slice %261 {offsets = [0, 0], sizes = [16, 128], strides = [1, 1]} : vector<32x128xf32> to vector<16x128xf32>
    %265 = vector.extract_strided_slice %262 {offsets = [0, 0], sizes = [8, 32], strides = [1, 1]} : vector<8x128xf32> to vector<8x32xf32>
    %266 = arith.truncf %265 : vector<8x32xf32> to vector<8x32xbf16>
    %267 = vector.extract_strided_slice %263 {offsets = [0, 0], sizes = [16, 32], strides = [1, 1]} : vector<16x128xf32> to vector<16x32xf32>
    %268 = arith.truncf %267 : vector<16x32xf32> to vector<16x32xbf16>
    %269 = vector.extract_strided_slice %264 {offsets = [0, 0], sizes = [16, 32], strides = [1, 1]} : vector<16x128xf32> to vector<16x32xf32>
    %270 = arith.truncf %269 : vector<16x32xf32> to vector<16x32xbf16>
    %cst_82 = arith.constant dense<0.000000e+00> : vector<8x16xf32>
    %271 = tpu.matmul %266, %268, %cst_82 {dimension_numbers = #tpu.dot_dimension_numbers<[1], [1], [0], [0], [0, 0, 1, 0], [], []>} : vector<8x32xbf16>, vector<16x32xbf16>, vector<8x16xf32> -> vector<8x16xf32>
    %cst_83 = arith.constant dense<0xFF800000> : vector<8xf32>
    %272 = vector.multi_reduction <maximumf>, %271, %cst_83 [1] : vector<8x16xf32> to vector<8xf32>
    %273 = vector.shape_cast %272 : vector<8xf32> to vector<8x1xf32>
    %274 = vector.broadcast %273 : vector<8x1xf32> to vector<8x16xf32>
    %275 = arith.subf %271, %274 : vector<8x16xf32>
    %276 = math.exp %275 : vector<8x16xf32>
    %cst_84 = arith.constant dense<0.000000e+00> : vector<8xf32>
    %277 = vector.multi_reduction <add>, %276, %cst_84 [1] : vector<8x16xf32> to vector<8xf32>
    %278 = vector.shape_cast %277 : vector<8xf32> to vector<8x1xf32>
    %279 = tpu.reciprocal %278 {approx = true} : vector<8x1xf32> -> vector<8x1xf32>
    %280 = vector.broadcast %279 : vector<8x1xf32> to vector<8x16xf32>
    %281 = arith.mulf %276, %280 : vector<8x16xf32>
    %282 = arith.truncf %281 : vector<8x16xf32> to vector<8x16xbf16>
    %cst_85 = arith.constant dense<0.000000e+00> : vector<8x32xf32>
    %283 = tpu.matmul %282, %270, %cst_85 {dimension_numbers = #tpu.dot_dimension_numbers<[1], [0], [0], [1], [0, 0, 1, 1], [], []>} : vector<8x16xbf16>, vector<16x32xbf16>, vector<8x32xf32> -> vector<8x32xf32>
    %284 = vector.extract_strided_slice %262 {offsets = [0, 32], sizes = [8, 32], strides = [1, 1]} : vector<8x128xf32> to vector<8x32xf32>
    %285 = arith.truncf %284 : vector<8x32xf32> to vector<8x32xbf16>
    %286 = vector.extract_strided_slice %263 {offsets = [0, 32], sizes = [16, 32], strides = [1, 1]} : vector<16x128xf32> to vector<16x32xf32>
    %287 = arith.truncf %286 : vector<16x32xf32> to vector<16x32xbf16>
    %288 = vector.extract_strided_slice %264 {offsets = [0, 32], sizes = [16, 32], strides = [1, 1]} : vector<16x128xf32> to vector<16x32xf32>
    %289 = arith.truncf %288 : vector<16x32xf32> to vector<16x32xbf16>
    %cst_86 = arith.constant dense<0.000000e+00> : vector<8x16xf32>
    %290 = tpu.matmul %285, %287, %cst_86 {dimension_numbers = #tpu.dot_dimension_numbers<[1], [1], [0], [0], [0, 0, 1, 0], [], []>} : vector<8x32xbf16>, vector<16x32xbf16>, vector<8x16xf32> -> vector<8x16xf32>
    %cst_87 = arith.constant dense<0xFF800000> : vector<8xf32>
    %291 = vector.multi_reduction <maximumf>, %290, %cst_87 [1] : vector<8x16xf32> to vector<8xf32>
    %292 = vector.shape_cast %291 : vector<8xf32> to vector<8x1xf32>
    %293 = vector.broadcast %292 : vector<8x1xf32> to vector<8x16xf32>
    %294 = arith.subf %290, %293 : vector<8x16xf32>
    %295 = math.exp %294 : vector<8x16xf32>
    %cst_88 = arith.constant dense<0.000000e+00> : vector<8xf32>
    %296 = vector.multi_reduction <add>, %295, %cst_88 [1] : vector<8x16xf32> to vector<8xf32>
    %297 = vector.shape_cast %296 : vector<8xf32> to vector<8x1xf32>
    %298 = tpu.reciprocal %297 {approx = true} : vector<8x1xf32> -> vector<8x1xf32>
    %299 = vector.broadcast %298 : vector<8x1xf32> to vector<8x16xf32>
    %300 = arith.mulf %295, %299 : vector<8x16xf32>
    %301 = arith.truncf %300 : vector<8x16xf32> to vector<8x16xbf16>
    %cst_89 = arith.constant dense<0.000000e+00> : vector<8x32xf32>
    %302 = tpu.matmul %301, %289, %cst_89 {dimension_numbers = #tpu.dot_dimension_numbers<[1], [0], [0], [1], [0, 0, 1, 1], [], []>} : vector<8x16xbf16>, vector<16x32xbf16>, vector<8x32xf32> -> vector<8x32xf32>
    %303 = vector.extract_strided_slice %262 {offsets = [0, 64], sizes = [8, 32], strides = [1, 1]} : vector<8x128xf32> to vector<8x32xf32>
    %304 = arith.truncf %303 : vector<8x32xf32> to vector<8x32xbf16>
    %305 = vector.extract_strided_slice %263 {offsets = [0, 64], sizes = [16, 32], strides = [1, 1]} : vector<16x128xf32> to vector<16x32xf32>
    %306 = arith.truncf %305 : vector<16x32xf32> to vector<16x32xbf16>
    %307 = vector.extract_strided_slice %264 {offsets = [0, 64], sizes = [16, 32], strides = [1, 1]} : vector<16x128xf32> to vector<16x32xf32>
    %308 = arith.truncf %307 : vector<16x32xf32> to vector<16x32xbf16>
    %cst_90 = arith.constant dense<0.000000e+00> : vector<8x16xf32>
    %309 = tpu.matmul %304, %306, %cst_90 {dimension_numbers = #tpu.dot_dimension_numbers<[1], [1], [0], [0], [0, 0, 1, 0], [], []>} : vector<8x32xbf16>, vector<16x32xbf16>, vector<8x16xf32> -> vector<8x16xf32>
    %cst_91 = arith.constant dense<0xFF800000> : vector<8xf32>
    %310 = vector.multi_reduction <maximumf>, %309, %cst_91 [1] : vector<8x16xf32> to vector<8xf32>
    %311 = vector.shape_cast %310 : vector<8xf32> to vector<8x1xf32>
    %312 = vector.broadcast %311 : vector<8x1xf32> to vector<8x16xf32>
    %313 = arith.subf %309, %312 : vector<8x16xf32>
    %314 = math.exp %313 : vector<8x16xf32>
    %cst_92 = arith.constant dense<0.000000e+00> : vector<8xf32>
    %315 = vector.multi_reduction <add>, %314, %cst_92 [1] : vector<8x16xf32> to vector<8xf32>
    %316 = vector.shape_cast %315 : vector<8xf32> to vector<8x1xf32>
    %317 = tpu.reciprocal %316 {approx = true} : vector<8x1xf32> -> vector<8x1xf32>
    %318 = vector.broadcast %317 : vector<8x1xf32> to vector<8x16xf32>
    %319 = arith.mulf %314, %318 : vector<8x16xf32>
    %320 = arith.truncf %319 : vector<8x16xf32> to vector<8x16xbf16>
    %cst_93 = arith.constant dense<0.000000e+00> : vector<8x32xf32>
    %321 = tpu.matmul %320, %308, %cst_93 {dimension_numbers = #tpu.dot_dimension_numbers<[1], [0], [0], [1], [0, 0, 1, 1], [], []>} : vector<8x16xbf16>, vector<16x32xbf16>, vector<8x32xf32> -> vector<8x32xf32>
    %322 = vector.extract_strided_slice %262 {offsets = [0, 96], sizes = [8, 32], strides = [1, 1]} : vector<8x128xf32> to vector<8x32xf32>
    %323 = arith.truncf %322 : vector<8x32xf32> to vector<8x32xbf16>
    %324 = vector.extract_strided_slice %263 {offsets = [0, 96], sizes = [16, 32], strides = [1, 1]} : vector<16x128xf32> to vector<16x32xf32>
    %325 = arith.truncf %324 : vector<16x32xf32> to vector<16x32xbf16>
    %326 = vector.extract_strided_slice %264 {offsets = [0, 96], sizes = [16, 32], strides = [1, 1]} : vector<16x128xf32> to vector<16x32xf32>
    %327 = arith.truncf %326 : vector<16x32xf32> to vector<16x32xbf16>
    %cst_94 = arith.constant dense<0.000000e+00> : vector<8x16xf32>
    %328 = tpu.matmul %323, %325, %cst_94 {dimension_numbers = #tpu.dot_dimension_numbers<[1], [1], [0], [0], [0, 0, 1, 0], [], []>} : vector<8x32xbf16>, vector<16x32xbf16>, vector<8x16xf32> -> vector<8x16xf32>
    %cst_95 = arith.constant dense<0xFF800000> : vector<8xf32>
    %329 = vector.multi_reduction <maximumf>, %328, %cst_95 [1] : vector<8x16xf32> to vector<8xf32>
    %330 = vector.shape_cast %329 : vector<8xf32> to vector<8x1xf32>
    %331 = vector.broadcast %330 : vector<8x1xf32> to vector<8x16xf32>
    %332 = arith.subf %328, %331 : vector<8x16xf32>
    %333 = math.exp %332 : vector<8x16xf32>
    %cst_96 = arith.constant dense<0.000000e+00> : vector<8xf32>
    %334 = vector.multi_reduction <add>, %333, %cst_96 [1] : vector<8x16xf32> to vector<8xf32>
    %335 = vector.shape_cast %334 : vector<8xf32> to vector<8x1xf32>
    %336 = tpu.reciprocal %335 {approx = true} : vector<8x1xf32> -> vector<8x1xf32>
    %337 = vector.broadcast %336 : vector<8x1xf32> to vector<8x16xf32>
    %338 = arith.mulf %333, %337 : vector<8x16xf32>
    %339 = arith.truncf %338 : vector<8x16xf32> to vector<8x16xbf16>
    %cst_97 = arith.constant dense<0.000000e+00> : vector<8x32xf32>
    %340 = tpu.matmul %339, %327, %cst_97 {dimension_numbers = #tpu.dot_dimension_numbers<[1], [0], [0], [1], [0, 0, 1, 1], [], []>} : vector<8x16xbf16>, vector<16x32xbf16>, vector<8x32xf32> -> vector<8x32xf32>
    %341 = tpu.concatenate %283, %302, %321, %340 in 1 : vector<8x32xf32>, vector<8x32xf32>, vector<8x32xf32>, vector<8x32xf32> -> vector<8x128xf32>
    %342 = vector.extract_strided_slice %254 {offsets = [8, 0], sizes = [8, 128], strides = [1, 1]} : vector<16x128xf32> to vector<8x128xf32>
    %343 = vector.extract_strided_slice %260 {offsets = [16, 0], sizes = [16, 128], strides = [1, 1]} : vector<32x128xf32> to vector<16x128xf32>
    %344 = vector.extract_strided_slice %261 {offsets = [16, 0], sizes = [16, 128], strides = [1, 1]} : vector<32x128xf32> to vector<16x128xf32>
    %345 = vector.extract_strided_slice %342 {offsets = [0, 0], sizes = [8, 32], strides = [1, 1]} : vector<8x128xf32> to vector<8x32xf32>
    %346 = arith.truncf %345 : vector<8x32xf32> to vector<8x32xbf16>
    %347 = vector.extract_strided_slice %343 {offsets = [0, 0], sizes = [16, 32], strides = [1, 1]} : vector<16x128xf32> to vector<16x32xf32>
    %348 = arith.truncf %347 : vector<16x32xf32> to vector<16x32xbf16>
    %349 = vector.extract_strided_slice %344 {offsets = [0, 0], sizes = [16, 32], strides = [1, 1]} : vector<16x128xf32> to vector<16x32xf32>
    %350 = arith.truncf %349 : vector<16x32xf32> to vector<16x32xbf16>
    %cst_98 = arith.constant dense<0.000000e+00> : vector<8x16xf32>
    %351 = tpu.matmul %346, %348, %cst_98 {dimension_numbers = #tpu.dot_dimension_numbers<[1], [1], [0], [0], [0, 0, 1, 0], [], []>} : vector<8x32xbf16>, vector<16x32xbf16>, vector<8x16xf32> -> vector<8x16xf32>
    %cst_99 = arith.constant dense<0xFF800000> : vector<8xf32>
    %352 = vector.multi_reduction <maximumf>, %351, %cst_99 [1] : vector<8x16xf32> to vector<8xf32>
    %353 = vector.shape_cast %352 : vector<8xf32> to vector<8x1xf32>
    %354 = vector.broadcast %353 : vector<8x1xf32> to vector<8x16xf32>
    %355 = arith.subf %351, %354 : vector<8x16xf32>
    %356 = math.exp %355 : vector<8x16xf32>
    %cst_100 = arith.constant dense<0.000000e+00> : vector<8xf32>
    %357 = vector.multi_reduction <add>, %356, %cst_100 [1] : vector<8x16xf32> to vector<8xf32>
    %358 = vector.shape_cast %357 : vector<8xf32> to vector<8x1xf32>
    %359 = tpu.reciprocal %358 {approx = true} : vector<8x1xf32> -> vector<8x1xf32>
    %360 = vector.broadcast %359 : vector<8x1xf32> to vector<8x16xf32>
    %361 = arith.mulf %356, %360 : vector<8x16xf32>
    %362 = arith.truncf %361 : vector<8x16xf32> to vector<8x16xbf16>
    %cst_101 = arith.constant dense<0.000000e+00> : vector<8x32xf32>
    %363 = tpu.matmul %362, %350, %cst_101 {dimension_numbers = #tpu.dot_dimension_numbers<[1], [0], [0], [1], [0, 0, 1, 1], [], []>} : vector<8x16xbf16>, vector<16x32xbf16>, vector<8x32xf32> -> vector<8x32xf32>
    %364 = vector.extract_strided_slice %342 {offsets = [0, 32], sizes = [8, 32], strides = [1, 1]} : vector<8x128xf32> to vector<8x32xf32>
    %365 = arith.truncf %364 : vector<8x32xf32> to vector<8x32xbf16>
    %366 = vector.extract_strided_slice %343 {offsets = [0, 32], sizes = [16, 32], strides = [1, 1]} : vector<16x128xf32> to vector<16x32xf32>
    %367 = arith.truncf %366 : vector<16x32xf32> to vector<16x32xbf16>
    %368 = vector.extract_strided_slice %344 {offsets = [0, 32], sizes = [16, 32], strides = [1, 1]} : vector<16x128xf32> to vector<16x32xf32>
    %369 = arith.truncf %368 : vector<16x32xf32> to vector<16x32xbf16>
    %cst_102 = arith.constant dense<0.000000e+00> : vector<8x16xf32>
    %370 = tpu.matmul %365, %367, %cst_102 {dimension_numbers = #tpu.dot_dimension_numbers<[1], [1], [0], [0], [0, 0, 1, 0], [], []>} : vector<8x32xbf16>, vector<16x32xbf16>, vector<8x16xf32> -> vector<8x16xf32>
    %cst_103 = arith.constant dense<0xFF800000> : vector<8xf32>
    %371 = vector.multi_reduction <maximumf>, %370, %cst_103 [1] : vector<8x16xf32> to vector<8xf32>
    %372 = vector.shape_cast %371 : vector<8xf32> to vector<8x1xf32>
    %373 = vector.broadcast %372 : vector<8x1xf32> to vector<8x16xf32>
    %374 = arith.subf %370, %373 : vector<8x16xf32>
    %375 = math.exp %374 : vector<8x16xf32>
    %cst_104 = arith.constant dense<0.000000e+00> : vector<8xf32>
    %376 = vector.multi_reduction <add>, %375, %cst_104 [1] : vector<8x16xf32> to vector<8xf32>
    %377 = vector.shape_cast %376 : vector<8xf32> to vector<8x1xf32>
    %378 = tpu.reciprocal %377 {approx = true} : vector<8x1xf32> -> vector<8x1xf32>
    %379 = vector.broadcast %378 : vector<8x1xf32> to vector<8x16xf32>
    %380 = arith.mulf %375, %379 : vector<8x16xf32>
    %381 = arith.truncf %380 : vector<8x16xf32> to vector<8x16xbf16>
    %cst_105 = arith.constant dense<0.000000e+00> : vector<8x32xf32>
    %382 = tpu.matmul %381, %369, %cst_105 {dimension_numbers = #tpu.dot_dimension_numbers<[1], [0], [0], [1], [0, 0, 1, 1], [], []>} : vector<8x16xbf16>, vector<16x32xbf16>, vector<8x32xf32> -> vector<8x32xf32>
    %383 = vector.extract_strided_slice %342 {offsets = [0, 64], sizes = [8, 32], strides = [1, 1]} : vector<8x128xf32> to vector<8x32xf32>
    %384 = arith.truncf %383 : vector<8x32xf32> to vector<8x32xbf16>
    %385 = vector.extract_strided_slice %343 {offsets = [0, 64], sizes = [16, 32], strides = [1, 1]} : vector<16x128xf32> to vector<16x32xf32>
    %386 = arith.truncf %385 : vector<16x32xf32> to vector<16x32xbf16>
    %387 = vector.extract_strided_slice %344 {offsets = [0, 64], sizes = [16, 32], strides = [1, 1]} : vector<16x128xf32> to vector<16x32xf32>
    %388 = arith.truncf %387 : vector<16x32xf32> to vector<16x32xbf16>
    %cst_106 = arith.constant dense<0.000000e+00> : vector<8x16xf32>
    %389 = tpu.matmul %384, %386, %cst_106 {dimension_numbers = #tpu.dot_dimension_numbers<[1], [1], [0], [0], [0, 0, 1, 0], [], []>} : vector<8x32xbf16>, vector<16x32xbf16>, vector<8x16xf32> -> vector<8x16xf32>
    %cst_107 = arith.constant dense<0xFF800000> : vector<8xf32>
    %390 = vector.multi_reduction <maximumf>, %389, %cst_107 [1] : vector<8x16xf32> to vector<8xf32>
    %391 = vector.shape_cast %390 : vector<8xf32> to vector<8x1xf32>
    %392 = vector.broadcast %391 : vector<8x1xf32> to vector<8x16xf32>
    %393 = arith.subf %389, %392 : vector<8x16xf32>
    %394 = math.exp %393 : vector<8x16xf32>
    %cst_108 = arith.constant dense<0.000000e+00> : vector<8xf32>
    %395 = vector.multi_reduction <add>, %394, %cst_108 [1] : vector<8x16xf32> to vector<8xf32>
    %396 = vector.shape_cast %395 : vector<8xf32> to vector<8x1xf32>
    %397 = tpu.reciprocal %396 {approx = true} : vector<8x1xf32> -> vector<8x1xf32>
    %398 = vector.broadcast %397 : vector<8x1xf32> to vector<8x16xf32>
    %399 = arith.mulf %394, %398 : vector<8x16xf32>
    %400 = arith.truncf %399 : vector<8x16xf32> to vector<8x16xbf16>
    %cst_109 = arith.constant dense<0.000000e+00> : vector<8x32xf32>
    %401 = tpu.matmul %400, %388, %cst_109 {dimension_numbers = #tpu.dot_dimension_numbers<[1], [0], [0], [1], [0, 0, 1, 1], [], []>} : vector<8x16xbf16>, vector<16x32xbf16>, vector<8x32xf32> -> vector<8x32xf32>
    %402 = vector.extract_strided_slice %342 {offsets = [0, 96], sizes = [8, 32], strides = [1, 1]} : vector<8x128xf32> to vector<8x32xf32>
    %403 = arith.truncf %402 : vector<8x32xf32> to vector<8x32xbf16>
    %404 = vector.extract_strided_slice %343 {offsets = [0, 96], sizes = [16, 32], strides = [1, 1]} : vector<16x128xf32> to vector<16x32xf32>
    %405 = arith.truncf %404 : vector<16x32xf32> to vector<16x32xbf16>
    %406 = vector.extract_strided_slice %344 {offsets = [0, 96], sizes = [16, 32], strides = [1, 1]} : vector<16x128xf32> to vector<16x32xf32>
    %407 = arith.truncf %406 : vector<16x32xf32> to vector<16x32xbf16>
    %cst_110 = arith.constant dense<0.000000e+00> : vector<8x16xf32>
    %408 = tpu.matmul %403, %405, %cst_110 {dimension_numbers = #tpu.dot_dimension_numbers<[1], [1], [0], [0], [0, 0, 1, 0], [], []>} : vector<8x32xbf16>, vector<16x32xbf16>, vector<8x16xf32> -> vector<8x16xf32>
    %cst_111 = arith.constant dense<0xFF800000> : vector<8xf32>
    %409 = vector.multi_reduction <maximumf>, %408, %cst_111 [1] : vector<8x16xf32> to vector<8xf32>
    %410 = vector.shape_cast %409 : vector<8xf32> to vector<8x1xf32>
    %411 = vector.broadcast %410 : vector<8x1xf32> to vector<8x16xf32>
    %412 = arith.subf %408, %411 : vector<8x16xf32>
    %413 = math.exp %412 : vector<8x16xf32>
    %cst_112 = arith.constant dense<0.000000e+00> : vector<8xf32>
    %414 = vector.multi_reduction <add>, %413, %cst_112 [1] : vector<8x16xf32> to vector<8xf32>
    %415 = vector.shape_cast %414 : vector<8xf32> to vector<8x1xf32>
    %416 = tpu.reciprocal %415 {approx = true} : vector<8x1xf32> -> vector<8x1xf32>
    %417 = vector.broadcast %416 : vector<8x1xf32> to vector<8x16xf32>
    %418 = arith.mulf %413, %417 : vector<8x16xf32>
    %419 = arith.truncf %418 : vector<8x16xf32> to vector<8x16xbf16>
    %cst_113 = arith.constant dense<0.000000e+00> : vector<8x32xf32>
    %420 = tpu.matmul %419, %407, %cst_113 {dimension_numbers = #tpu.dot_dimension_numbers<[1], [0], [0], [1], [0, 0, 1, 1], [], []>} : vector<8x16xbf16>, vector<16x32xbf16>, vector<8x32xf32> -> vector<8x32xf32>
    %421 = tpu.concatenate %363, %382, %401, %420 in 1 : vector<8x32xf32>, vector<8x32xf32>, vector<8x32xf32>, vector<8x32xf32> -> vector<8x128xf32>
    %422 = tpu.concatenate %341, %421 in 0 : vector<8x128xf32>, vector<8x128xf32> -> vector<16x128xf32>
    %423 = arith.truncf %422 : vector<16x128xf32> to vector<16x128xbf16>
    %c0_114 = arith.constant 0 : index
    %c0_115 = arith.constant 0 : index
    %424 = vector.load %arg17[%c0_114, %c0_115] : memref<128x128xbf16, #tpu.memory_space<vmem>>, vector<128x128xbf16>
    %cst_116 = arith.constant dense<0.000000e+00> : vector<16x128xf32>
    %425 = tpu.matmul %423, %424, %cst_116 {dimension_numbers = #tpu.dot_dimension_numbers<[1], [0], [0], [1], [0, 0, 1, 1], [], []>} : vector<16x128xbf16>, vector<128x128xbf16>, vector<16x128xf32> -> vector<16x128xf32>
    %c0_117 = arith.constant 0 : index
    %c0_118 = arith.constant 0 : index
    %426 = vector.load %arg18[%c0_117, %c0_118] : memref<1x128xf32, #tpu.memory_space<vmem>>, vector<1x128xf32>
    %427 = vector.broadcast %426 : vector<1x128xf32> to vector<16x128xf32>
    %428 = arith.addf %425, %427 : vector<16x128xf32>
    %429 = arith.addf %224, %428 : vector<16x128xf32>
    %c0_119 = arith.constant 0 : index
    %c0_120 = arith.constant 0 : index
    %430 = vector.load %arg7[%c0_119, %c0_120] : memref<1x128xf32, #tpu.memory_space<vmem>>, vector<1x128xf32>
    %c0_121 = arith.constant 0 : index
    %c0_122 = arith.constant 0 : index
    %431 = vector.load %arg8[%c0_121, %c0_122] : memref<1x128xf32, #tpu.memory_space<vmem>>, vector<1x128xf32>
    %cst_123 = arith.constant dense<0.000000e+00> : vector<16xf32>
    %432 = vector.multi_reduction <add>, %429, %cst_123 [1] : vector<16x128xf32> to vector<16xf32>
    %433 = vector.shape_cast %432 : vector<16xf32> to vector<16x1xf32>
    %cst_124 = arith.constant 1.280000e+02 : f32
    %434 = vector.broadcast %cst_124 : f32 to vector<16x1xf32>
    %435 = arith.divf %433, %434 : vector<16x1xf32>
    %436 = vector.broadcast %435 : vector<16x1xf32> to vector<16x128xf32>
    %437 = arith.subf %429, %436 : vector<16x128xf32>
    %438 = arith.mulf %437, %437 : vector<16x128xf32>
    %cst_125 = arith.constant dense<0.000000e+00> : vector<16xf32>
    %439 = vector.multi_reduction <add>, %438, %cst_125 [1] : vector<16x128xf32> to vector<16xf32>
    %440 = vector.shape_cast %439 : vector<16xf32> to vector<16x1xf32>
    %cst_126 = arith.constant 1.280000e+02 : f32
    %441 = vector.broadcast %cst_126 : f32 to vector<16x1xf32>
    %442 = arith.divf %440, %441 : vector<16x1xf32>
    %443 = vector.broadcast %435 : vector<16x1xf32> to vector<16x128xf32>
    %444 = arith.subf %429, %443 : vector<16x128xf32>
    %cst_127 = arith.constant 9.99999974E-6 : f32
    %445 = vector.broadcast %cst_127 : f32 to vector<16x1xf32>
    %446 = arith.addf %442, %445 : vector<16x1xf32>
    %447 = math.rsqrt %446 : vector<16x1xf32>
    %448 = vector.broadcast %447 : vector<16x1xf32> to vector<16x128xf32>
    %449 = arith.mulf %444, %448 : vector<16x128xf32>
    %450 = vector.broadcast %430 : vector<1x128xf32> to vector<16x128xf32>
    %451 = arith.mulf %449, %450 : vector<16x128xf32>
    %452 = vector.broadcast %431 : vector<1x128xf32> to vector<16x128xf32>
    %453 = arith.addf %451, %452 : vector<16x128xf32>
    %454 = arith.truncf %453 : vector<16x128xf32> to vector<16x128xbf16>
    %c0_128 = arith.constant 0 : index
    %c0_129 = arith.constant 0 : index
    %455 = vector.load %arg19[%c0_128, %c0_129] : memref<128x512xbf16, #tpu.memory_space<vmem>>, vector<128x512xbf16>
    %cst_130 = arith.constant dense<0.000000e+00> : vector<16x512xf32>
    %456 = tpu.matmul %454, %455, %cst_130 {dimension_numbers = #tpu.dot_dimension_numbers<[1], [0], [0], [1], [0, 0, 1, 1], [], []>} : vector<16x128xbf16>, vector<128x512xbf16>, vector<16x512xf32> -> vector<16x512xf32>
    %c0_131 = arith.constant 0 : index
    %c0_132 = arith.constant 0 : index
    %457 = vector.load %arg20[%c0_131, %c0_132] : memref<1x512xf32, #tpu.memory_space<vmem>>, vector<1x512xf32>
    %458 = vector.broadcast %457 : vector<1x512xf32> to vector<16x512xf32>
    %459 = arith.addf %456, %458 : vector<16x512xf32>
    %cst_133 = arith.constant 5.000000e-01 : f32
    %460 = vector.broadcast %cst_133 : f32 to vector<16x512xf32>
    %461 = arith.mulf %460, %459 : vector<16x512xf32>
    %cst_134 = arith.constant 4.471500e-02 : f32
    %462 = vector.broadcast %cst_134 : f32 to vector<16x512xf32>
    %463 = arith.mulf %462, %459 : vector<16x512xf32>
    %464 = arith.mulf %463, %459 : vector<16x512xf32>
    %465 = arith.mulf %464, %459 : vector<16x512xf32>
    %466 = arith.addf %459, %465 : vector<16x512xf32>
    %cst_135 = arith.constant 0.797884583 : f32
    %467 = vector.broadcast %cst_135 : f32 to vector<16x512xf32>
    %468 = arith.mulf %467, %466 : vector<16x512xf32>
    %469 = math.tanh %468 : vector<16x512xf32>
    %cst_136 = arith.constant 1.000000e+00 : f32
    %470 = vector.broadcast %cst_136 : f32 to vector<16x512xf32>
    %471 = arith.addf %470, %469 : vector<16x512xf32>
    %472 = arith.mulf %461, %471 : vector<16x512xf32>
    %473 = arith.truncf %472 : vector<16x512xf32> to vector<16x512xbf16>
    %c0_137 = arith.constant 0 : index
    %c0_138 = arith.constant 0 : index
    %474 = vector.load %arg21[%c0_137, %c0_138] : memref<512x128xbf16, #tpu.memory_space<vmem>>, vector<512x128xbf16>
    %cst_139 = arith.constant dense<0.000000e+00> : vector<16x128xf32>
    %475 = tpu.matmul %473, %474, %cst_139 {dimension_numbers = #tpu.dot_dimension_numbers<[1], [0], [0], [1], [0, 0, 1, 1], [], []>} : vector<16x512xbf16>, vector<512x128xbf16>, vector<16x128xf32> -> vector<16x128xf32>
    %c0_140 = arith.constant 0 : index
    %c0_141 = arith.constant 0 : index
    %476 = vector.load %arg22[%c0_140, %c0_141] : memref<1x128xf32, #tpu.memory_space<vmem>>, vector<1x128xf32>
    %477 = vector.broadcast %476 : vector<1x128xf32> to vector<16x128xf32>
    %478 = arith.addf %475, %477 : vector<16x128xf32>
    %479 = arith.addf %429, %478 : vector<16x128xf32>
    %480 = arith.addf %479, %2 : vector<16x128xf32>
    %481 = vector.shape_cast %480 : vector<16x128xf32> to vector<2x8x128xf32>
    %c0_142 = arith.constant 0 : index
    %c0_143 = arith.constant 0 : index
    %c0_144 = arith.constant 0 : index
    %482 = vector.load %arg23[%c0_142, %c0_143, %c0_144] : memref<2x8x128xf32, #tpu.memory_space<vmem>>, vector<2x8x128xf32>
    tpu.vector_store %arg23[%c0_142, %c0_143, %c0_144], %481 {strides = array<i32>} : memref<2x8x128xf32, #tpu.memory_space<vmem>>, vector<2x8x128xf32>,
    return
  }
  func.func @transform_0(%arg0: i32) -> (i32, i32, i32) {
    %c0_i32 = arith.constant 0 : i32
    %c0_i32_0 = arith.constant 0 : i32
    %c0_i32_1 = arith.constant 0 : i32
    return %arg0, %c0_i32, %c0_i32_0 : i32, i32, i32
  }
  func.func @transform_1(%arg0: i32) -> (i32, i32, i32) {
    %c0_i32 = arith.constant 0 : i32
    %c0_i32_0 = arith.constant 0 : i32
    %c0_i32_1 = arith.constant 0 : i32
    return %arg0, %c0_i32, %c0_i32_0 : i32, i32, i32
  }
  func.func @transform_2(%arg0: i32) -> (i32, i32) {
    %c0_i32 = arith.constant 0 : i32
    %c0_i32_0 = arith.constant 0 : i32
    %c0_i32_1 = arith.constant 0 : i32
    return %c0_i32, %c0_i32_0 : i32, i32
  }
  func.func @transform_3(%arg0: i32) -> (i32, i32) {
    %c0_i32 = arith.constant 0 : i32
    %c0_i32_0 = arith.constant 0 : i32
    %c0_i32_1 = arith.constant 0 : i32
    return %c0_i32, %c0_i32_0 : i32, i32
  }
  func.func @transform_4(%arg0: i32) -> (i32, i32) {
    %c0_i32 = arith.constant 0 : i32
    %c0_i32_0 = arith.constant 0 : i32
    %c0_i32_1 = arith.constant 0 : i32
    return %c0_i32, %c0_i32_0 : i32, i32
  }
  func.func @transform_5(%arg0: i32) -> (i32, i32) {
    %c0_i32 = arith.constant 0 : i32
    %c0_i32_0 = arith.constant 0 : i32
    %c0_i32_1 = arith.constant 0 : i32
    return %c0_i32, %c0_i32_0 : i32, i32
  }
  func.func @transform_6(%arg0: i32) -> (i32, i32) {
    %c0_i32 = arith.constant 0 : i32
    %c0_i32_0 = arith.constant 0 : i32
    %c0_i32_1 = arith.constant 0 : i32
    return %c0_i32, %c0_i32_0 : i32, i32
  }
  func.func @transform_7(%arg0: i32) -> (i32, i32) {
    %c0_i32 = arith.constant 0 : i32
    %c0_i32_0 = arith.constant 0 : i32
    %c0_i32_1 = arith.constant 0 : i32
    return %c0_i32, %c0_i32_0 : i32, i32
  }
  func.func @transform_8(%arg0: i32) -> (i32, i32) {
    %c0_i32 = arith.constant 0 : i32
    %c0_i32_0 = arith.constant 0 : i32
    %c0_i32_1 = arith.constant 0 : i32
    return %c0_i32, %c0_i32_0 : i32, i32
  }
  func.func @transform_9(%arg0: i32) -> (i32, i32) {
    %c0_i32 = arith.constant 0 : i32
    %c0_i32_0 = arith.constant 0 : i32
    %c0_i32_1 = arith.constant 0 : i32
    return %c0_i32, %c0_i32_0 : i32, i32
  }
  func.func @transform_10(%arg0: i32) -> (i32, i32) {
    %c0_i32 = arith.constant 0 : i32
    %c0_i32_0 = arith.constant 0 : i32
    %c0_i32_1 = arith.constant 0 : i32
    return %c0_i32, %c0_i32_0 : i32, i32
  }
  func.func @transform_11(%arg0: i32) -> (i32, i32) {
    %c0_i32 = arith.constant 0 : i32
    %c0_i32_0 = arith.constant 0 : i32
    %c0_i32_1 = arith.constant 0 : i32
    return %c0_i32, %c0_i32_0 : i32, i32
  }
  func.func @transform_12(%arg0: i32) -> (i32, i32) {
    %c0_i32 = arith.constant 0 : i32
    %c0_i32_0 = arith.constant 0 : i32
    %c0_i32_1 = arith.constant 0 : i32
    return %c0_i32, %c0_i32_0 : i32, i32
  }
  func.func @transform_13(%arg0: i32) -> (i32, i32) {
    %c0_i32 = arith.constant 0 : i32
    %c0_i32_0 = arith.constant 0 : i32
    %c0_i32_1 = arith.constant 0 : i32
    return %c0_i32, %c0_i32_0 : i32, i32
  }
  func.func @transform_14(%arg0: i32) -> (i32, i32) {
    %c0_i32 = arith.constant 0 : i32
    %c0_i32_0 = arith.constant 0 : i32
    %c0_i32_1 = arith.constant 0 : i32
    return %c0_i32, %c0_i32_0 : i32, i32
  }
  func.func @transform_15(%arg0: i32) -> (i32, i32) {
    %c0_i32 = arith.constant 0 : i32
    %c0_i32_0 = arith.constant 0 : i32
    %c0_i32_1 = arith.constant 0 : i32
    return %c0_i32, %c0_i32_0 : i32, i32
  }
  func.func @transform_16(%arg0: i32) -> (i32, i32) {
    %c0_i32 = arith.constant 0 : i32
    %c0_i32_0 = arith.constant 0 : i32
    %c0_i32_1 = arith.constant 0 : i32
    return %c0_i32, %c0_i32_0 : i32, i32
  }
  func.func @transform_17(%arg0: i32) -> (i32, i32) {
    %c0_i32 = arith.constant 0 : i32
    %c0_i32_0 = arith.constant 0 : i32
    %c0_i32_1 = arith.constant 0 : i32
    return %c0_i32, %c0_i32_0 : i32, i32
  }
  func.func @transform_18(%arg0: i32) -> (i32, i32) {
    %c0_i32 = arith.constant 0 : i32
    %c0_i32_0 = arith.constant 0 : i32
    %c0_i32_1 = arith.constant 0 : i32
    return %c0_i32, %c0_i32_0 : i32, i32
  }
  func.func @transform_19(%arg0: i32) -> (i32, i32) {
    %c0_i32 = arith.constant 0 : i32
    %c0_i32_0 = arith.constant 0 : i32
    %c0_i32_1 = arith.constant 0 : i32
    return %c0_i32, %c0_i32_0 : i32, i32
  }
  func.func @transform_20(%arg0: i32) -> (i32, i32) {
    %c0_i32 = arith.constant 0 : i32
    %c0_i32_0 = arith.constant 0 : i32
    %c0_i32_1 = arith.constant 0 : i32
    return %c0_i32, %c0_i32_0 : i32, i32
  }
  func.func @transform_21(%arg0: i32) -> (i32, i32) {
    %c0_i32 = arith.constant 0 : i32
    %c0_i32_0 = arith.constant 0 : i32
    %c0_i32_1 = arith.constant 0 : i32
    return %c0_i32, %c0_i32_0 : i32, i32
  }
  func.func @transform_22(%arg0: i32) -> (i32, i32, i32) {
    %c0_i32 = arith.constant 0 : i32
    %c0_i32_0 = arith.constant 0 : i32
    %c0_i32_1 = arith.constant 0 : i32
    return %arg0, %c0_i32, %c0_i32_0 : i32, i32, i32
  }
}

module attributes {stable_mosaic.version = 11 : i64} {
  func.func @gpt2_block_kernel(%arg0: i32, %arg1: memref<2x8x128xbf16, #tpu.memory_space<vmem>>, %arg2: memref<2x16x128xbf16, #tpu.memory_space<vmem>>, %arg3: memref<1x128xf32, #tpu.memory_space<vmem>>, %arg4: memref<1x128xf32, #tpu.memory_space<vmem>>, %arg5: memref<1x128xf32, #tpu.memory_space<vmem>>, %arg6: memref<1x128xf32, #tpu.memory_space<vmem>>, %arg7: memref<1x128xf32, #tpu.memory_space<vmem>>, %arg8: memref<1x128xf32, #tpu.memory_space<vmem>>, %arg9: memref<128x384xbf16, #tpu.memory_space<vmem>>, %arg10: memref<1x384xf32, #tpu.memory_space<vmem>>, %arg11: memref<128x128xbf16, #tpu.memory_space<vmem>>, %arg12: memref<1x128xf32, #tpu.memory_space<vmem>>, %arg13: memref<128x128xbf16, #tpu.memory_space<vmem>>, %arg14: memref<1x128xf32, #tpu.memory_space<vmem>>, %arg15: memref<128x256xbf16, #tpu.memory_space<vmem>>, %arg16: memref<1x256xf32, #tpu.memory_space<vmem>>, %arg17: memref<128x128xbf16, #tpu.memory_space<vmem>>, %arg18: memref<1x128xf32, #tpu.memory_space<vmem>>, %arg19: memref<128x512xbf16, #tpu.memory_space<vmem>>, %arg20: memref<1x512xf32, #tpu.memory_space<vmem>>, %arg21: memref<512x128xbf16, #tpu.memory_space<vmem>>, %arg22: memref<1x128xf32, #tpu.memory_space<vmem>>, %arg23: memref<2x8x128xf32, #tpu.memory_space<vmem>>) attributes {dimension_semantics = [#tpu.dimension_semantics<parallel>], iteration_bounds = array<i64: 1>, scalar_prefetch = 0 : i64, scratch_operands = 0 : i64, tpu.core_type = #tpu.core_type<tc>, window_params = [{transform_indices = @transform_0, window_bounds = array<i64: 2, 8, 128>}, {transform_indices = @transform_1, window_bounds = array<i64: 2, 16, 128>}, {pipeline_mode = #tpu.pipeline_mode<synchronous>, transform_indices = @transform_2, window_bounds = array<i64: 1, 128>}, {pipeline_mode = #tpu.pipeline_mode<synchronous>, transform_indices = @transform_3, window_bounds = array<i64: 1, 128>}, {pipeline_mode = #tpu.pipeline_mode<synchronous>, transform_indices = @transform_4, window_bounds = array<i64: 1, 128>}, {pipeline_mode = #tpu.pipeline_mode<synchronous>, transform_indices = @transform_5, window_bounds = array<i64: 1, 128>}, {pipeline_mode = #tpu.pipeline_mode<synchronous>, transform_indices = @transform_6, window_bounds = array<i64: 1, 128>}, {pipeline_mode = #tpu.pipeline_mode<synchronous>, transform_indices = @transform_7, window_bounds = array<i64: 1, 128>}, {pipeline_mode = #tpu.pipeline_mode<synchronous>, transform_indices = @transform_8, window_bounds = array<i64: 128, 384>}, {pipeline_mode = #tpu.pipeline_mode<synchronous>, transform_indices = @transform_9, window_bounds = array<i64: 1, 384>}, {pipeline_mode = #tpu.pipeline_mode<synchronous>, transform_indices = @transform_10, window_bounds = array<i64: 128, 128>}, {pipeline_mode = #tpu.pipeline_mode<synchronous>, transform_indices = @transform_11, window_bounds = array<i64: 1, 128>}, {pipeline_mode = #tpu.pipeline_mode<synchronous>, transform_indices = @transform_12, window_bounds = array<i64: 128, 128>}, {pipeline_mode = #tpu.pipeline_mode<synchronous>, transform_indices = @transform_13, window_bounds = array<i64: 1, 128>}, {pipeline_mode = #tpu.pipeline_mode<synchronous>, transform_indices = @transform_14, window_bounds = array<i64: 128, 256>}, {pipeline_mode = #tpu.pipeline_mode<synchronous>, transform_indices = @transform_15, window_bounds = array<i64: 1, 256>}, {pipeline_mode = #tpu.pipeline_mode<synchronous>, transform_indices = @transform_16, window_bounds = array<i64: 128, 128>}, {pipeline_mode = #tpu.pipeline_mode<synchronous>, transform_indices = @transform_17, window_bounds = array<i64: 1, 128>}, {pipeline_mode = #tpu.pipeline_mode<synchronous>, transform_indices = @transform_18, window_bounds = array<i64: 128, 512>}, {pipeline_mode = #tpu.pipeline_mode<synchronous>, transform_indices = @transform_19, window_bounds = array<i64: 1, 512>}, {pipeline_mode = #tpu.pipeline_mode<synchronous>, transform_indices = @transform_20, window_bounds = array<i64: 512, 128>}, {pipeline_mode = #tpu.pipeline_mode<synchronous>, transform_indices = @transform_21, window_bounds = array<i64: 1, 128>}, {transform_indices = @transform_22, window_bounds = array<i64: 2, 8, 128>}]} {
    %c0 = arith.constant 0 : index
    %c0_0 = arith.constant 0 : index
    %c0_1 = arith.constant 0 : index
    %0 = vector.load %arg1[%c0, %c0_0, %c0_1] : memref<2x8x128xbf16, #tpu.memory_space<vmem>>, vector<2x8x128xbf16>
    %1 = vector.shape_cast %0 : vector<2x8x128xbf16> to vector<16x128xbf16>
    %2 = arith.extf %1 : vector<16x128xbf16> to vector<16x128xf32>
    %c0_2 = arith.constant 0 : index
    %c0_3 = arith.constant 0 : index
    %c0_4 = arith.constant 0 : index
    %3 = vector.load %arg2[%c0_2, %c0_3, %c0_4] : memref<2x16x128xbf16, #tpu.memory_space<vmem>>, vector<2x16x128xbf16>
    %4 = vector.shape_cast %3 : vector<2x16x128xbf16> to vector<32x128xbf16>
    %c0_5 = arith.constant 0 : index
    %c0_6 = arith.constant 0 : index
    %5 = vector.load %arg3[%c0_5, %c0_6] : memref<1x128xf32, #tpu.memory_space<vmem>>, vector<1x128xf32>
    %c0_7 = arith.constant 0 : index
    %c0_8 = arith.constant 0 : index
    %6 = vector.load %arg4[%c0_7, %c0_8] : memref<1x128xf32, #tpu.memory_space<vmem>>, vector<1x128xf32>
    %cst = arith.constant dense<0.000000e+00> : vector<16xf32>
    %7 = vector.multi_reduction <add>, %2, %cst [1] : vector<16x128xf32> to vector<16xf32>
    %8 = vector.shape_cast %7 : vector<16xf32> to vector<16x1xf32>
    %cst_9 = arith.constant 1.280000e+02 : f32
    %9 = vector.broadcast %cst_9 : f32 to vector<16x1xf32>
    %10 = arith.divf %8, %9 : vector<16x1xf32>
    %11 = vector.broadcast %10 : vector<16x1xf32> to vector<16x128xf32>
    %12 = arith.subf %2, %11 : vector<16x128xf32>
    %13 = arith.mulf %12, %12 : vector<16x128xf32>
    %cst_10 = arith.constant dense<0.000000e+00> : vector<16xf32>
    %14 = vector.multi_reduction <add>, %13, %cst_10 [1] : vector<16x128xf32> to vector<16xf32>
    %15 = vector.shape_cast %14 : vector<16xf32> to vector<16x1xf32>
    %cst_11 = arith.constant 1.280000e+02 : f32
    %16 = vector.broadcast %cst_11 : f32 to vector<16x1xf32>
    %17 = arith.divf %15, %16 : vector<16x1xf32>
    %18 = vector.broadcast %10 : vector<16x1xf32> to vector<16x128xf32>
    %19 = arith.subf %2, %18 : vector<16x128xf32>
    %cst_12 = arith.constant 9.99999974E-6 : f32
    %20 = vector.broadcast %cst_12 : f32 to vector<16x1xf32>
    %21 = arith.addf %17, %20 : vector<16x1xf32>
    %22 = math.rsqrt %21 : vector<16x1xf32>
    %23 = vector.broadcast %22 : vector<16x1xf32> to vector<16x128xf32>
    %24 = arith.mulf %19, %23 : vector<16x128xf32>
    %25 = vector.broadcast %5 : vector<1x128xf32> to vector<16x128xf32>
    %26 = arith.mulf %24, %25 : vector<16x128xf32>
    %27 = vector.broadcast %6 : vector<1x128xf32> to vector<16x128xf32>
    %28 = arith.addf %26, %27 : vector<16x128xf32>
    %29 = arith.truncf %28 : vector<16x128xf32> to vector<16x128xbf16>
    %c0_13 = arith.constant 0 : index
    %c0_14 = arith.constant 0 : index
    %30 = vector.load %arg9[%c0_13, %c0_14] : memref<128x384xbf16, #tpu.memory_space<vmem>>, vector<128x384xbf16>
    %cst_15 = arith.constant dense<0.000000e+00> : vector<16x384xf32>
    %31 = tpu.matmul %29, %30, %cst_15 {dimension_numbers = #tpu.dot_dimension_numbers<[1], [0], [0], [1], [0, 0, 1, 1], [], []>} : vector<16x128xbf16>, vector<128x384xbf16>, vector<16x384xf32> -> vector<16x384xf32>
    %c0_16 = arith.constant 0 : index
    %c0_17 = arith.constant 0 : index
    %32 = vector.load %arg10[%c0_16, %c0_17] : memref<1x384xf32, #tpu.memory_space<vmem>>, vector<1x384xf32>
    %33 = vector.broadcast %32 : vector<1x384xf32> to vector<16x384xf32>
    %34 = arith.addf %31, %33 : vector<16x384xf32>
    %35 = vector.extract_strided_slice %34 {offsets = [0, 0], sizes = [16, 128], strides = [1, 1]} : vector<16x384xf32> to vector<16x128xf32>
    %36 = vector.extract_strided_slice %34 {offsets = [0, 128], sizes = [16, 128], strides = [1, 1]} : vector<16x384xf32> to vector<16x128xf32>
    %37 = vector.extract_strided_slice %34 {offsets = [0, 256], sizes = [16, 128], strides = [1, 1]} : vector<16x384xf32> to vector<16x128xf32>
    %38 = tpu.iota {dimensions = array<i32: 0>} : vector<8x8xi32>
    %39 = tpu.iota {dimensions = array<i32: 1>} : vector<8x8xi32>
    %40 = arith.cmpi sge, %38, %39 : vector<8x8xi32>
    %41 = vector.extract_strided_slice %35 {offsets = [0, 0], sizes = [8, 128], strides = [1, 1]} : vector<16x128xf32> to vector<8x128xf32>
    %42 = vector.extract_strided_slice %36 {offsets = [0, 0], sizes = [8, 128], strides = [1, 1]} : vector<16x128xf32> to vector<8x128xf32>
    %43 = vector.extract_strided_slice %37 {offsets = [0, 0], sizes = [8, 128], strides = [1, 1]} : vector<16x128xf32> to vector<8x128xf32>
    %44 = vector.extract_strided_slice %41 {offsets = [0, 0], sizes = [8, 32], strides = [1, 1]} : vector<8x128xf32> to vector<8x32xf32>
    %45 = arith.truncf %44 : vector<8x32xf32> to vector<8x32xbf16>
    %46 = vector.extract_strided_slice %42 {offsets = [0, 0], sizes = [8, 32], strides = [1, 1]} : vector<8x128xf32> to vector<8x32xf32>
    %47 = arith.truncf %46 : vector<8x32xf32> to vector<8x32xbf16>
    %48 = vector.extract_strided_slice %43 {offsets = [0, 0], sizes = [8, 32], strides = [1, 1]} : vector<8x128xf32> to vector<8x32xf32>
    %49 = arith.truncf %48 : vector<8x32xf32> to vector<8x32xbf16>
    %cst_18 = arith.constant dense<0.000000e+00> : vector<8x8xf32>
    %50 = tpu.matmul %45, %47, %cst_18 {dimension_numbers = #tpu.dot_dimension_numbers<[1], [1], [0], [0], [0, 0, 1, 0], [], []>} : vector<8x32xbf16>, vector<8x32xbf16>, vector<8x8xf32> -> vector<8x8xf32>
    %cst_19 = arith.constant -1.000000e+30 : f32
    %51 = vector.broadcast %cst_19 : f32 to vector<8x8xf32>
    %52 = arith.select %40, %50, %51 : vector<8x8xi1>, vector<8x8xf32>
    %cst_20 = arith.constant dense<0xFF800000> : vector<8xf32>
    %53 = vector.multi_reduction <maximumf>, %52, %cst_20 [1] : vector<8x8xf32> to vector<8xf32>
    %54 = vector.shape_cast %53 : vector<8xf32> to vector<8x1xf32>
    %55 = vector.broadcast %54 : vector<8x1xf32> to vector<8x8xf32>
    %56 = arith.subf %52, %55 : vector<8x8xf32>
    %57 = math.exp %56 : vector<8x8xf32>
    %cst_21 = arith.constant dense<0.000000e+00> : vector<8xf32>
    %58 = vector.multi_reduction <add>, %57, %cst_21 [1] : vector<8x8xf32> to vector<8xf32>
    %59 = vector.shape_cast %58 : vector<8xf32> to vector<8x1xf32>
    %60 = tpu.reciprocal %59 {approx = true} : vector<8x1xf32> -> vector<8x1xf32>
    %61 = vector.broadcast %60 : vector<8x1xf32> to vector<8x8xf32>
    %62 = arith.mulf %57, %61 : vector<8x8xf32>
    %63 = arith.truncf %62 : vector<8x8xf32> to vector<8x8xbf16>
    %cst_22 = arith.constant dense<0.000000e+00> : vector<8x32xf32>
    %64 = tpu.matmul %63, %49, %cst_22 {dimension_numbers = #tpu.dot_dimension_numbers<[1], [0], [0], [1], [0, 0, 1, 1], [], []>} : vector<8x8xbf16>, vector<8x32xbf16>, vector<8x32xf32> -> vector<8x32xf32>
    %65 = vector.extract_strided_slice %41 {offsets = [0, 32], sizes = [8, 32], strides = [1, 1]} : vector<8x128xf32> to vector<8x32xf32>
    %66 = arith.truncf %65 : vector<8x32xf32> to vector<8x32xbf16>
    %67 = vector.extract_strided_slice %42 {offsets = [0, 32], sizes = [8, 32], strides = [1, 1]} : vector<8x128xf32> to vector<8x32xf32>
    %68 = arith.truncf %67 : vector<8x32xf32> to vector<8x32xbf16>
    %69 = vector.extract_strided_slice %43 {offsets = [0, 32], sizes = [8, 32], strides = [1, 1]} : vector<8x128xf32> to vector<8x32xf32>
    %70 = arith.truncf %69 : vector<8x32xf32> to vector<8x32xbf16>
    %cst_23 = arith.constant dense<0.000000e+00> : vector<8x8xf32>
    %71 = tpu.matmul %66, %68, %cst_23 {dimension_numbers = #tpu.dot_dimension_numbers<[1], [1], [0], [0], [0, 0, 1, 0], [], []>} : vector<8x32xbf16>, vector<8x32xbf16>, vector<8x8xf32> -> vector<8x8xf32>
    %cst_24 = arith.constant -1.000000e+30 : f32
    %72 = vector.broadcast %cst_24 : f32 to vector<8x8xf32>
    %73 = arith.select %40, %71, %72 : vector<8x8xi1>, vector<8x8xf32>
    %cst_25 = arith.constant dense<0xFF800000> : vector<8xf32>
    %74 = vector.multi_reduction <maximumf>, %73, %cst_25 [1] : vector<8x8xf32> to vector<8xf32>
    %75 = vector.shape_cast %74 : vector<8xf32> to vector<8x1xf32>
    %76 = vector.broadcast %75 : vector<8x1xf32> to vector<8x8xf32>
    %77 = arith.subf %73, %76 : vector<8x8xf32>
    %78 = math.exp %77 : vector<8x8xf32>
    %cst_26 = arith.constant dense<0.000000e+00> : vector<8xf32>
    %79 = vector.multi_reduction <add>, %78, %cst_26 [1] : vector<8x8xf32> to vector<8xf32>
    %80 = vector.shape_cast %79 : vector<8xf32> to vector<8x1xf32>
    %81 = tpu.reciprocal %80 {approx = true} : vector<8x1xf32> -> vector<8x1xf32>
    %82 = vector.broadcast %81 : vector<8x1xf32> to vector<8x8xf32>
    %83 = arith.mulf %78, %82 : vector<8x8xf32>
    %84 = arith.truncf %83 : vector<8x8xf32> to vector<8x8xbf16>
    %cst_27 = arith.constant dense<0.000000e+00> : vector<8x32xf32>
    %85 = tpu.matmul %84, %70, %cst_27 {dimension_numbers = #tpu.dot_dimension_numbers<[1], [0], [0], [1], [0, 0, 1, 1], [], []>} : vector<8x8xbf16>, vector<8x32xbf16>, vector<8x32xf32> -> vector<8x32xf32>
    %86 = vector.extract_strided_slice %41 {offsets = [0, 64], sizes = [8, 32], strides = [1, 1]} : vector<8x128xf32> to vector<8x32xf32>
    %87 = arith.truncf %86 : vector<8x32xf32> to vector<8x32xbf16>
    %88 = vector.extract_strided_slice %42 {offsets = [0, 64], sizes = [8, 32], strides = [1, 1]} : vector<8x128xf32> to vector<8x32xf32>
    %89 = arith.truncf %88 : vector<8x32xf32> to vector<8x32xbf16>
    %90 = vector.extract_strided_slice %43 {offsets = [0, 64], sizes = [8, 32], strides = [1, 1]} : vector<8x128xf32> to vector<8x32xf32>
    %91 = arith.truncf %90 : vector<8x32xf32> to vector<8x32xbf16>
    %cst_28 = arith.constant dense<0.000000e+00> : vector<8x8xf32>
    %92 = tpu.matmul %87, %89, %cst_28 {dimension_numbers = #tpu.dot_dimension_numbers<[1], [1], [0], [0], [0, 0, 1, 0], [], []>} : vector<8x32xbf16>, vector<8x32xbf16>, vector<8x8xf32> -> vector<8x8xf32>
    %cst_29 = arith.constant -1.000000e+30 : f32
    %93 = vector.broadcast %cst_29 : f32 to vector<8x8xf32>
    %94 = arith.select %40, %92, %93 : vector<8x8xi1>, vector<8x8xf32>
    %cst_30 = arith.constant dense<0xFF800000> : vector<8xf32>
    %95 = vector.multi_reduction <maximumf>, %94, %cst_30 [1] : vector<8x8xf32> to vector<8xf32>
    %96 = vector.shape_cast %95 : vector<8xf32> to vector<8x1xf32>
    %97 = vector.broadcast %96 : vector<8x1xf32> to vector<8x8xf32>
    %98 = arith.subf %94, %97 : vector<8x8xf32>
    %99 = math.exp %98 : vector<8x8xf32>
    %cst_31 = arith.constant dense<0.000000e+00> : vector<8xf32>
    %100 = vector.multi_reduction <add>, %99, %cst_31 [1] : vector<8x8xf32> to vector<8xf32>
    %101 = vector.shape_cast %100 : vector<8xf32> to vector<8x1xf32>
    %102 = tpu.reciprocal %101 {approx = true} : vector<8x1xf32> -> vector<8x1xf32>
    %103 = vector.broadcast %102 : vector<8x1xf32> to vector<8x8xf32>
    %104 = arith.mulf %99, %103 : vector<8x8xf32>
    %105 = arith.truncf %104 : vector<8x8xf32> to vector<8x8xbf16>
    %cst_32 = arith.constant dense<0.000000e+00> : vector<8x32xf32>
    %106 = tpu.matmul %105, %91, %cst_32 {dimension_numbers = #tpu.dot_dimension_numbers<[1], [0], [0], [1], [0, 0, 1, 1], [], []>} : vector<8x8xbf16>, vector<8x32xbf16>, vector<8x32xf32> -> vector<8x32xf32>
    %107 = vector.extract_strided_slice %41 {offsets = [0, 96], sizes = [8, 32], strides = [1, 1]} : vector<8x128xf32> to vector<8x32xf32>
    %108 = arith.truncf %107 : vector<8x32xf32> to vector<8x32xbf16>
    %109 = vector.extract_strided_slice %42 {offsets = [0, 96], sizes = [8, 32], strides = [1, 1]} : vector<8x128xf32> to vector<8x32xf32>
    %110 = arith.truncf %109 : vector<8x32xf32> to vector<8x32xbf16>
    %111 = vector.extract_strided_slice %43 {offsets = [0, 96], sizes = [8, 32], strides = [1, 1]} : vector<8x128xf32> to vector<8x32xf32>
    %112 = arith.truncf %111 : vector<8x32xf32> to vector<8x32xbf16>
    %cst_33 = arith.constant dense<0.000000e+00> : vector<8x8xf32>
    %113 = tpu.matmul %108, %110, %cst_33 {dimension_numbers = #tpu.dot_dimension_numbers<[1], [1], [0], [0], [0, 0, 1, 0], [], []>} : vector<8x32xbf16>, vector<8x32xbf16>, vector<8x8xf32> -> vector<8x8xf32>
    %cst_34 = arith.constant -1.000000e+30 : f32
    %114 = vector.broadcast %cst_34 : f32 to vector<8x8xf32>
    %115 = arith.select %40, %113, %114 : vector<8x8xi1>, vector<8x8xf32>
    %cst_35 = arith.constant dense<0xFF800000> : vector<8xf32>
    %116 = vector.multi_reduction <maximumf>, %115, %cst_35 [1] : vector<8x8xf32> to vector<8xf32>
    %117 = vector.shape_cast %116 : vector<8xf32> to vector<8x1xf32>
    %118 = vector.broadcast %117 : vector<8x1xf32> to vector<8x8xf32>
    %119 = arith.subf %115, %118 : vector<8x8xf32>
    %120 = math.exp %119 : vector<8x8xf32>
    %cst_36 = arith.constant dense<0.000000e+00> : vector<8xf32>
    %121 = vector.multi_reduction <add>, %120, %cst_36 [1] : vector<8x8xf32> to vector<8xf32>
    %122 = vector.shape_cast %121 : vector<8xf32> to vector<8x1xf32>
    %123 = tpu.reciprocal %122 {approx = true} : vector<8x1xf32> -> vector<8x1xf32>
    %124 = vector.broadcast %123 : vector<8x1xf32> to vector<8x8xf32>
    %125 = arith.mulf %120, %124 : vector<8x8xf32>
    %126 = arith.truncf %125 : vector<8x8xf32> to vector<8x8xbf16>
    %cst_37 = arith.constant dense<0.000000e+00> : vector<8x32xf32>
    %127 = tpu.matmul %126, %112, %cst_37 {dimension_numbers = #tpu.dot_dimension_numbers<[1], [0], [0], [1], [0, 0, 1, 1], [], []>} : vector<8x8xbf16>, vector<8x32xbf16>, vector<8x32xf32> -> vector<8x32xf32>
    %128 = tpu.concatenate %64, %85, %106, %127 in 1 : vector<8x32xf32>, vector<8x32xf32>, vector<8x32xf32>, vector<8x32xf32> -> vector<8x128xf32>
    %129 = vector.extract_strided_slice %35 {offsets = [8, 0], sizes = [8, 128], strides = [1, 1]} : vector<16x128xf32> to vector<8x128xf32>
    %130 = vector.extract_strided_slice %36 {offsets = [8, 0], sizes = [8, 128], strides = [1, 1]} : vector<16x128xf32> to vector<8x128xf32>
    %131 = vector.extract_strided_slice %37 {offsets = [8, 0], sizes = [8, 128], strides = [1, 1]} : vector<16x128xf32> to vector<8x128xf32>
    %132 = vector.extract_strided_slice %129 {offsets = [0, 0], sizes = [8, 32], strides = [1, 1]} : vector<8x128xf32> to vector<8x32xf32>
    %133 = arith.truncf %132 : vector<8x32xf32> to vector<8x32xbf16>
    %134 = vector.extract_strided_slice %130 {offsets = [0, 0], sizes = [8, 32], strides = [1, 1]} : vector<8x128xf32> to vector<8x32xf32>
    %135 = arith.truncf %134 : vector<8x32xf32> to vector<8x32xbf16>
    %136 = vector.extract_strided_slice %131 {offsets = [0, 0], sizes = [8, 32], strides = [1, 1]} : vector<8x128xf32> to vector<8x32xf32>
    %137 = arith.truncf %136 : vector<8x32xf32> to vector<8x32xbf16>
    %cst_38 = arith.constant dense<0.000000e+00> : vector<8x8xf32>
    %138 = tpu.matmul %133, %135, %cst_38 {dimension_numbers = #tpu.dot_dimension_numbers<[1], [1], [0], [0], [0, 0, 1, 0], [], []>} : vector<8x32xbf16>, vector<8x32xbf16>, vector<8x8xf32> -> vector<8x8xf32>
    %cst_39 = arith.constant -1.000000e+30 : f32
    %139 = vector.broadcast %cst_39 : f32 to vector<8x8xf32>
    %140 = arith.select %40, %138, %139 : vector<8x8xi1>, vector<8x8xf32>
    %cst_40 = arith.constant dense<0xFF800000> : vector<8xf32>
    %141 = vector.multi_reduction <maximumf>, %140, %cst_40 [1] : vector<8x8xf32> to vector<8xf32>
    %142 = vector.shape_cast %141 : vector<8xf32> to vector<8x1xf32>
    %143 = vector.broadcast %142 : vector<8x1xf32> to vector<8x8xf32>
    %144 = arith.subf %140, %143 : vector<8x8xf32>
    %145 = math.exp %144 : vector<8x8xf32>
    %cst_41 = arith.constant dense<0.000000e+00> : vector<8xf32>
    %146 = vector.multi_reduction <add>, %145, %cst_41 [1] : vector<8x8xf32> to vector<8xf32>
    %147 = vector.shape_cast %146 : vector<8xf32> to vector<8x1xf32>
    %148 = tpu.reciprocal %147 {approx = true} : vector<8x1xf32> -> vector<8x1xf32>
    %149 = vector.broadcast %148 : vector<8x1xf32> to vector<8x8xf32>
    %150 = arith.mulf %145, %149 : vector<8x8xf32>
    %151 = arith.truncf %150 : vector<8x8xf32> to vector<8x8xbf16>
    %cst_42 = arith.constant dense<0.000000e+00> : vector<8x32xf32>
    %152 = tpu.matmul %151, %137, %cst_42 {dimension_numbers = #tpu.dot_dimension_numbers<[1], [0], [0], [1], [0, 0, 1, 1], [], []>} : vector<8x8xbf16>, vector<8x32xbf16>, vector<8x32xf32> -> vector<8x32xf32>
    %153 = vector.extract_strided_slice %129 {offsets = [0, 32], sizes = [8, 32], strides = [1, 1]} : vector<8x128xf32> to vector<8x32xf32>
    %154 = arith.truncf %153 : vector<8x32xf32> to vector<8x32xbf16>
    %155 = vector.extract_strided_slice %130 {offsets = [0, 32], sizes = [8, 32], strides = [1, 1]} : vector<8x128xf32> to vector<8x32xf32>
    %156 = arith.truncf %155 : vector<8x32xf32> to vector<8x32xbf16>
    %157 = vector.extract_strided_slice %131 {offsets = [0, 32], sizes = [8, 32], strides = [1, 1]} : vector<8x128xf32> to vector<8x32xf32>
    %158 = arith.truncf %157 : vector<8x32xf32> to vector<8x32xbf16>
    %cst_43 = arith.constant dense<0.000000e+00> : vector<8x8xf32>
    %159 = tpu.matmul %154, %156, %cst_43 {dimension_numbers = #tpu.dot_dimension_numbers<[1], [1], [0], [0], [0, 0, 1, 0], [], []>} : vector<8x32xbf16>, vector<8x32xbf16>, vector<8x8xf32> -> vector<8x8xf32>
    %cst_44 = arith.constant -1.000000e+30 : f32
    %160 = vector.broadcast %cst_44 : f32 to vector<8x8xf32>
    %161 = arith.select %40, %159, %160 : vector<8x8xi1>, vector<8x8xf32>
    %cst_45 = arith.constant dense<0xFF800000> : vector<8xf32>
    %162 = vector.multi_reduction <maximumf>, %161, %cst_45 [1] : vector<8x8xf32> to vector<8xf32>
    %163 = vector.shape_cast %162 : vector<8xf32> to vector<8x1xf32>
    %164 = vector.broadcast %163 : vector<8x1xf32> to vector<8x8xf32>
    %165 = arith.subf %161, %164 : vector<8x8xf32>
    %166 = math.exp %165 : vector<8x8xf32>
    %cst_46 = arith.constant dense<0.000000e+00> : vector<8xf32>
    %167 = vector.multi_reduction <add>, %166, %cst_46 [1] : vector<8x8xf32> to vector<8xf32>
    %168 = vector.shape_cast %167 : vector<8xf32> to vector<8x1xf32>
    %169 = tpu.reciprocal %168 {approx = true} : vector<8x1xf32> -> vector<8x1xf32>
    %170 = vector.broadcast %169 : vector<8x1xf32> to vector<8x8xf32>
    %171 = arith.mulf %166, %170 : vector<8x8xf32>
    %172 = arith.truncf %171 : vector<8x8xf32> to vector<8x8xbf16>
    %cst_47 = arith.constant dense<0.000000e+00> : vector<8x32xf32>
    %173 = tpu.matmul %172, %158, %cst_47 {dimension_numbers = #tpu.dot_dimension_numbers<[1], [0], [0], [1], [0, 0, 1, 1], [], []>} : vector<8x8xbf16>, vector<8x32xbf16>, vector<8x32xf32> -> vector<8x32xf32>
    %174 = vector.extract_strided_slice %129 {offsets = [0, 64], sizes = [8, 32], strides = [1, 1]} : vector<8x128xf32> to vector<8x32xf32>
    %175 = arith.truncf %174 : vector<8x32xf32> to vector<8x32xbf16>
    %176 = vector.extract_strided_slice %130 {offsets = [0, 64], sizes = [8, 32], strides = [1, 1]} : vector<8x128xf32> to vector<8x32xf32>
    %177 = arith.truncf %176 : vector<8x32xf32> to vector<8x32xbf16>
    %178 = vector.extract_strided_slice %131 {offsets = [0, 64], sizes = [8, 32], strides = [1, 1]} : vector<8x128xf32> to vector<8x32xf32>
    %179 = arith.truncf %178 : vector<8x32xf32> to vector<8x32xbf16>
    %cst_48 = arith.constant dense<0.000000e+00> : vector<8x8xf32>
    %180 = tpu.matmul %175, %177, %cst_48 {dimension_numbers = #tpu.dot_dimension_numbers<[1], [1], [0], [0], [0, 0, 1, 0], [], []>} : vector<8x32xbf16>, vector<8x32xbf16>, vector<8x8xf32> -> vector<8x8xf32>
    %cst_49 = arith.constant -1.000000e+30 : f32
    %181 = vector.broadcast %cst_49 : f32 to vector<8x8xf32>
    %182 = arith.select %40, %180, %181 : vector<8x8xi1>, vector<8x8xf32>
    %cst_50 = arith.constant dense<0xFF800000> : vector<8xf32>
    %183 = vector.multi_reduction <maximumf>, %182, %cst_50 [1] : vector<8x8xf32> to vector<8xf32>
    %184 = vector.shape_cast %183 : vector<8xf32> to vector<8x1xf32>
    %185 = vector.broadcast %184 : vector<8x1xf32> to vector<8x8xf32>
    %186 = arith.subf %182, %185 : vector<8x8xf32>
    %187 = math.exp %186 : vector<8x8xf32>
    %cst_51 = arith.constant dense<0.000000e+00> : vector<8xf32>
    %188 = vector.multi_reduction <add>, %187, %cst_51 [1] : vector<8x8xf32> to vector<8xf32>
    %189 = vector.shape_cast %188 : vector<8xf32> to vector<8x1xf32>
    %190 = tpu.reciprocal %189 {approx = true} : vector<8x1xf32> -> vector<8x1xf32>
    %191 = vector.broadcast %190 : vector<8x1xf32> to vector<8x8xf32>
    %192 = arith.mulf %187, %191 : vector<8x8xf32>
    %193 = arith.truncf %192 : vector<8x8xf32> to vector<8x8xbf16>
    %cst_52 = arith.constant dense<0.000000e+00> : vector<8x32xf32>
    %194 = tpu.matmul %193, %179, %cst_52 {dimension_numbers = #tpu.dot_dimension_numbers<[1], [0], [0], [1], [0, 0, 1, 1], [], []>} : vector<8x8xbf16>, vector<8x32xbf16>, vector<8x32xf32> -> vector<8x32xf32>
    %195 = vector.extract_strided_slice %129 {offsets = [0, 96], sizes = [8, 32], strides = [1, 1]} : vector<8x128xf32> to vector<8x32xf32>
    %196 = arith.truncf %195 : vector<8x32xf32> to vector<8x32xbf16>
    %197 = vector.extract_strided_slice %130 {offsets = [0, 96], sizes = [8, 32], strides = [1, 1]} : vector<8x128xf32> to vector<8x32xf32>
    %198 = arith.truncf %197 : vector<8x32xf32> to vector<8x32xbf16>
    %199 = vector.extract_strided_slice %131 {offsets = [0, 96], sizes = [8, 32], strides = [1, 1]} : vector<8x128xf32> to vector<8x32xf32>
    %200 = arith.truncf %199 : vector<8x32xf32> to vector<8x32xbf16>
    %cst_53 = arith.constant dense<0.000000e+00> : vector<8x8xf32>
    %201 = tpu.matmul %196, %198, %cst_53 {dimension_numbers = #tpu.dot_dimension_numbers<[1], [1], [0], [0], [0, 0, 1, 0], [], []>} : vector<8x32xbf16>, vector<8x32xbf16>, vector<8x8xf32> -> vector<8x8xf32>
    %cst_54 = arith.constant -1.000000e+30 : f32
    %202 = vector.broadcast %cst_54 : f32 to vector<8x8xf32>
    %203 = arith.select %40, %201, %202 : vector<8x8xi1>, vector<8x8xf32>
    %cst_55 = arith.constant dense<0xFF800000> : vector<8xf32>
    %204 = vector.multi_reduction <maximumf>, %203, %cst_55 [1] : vector<8x8xf32> to vector<8xf32>
    %205 = vector.shape_cast %204 : vector<8xf32> to vector<8x1xf32>
    %206 = vector.broadcast %205 : vector<8x1xf32> to vector<8x8xf32>
    %207 = arith.subf %203, %206 : vector<8x8xf32>
    %208 = math.exp %207 : vector<8x8xf32>
    %cst_56 = arith.constant dense<0.000000e+00> : vector<8xf32>
    %209 = vector.multi_reduction <add>, %208, %cst_56 [1] : vector<8x8xf32> to vector<8xf32>
    %210 = vector.shape_cast %209 : vector<8xf32> to vector<8x1xf32>
    %211 = tpu.reciprocal %210 {approx = true} : vector<8x1xf32> -> vector<8x1xf32>
    %212 = vector.broadcast %211 : vector<8x1xf32> to vector<8x8xf32>
    %213 = arith.mulf %208, %212 : vector<8x8xf32>
    %214 = arith.truncf %213 : vector<8x8xf32> to vector<8x8xbf16>
    %cst_57 = arith.constant dense<0.000000e+00> : vector<8x32xf32>
    %215 = tpu.matmul %214, %200, %cst_57 {dimension_numbers = #tpu.dot_dimension_numbers<[1], [0], [0], [1], [0, 0, 1, 1], [], []>} : vector<8x8xbf16>, vector<8x32xbf16>, vector<8x32xf32> -> vector<8x32xf32>
    %216 = tpu.concatenate %152, %173, %194, %215 in 1 : vector<8x32xf32>, vector<8x32xf32>, vector<8x32xf32>, vector<8x32xf32> -> vector<8x128xf32>
    %217 = tpu.concatenate %128, %216 in 0 : vector<8x128xf32>, vector<8x128xf32> -> vector<16x128xf32>
    %218 = arith.truncf %217 : vector<16x128xf32> to vector<16x128xbf16>
    %c0_58 = arith.constant 0 : index
    %c0_59 = arith.constant 0 : index
    %219 = vector.load %arg11[%c0_58, %c0_59] : memref<128x128xbf16, #tpu.memory_space<vmem>>, vector<128x128xbf16>
    %cst_60 = arith.constant dense<0.000000e+00> : vector<16x128xf32>
    %220 = tpu.matmul %218, %219, %cst_60 {dimension_numbers = #tpu.dot_dimension_numbers<[1], [0], [0], [1], [0, 0, 1, 1], [], []>} : vector<16x128xbf16>, vector<128x128xbf16>, vector<16x128xf32> -> vector<16x128xf32>
    %c0_61 = arith.constant 0 : index
    %c0_62 = arith.constant 0 : index
    %221 = vector.load %arg12[%c0_61, %c0_62] : memref<1x128xf32, #tpu.memory_space<vmem>>, vector<1x128xf32>
    %222 = vector.broadcast %221 : vector<1x128xf32> to vector<16x128xf32>
    %223 = arith.addf %220, %222 : vector<16x128xf32>
    %224 = arith.addf %2, %223 : vector<16x128xf32>
    %c0_63 = arith.constant 0 : index
    %c0_64 = arith.constant 0 : index
    %225 = vector.load %arg5[%c0_63, %c0_64] : memref<1x128xf32, #tpu.memory_space<vmem>>, vector<1x128xf32>
    %c0_65 = arith.constant 0 : index
    %c0_66 = arith.constant 0 : index
    %226 = vector.load %arg6[%c0_65, %c0_66] : memref<1x128xf32, #tpu.memory_space<vmem>>, vector<1x128xf32>
    %cst_67 = arith.constant dense<0.000000e+00> : vector<16xf32>
    %227 = vector.multi_reduction <add>, %224, %cst_67 [1] : vector<16x128xf32> to vector<16xf32>
    %228 = vector.shape_cast %227 : vector<16xf32> to vector<16x1xf32>
    %cst_68 = arith.constant 1.280000e+02 : f32
    %229 = vector.broadcast %cst_68 : f32 to vector<16x1xf32>
    %230 = arith.divf %228, %229 : vector<16x1xf32>
    %231 = vector.broadcast %230 : vector<16x1xf32> to vector<16x128xf32>
    %232 = arith.subf %224, %231 : vector<16x128xf32>
    %233 = arith.mulf %232, %232 : vector<16x128xf32>
    %cst_69 = arith.constant dense<0.000000e+00> : vector<16xf32>
    %234 = vector.multi_reduction <add>, %233, %cst_69 [1] : vector<16x128xf32> to vector<16xf32>
    %235 = vector.shape_cast %234 : vector<16xf32> to vector<16x1xf32>
    %cst_70 = arith.constant 1.280000e+02 : f32
    %236 = vector.broadcast %cst_70 : f32 to vector<16x1xf32>
    %237 = arith.divf %235, %236 : vector<16x1xf32>
    %238 = vector.broadcast %230 : vector<16x1xf32> to vector<16x128xf32>
    %239 = arith.subf %224, %238 : vector<16x128xf32>
    %cst_71 = arith.constant 9.99999974E-6 : f32
    %240 = vector.broadcast %cst_71 : f32 to vector<16x1xf32>
    %241 = arith.addf %237, %240 : vector<16x1xf32>
    %242 = math.rsqrt %241 : vector<16x1xf32>
    %243 = vector.broadcast %242 : vector<16x1xf32> to vector<16x128xf32>
    %244 = arith.mulf %239, %243 : vector<16x128xf32>
    %245 = vector.broadcast %225 : vector<1x128xf32> to vector<16x128xf32>
    %246 = arith.mulf %244, %245 : vector<16x128xf32>
    %247 = vector.broadcast %226 : vector<1x128xf32> to vector<16x128xf32>
    %248 = arith.addf %246, %247 : vector<16x128xf32>
    %249 = arith.truncf %248 : vector<16x128xf32> to vector<16x128xbf16>
    %c0_72 = arith.constant 0 : index
    %c0_73 = arith.constant 0 : index
    %250 = vector.load %arg13[%c0_72, %c0_73] : memref<128x128xbf16, #tpu.memory_space<vmem>>, vector<128x128xbf16>
    %cst_74 = arith.constant dense<0.000000e+00> : vector<16x128xf32>
    %251 = tpu.matmul %249, %250, %cst_74 {dimension_numbers = #tpu.dot_dimension_numbers<[1], [0], [0], [1], [0, 0, 1, 1], [], []>} : vector<16x128xbf16>, vector<128x128xbf16>, vector<16x128xf32> -> vector<16x128xf32>
    %c0_75 = arith.constant 0 : index
    %c0_76 = arith.constant 0 : index
    %252 = vector.load %arg14[%c0_75, %c0_76] : memref<1x128xf32, #tpu.memory_space<vmem>>, vector<1x128xf32>
    %253 = vector.broadcast %252 : vector<1x128xf32> to vector<16x128xf32>
    %254 = arith.addf %251, %253 : vector<16x128xf32>
    %c0_77 = arith.constant 0 : index
    %c0_78 = arith.constant 0 : index
    %255 = vector.load %arg15[%c0_77, %c0_78] : memref<128x256xbf16, #tpu.memory_space<vmem>>, vector<128x256xbf16>
    %cst_79 = arith.constant dense<0.000000e+00> : vector<32x256xf32>
    %256 = tpu.matmul %4, %255, %cst_79 {dimension_numbers = #tpu.dot_dimension_numbers<[1], [0], [0], [1], [0, 0, 1, 1], [], []>} : vector<32x128xbf16>, vector<128x256xbf16>, vector<32x256xf32> -> vector<32x256xf32>
    %c0_80 = arith.constant 0 : index
    %c0_81 = arith.constant 0 : index
    %257 = vector.load %arg16[%c0_80, %c0_81] : memref<1x256xf32, #tpu.memory_space<vmem>>, vector<1x256xf32>
    %258 = vector.broadcast %257 : vector<1x256xf32> to vector<32x256xf32>
    %259 = arith.addf %256, %258 : vector<32x256xf32>
    %260 = vector.extract_strided_slice %259 {offsets = [0, 0], sizes = [32, 128], strides = [1, 1]} : vector<32x256xf32> to vector<32x128xf32>
    %261 = vector.extract_strided_slice %259 {offsets = [0, 128], sizes = [32, 128], strides = [1, 1]} : vector<32x256xf32> to vector<32x128xf32>
    %262 = vector.extract_strided_slice %254 {offsets = [0, 0], sizes = [8, 128], strides = [1, 1]} : vector<16x128xf32> to vector<8x128xf32>
    %263 = vector.extract_strided_slice %260 {offsets = [0, 0], sizes = [16, 128], strides = [1, 1]} : vector<32x128xf32> to vector<16x128xf32>
    %264 = vector.extract_strided_slice %261 {offsets = [0, 0], sizes = [16, 128], strides = [1, 1]} : vector<32x128xf32> to vector<16x128xf32>
    %265 = vector.extract_strided_slice %262 {offsets = [0, 0], sizes = [8, 32], strides = [1, 1]} : vector<8x128xf32> to vector<8x32xf32>
    %266 = arith.truncf %265 : vector<8x32xf32> to vector<8x32xbf16>
    %267 = vector.extract_strided_slice %263 {offsets = [0, 0], sizes = [16, 32], strides = [1, 1]} : vector<16x128xf32> to vector<16x32xf32>
    %268 = arith.truncf %267 : vector<16x32xf32> to vector<16x32xbf16>
    %269 = vector.extract_strided_slice %264 {offsets = [0, 0], sizes = [16, 32], strides = [1, 1]} : vector<16x128xf32> to vector<16x32xf32>
    %270 = arith.truncf %269 : vector<16x32xf32> to vector<16x32xbf16>
    %cst_82 = arith.constant dense<0.000000e+00> : vector<8x16xf32>
    %271 = tpu.matmul %266, %268, %cst_82 {dimension_numbers = #tpu.dot_dimension_numbers<[1], [1], [0], [0], [0, 0, 1, 0], [], []>} : vector<8x32xbf16>, vector<16x32xbf16>, vector<8x16xf32> -> vector<8x16xf32>
    %cst_83 = arith.constant dense<0xFF800000> : vector<8xf32>
    %272 = vector.multi_reduction <maximumf>, %271, %cst_83 [1] : vector<8x16xf32> to vector<8xf32>
    %273 = vector.shape_cast %272 : vector<8xf32> to vector<8x1xf32>
    %274 = vector.broadcast %273 : vector<8x1xf32> to vector<8x16xf32>
    %275 = arith.subf %271, %274 : vector<8x16xf32>
    %276 = math.exp %275 : vector<8x16xf32>
    %cst_84 = arith.constant dense<0.000000e+00> : vector<8xf32>
    %277 = vector.multi_reduction <add>, %276, %cst_84 [1] : vector<8x16xf32> to vector<8xf32>
    %278 = vector.shape_cast %277 : vector<8xf32> to vector<8x1xf32>
    %279 = tpu.reciprocal %278 {approx = true} : vector<8x1xf32> -> vector<8x1xf32>
    %280 = vector.broadcast %279 : vector<8x1xf32> to vector<8x16xf32>
    %281 = arith.mulf %276, %280 : vector<8x16xf32>
    %282 = arith.truncf %281 : vector<8x16xf32> to vector<8x16xbf16>
    %cst_85 = arith.constant dense<0.000000e+00> : vector<8x32xf32>
    %283 = tpu.matmul %282, %270, %cst_85 {dimension_numbers = #tpu.dot_dimension_numbers<[1], [0], [0], [1], [0, 0, 1, 1], [], []>} : vector<8x16xbf16>, vector<16x32xbf16>, vector<8x32xf32> -> vector<8x32xf32>
    %284 = vector.extract_strided_slice %262 {offsets = [0, 32], sizes = [8, 32], strides = [1, 1]} : vector<8x128xf32> to vector<8x32xf32>
    %285 = arith.truncf %284 : vector<8x32xf32> to vector<8x32xbf16>
    %286 = vector.extract_strided_slice %263 {offsets = [0, 32], sizes = [16, 32], strides = [1, 1]} : vector<16x128xf32> to vector<16x32xf32>
    %287 = arith.truncf %286 : vector<16x32xf32> to vector<16x32xbf16>
    %288 = vector.extract_strided_slice %264 {offsets = [0, 32], sizes = [16, 32], strides = [1, 1]} : vector<16x128xf32> to vector<16x32xf32>
    %289 = arith.truncf %288 : vector<16x32xf32> to vector<16x32xbf16>
    %cst_86 = arith.constant dense<0.000000e+00> : vector<8x16xf32>
    %290 = tpu.matmul %285, %287, %cst_86 {dimension_numbers = #tpu.dot_dimension_numbers<[1], [1], [0], [0], [0, 0, 1, 0], [], []>} : vector<8x32xbf16>, vector<16x32xbf16>, vector<8x16xf32> -> vector<8x16xf32>
    %cst_87 = arith.constant dense<0xFF800000> : vector<8xf32>
    %291 = vector.multi_reduction <maximumf>, %290, %cst_87 [1] : vector<8x16xf32> to vector<8xf32>
    %292 = vector.shape_cast %291 : vector<8xf32> to vector<8x1xf32>
    %293 = vector.broadcast %292 : vector<8x1xf32> to vector<8x16xf32>
    %294 = arith.subf %290, %293 : vector<8x16xf32>
    %295 = math.exp %294 : vector<8x16xf32>
    %cst_88 = arith.constant dense<0.000000e+00> : vector<8xf32>
    %296 = vector.multi_reduction <add>, %295, %cst_88 [1] : vector<8x16xf32> to vector<8xf32>
    %297 = vector.shape_cast %296 : vector<8xf32> to vector<8x1xf32>
    %298 = tpu.reciprocal %297 {approx = true} : vector<8x1xf32> -> vector<8x1xf32>
    %299 = vector.broadcast %298 : vector<8x1xf32> to vector<8x16xf32>
    %300 = arith.mulf %295, %299 : vector<8x16xf32>
    %301 = arith.truncf %300 : vector<8x16xf32> to vector<8x16xbf16>
    %cst_89 = arith.constant dense<0.000000e+00> : vector<8x32xf32>
    %302 = tpu.matmul %301, %289, %cst_89 {dimension_numbers = #tpu.dot_dimension_numbers<[1], [0], [0], [1], [0, 0, 1, 1], [], []>} : vector<8x16xbf16>, vector<16x32xbf16>, vector<8x32xf32> -> vector<8x32xf32>
    %303 = vector.extract_strided_slice %262 {offsets = [0, 64], sizes = [8, 32], strides = [1, 1]} : vector<8x128xf32> to vector<8x32xf32>
    %304 = arith.truncf %303 : vector<8x32xf32> to vector<8x32xbf16>
    %305 = vector.extract_strided_slice %263 {offsets = [0, 64], sizes = [16, 32], strides = [1, 1]} : vector<16x128xf32> to vector<16x32xf32>
    %306 = arith.truncf %305 : vector<16x32xf32> to vector<16x32xbf16>
    %307 = vector.extract_strided_slice %264 {offsets = [0, 64], sizes = [16, 32], strides = [1, 1]} : vector<16x128xf32> to vector<16x32xf32>
    %308 = arith.truncf %307 : vector<16x32xf32> to vector<16x32xbf16>
    %cst_90 = arith.constant dense<0.000000e+00> : vector<8x16xf32>
    %309 = tpu.matmul %304, %306, %cst_90 {dimension_numbers = #tpu.dot_dimension_numbers<[1], [1], [0], [0], [0, 0, 1, 0], [], []>} : vector<8x32xbf16>, vector<16x32xbf16>, vector<8x16xf32> -> vector<8x16xf32>
    %cst_91 = arith.constant dense<0xFF800000> : vector<8xf32>
    %310 = vector.multi_reduction <maximumf>, %309, %cst_91 [1] : vector<8x16xf32> to vector<8xf32>
    %311 = vector.shape_cast %310 : vector<8xf32> to vector<8x1xf32>
    %312 = vector.broadcast %311 : vector<8x1xf32> to vector<8x16xf32>
    %313 = arith.subf %309, %312 : vector<8x16xf32>
    %314 = math.exp %313 : vector<8x16xf32>
    %cst_92 = arith.constant dense<0.000000e+00> : vector<8xf32>
    %315 = vector.multi_reduction <add>, %314, %cst_92 [1] : vector<8x16xf32> to vector<8xf32>
    %316 = vector.shape_cast %315 : vector<8xf32> to vector<8x1xf32>
    %317 = tpu.reciprocal %316 {approx = true} : vector<8x1xf32> -> vector<8x1xf32>
    %318 = vector.broadcast %317 : vector<8x1xf32> to vector<8x16xf32>
    %319 = arith.mulf %314, %318 : vector<8x16xf32>
    %320 = arith.truncf %319 : vector<8x16xf32> to vector<8x16xbf16>
    %cst_93 = arith.constant dense<0.000000e+00> : vector<8x32xf32>
    %321 = tpu.matmul %320, %308, %cst_93 {dimension_numbers = #tpu.dot_dimension_numbers<[1], [0], [0], [1], [0, 0, 1, 1], [], []>} : vector<8x16xbf16>, vector<16x32xbf16>, vector<8x32xf32> -> vector<8x32xf32>
    %322 = vector.extract_strided_slice %262 {offsets = [0, 96], sizes = [8, 32], strides = [1, 1]} : vector<8x128xf32> to vector<8x32xf32>
    %323 = arith.truncf %322 : vector<8x32xf32> to vector<8x32xbf16>
    %324 = vector.extract_strided_slice %263 {offsets = [0, 96], sizes = [16, 32], strides = [1, 1]} : vector<16x128xf32> to vector<16x32xf32>
    %325 = arith.truncf %324 : vector<16x32xf32> to vector<16x32xbf16>
    %326 = vector.extract_strided_slice %264 {offsets = [0, 96], sizes = [16, 32], strides = [1, 1]} : vector<16x128xf32> to vector<16x32xf32>
    %327 = arith.truncf %326 : vector<16x32xf32> to vector<16x32xbf16>
    %cst_94 = arith.constant dense<0.000000e+00> : vector<8x16xf32>
    %328 = tpu.matmul %323, %325, %cst_94 {dimension_numbers = #tpu.dot_dimension_numbers<[1], [1], [0], [0], [0, 0, 1, 0], [], []>} : vector<8x32xbf16>, vector<16x32xbf16>, vector<8x16xf32> -> vector<8x16xf32>
    %cst_95 = arith.constant dense<0xFF800000> : vector<8xf32>
    %329 = vector.multi_reduction <maximumf>, %328, %cst_95 [1] : vector<8x16xf32> to vector<8xf32>
    %330 = vector.shape_cast %329 : vector<8xf32> to vector<8x1xf32>
    %331 = vector.broadcast %330 : vector<8x1xf32> to vector<8x16xf32>
    %332 = arith.subf %328, %331 : vector<8x16xf32>
    %333 = math.exp %332 : vector<8x16xf32>
    %cst_96 = arith.constant dense<0.000000e+00> : vector<8xf32>
    %334 = vector.multi_reduction <add>, %333, %cst_96 [1] : vector<8x16xf32> to vector<8xf32>
    %335 = vector.shape_cast %334 : vector<8xf32> to vector<8x1xf32>
    %336 = tpu.reciprocal %335 {approx = true} : vector<8x1xf32> -> vector<8x1xf32>
    %337 = vector.broadcast %336 : vector<8x1xf32> to vector<8x16xf32>
    %338 = arith.mulf %333, %337 : vector<8x16xf32>
    %339 = arith.truncf %338 : vector<8x16xf32> to vector<8x16xbf16>
    %cst_97 = arith.constant dense<0.000000e+00> : vector<8x32xf32>
    %340 = tpu.matmul %339, %327, %cst_97 {dimension_numbers = #tpu.dot_dimension_numbers<[1], [0], [0], [1], [0, 0, 1, 1], [], []>} : vector<8x16xbf16>, vector<16x32xbf16>, vector<8x32xf32> -> vector<8x32xf32>
    %341 = tpu.concatenate %283, %302, %321, %340 in 1 : vector<8x32xf32>, vector<8x32xf32>, vector<8x32xf32>, vector<8x32xf32> -> vector<8x128xf32>
    %342 = vector.extract_strided_slice %254 {offsets = [8, 0], sizes = [8, 128], strides = [1, 1]} : vector<16x128xf32> to vector<8x128xf32>
    %343 = vector.extract_strided_slice %260 {offsets = [16, 0], sizes = [16, 128], strides = [1, 1]} : vector<32x128xf32> to vector<16x128xf32>
    %344 = vector.extract_strided_slice %261 {offsets = [16, 0], sizes = [16, 128], strides = [1, 1]} : vector<32x128xf32> to vector<16x128xf32>
    %345 = vector.extract_strided_slice %342 {offsets = [0, 0], sizes = [8, 32], strides = [1, 1]} : vector<8x128xf32> to vector<8x32xf32>
    %346 = arith.truncf %345 : vector<8x32xf32> to vector<8x32xbf16>
    %347 = vector.extract_strided_slice %343 {offsets = [0, 0], sizes = [16, 32], strides = [1, 1]} : vector<16x128xf32> to vector<16x32xf32>
    %348 = arith.truncf %347 : vector<16x32xf32> to vector<16x32xbf16>
    %349 = vector.extract_strided_slice %344 {offsets = [0, 0], sizes = [16, 32], strides = [1, 1]} : vector<16x128xf32> to vector<16x32xf32>
    %350 = arith.truncf %349 : vector<16x32xf32> to vector<16x32xbf16>
    %cst_98 = arith.constant dense<0.000000e+00> : vector<8x16xf32>
    %351 = tpu.matmul %346, %348, %cst_98 {dimension_numbers = #tpu.dot_dimension_numbers<[1], [1], [0], [0], [0, 0, 1, 0], [], []>} : vector<8x32xbf16>, vector<16x32xbf16>, vector<8x16xf32> -> vector<8x16xf32>
    %cst_99 = arith.constant dense<0xFF800000> : vector<8xf32>
    %352 = vector.multi_reduction <maximumf>, %351, %cst_99 [1] : vector<8x16xf32> to vector<8xf32>
    %353 = vector.shape_cast %352 : vector<8xf32> to vector<8x1xf32>
    %354 = vector.broadcast %353 : vector<8x1xf32> to vector<8x16xf32>
    %355 = arith.subf %351, %354 : vector<8x16xf32>
    %356 = math.exp %355 : vector<8x16xf32>
    %cst_100 = arith.constant dense<0.000000e+00> : vector<8xf32>
    %357 = vector.multi_reduction <add>, %356, %cst_100 [1] : vector<8x16xf32> to vector<8xf32>
    %358 = vector.shape_cast %357 : vector<8xf32> to vector<8x1xf32>
    %359 = tpu.reciprocal %358 {approx = true} : vector<8x1xf32> -> vector<8x1xf32>
    %360 = vector.broadcast %359 : vector<8x1xf32> to vector<8x16xf32>
    %361 = arith.mulf %356, %360 : vector<8x16xf32>
    %362 = arith.truncf %361 : vector<8x16xf32> to vector<8x16xbf16>
    %cst_101 = arith.constant dense<0.000000e+00> : vector<8x32xf32>
    %363 = tpu.matmul %362, %350, %cst_101 {dimension_numbers = #tpu.dot_dimension_numbers<[1], [0], [0], [1], [0, 0, 1, 1], [], []>} : vector<8x16xbf16>, vector<16x32xbf16>, vector<8x32xf32> -> vector<8x32xf32>
    %364 = vector.extract_strided_slice %342 {offsets = [0, 32], sizes = [8, 32], strides = [1, 1]} : vector<8x128xf32> to vector<8x32xf32>
    %365 = arith.truncf %364 : vector<8x32xf32> to vector<8x32xbf16>
    %366 = vector.extract_strided_slice %343 {offsets = [0, 32], sizes = [16, 32], strides = [1, 1]} : vector<16x128xf32> to vector<16x32xf32>
    %367 = arith.truncf %366 : vector<16x32xf32> to vector<16x32xbf16>
    %368 = vector.extract_strided_slice %344 {offsets = [0, 32], sizes = [16, 32], strides = [1, 1]} : vector<16x128xf32> to vector<16x32xf32>
    %369 = arith.truncf %368 : vector<16x32xf32> to vector<16x32xbf16>
    %cst_102 = arith.constant dense<0.000000e+00> : vector<8x16xf32>
    %370 = tpu.matmul %365, %367, %cst_102 {dimension_numbers = #tpu.dot_dimension_numbers<[1], [1], [0], [0], [0, 0, 1, 0], [], []>} : vector<8x32xbf16>, vector<16x32xbf16>, vector<8x16xf32> -> vector<8x16xf32>
    %cst_103 = arith.constant dense<0xFF800000> : vector<8xf32>
    %371 = vector.multi_reduction <maximumf>, %370, %cst_103 [1] : vector<8x16xf32> to vector<8xf32>
    %372 = vector.shape_cast %371 : vector<8xf32> to vector<8x1xf32>
    %373 = vector.broadcast %372 : vector<8x1xf32> to vector<8x16xf32>
    %374 = arith.subf %370, %373 : vector<8x16xf32>
    %375 = math.exp %374 : vector<8x16xf32>
    %cst_104 = arith.constant dense<0.000000e+00> : vector<8xf32>
    %376 = vector.multi_reduction <add>, %375, %cst_104 [1] : vector<8x16xf32> to vector<8xf32>
    %377 = vector.shape_cast %376 : vector<8xf32> to vector<8x1xf32>
    %378 = tpu.reciprocal %377 {approx = true} : vector<8x1xf32> -> vector<8x1xf32>
    %379 = vector.broadcast %378 : vector<8x1xf32> to vector<8x16xf32>
    %380 = arith.mulf %375, %379 : vector<8x16xf32>
    %381 = arith.truncf %380 : vector<8x16xf32> to vector<8x16xbf16>
    %cst_105 = arith.constant dense<0.000000e+00> : vector<8x32xf32>
    %382 = tpu.matmul %381, %369, %cst_105 {dimension_numbers = #tpu.dot_dimension_numbers<[1], [0], [0], [1], [0, 0, 1, 1], [], []>} : vector<8x16xbf16>, vector<16x32xbf16>, vector<8x32xf32> -> vector<8x32xf32>
    %383 = vector.extract_strided_slice %342 {offsets = [0, 64], sizes = [8, 32], strides = [1, 1]} : vector<8x128xf32> to vector<8x32xf32>
    %384 = arith.truncf %383 : vector<8x32xf32> to vector<8x32xbf16>
    %385 = vector.extract_strided_slice %343 {offsets = [0, 64], sizes = [16, 32], strides = [1, 1]} : vector<16x128xf32> to vector<16x32xf32>
    %386 = arith.truncf %385 : vector<16x32xf32> to vector<16x32xbf16>
    %387 = vector.extract_strided_slice %344 {offsets = [0, 64], sizes = [16, 32], strides = [1, 1]} : vector<16x128xf32> to vector<16x32xf32>
    %388 = arith.truncf %387 : vector<16x32xf32> to vector<16x32xbf16>
    %cst_106 = arith.constant dense<0.000000e+00> : vector<8x16xf32>
    %389 = tpu.matmul %384, %386, %cst_106 {dimension_numbers = #tpu.dot_dimension_numbers<[1], [1], [0], [0], [0, 0, 1, 0], [], []>} : vector<8x32xbf16>, vector<16x32xbf16>, vector<8x16xf32> -> vector<8x16xf32>
    %cst_107 = arith.constant dense<0xFF800000> : vector<8xf32>
    %390 = vector.multi_reduction <maximumf>, %389, %cst_107 [1] : vector<8x16xf32> to vector<8xf32>
    %391 = vector.shape_cast %390 : vector<8xf32> to vector<8x1xf32>
    %392 = vector.broadcast %391 : vector<8x1xf32> to vector<8x16xf32>
    %393 = arith.subf %389, %392 : vector<8x16xf32>
    %394 = math.exp %393 : vector<8x16xf32>
    %cst_108 = arith.constant dense<0.000000e+00> : vector<8xf32>
    %395 = vector.multi_reduction <add>, %394, %cst_108 [1] : vector<8x16xf32> to vector<8xf32>
    %396 = vector.shape_cast %395 : vector<8xf32> to vector<8x1xf32>
    %397 = tpu.reciprocal %396 {approx = true} : vector<8x1xf32> -> vector<8x1xf32>
    %398 = vector.broadcast %397 : vector<8x1xf32> to vector<8x16xf32>
    %399 = arith.mulf %394, %398 : vector<8x16xf32>
    %400 = arith.truncf %399 : vector<8x16xf32> to vector<8x16xbf16>
    %cst_109 = arith.constant dense<0.000000e+00> : vector<8x32xf32>
    %401 = tpu.matmul %400, %388, %cst_109 {dimension_numbers = #tpu.dot_dimension_numbers<[1], [0], [0], [1], [0, 0, 1, 1], [], []>} : vector<8x16xbf16>, vector<16x32xbf16>, vector<8x32xf32> -> vector<8x32xf32>
    %402 = vector.extract_strided_slice %342 {offsets = [0, 96], sizes = [8, 32], strides = [1, 1]} : vector<8x128xf32> to vector<8x32xf32>
    %403 = arith.truncf %402 : vector<8x32xf32> to vector<8x32xbf16>
    %404 = vector.extract_strided_slice %343 {offsets = [0, 96], sizes = [16, 32], strides = [1, 1]} : vector<16x128xf32> to vector<16x32xf32>
    %405 = arith.truncf %404 : vector<16x32xf32> to vector<16x32xbf16>
    %406 = vector.extract_strided_slice %344 {offsets = [0, 96], sizes = [16, 32], strides = [1, 1]} : vector<16x128xf32> to vector<16x32xf32>
    %407 = arith.truncf %406 : vector<16x32xf32> to vector<16x32xbf16>
    %cst_110 = arith.constant dense<0.000000e+00> : vector<8x16xf32>
    %408 = tpu.matmul %403, %405, %cst_110 {dimension_numbers = #tpu.dot_dimension_numbers<[1], [1], [0], [0], [0, 0, 1, 0], [], []>} : vector<8x32xbf16>, vector<16x32xbf16>, vector<8x16xf32> -> vector<8x16xf32>
    %cst_111 = arith.constant dense<0xFF800000> : vector<8xf32>
    %409 = vector.multi_reduction <maximumf>, %408, %cst_111 [1] : vector<8x16xf32> to vector<8xf32>
    %410 = vector.shape_cast %409 : vector<8xf32> to vector<8x1xf32>
    %411 = vector.broadcast %410 : vector<8x1xf32> to vector<8x16xf32>
    %412 = arith.subf %408, %411 : vector<8x16xf32>
    %413 = math.exp %412 : vector<8x16xf32>
    %cst_112 = arith.constant dense<0.000000e+00> : vector<8xf32>
    %414 = vector.multi_reduction <add>, %413, %cst_112 [1] : vector<8x16xf32> to vector<8xf32>
    %415 = vector.shape_cast %414 : vector<8xf32> to vector<8x1xf32>
    %416 = tpu.reciprocal %415 {approx = true} : vector<8x1xf32> -> vector<8x1xf32>
    %417 = vector.broadcast %416 : vector<8x1xf32> to vector<8x16xf32>
    %418 = arith.mulf %413, %417 : vector<8x16xf32>
    %419 = arith.truncf %418 : vector<8x16xf32> to vector<8x16xbf16>
    %cst_113 = arith.constant dense<0.000000e+00> : vector<8x32xf32>
    %420 = tpu.matmul %419, %407, %cst_113 {dimension_numbers = #tpu.dot_dimension_numbers<[1], [0], [0], [1], [0, 0, 1, 1], [], []>} : vector<8x16xbf16>, vector<16x32xbf16>, vector<8x32xf32> -> vector<8x32xf32>
    %421 = tpu.concatenate %363, %382, %401, %420 in 1 : vector<8x32xf32>, vector<8x32xf32>, vector<8x32xf32>, vector<8x32xf32> -> vector<8x128xf32>
    %422 = tpu.concatenate %341, %421 in 0 : vector<8x128xf32>, vector<8x128xf32> -> vector<16x128xf32>
    %423 = arith.truncf %422 : vector<16x128xf32> to vector<16x128xbf16>
    %c0_114 = arith.constant 0 : index
    %c0_115 = arith.constant 0 : index
    %424 = vector.load %arg17[%c0_114, %c0_115] : memref<128x128xbf16, #tpu.memory_space<vmem>>, vector<128x128xbf16>
    %cst_116 = arith.constant dense<0.000000e+00> : vector<16x128xf32>
    %425 = tpu.matmul %423, %424, %cst_116 {dimension_numbers = #tpu.dot_dimension_numbers<[1], [0], [0], [1], [0, 0, 1, 1], [], []>} : vector<16x128xbf16>, vector<128x128xbf16>, vector<16x128xf32> -> vector<16x128xf32>
    %c0_117 = arith.constant 0 : index
    %c0_118 = arith.constant 0 : index
    %426 = vector.load %arg18[%c0_117, %c0_118] : memref<1x128xf32, #tpu.memory_space<vmem>>, vector<1x128xf32>
    %427 = vector.broadcast %426 : vector<1x128xf32> to vector<16x128xf32>
    %428 = arith.addf %425, %427 : vector<16x128xf32>
    %429 = arith.addf %224, %428 : vector<16x128xf32>
    %c0_119 = arith.constant 0 : index
    %c0_120 = arith.constant 0 : index
    %430 = vector.load %arg7[%c0_119, %c0_120] : memref<1x128xf32, #tpu.memory_space<vmem>>, vector<1x128xf32>
    %c0_121 = arith.constant 0 : index
    %c0_122 = arith.constant 0 : index
    %431 = vector.load %arg8[%c0_121, %c0_122] : memref<1x128xf32, #tpu.memory_space<vmem>>, vector<1x128xf32>
    %cst_123 = arith.constant dense<0.000000e+00> : vector<16xf32>
    %432 = vector.multi_reduction <add>, %429, %cst_123 [1] : vector<16x128xf32> to vector<16xf32>
    %433 = vector.shape_cast %432 : vector<16xf32> to vector<16x1xf32>
    %cst_124 = arith.constant 1.280000e+02 : f32
    %434 = vector.broadcast %cst_124 : f32 to vector<16x1xf32>
    %435 = arith.divf %433, %434 : vector<16x1xf32>
    %436 = vector.broadcast %435 : vector<16x1xf32> to vector<16x128xf32>
    %437 = arith.subf %429, %436 : vector<16x128xf32>
    %438 = arith.mulf %437, %437 : vector<16x128xf32>
    %cst_125 = arith.constant dense<0.000000e+00> : vector<16xf32>
    %439 = vector.multi_reduction <add>, %438, %cst_125 [1] : vector<16x128xf32> to vector<16xf32>
    %440 = vector.shape_cast %439 : vector<16xf32> to vector<16x1xf32>
    %cst_126 = arith.constant 1.280000e+02 : f32
    %441 = vector.broadcast %cst_126 : f32 to vector<16x1xf32>
    %442 = arith.divf %440, %441 : vector<16x1xf32>
    %443 = vector.broadcast %435 : vector<16x1xf32> to vector<16x128xf32>
    %444 = arith.subf %429, %443 : vector<16x128xf32>
    %cst_127 = arith.constant 9.99999974E-6 : f32
    %445 = vector.broadcast %cst_127 : f32 to vector<16x1xf32>
    %446 = arith.addf %442, %445 : vector<16x1xf32>
    %447 = math.rsqrt %446 : vector<16x1xf32>
    %448 = vector.broadcast %447 : vector<16x1xf32> to vector<16x128xf32>
    %449 = arith.mulf %444, %448 : vector<16x128xf32>
    %450 = vector.broadcast %430 : vector<1x128xf32> to vector<16x128xf32>
    %451 = arith.mulf %449, %450 : vector<16x128xf32>
    %452 = vector.broadcast %431 : vector<1x128xf32> to vector<16x128xf32>
    %453 = arith.addf %451, %452 : vector<16x128xf32>
    %454 = arith.truncf %453 : vector<16x128xf32> to vector<16x128xbf16>
    %c0_128 = arith.constant 0 : index
    %c0_129 = arith.constant 0 : index
    %455 = vector.load %arg19[%c0_128, %c0_129] : memref<128x512xbf16, #tpu.memory_space<vmem>>, vector<128x512xbf16>
    %cst_130 = arith.constant dense<0.000000e+00> : vector<16x512xf32>
    %456 = tpu.matmul %454, %455, %cst_130 {dimension_numbers = #tpu.dot_dimension_numbers<[1], [0], [0], [1], [0, 0, 1, 1], [], []>} : vector<16x128xbf16>, vector<128x512xbf16>, vector<16x512xf32> -> vector<16x512xf32>
    %c0_131 = arith.constant 0 : index
    %c0_132 = arith.constant 0 : index
    %457 = vector.load %arg20[%c0_131, %c0_132] : memref<1x512xf32, #tpu.memory_space<vmem>>, vector<1x512xf32>
    %458 = vector.broadcast %457 : vector<1x512xf32> to vector<16x512xf32>
    %459 = arith.addf %456, %458 : vector<16x512xf32>
    %cst_133 = arith.constant 5.000000e-01 : f32
    %460 = vector.broadcast %cst_133 : f32 to vector<16x512xf32>
    %461 = arith.mulf %460, %459 : vector<16x512xf32>
    %cst_134 = arith.constant 4.471500e-02 : f32
    %462 = vector.broadcast %cst_134 : f32 to vector<16x512xf32>
    %463 = arith.mulf %462, %459 : vector<16x512xf32>
    %464 = arith.mulf %463, %459 : vector<16x512xf32>
    %465 = arith.mulf %464, %459 : vector<16x512xf32>
    %466 = arith.addf %459, %465 : vector<16x512xf32>
    %cst_135 = arith.constant 0.797884583 : f32
    %467 = vector.broadcast %cst_135 : f32 to vector<16x512xf32>
    %468 = arith.mulf %467, %466 : vector<16x512xf32>
    %469 = math.tanh %468 : vector<16x512xf32>
    %cst_136 = arith.constant 1.000000e+00 : f32
    %470 = vector.broadcast %cst_136 : f32 to vector<16x512xf32>
    %471 = arith.addf %470, %469 : vector<16x512xf32>
    %472 = arith.mulf %461, %471 : vector<16x512xf32>
    %473 = arith.truncf %472 : vector<16x512xf32> to vector<16x512xbf16>
    %c0_137 = arith.constant 0 : index
    %c0_138 = arith.constant 0 : index
    %474 = vector.load %arg21[%c0_137, %c0_138] : memref<512x128xbf16, #tpu.memory_space<vmem>>, vector<512x128xbf16>
    %cst_139 = arith.constant dense<0.000000e+00> : vector<16x128xf32>
    %475 = tpu.matmul %473, %474, %cst_139 {dimension_numbers = #tpu.dot_dimension_numbers<[1], [0], [0], [1], [0, 0, 1, 1], [], []>} : vector<16x512xbf16>, vector<512x128xbf16>, vector<16x128xf32> -> vector<16x128xf32>
    %c0_140 = arith.constant 0 : index
    %c0_141 = arith.constant 0 : index
    %476 = vector.load %arg22[%c0_140, %c0_141] : memref<1x128xf32, #tpu.memory_space<vmem>>, vector<1x128xf32>
    %477 = vector.broadcast %476 : vector<1x128xf32> to vector<16x128xf32>
    %478 = arith.addf %475, %477 : vector<16x128xf32>
    %479 = arith.addf %429, %478 : vector<16x128xf32>
    %480 = arith.addf %479, %2 : vector<16x128xf32>
    %481 = vector.shape_cast %480 : vector<16x128xf32> to vector<2x8x128xf32>
    %c0_142 = arith.constant 0 : index
    %c0_143 = arith.constant 0 : index
    %c0_144 = arith.constant 0 : index
    %482 = vector.load %arg23[%c0_142, %c0_143, %c0_144] : memref<2x8x128xf32, #tpu.memory_space<vmem>>, vector<2x8x128xf32>
    tpu.vector_store %arg23[%c0_142, %c0_143, %c0_144], %481 {strides = array<i32>} : memref<2x8x128xf32, #tpu.memory_space<vmem>>, vector<2x8x128xf32>,
    return
  }
  func.func @transform_0(%arg0: i32) -> (i32, i32, i32) {
    %c0_i32 = arith.constant 0 : i32
    %c0_i32_0 = arith.constant 0 : i32
    %c0_i32_1 = arith.constant 0 : i32
    return %arg0, %c0_i32, %c0_i32_0 : i32, i32, i32
  }
  func.func @transform_1(%arg0: i32) -> (i32, i32, i32) {
    %c0_i32 = arith.constant 0 : i32
    %c0_i32_0 = arith.constant 0 : i32
    %c0_i32_1 = arith.constant 0 : i32
    return %arg0, %c0_i32, %c0_i32_0 : i32, i32, i32
  }
  func.func @transform_2(%arg0: i32) -> (i32, i32) {
    %c0_i32 = arith.constant 0 : i32
    %c0_i32_0 = arith.constant 0 : i32
    %c0_i32_1 = arith.constant 0 : i32
    return %c0_i32, %c0_i32_0 : i32, i32
  }
  func.func @transform_3(%arg0: i32) -> (i32, i32) {
    %c0_i32 = arith.constant 0 : i32
    %c0_i32_0 = arith.constant 0 : i32
    %c0_i32_1 = arith.constant 0 : i32
    return %c0_i32, %c0_i32_0 : i32, i32
  }
  func.func @transform_4(%arg0: i32) -> (i32, i32) {
    %c0_i32 = arith.constant 0 : i32
    %c0_i32_0 = arith.constant 0 : i32
    %c0_i32_1 = arith.constant 0 : i32
    return %c0_i32, %c0_i32_0 : i32, i32
  }
  func.func @transform_5(%arg0: i32) -> (i32, i32) {
    %c0_i32 = arith.constant 0 : i32
    %c0_i32_0 = arith.constant 0 : i32
    %c0_i32_1 = arith.constant 0 : i32
    return %c0_i32, %c0_i32_0 : i32, i32
  }
  func.func @transform_6(%arg0: i32) -> (i32, i32) {
    %c0_i32 = arith.constant 0 : i32
    %c0_i32_0 = arith.constant 0 : i32
    %c0_i32_1 = arith.constant 0 : i32
    return %c0_i32, %c0_i32_0 : i32, i32
  }
  func.func @transform_7(%arg0: i32) -> (i32, i32) {
    %c0_i32 = arith.constant 0 : i32
    %c0_i32_0 = arith.constant 0 : i32
    %c0_i32_1 = arith.constant 0 : i32
    return %c0_i32, %c0_i32_0 : i32, i32
  }
  func.func @transform_8(%arg0: i32) -> (i32, i32) {
    %c0_i32 = arith.constant 0 : i32
    %c0_i32_0 = arith.constant 0 : i32
    %c0_i32_1 = arith.constant 0 : i32
    return %c0_i32, %c0_i32_0 : i32, i32
  }
  func.func @transform_9(%arg0: i32) -> (i32, i32) {
    %c0_i32 = arith.constant 0 : i32
    %c0_i32_0 = arith.constant 0 : i32
    %c0_i32_1 = arith.constant 0 : i32
    return %c0_i32, %c0_i32_0 : i32, i32
  }
  func.func @transform_10(%arg0: i32) -> (i32, i32) {
    %c0_i32 = arith.constant 0 : i32
    %c0_i32_0 = arith.constant 0 : i32
    %c0_i32_1 = arith.constant 0 : i32
    return %c0_i32, %c0_i32_0 : i32, i32
  }
  func.func @transform_11(%arg0: i32) -> (i32, i32) {
    %c0_i32 = arith.constant 0 : i32
    %c0_i32_0 = arith.constant 0 : i32
    %c0_i32_1 = arith.constant 0 : i32
    return %c0_i32, %c0_i32_0 : i32, i32
  }
  func.func @transform_12(%arg0: i32) -> (i32, i32) {
    %c0_i32 = arith.constant 0 : i32
    %c0_i32_0 = arith.constant 0 : i32
    %c0_i32_1 = arith.constant 0 : i32
    return %c0_i32, %c0_i32_0 : i32, i32
  }
  func.func @transform_13(%arg0: i32) -> (i32, i32) {
    %c0_i32 = arith.constant 0 : i32
    %c0_i32_0 = arith.constant 0 : i32
    %c0_i32_1 = arith.constant 0 : i32
    return %c0_i32, %c0_i32_0 : i32, i32
  }
  func.func @transform_14(%arg0: i32) -> (i32, i32) {
    %c0_i32 = arith.constant 0 : i32
    %c0_i32_0 = arith.constant 0 : i32
    %c0_i32_1 = arith.constant 0 : i32
    return %c0_i32, %c0_i32_0 : i32, i32
  }
  func.func @transform_15(%arg0: i32) -> (i32, i32) {
    %c0_i32 = arith.constant 0 : i32
    %c0_i32_0 = arith.constant 0 : i32
    %c0_i32_1 = arith.constant 0 : i32
    return %c0_i32, %c0_i32_0 : i32, i32
  }
  func.func @transform_16(%arg0: i32) -> (i32, i32) {
    %c0_i32 = arith.constant 0 : i32
    %c0_i32_0 = arith.constant 0 : i32
    %c0_i32_1 = arith.constant 0 : i32
    return %c0_i32, %c0_i32_0 : i32, i32
  }
  func.func @transform_17(%arg0: i32) -> (i32, i32) {
    %c0_i32 = arith.constant 0 : i32
    %c0_i32_0 = arith.constant 0 : i32
    %c0_i32_1 = arith.constant 0 : i32
    return %c0_i32, %c0_i32_0 : i32, i32
  }
  func.func @transform_18(%arg0: i32) -> (i32, i32) {
    %c0_i32 = arith.constant 0 : i32
    %c0_i32_0 = arith.constant 0 : i32
    %c0_i32_1 = arith.constant 0 : i32
    return %c0_i32, %c0_i32_0 : i32, i32
  }
  func.func @transform_19(%arg0: i32) -> (i32, i32) {
    %c0_i32 = arith.constant 0 : i32
    %c0_i32_0 = arith.constant 0 : i32
    %c0_i32_1 = arith.constant 0 : i32
    return %c0_i32, %c0_i32_0 : i32, i32
  }
  func.func @transform_20(%arg0: i32) -> (i32, i32) {
    %c0_i32 = arith.constant 0 : i32
    %c0_i32_0 = arith.constant 0 : i32
    %c0_i32_1 = arith.constant 0 : i32
    return %c0_i32, %c0_i32_0 : i32, i32
  }
  func.func @transform_21(%arg0: i32) -> (i32, i32) {
    %c0_i32 = arith.constant 0 : i32
    %c0_i32_0 = arith.constant 0 : i32
    %c0_i32_1 = arith.constant 0 : i32
    return %c0_i32, %c0_i32_0 : i32, i32
  }
  func.func @transform_22(%arg0: i32) -> (i32, i32, i32) {
    %c0_i32 = arith.constant 0 : i32
    %c0_i32_0 = arith.constant 0 : i32
    %c0_i32_1 = arith.constant 0 : i32
    return %arg0, %c0_i32, %c0_i32_0 : i32, i32, i32
  }
}

</mosaic_0001>

<bundles_post_ra>
// kernel: tpu_custom_call.1
= control target key start
LH: loop header
LB: loop body
LE: loop exit
PB: predicated region body
PF: predicated region fallthrough
CT: control target
= control target key end

     0   :  { %s5628_s0 = inlined_call_operand.hbm [shape: bf16[2,8,128], index: 0, kind: input, shape index: {}]   ;;  %s5629_s1 = inlined_call_operand.hbm [shape: bf16[2,16,128], index: 1, kind: input, shape index: {}]   ;;  %s5630_s2 = inlined_call_operand.hbm [shape: f32[1,128], index: 2, kind: input, shape index: {}]   ;;  %s5631_s3 = inlined_call_operand.hbm [shape: f32[1,128], index: 3, kind: input, shape index: {}]   ;;  %s5632_s4 = inlined_call_operand.hbm [shape: f32[1,128], index: 4, kind: input, shape index: {}]   ;;  %s5633_s5 = inlined_call_operand.hbm [shape: f32[1,128], index: 5, kind: input, shape index: {}]   ;;  %s5634_s6 = inlined_call_operand.vmem [shape: f32[1,128], index: 6, kind: input, shape index: {}]   ;;  %s5635_s7 = inlined_call_operand.vmem [shape: f32[1,128], index: 7, kind: input, shape index: {}]   ;;  %s5636_s8 = inlined_call_operand.hbm [shape: bf16[128,384], index: 8, kind: input, shape index: {}]   ;;  %s5637_s9 = inlined_call_operand.vmem [shape: f32[1,384], index: 9, kind: input, shape index: {}]   ;;  %s5638_s10 = inlined_call_operand.hbm [shape: bf16[128,128], index: 10, kind: input, shape index: {}]   ;;  %s5639_s11 = inlined_call_operand.vmem [shape: f32[1,128], index: 11, kind: input, shape index: {}]   ;;  %s5640_s12 = inlined_call_operand.hbm [shape: bf16[128,128], index: 12, kind: input, shape index: {}]   ;;  %s5641_s13 = inlined_call_operand.vmem [shape: f32[1,128], index: 13, kind: input, shape index: {}]   ;;  %s5642_s14 = inlined_call_operand.hbm [shape: bf16[128,256], index: 14, kind: input, shape index: {}]   ;;  %s5643_s15 = inlined_call_operand.vmem [shape: f32[1,256], index: 15, kind: input, shape index: {}]   ;;  %s5644_s16 = inlined_call_operand.hbm [shape: bf16[128,128], index: 16, kind: input, shape index: {}]   ;;  %s5645_s17 = inlined_call_operand.vmem [shape: f32[1,128], index: 17, kind: input, shape index: {}]   ;;  %s5646_s18 = inlined_call_operand.hbm [shape: bf16[128,512], index: 18, kind: input, shape index: {}]   ;;  %s5647_s19 = inlined_call_operand.vmem [shape: f32[1,512], index: 19, kind: input, shape index: {}]   ;;  %s5648_s20 = inlined_call_operand.hbm [shape: bf16[512,128], index: 20, kind: input, shape index: {}]   ;;  %s5649_s21 = inlined_call_operand.vmem [shape: f32[1,128], index: 21, kind: input, shape index: {}]   ;;  %s5650_s22 = inlined_call_operand.hbm [shape: f32[2,8,128], index: 22, kind: output, shape index: {}]  }
   0x1   :  { %5651 = sst [smem:[#allocation32_spill]] %s5628_s0 }
   0x2   :  { %5652 = sst [smem:[#allocation33_spill]] %s5629_s1 }
   0x3   :  { %5653 = sst [smem:[#allocation34_spill]] %s5630_s2 }
   0x4   :  { %5654 = sst [smem:[#allocation35_spill]] %s5631_s3 }
   0x5   :  { %5655 = sst [smem:[#allocation36_spill]] %s5632_s4 }
   0x6   :  { %5656 = sst [smem:[#allocation37_spill]] %s5633_s5 }
   0x7   :  { %5657 = sst [smem:[#allocation38_spill]] %s5634_s6 }
   0x8   :  { %5658 = sst [smem:[#allocation39_spill]] %s5650_s22 }
   0x9   :  { %27 = vsyncpa [#allocation3], 0 }
   0xa   :  { %28 = vsyncpa [#allocation6], 0 }
   0xb   :  { %29 = vsyncpa [#allocation9], 0 }
   0xc   :  { %30 = vsyncpa [#allocation12], 0 }
   0xd   :  { %31 = vsyncpa [#allocation15], 0 }
   0xe   :  { %32 = vsyncpa [#allocation18], 0 }
   0xf   :  { %33 = vsyncpa [#allocation21], 0 }
  0x10   :  { %34 = vsyncpa [#allocation4], 0  ;;  %s4919_s3 = smov [#allocation5]   ;;  %s4920_s29 = smov [#allocation8]  }
  0x11   :  { %s52_s28 = sshll.u32 %s4919_s3, 4  ;;  %s75_s30 = sshll.u32 %s4920_s29, 4  ;;  %s53_s28 = int_to_ptr.vmem [resolvable:$true] %s52_s28  ;;  %s76_s30 = int_to_ptr.vmem [resolvable:$true] %s75_s30 }
  0x12   :  { %s4631_s4 = scalar_lea.vmem %s53_s28, 256  ;;  %p4636_p1 = scmp.lt.s32.totalorder %s53_s28, %s53_s28 }
  0x13   :  { %p4632_p0 = scmp.ne.s32.totalorder %s53_s28, %s4631_s4  ;;  %p4637_p2 = scmp.lt.s32.totalorder %s4631_s4, %s4631_s4 }
  0x15   :  { %p4638_p3 = por %p4637_p2, %p4636_p1 }
  0x17   :  { %p4639_p4 = pnand %p4638_p3, %p4632_p0 }
  0x19   :  { %4642 = shalt.err (!%p4639_p4)
}
  0x1a   :  { %s4921_s0 = smov 64   ;;  %s4922_s23 = smov 4  }
  0x1b   :  { %s5659_s24 = sld [smem:[#allocation33_spill]]  ;;  %s4651_s6 = scalar_lea.vmem %s76_s30, 16 }
  0x1c   :  { %p4652_p5 = scmp.ne.s32.totalorder %s76_s30, %s4651_s6  ;;  %s4655_s25 = scalar_lea.vmem %s76_s30, 32 }
  0x1d   :  { %p4656_p6 = scmp.lt.s32.totalorder %s76_s30, %s76_s30  ;;  %p4657_p7 = scmp.lt.s32.totalorder %s4655_s25, %s4651_s6 }
  0x1f   :  { %p4658_p8 = por %p4657_p7, %p4656_p6 }
  0x21   :  { %58 = dma.hbm_to_vmem [thread:$0]  %s5659_s24, 256, %s53_s28, [#allocation6], %s4921_s0, %s4921_s0, %s4922_s23  }
  0x22   :  { %p4659_p9 = pnand %p4658_p8, %p4652_p5 }
  0x24   :  { %4662 = shalt.err (!%p4659_p9)
}
  0x25   :  { %s5660_s27 = sld [smem:[#allocation35_spill]]  ;;  %s4923_s3 = smov [#allocation11]  }
  0x26   :  { %s95_s29 = sshll.u32 %s4923_s3, 4  ;;  %s4924_s4 = smov [#allocation14]   ;;  %s96_s29 = int_to_ptr.vmem [resolvable:$true] %s95_s29 }
  0x27   :  { %s122_s22 = sshll.u32 %s4924_s4, 4  ;;  %s4671_s1 = scalar_lea.vmem %s96_s29, 16  ;;  %s123_s22 = int_to_ptr.vmem [resolvable:$true] %s122_s22 }
  0x28   :  { %p4672_p10 = scmp.ne.s32.totalorder %s96_s29, %s4671_s1  ;;  %s4675_s28 = scalar_lea.vmem %s96_s29, 32 }
  0x29   :  { %p4676_p11 = scmp.lt.s32.totalorder %s96_s29, %s96_s29  ;;  %p4677_p12 = scmp.lt.s32.totalorder %s4675_s28, %s4671_s1 }
  0x2b   :  { %78 = dma.hbm_to_vmem [thread:$0]  %s5660_s27, 16, %s76_s30, [#allocation9]  }
  0x2c   :  { %p4678_p13 = por %p4677_p12, %p4676_p11 }
  0x2e   :  { %p4679_p0 = pnand %p4678_p13, %p4672_p10 }
  0x30   :  { %4682 = shalt.err (!%p4679_p0)
}
  0x31   :  { %s5661_s6 = sld [smem:[#allocation37_spill]]  ;;  %s4691_s25 = scalar_lea.vmem %s123_s22, 1024 }
  0x32   :  { %p4692_p1 = scmp.ne.s32.totalorder %s123_s22, %s4691_s25  ;;  %p4696_p2 = scmp.lt.s32.totalorder %s123_s22, %s123_s22 }
  0x33   :  { %p4697_p3 = scmp.lt.s32.totalorder %s4691_s25, %s4691_s25 }
  0x35   :  { %p4698_p4 = por %p4697_p3, %p4696_p2 }
  0x37   :  { %98 = dma.hbm_to_vmem [thread:$0]  %s5661_s6, 16, %s96_s29, [#allocation12]  }
  0x38   :  { %p4699_p5 = pnand %p4698_p4, %p4692_p1 }
  0x3a   :  { %4702 = shalt.err (!%p4699_p5)
}
  0x3b   :  { %128 = dma.hbm_to_vmem [thread:$0]  %s5638_s10, 1024, %s123_s22, [#allocation15], %s4921_s0, %s4921_s0, %s4922_s23  }
  0x3c   :  { %s4925_s2 = smov [#allocation17]  }
  0x3d   :  { %s150_s27 = sshll.u32 %s4925_s2, 4  ;;  %s151_s27 = int_to_ptr.vmem [resolvable:$true] %s150_s27 }
  0x3e   :  { %s4711_s3 = scalar_lea.vmem %s151_s27, 2048  ;;  %p4716_p7 = scmp.lt.s32.totalorder %s151_s27, %s151_s27 }
  0x3f   :  { %p4712_p6 = scmp.ne.s32.totalorder %s151_s27, %s4711_s3  ;;  %p4717_p8 = scmp.lt.s32.totalorder %s4711_s3, %s4711_s3 }
  0x41   :  { %p4718_p9 = por %p4717_p8, %p4716_p7 }
  0x43   :  { %p4719_p10 = pnand %p4718_p9, %p4712_p6 }
  0x45   :  { %4722 = shalt.err (!%p4719_p10)
}
  0x46   :  { %s4926_s29 = smov 128   ;;  %s4927_s4 = smov 8  }
  0x47   :  { %156 = dma.hbm_to_vmem [thread:$0]  %s5642_s14, 2048, %s151_s27, [#allocation18], %s4926_s29, %s4926_s29, %s4927_s4  }
  0x48   :  { %s4928_s10 = smov [#allocation20]  }
  0x49   :  { %s178_s22 = sshll.u32 %s4928_s10, 4  ;;  %s179_s22 = int_to_ptr.vmem [resolvable:$true] %s178_s22 }
  0x4a   :  { %s4731_s5 = scalar_lea.vmem %s179_s22, 4096  ;;  %p4736_p12 = scmp.lt.s32.totalorder %s179_s22, %s179_s22 }
  0x4b   :  { %p4732_p11 = scmp.ne.s32.totalorder %s179_s22, %s4731_s5  ;;  %p4737_p13 = scmp.lt.s32.totalorder %s4731_s5, %s4731_s5 }
  0x4d   :  { %p4738_p0 = por %p4737_p13, %p4736_p12 }
  0x4f   :  { %p4739_p1 = pnand %p4738_p0, %p4732_p11 }
  0x51   :  { %4742 = shalt.err (!%p4739_p1)
}
  0x52   :  { %s4929_s24 = smov 256   ;;  %s4930_s6 = smov 16  }
  0x53   :  { %184 = dma.hbm_to_vmem [thread:$0]  %s5646_s18, 4096, %s179_s22, [#allocation21], %s4929_s24, %s4929_s24, %s4930_s6  }
  0x54   :  { %s4931_s26 = smov [#allocation2]   ;;  %s4932_s3 = smov [#allocation7]  }
  0x55   :  { %s40_s2 = sshll.u32 %s4931_s26, 4  ;;  %s65_s14 = sshll.u32 %s4932_s3, 4  ;;  %s41_s2 = int_to_ptr.vmem [resolvable:$true] %s40_s2  ;;  %s66_s14 = int_to_ptr.vmem [resolvable:$true] %s65_s14 }
  0x56   :  { %s4751_s27 = scalar_lea.vmem %s41_s2, 128  ;;  %p4756_p3 = scmp.lt.s32.totalorder %s41_s2, %s41_s2 }
  0x57   :  { %p4752_p2 = scmp.ne.s32.totalorder %s41_s2, %s4751_s27  ;;  %p4757_p4 = scmp.lt.s32.totalorder %s4751_s27, %s4751_s27 }
  0x59   :  { %p4758_p5 = por %p4757_p4, %p4756_p3 }
  0x5b   :  { %p4759_p6 = pnand %p4758_p5, %p4752_p2 }
  0x5d   :  { %4762 = shalt.err (!%p4759_p6)
}
  0x5e   :  { %s5662_s10 = sld [smem:[#allocation32_spill]]  ;;  %s4771_s18 = scalar_lea.vmem %s66_s14, 16 }
  0x5f   :  { %p4772_p7 = scmp.ne.s32.totalorder %s66_s14, %s4771_s18  ;;  %s4775_s22 = scalar_lea.vmem %s66_s14, 32 }
  0x60   :  { %p4776_p8 = scmp.lt.s32.totalorder %s66_s14, %s66_s14  ;;  %p4777_p9 = scmp.lt.s32.totalorder %s4775_s22, %s4771_s18 }
  0x62   :  { %p4778_p10 = por %p4777_p9, %p4776_p8 }
  0x64   :  { %46 = dma.hbm_to_vmem [thread:$0]  %s5662_s10, 128, %s41_s2, [#allocation3], %s4921_s0, %s4921_s0, %s4922_s23  }
  0x65   :  { %p4779_p11 = pnand %p4778_p10, %p4772_p7 }
  0x67   :  { %4782 = shalt.err (!%p4779_p11)
}
  0x68   :  { %s5663_s6 = sld [smem:[#allocation34_spill]]  ;;  %s4933_s25 = smov [#allocation10]  }
  0x69   :  { %s85_s30 = sshll.u32 %s4933_s25, 4  ;;  %s4934_s26 = smov [#allocation13]   ;;  %s86_s30 = int_to_ptr.vmem [resolvable:$true] %s85_s30 }
  0x6a   :  { %s108_s3 = sshll.u32 %s4934_s26, 4  ;;  %s4791_s27 = scalar_lea.vmem %s86_s30, 16  ;;  %s109_s3 = int_to_ptr.vmem [resolvable:$true] %s108_s3 }
  0x6b   :  { %p4792_p12 = scmp.ne.s32.totalorder %s86_s30, %s4791_s27  ;;  %s4795_s2 = scalar_lea.vmem %s86_s30, 32 }
  0x6c   :  { %p4796_p13 = scmp.lt.s32.totalorder %s86_s30, %s86_s30  ;;  %p4797_p0 = scmp.lt.s32.totalorder %s4795_s2, %s4791_s27 }
  0x6e   :  { %68 = dma.hbm_to_vmem [thread:$0]  %s5663_s6, 16, %s66_s14, [#allocation6]  }
  0x6f   :  { %p4798_p1 = por %p4797_p0, %p4796_p13 }
  0x71   :  { %p4799_p2 = pnand %p4798_p1, %p4792_p12 }
  0x73   :  { %4802 = shalt.err (!%p4799_p2)
}
  0x74   :  { %s5664_s10 = sld [smem:[#allocation36_spill]]  ;;  %s4811_s18 = scalar_lea.vmem %s109_s3, 3072 }
  0x75   :  { %p4812_p3 = scmp.ne.s32.totalorder %s109_s3, %s4811_s18  ;;  %p4816_p4 = scmp.lt.s32.totalorder %s109_s3, %s109_s3 }
  0x76   :  { %p4817_p5 = scmp.lt.s32.totalorder %s4811_s18, %s4811_s18 }
  0x78   :  { %p4818_p6 = por %p4817_p5, %p4816_p4 }
  0x7a   :  { %88 = dma.hbm_to_vmem [thread:$0]  %s5664_s10, 16, %s86_s30, [#allocation9]  }
  0x7b   :  { %p4819_p7 = pnand %p4818_p6, %p4812_p3 }
  0x7d   :  { %4822 = shalt.err (!%p4819_p7)
}
  0x7e   :  { %s4935_s14 = smov 192   ;;  %s4936_s22 = smov 12  }
  0x7f   :  { %114 = dma.hbm_to_vmem [thread:$0]  %s5636_s8, 3072, %s109_s3, [#allocation12], %s4935_s14, %s4935_s14, %s4936_s22  }
  0x80   :  { %s4937_s6 = smov [#allocation16]   ;;  %s4938_s26 = smov [#allocation19]  }
  0x81   :  { %s136_s25 = sshll.u32 %s4937_s6, 4  ;;  %s164_s27 = sshll.u32 %s4938_s26, 4  ;;  %s137_s25 = int_to_ptr.vmem [resolvable:$true] %s136_s25  ;;  %s165_s27 = int_to_ptr.vmem [resolvable:$true] %s164_s27 }
  0x82   :  { %s4831_s30 = scalar_lea.vmem %s137_s25, 1024  ;;  %p4836_p9 = scmp.lt.s32.totalorder %s137_s25, %s137_s25 }
  0x83   :  { %p4832_p8 = scmp.ne.s32.totalorder %s137_s25, %s4831_s30  ;;  %p4837_p10 = scmp.lt.s32.totalorder %s4831_s30, %s4831_s30 }
  0x85   :  { %p4838_p11 = por %p4837_p10, %p4836_p9 }
  0x87   :  { %p4839_p12 = pnand %p4838_p11, %p4832_p8 }
  0x89   :  { %4842 = shalt.err (!%p4839_p12)
}
  0x8a   :  { %142 = dma.hbm_to_vmem [thread:$0]  %s5640_s12, 1024, %s137_s25, [#allocation15], %s4921_s0, %s4921_s0, %s4922_s23  }
  0x8b   :  { %s4851_s8 = scalar_lea.vmem %s165_s27, 1024  ;;  %p4856_p0 = scmp.lt.s32.totalorder %s165_s27, %s165_s27 }
  0x8c   :  { %p4852_p13 = scmp.ne.s32.totalorder %s165_s27, %s4851_s8  ;;  %p4857_p1 = scmp.lt.s32.totalorder %s4851_s8, %s4851_s8 }
  0x8e   :  { %p4858_p2 = por %p4857_p1, %p4856_p0 }
  0x90   :  { %p4859_p3 = pnand %p4858_p2, %p4852_p13 }
  0x92   :  { %4862 = shalt.err (!%p4859_p3)
}
  0x93   :  { %170 = dma.hbm_to_vmem [thread:$0]  %s5644_s16, 1024, %s165_s27, [#allocation18], %s4921_s0, %s4921_s0, %s4922_s23  }
  0x94   :  { %s4939_s10 = smov [#allocation22]  }
  0x95   :  { %s192_s18 = sshll.u32 %s4939_s10, 4  ;;  %s193_s18 = int_to_ptr.vmem [resolvable:$true] %s192_s18 }
  0x96   :  { %s4871_s14 = scalar_lea.vmem %s193_s18, 4096  ;;  %p4876_p5 = scmp.lt.s32.totalorder %s193_s18, %s193_s18 }
  0x97   :  { %p4872_p4 = scmp.ne.s32.totalorder %s193_s18, %s4871_s14  ;;  %p4877_p6 = scmp.lt.s32.totalorder %s4871_s14, %s4871_s14 }
  0x99   :  { %p4878_p7 = por %p4877_p6, %p4876_p5 }
  0x9b   :  { %p4879_p8 = pnand %p4878_p7, %p4872_p4 }
  0x9d   :  { %4882 = shalt.err (!%p4879_p8)
}
  0x9e   :  { %198 = dma.hbm_to_vmem [thread:$0]  %s5648_s20, 4096, %s193_s18, [#allocation21], %s4921_s0, %s4921_s0, %s4922_s23  }
  0x9f   :  { %4903 = dma.done.wait [#allocation3], 128  }
  0xa0   :  { %4904 = vsyncadd [#allocation3], 4294967168 }
  0xa1   :  { %4905 = dma.done.wait [#allocation6], 272  }
  0xa2   :  { %4906 = vsyncadd [#allocation6], 4294967024 }
  0xa3   :  { %4907 = dma.done.wait [#allocation9], 32  }
  0xa4   :  { %4908 = vsyncadd [#allocation9], 4294967264 }
  0xa5   :  { %4909 = dma.done.wait [#allocation12], 3088  }
  0xa6   :  { %4910 = vsyncadd [#allocation12], 4294964208 }
  0xa7   :  { %4911 = dma.done.wait [#allocation15], 2048  }
  0xa8   :  { %4912 = vsyncadd [#allocation15], 4294965248 }
  0xa9   :  { %4913 = dma.done.wait [#allocation18], 3072  }
  0xaa   :  { %4914 = vsyncadd [#allocation18], 4294964224 }
  0xab   :  { %4915 = dma.done.wait [#allocation21], 8192  }
  0xac   :  { %4916 = vsyncadd [#allocation21], 4294959104  ;;  %v3893_v0 = vld [vmem:[#allocation2] sm:$0xff]   ;;  %v4369_v3 = vld [vmem:[#allocation13 + $0xac] ss:$12 sps:$4 sm:$0xff]   ;;  %v4940_v5 = vmov 0.0   ;;  %v325_v54 = vlaneseq }
  0xad   :  { %v5121_v1 = vunpack.c.l.bf16 %v3893_v0  ;;  %v5124_v2 = vunpack.c.h.bf16 %v3893_v0  ;;  %v4371_v4 = vld [vmem:[#allocation13 + $0xa8] ss:$12 sps:$4 sm:$0xff]   ;;  %4040 = vmatprep.subr.bf16.mxu1 %v4940_v5  ;;  %v4372_v6 = vld [vmem:[#allocation13 + $0xb0] ss:$12 sps:$4 sm:$0xff]   ;;  %468 = vmatprep.subr.bf16.mxu0 %v4369_v3  ;;  %v4376_v17 = vld [vmem:[#allocation13 + $0x98] ss:$12 sps:$4 sm:$0xff]  }
  0xae   :  { %469 = vmatpush1.bf16.msra.mxu0 %v4371_v4  ;;  %4041 = vmatpush3.bf16.msra.mxu1 %v4372_v6  ;;  %v4373_v15 = vld [vmem:[#allocation13 + $0x94] ss:$12 sps:$4 sm:$0xff]   ;;  %v4375_v16 = vld [vmem:[#allocation13 + $0x90] ss:$12 sps:$4 sm:$0xff]   ;;  %v4379_v19 = vld [vmem:[#allocation13 + $0x78] ss:$12 sps:$4 sm:$0xff]  }
  0xaf   :  { %251 = vadd.xlane.f32.xlu0 %v5121_v1  ;;  %4042 = vmatprep.subr.bf16.mxu1 %v4940_v5  ;;  %v4377_v18 = vld [vmem:[#allocation13 + $0x7c] ss:$12 sps:$4 sm:$0xff]   ;;  %v4380_v20 = vld [vmem:[#allocation13 + $0x80] ss:$12 sps:$4 sm:$0xff]   ;;  %v4381_v21 = vld [vmem:[#allocation13 + $0x64] ss:$12 sps:$4 sm:$0xff]  }
  0xb0   :  { %470 = vmatprep.subr.bf16.mxu0 %v4373_v15  ;;  %v4383_v22 = vld [vmem:[#allocation13 + $0x60] ss:$12 sps:$4 sm:$0xff]   ;;  %v4384_v23 = vld [vmem:[#allocation13 + $0x68] ss:$12 sps:$4 sm:$0xff]   ;;  %v4388_v26 = vld [vmem:[#allocation13 + $0x50] ss:$12 sps:$4 sm:$0xff]  }
  0xb1   :  { %v4385_v24 = vld [vmem:[#allocation13 + $0x4c] ss:$12 sps:$4 sm:$0xff]   ;;  %v4387_v25 = vld [vmem:[#allocation13 + $0x48] ss:$12 sps:$4 sm:$0xff]   ;;  %v4941_v28 = vmov 0   ;;  %vm4942_vm0 = vmmov 0  }
  0xb2   :  { %471 = vmatpush1.bf16.msra.mxu0 %v4375_v16  ;;  %4043 = vmatpush3.bf16.msra.mxu1 %v4376_v17  ;;  %v4389_v27 = vld [vmem:[#allocation13 + $0x34] ss:$12 sps:$4 sm:$0xff]   ;;  %v4391_v29 = vld [vmem:[#allocation13 + $0x30] ss:$12 sps:$4 sm:$0xff]   ;;  %v4392_v30 = vld [vmem:[#allocation13 + $0x38] ss:$12 sps:$4 sm:$0xff]  }
  0xb3   :  { %253 = vadd.xlane.f32.xlu0 %v5124_v2  ;;  %4044 = vmatprep.subr.bf16.mxu1 %v4940_v5  ;;  %v4393_v31 = vld [vmem:[#allocation13 + $0x1c] ss:$12 sps:$4 sm:$0xff]   ;;  %v4395_v32 = vld [vmem:[#allocation13 + $0x18] ss:$12 sps:$4 sm:$0xff]   ;;  %v4396_v33 = vld [vmem:[#allocation13 + $0x20] ss:$12 sps:$4 sm:$0xff]  }
  0xb4   :  { %472 = vmatprep.subr.bf16.mxu0 %v4377_v18  ;;  %500 = vmatprep.mubr.bf16.mxu0 %v4941_v28  ;;  %v4397_v34 = vld [vmem:[#allocation13 + $0x4] ss:$12 sps:$4 sm:$0xff]   ;;  %v4399_v35 = vld [vmem:[#allocation13] ss:$12 sps:$4 sm:$0xff]   ;;  %v4400_v36 = vld [vmem:[#allocation13 + $0x8] ss:$12 sps:$4 sm:$0xff]  }
  0xb5   :  { %4056 = vmatprep.mubr.msk.bf16.mxu1 %vm4942_vm0, %v4940_v5  ;;  %v3720_v45 = vld [vmem:[#allocation7] ss:$0 sm:$0xff]  ;;  %v3721_v49 = vld [vmem:[#allocation8] ss:$0 sm:$0xff]  ;;  %v5156_v55 = vshrl.u32 %v325_v54, 7  ;;  %vm560_vm1 = vcmask 261120  }
  0xb6   :  { %473 = vmatpush1.bf16.msra.mxu0 %v4379_v19  ;;  %4045 = vmatpush3.bf16.msra.mxu1 %v4380_v20  ;;  %v323_v57 = vld [vmem:[%s5637_s9] sm:$0x7]  ;;  %vm624_vm2 = vcmask 1043456   ;;  %v555_v19 = vand.u32 127, %v325_v54  ;;  %vm608_vm4 = vcmask 64512   ;;  %s4943_s9 = smov 96  }
  0xb7   :  { %4046 = vmatprep.subr.bf16.mxu1 %v4940_v5  ;;  %474 = vmatprep.subr.bf16.mxu0 %v4381_v21  ;;  %v5159_v56 = vsub.s32 1, %v5156_v55  ;;  %v5165_v58 = vsub.s32 0, %v5156_v55  ;;  %v335_v59 = vsub.s32 2, %v5156_v55  ;;  %s4944_s23 = smov 32   ;;  %vm1017_vm5 = vcmask 523264   ;;  %s5667_s27 = sld [smem:[#allocation38_spill]] }
  0xb8   :  { %vm5185_vm3 = vcmp.ge.s32.totalorder %v5156_v55, %v555_v19  ;;  %vm1019_vm6 = vcmask 785408   ;;  %vm1970_vm7 = vcmask 130048   ;;  %s4945_s3 = smov [#allocation23]  }
  0xb9   :  { %v332_v60 = vrot.slane %v323_v57, %v5159_v56  ;;  %v328_v3 = vrot.slane %v323_v57, %v5165_v58  ;;  %v336_v4 = vrot.slane %v323_v57, %v335_v59 }
  0xba   :  { %475 = vmatpush1.bf16.msra.mxu0 %v4383_v22  ;;  %4047 = vmatpush3.bf16.msra.mxu1 %v4384_v23 }
  0xbb   :  { %476 = vmatprep.subr.bf16.mxu0 %v4385_v24  ;;  %4048 = vmatprep.subr.bf16.mxu1 %v4940_v5 }
  0xbe   :  { %477 = vmatpush1.bf16.msra.mxu0 %v4387_v25  ;;  %4049 = vmatpush3.bf16.msra.mxu1 %v4388_v26 }
  0xbf   :  { %478 = vmatprep.subr.bf16.mxu0 %v4389_v27  ;;  %4050 = vmatprep.subr.bf16.mxu1 %v4940_v5 }
  0xc2   :  { %479 = vmatpush1.bf16.msra.mxu0 %v4391_v29  ;;  %4051 = vmatpush3.bf16.msra.mxu1 %v4392_v30 }
  0xc3   :  { %480 = vmatprep.subr.bf16.mxu0 %v4393_v31  ;;  %4052 = vmatprep.subr.bf16.mxu1 %v4940_v5 }
  0xc6   :  { %481 = vmatpush1.bf16.msra.mxu0 %v4395_v32  ;;  %4053 = vmatpush3.bf16.msra.mxu1 %v4396_v33 }
  0xc7   :  { %482 = vmatprep.subr.bf16.mxu0 %v4397_v34  ;;  %4054 = vmatprep.subr.bf16.mxu1 %v4940_v5 }
  0xca   :  { %483 = vmatpush1.bf16.msra.mxu0 %v4399_v35  ;;  %4055 = vmatpush3.bf16.msra.mxu1 %v4400_v36 }
  0xcb   :  { %4060 = vmatprep.subr.bf16.mxu0 %v4940_v5  ;;  %4078 = vmatprep.subr.bf16.mxu1 %v4940_v5 }
 0x138   :  { %v252_v7 = vpop.xlane.xlu0 %251 }
 0x139   :  { %v256_v8 = vmul.f32 0.0078125, %v252_v7 }
 0x13b   :  { %v5130_v9 = vsub.f32 %v5121_v1, %v256_v8 }
 0x13c   :  { %v254_v10 = vpop.xlane.xlu0 %253 }
 0x13d   :  { %v257_v11 = vmul.f32 0.0078125, %v254_v10  ;;  %v260_v12 = vmul.f32 %v5130_v9, %v5130_v9 }
 0x13f   :  { %v5135_v13 = vsub.f32 %v5124_v2, %v257_v11  ;;  %262 = vadd.xlane.f32.xlu1 %v260_v12 }
 0x141   :  { %v261_v14 = vmul.f32 %v5135_v13, %v5135_v13 }
 0x143   :  { %264 = vadd.xlane.f32.xlu1 %v261_v14 }
 0x1c8   :  { %v263_v37 = vpop.xlane.xlu1 %262 }
 0x1c9   :  { %v266_v38 = vmul.f32 0.0078125, %v263_v37 }
 0x1cb   :  { %v268_v39 = vadd.f32 1e-05, %v266_v38 }
 0x1cc   :  { %v265_v40 = vpop.xlane.xlu1 %264 }
 0x1cd   :  { %4531 = vrsqrt.f32 %v268_v39  ;;  %v267_v41 = vmul.f32 0.0078125, %v265_v40 }
 0x1cf   :  { %v269_v42 = vadd.f32 1e-05, %v267_v41 }
 0x1d1   :  { %4533 = vrsqrt.f32 %v269_v42 }
 0x1da   :  { %v4532_v43 = vpop.eup %4531 }
 0x1db   :  { %v272_v44 = vmul.f32 %v4532_v43, %v5130_v9 }
 0x1dd   :  { %v280_v48 = vmul.f32 %v3720_v45, %v272_v44 }
 0x1de   :  { %v4534_v46 = vpop.eup %4533 }
 0x1df   :  { %v273_v47 = vmul.f32 %v4534_v46, %v5135_v13  ;;  %v288_v51 = vadd.f32 %v3721_v49, %v280_v48 }
 0x1e1   :  { %v281_v50 = vmul.f32 %v3720_v45, %v273_v47 }
 0x1e3   :  { %v289_v52 = vadd.f32 %v3721_v49, %v281_v50 }
 0x1e5   :  { %v290_v53 = vpack.c.bf16 %v289_v52, %v288_v51 }
 0x1e7   :  { %501 = vmatmul.mubr.bf16.vlgmr.msra.gmra.mxu0 %v290_v53  ;;  %4057 = vmatmul.mubr.bf16.vlgmr.msra.gmra.mxu1 %v290_v53 }
 0x1e8   :  { %4062 = vmatprep.mubr.msk.bf16.mxu0 %vm4942_vm0, %v4940_v5  ;;  %4080 = vmatprep.mubr.msk.bf16.mxu1 %vm4942_vm0, %v4940_v5 }
 0x2a7   :  { %v502_v61 = vpop.f32.mrf.mxu0  ;;  %v545_v62 = vpop.f32.mrf.mxu1 }
 0x2a8   :  { %v546_v13 = vadd.f32 %v545_v62, %v336_v4  ;;  %v503_v15 = vadd.f32 %v502_v61, %v328_v3 }
 0x2a9   :  { %v504_v63 = vpop.f32.mrf.mxu0  ;;  %v4058_v0 = vpop.f32.mrf.mxu1 }
 0x2aa   :  { %v505_v6 = vadd.f32 %v504_v63, %v332_v60  ;;  %v5176_v16 = vpack.c.bf16 %v546_v13, %v546_v13  ;;  %v557_v17 = vpack.c.bf16 %v503_v15, %v503_v15 }
 0x2ab   :  { %v506_v7 = vpop.f32.mrf.mxu0  ;;  %v548_v8 = vpop.f32.mrf.mxu1 }
 0x2ac   :  { %v558_v9 = vpack.c.bf16 %v505_v6, %v505_v6  ;;  %v507_v10 = vadd.f32 %v506_v7, %v328_v3  ;;  %v5172_v11 = vadd.f32 %v548_v8, %v336_v4  ;;  %v626_v18 = vsel %vm624_vm2, %v5176_v16, 0 }
 0x2ad   :  { %v4059_v12 = vpop.f32.mrf.mxu1  ;;  %v508_v20 = vpop.f32.mrf.mxu0 }
 0x2ae   :  { %v565_v14 = vsel %vm560_vm1, %v558_v9, 0  ;;  %v509_v29 = vadd.f32 %v508_v20, %v332_v60  ;;  %v1021_v36 = vpack.c.bf16 %v507_v10, %v507_v10 }
 0x2af   :  { %4061 = vmatpush3.bf16.xpose.msra.mxu0 %v565_v14 }
 0x2b0   :  { %4066 = vmatprep.subr.bf16.mxu0 %v4940_v5  ;;  %v1022_v30 = vpack.c.bf16 %v509_v29, %v509_v29 }
 0x2b2   :  { %v1028_v50 = vsel %vm560_vm1, %v1022_v30, 0 }
 0x2b6   :  { %4063 = vmatmul.mubr.msk.bf16.vlgmr.msra.gmra.mxu0 %vm560_vm1, %v557_v17 }
 0x2b7   :  { %4067 = vmatpush3.bf16.msra.mxu0 %v626_v18  ;;  %4068 = vmatprep.mubr.msk.bf16.mxu0 %vm4942_vm0, %v4940_v5 }
 0x2b8   :  { %4072 = vmatprep.subr.bf16.mxu0 %v4940_v5 }
 0x376   :  { %v601_v22 = vpop.f32.mrf.mxu0 }
 0x377   :  { %v607_v23 = vsel %vm5185_vm3, %v601_v22, -1e+30 }
 0x378   :  { %v4064_v24 = vpop.f32.mrf.mxu0  ;;  %v609_v25 = vsel %vm608_vm4, %v607_v23, -inf }
 0x379   :  { %610 = vmax.xlane.f32.xlu0 %v609_v25 }
 0x37a   :  { %v604_v26 = vpop.f32.mrf.mxu0 }
 0x37c   :  { %v4065_v27 = vpop.f32.mrf.mxu0 }
 0x38f   :  { %672 = vrot.lane.b32.xlu0 %v558_v9, %s4943_s9 }
 0x393   :  { %895 = vrot.lane.b32.xlu0 %v558_v9, %s4944_s23 }
 0x397   :  { %1133 = vrot.lane.b32.xlu0 %v1022_v30, %s4943_s9 }
 0x39b   :  { %1245 = vrot.lane.b32.xlu0 %v1022_v30, %s4921_s0 }
 0x39f   :  { %1356 = vrot.lane.b32.xlu0 %v1022_v30, %s4944_s23 }
 0x402   :  { %v611_v31 = vpop.xlane.xlu0 %610 }
 0x403   :  { %v612_v32 = vsub.f32 %v607_v23, %v611_v31 }
 0x405   :  { %v613_v33 = vmul.f32 1.442695, %v612_v32 }
 0x406   :  { %v673_v40 = vpop.permute.xlu0 %672 }
 0x407   :  { %4535 = vpow2.f32 %v613_v33  ;;  %v678_v43 = vsel %vm560_vm1, %v673_v40, 0 }
 0x40a   :  { %v896_v46 = vpop.permute.xlu0 %895 }
 0x40b   :  { %v901_v48 = vsel %vm560_vm1, %v896_v46, 0 }
 0x40e   :  { %v1134_v51 = vpop.permute.xlu0 %1133 }
 0x40f   :  { %v1139_v52 = vsel %vm560_vm1, %v1134_v51, 0 }
 0x412   :  { %v1246_v53 = vpop.permute.xlu0 %1245 }
 0x413   :  { %v1251_v57 = vsel %vm560_vm1, %v1246_v53, 0 }
 0x414   :  { %v4536_v34 = vpop.eup %4535 }
 0x415   :  { %v615_v35 = vsel %vm608_vm4, %v4536_v34, 0.0 }
 0x416   :  { %616 = vadd.xlane.f32.xlu1 %v615_v35  ;;  %v1357_v60 = vpop.permute.xlu0 %1356 }
 0x417   :  { %v1362_v62 = vsel %vm560_vm1, %v1357_v60, 0 }
 0x427   :  { %669 = vrot.lane.b32.xlu1 %v557_v17, %s4943_s9 }
 0x42b   :  { %784 = vrot.lane.b32.xlu1 %v558_v9, %s4921_s0 }
 0x42f   :  { %782 = vrot.lane.b32.xlu1 %v557_v17, %s4921_s0 }
 0x433   :  { %893 = vrot.lane.b32.xlu1 %v557_v17, %s4944_s23 }
 0x437   :  { %1130 = vrot.lane.b32.xlu1 %v1021_v36, %s4943_s9 }
 0x43b   :  { %1243 = vrot.lane.b32.xlu1 %v1021_v36, %s4921_s0 }
 0x43f   :  { %1354 = vrot.lane.b32.xlu1 %v1021_v36, %s4944_s23 }
 0x49f   :  { %v617_v37 = vpop.xlane.xlu1 %616 }
 0x4a0   :  { %4537 = vrcp.f32 %v617_v37 }
 0x4a3   :  { %v670_v42 = vpop.permute.xlu1 %669 }
 0x4a7   :  { %v785_v44 = vpop.permute.xlu1 %784 }
 0x4a8   :  { %v790_v45 = vsel %vm560_vm1, %v785_v44, 0 }
 0x4ab   :  { %v783_v47 = vpop.permute.xlu1 %782 }
 0x4ad   :  { %v4538_v38 = vpop.eup %4537 }
 0x4ae   :  { %v619_v39 = vmul.f32 %v4538_v38, %v4536_v34 }
 0x4af   :  { %v894_v49 = vpop.permute.xlu1 %893 }
 0x4b0   :  { %v620_v41 = vpack.c.bf16 %v619_v39, %v619_v39 }
 0x4b2   :  { %4069 = vmatmul.mubr.msk.bf16.vlgmr.msra.gmra.mxu0 %vm608_vm4, %v620_v41 }
 0x4b3   :  { %4073 = vmatpush3.bf16.xpose.msra.mxu0 %v678_v43  ;;  %4074 = vmatprep.mubr.msk.bf16.mxu0 %vm4942_vm0, %v4940_v5  ;;  %v1131_v54 = vpop.permute.xlu1 %1130 }
 0x4b4   :  { %4084 = vmatprep.subr.bf16.mxu0 %v4940_v5 }
 0x4b7   :  { %v1244_v61 = vpop.permute.xlu1 %1243 }
 0x4ba   :  { %4075 = vmatmul.mubr.msk.bf16.vlgmr.msra.gmra.mxu0 %vm560_vm1, %v670_v42 }
 0x4bb   :  { %4085 = vmatpush3.bf16.xpose.msra.mxu0 %v790_v45  ;;  %4086 = vmatprep.mubr.msk.bf16.mxu0 %vm4942_vm0, %v4940_v5  ;;  %v1355_v63 = vpop.permute.xlu1 %1354 }
 0x4bc   :  { %4096 = vmatprep.subr.bf16.mxu0 %v4940_v5 }
 0x4c2   :  { %4087 = vmatmul.mubr.msk.bf16.vlgmr.msra.gmra.mxu0 %vm560_vm1, %v783_v47 }
 0x4c3   :  { %4097 = vmatpush3.bf16.xpose.msra.mxu0 %v901_v48  ;;  %4098 = vmatprep.mubr.msk.bf16.mxu0 %vm4942_vm0, %v4940_v5 }
 0x4c4   :  { %4108 = vmatprep.subr.bf16.mxu0 %v4940_v5 }
 0x4ca   :  { %4099 = vmatmul.mubr.msk.bf16.vlgmr.msra.gmra.mxu0 %vm560_vm1, %v894_v49 }
 0x4cb   :  { %4109 = vmatpush3.bf16.xpose.msra.mxu0 %v1028_v50  ;;  %4110 = vmatprep.mubr.msk.bf16.mxu0 %vm4942_vm0, %v4940_v5 }
 0x4cc   :  { %4120 = vmatprep.subr.bf16.mxu0 %v4940_v5 }
 0x4d2   :  { %4111 = vmatmul.mubr.msk.bf16.vlgmr.msra.gmra.mxu0 %vm560_vm1, %v1021_v36 }
 0x4d3   :  { %4121 = vmatpush3.bf16.xpose.msra.mxu0 %v1139_v52  ;;  %4122 = vmatprep.mubr.msk.bf16.mxu0 %vm4942_vm0, %v4940_v5 }
 0x4d4   :  { %4132 = vmatprep.subr.bf16.mxu0 %v4940_v5 }
 0x4da   :  { %4123 = vmatmul.mubr.msk.bf16.vlgmr.msra.gmra.mxu0 %vm560_vm1, %v1131_v54 }
 0x4db   :  { %4133 = vmatpush3.bf16.xpose.msra.mxu0 %v1251_v57  ;;  %4134 = vmatprep.mubr.msk.bf16.mxu0 %vm4942_vm0, %v4940_v5 }
 0x4dc   :  { %4144 = vmatprep.subr.bf16.mxu0 %v4940_v5 }
 0x4e2   :  { %4135 = vmatmul.mubr.msk.bf16.vlgmr.msra.gmra.mxu0 %vm560_vm1, %v1244_v61 }
 0x4e3   :  { %4145 = vmatpush3.bf16.xpose.msra.mxu0 %v1362_v62  ;;  %4146 = vmatprep.mubr.msk.bf16.mxu0 %vm4942_vm0, %v4940_v5 }
 0x4e4   :  { %4156 = vmatprep.subr.bf16.mxu0 %v4940_v5 }
 0x4ea   :  { %4147 = vmatmul.mubr.msk.bf16.vlgmr.msra.gmra.mxu0 %vm560_vm1, %v1355_v63 }
 0x4eb   :  { %4172 = vmatprep.mubr.msk.bf16.mxu0 %vm4942_vm0, %v4940_v5 }
 0x572   :  { %v5243_v0 = vpop.f32.mrf.mxu0 }
 0x574   :  { %v4070_v3 = vpop.f32.mrf.mxu0 }
 0x576   :  { %v665_v4 = vpop.f32.mrf.mxu0 }
 0x578   :  { %v4071_v6 = vpop.f32.mrf.mxu0 }
 0x57a   :  { %v714_v7 = vpop.f32.mrf.mxu0 }
 0x57b   :  { %v720_v8 = vsel %vm5185_vm3, %v714_v7, -1e+30 }
 0x57c   :  { %v4076_v9 = vpop.f32.mrf.mxu0  ;;  %v721_v10 = vsel %vm608_vm4, %v720_v8, -inf }
 0x57d   :  { %722 = vmax.xlane.f32.xlu0 %v721_v10 }
 0x57e   :  { %v717_v12 = vpop.f32.mrf.mxu0 }
 0x580   :  { %v4077_v13 = vpop.f32.mrf.mxu0 }
 0x582   :  { %v826_v14 = vpop.f32.mrf.mxu0 }
 0x583   :  { %v832_v15 = vsel %vm5185_vm3, %v826_v14, -1e+30 }
 0x584   :  { %v4088_v17 = vpop.f32.mrf.mxu0  ;;  %v833_v18 = vsel %vm608_vm4, %v832_v15, -inf }
 0x585   :  { %834 = vmax.xlane.f32.xlu1 %v833_v18 }
 0x586   :  { %v829_v19 = vpop.f32.mrf.mxu0 }
 0x588   :  { %v4089_v20 = vpop.f32.mrf.mxu0 }
 0x58a   :  { %v937_v22 = vpop.f32.mrf.mxu0 }
 0x58b   :  { %v943_v23 = vsel %vm5185_vm3, %v937_v22, -1e+30  ;;  %v1023_v22 = vpack.c.bf16 %v5172_v11, %v5172_v11 }
 0x58c   :  { %v4100_v24 = vpop.f32.mrf.mxu0  ;;  %v944_v25 = vsel %vm608_vm4, %v943_v23, -inf }
 0x58d   :  { %945 = vmax.xlane.f32.xlu0 %v944_v25 }
 0x58e   :  { %v940_v26 = vpop.f32.mrf.mxu0 }
 0x590   :  { %v4101_v27 = vpop.f32.mrf.mxu0 }
 0x592   :  { %v1064_v29 = vpop.f32.mrf.mxu0 }
 0x593   :  { %v1070_v30 = vsel %vm5185_vm3, %v1064_v29, -1e+30 }
 0x594   :  { %v4112_v31 = vpop.f32.mrf.mxu0  ;;  %v1071_v32 = vsel %vm608_vm4, %v1070_v30, -inf }
 0x595   :  { %1072 = vmax.xlane.f32.xlu0 %v1071_v32 }
 0x596   :  { %v1067_v33 = vpop.f32.mrf.mxu0 }
 0x598   :  { %v4113_v34 = vpop.f32.mrf.mxu0 }
 0x59a   :  { %v1175_v35 = vpop.f32.mrf.mxu0 }
 0x59b   :  { %v5259_v36 = vsel %vm5185_vm3, %v1175_v35, -1e+30 }
 0x59c   :  { %v4124_v37 = vpop.f32.mrf.mxu0  ;;  %v1182_v38 = vsel %vm608_vm4, %v5259_v36, -inf }
 0x59d   :  { %1183 = vmax.xlane.f32.xlu0 %v1182_v38 }
 0x59e   :  { %v1178_v39 = vpop.f32.mrf.mxu0 }
 0x5a0   :  { %v4125_v40 = vpop.f32.mrf.mxu0 }
 0x5a2   :  { %v1287_v41 = vpop.f32.mrf.mxu0 }
 0x5a3   :  { %v1293_v42 = vsel %vm5185_vm3, %v1287_v41, -1e+30 }
 0x5a4   :  { %v4136_v43 = vpop.f32.mrf.mxu0  ;;  %v1294_v44 = vsel %vm608_vm4, %v1293_v42, -inf }
 0x5a5   :  { %1295 = vmax.xlane.f32.xlu1 %v1294_v44 }
 0x5a6   :  { %v1290_v45 = vpop.f32.mrf.mxu0 }
 0x5a8   :  { %v4137_v46 = vpop.f32.mrf.mxu0 }
 0x5aa   :  { %v1398_v47 = vpop.f32.mrf.mxu0 }
 0x5ab   :  { %v1404_v48 = vsel %vm5185_vm3, %v1398_v47, -1e+30 }
 0x5ac   :  { %v4148_v49 = vpop.f32.mrf.mxu0  ;;  %v1405_v50 = vsel %vm608_vm4, %v1404_v48, -inf }
 0x5ad   :  { %1406 = vmax.xlane.f32.xlu0 %v1405_v50 }
 0x5ae   :  { %v1401_v51 = vpop.f32.mrf.mxu0 }
 0x5b0   :  { %v4149_v52 = vpop.f32.mrf.mxu0 }
 0x5b6   :  { %734 = vrot.lane.b32.xlu1 %v5176_v16, %s4943_s9 }
 0x5c3   :  { %845 = vrot.lane.b32.xlu0 %v5176_v16, %s4921_s0 }
 0x606   :  { %v723_v53 = vpop.xlane.xlu0 %722 }
 0x607   :  { %v724_v54 = vsub.f32 %v720_v8, %v723_v53  ;;  %v1087_v53 = vsel %vm624_vm2, %v1023_v22, 0 }
 0x609   :  { %v725_v57 = vmul.f32 1.442695, %v724_v54 }
 0x60b   :  { %4539 = vpow2.f32 %v725_v57 }
 0x60e   :  { %v835_v60 = vpop.xlane.xlu1 %834 }
 0x60f   :  { %v836_v61 = vsub.f32 %v832_v15, %v835_v60 }
 0x611   :  { %v837_v21 = vmul.f32 1.442695, %v836_v61 }
 0x613   :  { %4541 = vpow2.f32 %v837_v21 }
 0x616   :  { %v946_v62 = vpop.xlane.xlu0 %945 }
 0x617   :  { %v947_v63 = vsub.f32 %v943_v23, %v946_v62 }
 0x618   :  { %v4540_v3 = vpop.eup %4539 }
 0x619   :  { %v948_v4 = vmul.f32 1.442695, %v947_v63  ;;  %v727_v6 = vsel %vm608_vm4, %v4540_v3, 0.0 }
 0x61a   :  { %728 = vadd.xlane.f32.xlu1 %v727_v6 }
 0x61b   :  { %4543 = vpow2.f32 %v948_v4 }
 0x61e   :  { %v1073_v7 = vpop.xlane.xlu0 %1072 }
 0x61f   :  { %v1074_v9 = vsub.f32 %v1070_v30, %v1073_v7 }
 0x620   :  { %v4542_v10 = vpop.eup %4541 }
 0x621   :  { %v1075_v12 = vmul.f32 1.442695, %v1074_v9  ;;  %v839_v8 = vsel %vm608_vm4, %v4542_v10, 0.0 }
 0x622   :  { %840 = vadd.xlane.f32.xlu0 %v839_v8 }
 0x623   :  { %4545 = vpow2.f32 %v1075_v12 }
 0x626   :  { %v1184_v25 = vpop.xlane.xlu0 %1183 }
 0x627   :  { %v1185_v26 = vsub.f32 %v5259_v36, %v1184_v25 }
 0x628   :  { %v5275_v13 = vpop.eup %4543 }
 0x629   :  { %v950_v14 = vsel %vm608_vm4, %v5275_v13, 0.0  ;;  %v1186_v29 = vmul.f32 1.442695, %v1185_v26 }
 0x62a   :  { %951 = vadd.xlane.f32.xlu1 %v950_v14 }
 0x62e   :  { %v1296_v15 = vpop.xlane.xlu1 %1295 }
 0x62f   :  { %v1297_v23 = vsub.f32 %v1293_v42, %v1296_v15 }
 0x630   :  { %v5279_v17 = vpop.eup %4545 }
 0x631   :  { %v1077_v18 = vsel %vm608_vm4, %v5279_v17, 0.0  ;;  %v1298_v24 = vmul.f32 1.442695, %v1297_v23  ;;  %v4403_v23 = vld [vmem:[#allocation14 + $0x28] sm:$0xff]  }
 0x632   :  { %v735_v19 = vpop.permute.xlu1 %734  ;;  %1078 = vadd.xlane.f32.xlu0 %v1077_v18 }
 0x633   :  { %v740_v20 = vsel %vm624_vm2, %v735_v19, 0  ;;  %4547 = vpow2.f32 %v1298_v24 }
 0x634   :  { %4079 = vmatpush3.bf16.msra.mxu1 %v740_v20  ;;  %4549 = vpow2.f32 %v1186_v29  ;;  %v4401_v20 = vld [vmem:[#allocation14 + $0x38] sm:$0xff]  }
 0x635   :  { %4090 = vmatprep.subr.bf16.mxu1 %v4940_v5  ;;  %4157 = vmatpush3.bf16.msra.mxu0 %v4401_v20  ;;  %v3762_v20 = vld [vmem:[%s5639_s11] ss:$0 sm:$0xff] }
 0x636   :  { %v1407_v27 = vpop.xlane.xlu0 %1406  ;;  %4158 = vmatprep.subr.bf16.mxu0 %v4940_v5 }
 0x637   :  { %v1408_v30 = vsub.f32 %v1404_v48, %v1407_v27 }
 0x639   :  { %v1409_v31 = vmul.f32 1.442695, %v1408_v30 }
 0x63a   :  { %v846_v37 = vpop.permute.xlu0 %845 }
 0x63b   :  { %1195 = vrot.lane.b32.xlu1 %v1023_v22, %s4943_s9  ;;  %4551 = vpow2.f32 %v1409_v31  ;;  %v851_v43 = vsel %vm624_vm2, %v846_v37, 0 }
 0x640   :  { %v5291_v32 = vpop.eup %4547 }
 0x641   :  { %v1300_v11 = vsel %vm608_vm4, %v5291_v32, 0.0  ;;  %v4550_v33 = vpop.eup %4549 }
 0x648   :  { %956 = vrot.lane.b32.xlu0 %v5176_v16, %s4944_s23  ;;  %v1188_v16 = vsel %vm608_vm4, %v4550_v33, 0.0  ;;  %v5296_v34 = vpop.eup %4551 }
 0x649   :  { %v1411_v35 = vsel %vm608_vm4, %v5296_v34, 0.0 }
 0x65f   :  { %1301 = vadd.xlane.f32.xlu1 %v1300_v11 }
 0x667   :  { %1189 = vadd.xlane.f32.xlu0 %v1188_v16 }
 0x66b   :  { %1412 = vadd.xlane.f32.xlu0 %v1411_v35 }
 0x670   :  { %1417 = vrot.lane.b32.xlu1 %v1023_v22, %s4944_s23 }
 0x681   :  { %1306 = vrot.lane.b32.xlu0 %v1023_v22, %s4921_s0  ;;  %v4402_v22 = vld [vmem:[#allocation14 + $0x30] sm:$0xff]  }
 0x682   :  { %4159 = vmatpush3.bf16.msra.mxu0 %v4402_v22 }
 0x683   :  { %4160 = vmatprep.subr.bf16.mxu0 %v4940_v5 }
 0x686   :  { %4161 = vmatpush3.bf16.msra.mxu0 %v4403_v23 }
 0x687   :  { %4162 = vmatprep.subr.bf16.mxu0 %v4940_v5 }
 0x6a3   :  { %v729_v36 = vpop.xlane.xlu1 %728 }
 0x6a4   :  { %4553 = vrcp.f32 %v729_v36 }
 0x6ab   :  { %v841_v38 = vpop.xlane.xlu0 %840 }
 0x6ac   :  { %4555 = vrcp.f32 %v841_v38 }
 0x6b1   :  { %v4554_v39 = vpop.eup %4553 }
 0x6b2   :  { %v731_v40 = vmul.f32 %v4554_v39, %v4540_v3  ;;  %v4404_v39 = vld [vmem:[#allocation14 + $0x20] sm:$0xff]  }
 0x6b3   :  { %v952_v41 = vpop.xlane.xlu1 %951  ;;  %4163 = vmatpush3.bf16.msra.mxu0 %v4404_v39 }
 0x6b4   :  { %4557 = vrcp.f32 %v952_v41  ;;  %v732_v42 = vpack.c.bf16 %v731_v40, %v731_v40  ;;  %v4405_v40 = vld [vmem:[#allocation14 + $0x18] sm:$0xff]   ;;  %4164 = vmatprep.subr.bf16.mxu0 %v4940_v5  ;;  %v4406_v41 = vld [vmem:[#allocation14 + $0x10] sm:$0xff]  }
 0x6b6   :  { %4081 = vmatmul.mubr.msk.bf16.vlgmr.msra.gmra.mxu1 %vm608_vm4, %v732_v42 }
 0x6b7   :  { %4091 = vmatpush3.bf16.msra.mxu1 %v851_v43  ;;  %4092 = vmatprep.mubr.msk.bf16.mxu1 %vm4942_vm0, %v4940_v5  ;;  %v1196_v60 = vpop.permute.xlu1 %1195 }
 0x6b8   :  { %4102 = vmatprep.subr.bf16.mxu1 %v4940_v5  ;;  %v1201_v21 = vsel %vm624_vm2, %v1196_v60, 0  ;;  %4165 = vmatpush3.bf16.msra.mxu0 %v4405_v40 }
 0x6b9   :  { %v4556_v44 = vpop.eup %4555  ;;  %4166 = vmatprep.subr.bf16.mxu0 %v4940_v5 }
 0x6ba   :  { %v843_v45 = vmul.f32 %v4556_v44, %v4542_v10  ;;  %v4407_v44 = vld [vmem:[#allocation14 + $0x8] sm:$0xff]  }
 0x6bb   :  { %v1079_v46 = vpop.xlane.xlu0 %1078 }
 0x6bc   :  { %4559 = vrcp.f32 %v1079_v46  ;;  %v844_v47 = vpack.c.bf16 %v843_v45, %v843_v45  ;;  %4167 = vmatpush3.bf16.msra.mxu0 %v4406_v41 }
 0x6bd   :  { %4168 = vmatprep.subr.bf16.mxu0 %v4940_v5 }
 0x6be   :  { %4093 = vmatmul.mubr.msk.bf16.vlgmr.msra.gmra.mxu1 %vm608_vm4, %v844_v47 }
 0x6bf   :  { %v957_v48 = vpop.permute.xlu0 %956  ;;  %4104 = vmatprep.mubr.msk.bf16.mxu1 %vm4942_vm0, %v4940_v5 }
 0x6c0   :  { %v962_v49 = vsel %vm624_vm2, %v957_v48, 0  ;;  %4169 = vmatpush3.bf16.msra.mxu0 %v4407_v44  ;;  %v4408_v48 = vld [vmem:[#allocation14] sm:$0xff]  }
 0x6c1   :  { %v4558_v50 = vpop.eup %4557  ;;  %4103 = vmatpush3.bf16.msra.mxu1 %v962_v49  ;;  %4170 = vmatprep.subr.bf16.mxu0 %v4940_v5 }
 0x6c2   :  { %4114 = vmatprep.subr.bf16.mxu1 %v4940_v5  ;;  %v954_v51 = vmul.f32 %v4558_v50, %v5275_v13 }
 0x6c4   :  { %v955_v52 = vpack.c.bf16 %v954_v51, %v954_v51  ;;  %4171 = vmatpush3.bf16.msra.mxu0 %v4408_v48  ;;  %v4425_v48 = vld [vmem:[#allocation17 + $0x20] ss:$8 sps:$4 sm:$0xff]  }
 0x6c6   :  { %4105 = vmatmul.mubr.msk.bf16.vlgmr.msra.gmra.mxu1 %vm608_vm4, %v955_v52 }
 0x6c7   :  { %4115 = vmatpush3.bf16.msra.mxu1 %v1087_v53  ;;  %4116 = vmatprep.mubr.msk.bf16.mxu1 %vm4942_vm0, %v4940_v5 }
 0x6c8   :  { %4126 = vmatprep.subr.bf16.mxu1 %v4940_v5 }
 0x6c9   :  { %v4560_v54 = vpop.eup %4559 }
 0x6ca   :  { %v1081_v57 = vmul.f32 %v4560_v54, %v5279_v17 }
 0x6cc   :  { %v1082_v61 = vpack.c.bf16 %v1081_v57, %v1081_v57 }
 0x6ce   :  { %4117 = vmatmul.mubr.msk.bf16.vlgmr.msra.gmra.mxu1 %vm608_vm4, %v1082_v61 }
 0x6cf   :  { %4127 = vmatpush3.bf16.msra.mxu1 %v1201_v21  ;;  %4128 = vmatprep.mubr.msk.bf16.mxu1 %vm4942_vm0, %v4940_v5 }
 0x6d0   :  { %4138 = vmatprep.subr.bf16.mxu1 %v4940_v5 }
 0x6e8   :  { %v1302_v63 = vpop.xlane.xlu1 %1301 }
 0x6ec   :  { %v1418_v13 = vpop.permute.xlu1 %1417 }
 0x6ed   :  { %v1423_v17 = vsel %vm624_vm2, %v1418_v13, 0 }
 0x6f0   :  { %v1190_v62 = vpop.xlane.xlu0 %1189 }
 0x6f1   :  { %4561 = vrcp.f32 %v1190_v62 }
 0x6f2   :  { %4563 = vrcp.f32 %v1302_v63 }
 0x6f4   :  { %v1413_v3 = vpop.xlane.xlu0 %1412 }
 0x6f5   :  { %4565 = vrcp.f32 %v1413_v3 }
 0x6f8   :  { %v1307_v7 = vpop.permute.xlu0 %1306 }
 0x6f9   :  { %v1312_v12 = vsel %vm624_vm2, %v1307_v7, 0 }
 0x6fe   :  { %v4562_v4 = vpop.eup %4561 }
 0x6ff   :  { %v1192_v6 = vmul.f32 %v4562_v4, %v4550_v33  ;;  %v4564_v10 = vpop.eup %4563 }
 0x700   :  { %v1304_v8 = vmul.f32 %v4564_v10, %v5291_v32 }
 0x701   :  { %v1193_v9 = vpack.c.bf16 %v1192_v6, %v1192_v6 }
 0x702   :  { %v1305_v14 = vpack.c.bf16 %v1304_v8, %v1304_v8  ;;  %v4566_v15 = vpop.eup %4565 }
 0x703   :  { %4129 = vmatmul.mubr.msk.bf16.vlgmr.msra.gmra.mxu1 %vm608_vm4, %v1193_v9  ;;  %v1415_v18 = vmul.f32 %v4566_v15, %v5296_v34 }
 0x704   :  { %4139 = vmatpush3.bf16.msra.mxu1 %v1312_v12  ;;  %4140 = vmatprep.mubr.msk.bf16.mxu1 %vm4942_vm0, %v4940_v5 }
 0x705   :  { %4150 = vmatprep.subr.bf16.mxu1 %v4940_v5  ;;  %v1416_v19 = vpack.c.bf16 %v1415_v18, %v1415_v18 }
 0x70b   :  { %4141 = vmatmul.mubr.msk.bf16.vlgmr.msra.gmra.mxu1 %vm608_vm4, %v1305_v14 }
 0x70c   :  { %4151 = vmatpush3.bf16.msra.mxu1 %v1423_v17  ;;  %4152 = vmatprep.mubr.msk.bf16.mxu1 %vm4942_vm0, %v4940_v5 }
 0x70d   :  { %4176 = vmatprep.subr.bf16.mxu1 %v4940_v5 }
 0x713   :  { %4153 = vmatmul.mubr.msk.bf16.vlgmr.msra.gmra.mxu1 %vm608_vm4, %v1416_v19 }
 0x714   :  { %4192 = vmatprep.mubr.msk.bf16.mxu1 %vm4942_vm0, %v4940_v5 }
 0x776   :  { %v776_v24 = vpop.f32.mrf.mxu1 }
 0x778   :  { %v4082_v25 = vpop.f32.mrf.mxu1 }
 0x77a   :  { %v779_v26 = vpop.f32.mrf.mxu1 }
 0x77c   :  { %v4083_v27 = vpop.f32.mrf.mxu1 }
 0x77e   :  { %v887_v29 = vpop.f32.mrf.mxu1 }
 0x780   :  { %v4094_v30 = vpop.f32.mrf.mxu1 }
 0x781   :  { %v4409_v30 = vld [vmem:[#allocation17 + $0x70] ss:$8 sps:$4 sm:$0xff]  }
 0x782   :  { %v890_v31 = vpop.f32.mrf.mxu1 }
 0x783   :  { %v4411_v31 = vld [vmem:[#allocation17 + $0x74] ss:$8 sps:$4 sm:$0xff]  }
 0x784   :  { %v4095_v32 = vpop.f32.mrf.mxu1  ;;  %1868 = vmatprep.subr.bf16.mxu0 %v4411_v31 }
 0x785   :  { %v4414_v32 = vld [vmem:[#allocation17 + $0x64] ss:$8 sps:$4 sm:$0xff]  }
 0x786   :  { %v998_v11 = vpop.f32.mrf.mxu1 }
 0x788   :  { %v4106_v33 = vpop.f32.mrf.mxu1 }
 0x789   :  { %v4424_v33 = vld [vmem:[#allocation16 + $0x38] sm:$0xff]  }
 0x78a   :  { %v1001_v16 = vpop.f32.mrf.mxu1  ;;  %4177 = vmatpush3.bf16.msra.mxu1 %v4424_v33 }
 0x78b   :  { %v4417_v16 = vld [vmem:[#allocation17 + $0x54] ss:$8 sps:$4 sm:$0xff]   ;;  %4178 = vmatprep.subr.bf16.mxu1 %v4940_v5 }
 0x78c   :  { %v4107_v34 = vpop.f32.mrf.mxu1 }
 0x78d   :  { %v4415_v34 = vld [vmem:[#allocation17 + $0x50] ss:$8 sps:$4 sm:$0xff]  }
 0x78e   :  { %v1123_v35 = vpop.f32.mrf.mxu1 }
 0x790   :  { %v4118_v36 = vpop.f32.mrf.mxu1 }
 0x791   :  { %v4418_v36 = vld [vmem:[#allocation17 + $0x40] ss:$8 sps:$4 sm:$0xff]  }
 0x792   :  { %v1126_v37 = vpop.f32.mrf.mxu1 }
 0x793   :  { %v4423_v37 = vld [vmem:[#allocation17 + $0x34] ss:$8 sps:$4 sm:$0xff]  }
 0x794   :  { %v4119_v38 = vpop.f32.mrf.mxu1 }
 0x795   :  { %v4421_v38 = vld [vmem:[#allocation17 + $0x30] ss:$8 sps:$4 sm:$0xff]  }
 0x7c3   :  { %v1237_v42 = vpop.f32.mrf.mxu1 }
 0x7c4   :  { %v4339_v43 = vpack.i.bf16 %v1237_v42, %v776_v24 }
 0x7c5   :  { %v4130_v45 = vpop.f32.mrf.mxu1 }
 0x7c6   :  { %4340 = vrot.lane.b32.xlu1 %v4339_v43, %s4944_s23 }
 0x7c7   :  { %v1240_v46 = vpop.f32.mrf.mxu1 }
 0x7c9   :  { %v4131_v47 = vpop.f32.mrf.mxu1 }
 0x7ca   :  { %v4427_v47 = vld [vmem:[#allocation17 + $0x24] ss:$8 sps:$4 sm:$0xff]  }
 0x7cb   :  { %v1348_v49 = vpop.f32.mrf.mxu1 }
 0x7cc   :  { %v4344_v50 = vpack.i.bf16 %v1348_v49, %v887_v29  ;;  %v4428_v49 = vld [vmem:[#allocation16 + $0x30] sm:$0xff]  }
 0x7cd   :  { %v4142_v51 = vpop.f32.mrf.mxu1  ;;  %4179 = vmatpush3.bf16.msra.mxu1 %v4428_v49 }
 0x7ce   :  { %4345 = vrot.lane.b32.xlu1 %v4344_v50, %s4921_s0  ;;  %v4431_v50 = vld [vmem:[#allocation17 + $0x14] ss:$8 sps:$4 sm:$0xff]   ;;  %v4429_v51 = vld [vmem:[#allocation17 + $0x10] ss:$8 sps:$4 sm:$0xff]   ;;  %4180 = vmatprep.subr.bf16.mxu1 %v4940_v5 }
 0x7cf   :  { %v1351_v52 = vpop.f32.mrf.mxu1 }
 0x7d0   :  { %v4432_v52 = vld [vmem:[#allocation16 + $0x28] sm:$0xff]  }
 0x7d1   :  { %v4143_v53 = vpop.f32.mrf.mxu1  ;;  %4181 = vmatpush3.bf16.msra.mxu1 %v4432_v52 }
 0x7d2   :  { %v4435_v53 = vld [vmem:[#allocation17 + $0x4] ss:$8 sps:$4 sm:$0xff]   ;;  %4182 = vmatprep.subr.bf16.mxu1 %v4940_v5 }
 0x7d3   :  { %v1459_v54 = vpop.f32.mrf.mxu1 }
 0x7d4   :  { %v4349_v57 = vpack.i.bf16 %v1459_v54, %v998_v11  ;;  %v4412_v11 = vld [vmem:[#allocation17 + $0x60] ss:$8 sps:$4 sm:$0xff]  }
 0x7d5   :  { %v4154_v60 = vpop.f32.mrf.mxu1  ;;  %v4433_v54 = vld [vmem:[#allocation17] ss:$8 sps:$4 sm:$0xff]  }
 0x7d6   :  { %4350 = vrot.lane.b32.xlu1 %v4349_v57, %s4943_s9  ;;  %v4436_v57 = vld [vmem:[#allocation16 + $0x20] sm:$0xff]   ;;  %v4437_v60 = vld [vmem:[#allocation5] sm:$0xff]  }
 0x7d7   :  { %v1462_v61 = vpop.f32.mrf.mxu1  ;;  %4183 = vmatpush3.bf16.msra.mxu1 %v4436_v57 }
 0x7d8   :  { %v4438_v61 = vld [vmem:[#allocation16 + $0x18] sm:$0xff]   ;;  %4184 = vmatprep.subr.bf16.mxu1 %v4940_v5 }
 0x7d9   :  { %v4155_v21 = vpop.f32.mrf.mxu1 }
 0x7da   :  { %v4439_v21 = vld [vmem:[#allocation16 + $0x10] sm:$0xff]  }
 0x7db   :  { %4185 = vmatpush3.bf16.msra.mxu1 %v4438_v61 }
 0x7dc   :  { %4186 = vmatprep.subr.bf16.mxu1 %v4940_v5 }
 0x7df   :  { %4187 = vmatpush3.bf16.msra.mxu1 %v4439_v21 }
 0x7e0   :  { %4188 = vmatprep.subr.bf16.mxu1 %v4940_v5 }
 0x838   :  { %v4341_v62 = vpop.permute.xlu1 %4340 }
 0x839   :  { %v4343_v3 = vunpack.i.h.bf16 %v4341_v62  ;;  %v4342_v4 = vunpack.i.l.bf16 %v4341_v62  ;;  %v4440_v62 = vld [vmem:[#allocation16 + $0x8] sm:$0xff]  }
 0x83a   :  { %4189 = vmatpush3.bf16.msra.mxu1 %v4440_v62 }
 0x83b   :  { %v1477_v10 = vsel %vm560_vm1, %v1123_v35, %v4343_v3  ;;  %v1016_v12 = vsel %vm560_vm1, %v5243_v0, %v4342_v4  ;;  %v4420_v35 = vld [vmem:[#allocation17 + $0x44] ss:$8 sps:$4 sm:$0xff]   ;;  %4190 = vmatprep.subr.bf16.mxu1 %v4940_v5 }
 0x840   :  { %v4346_v63 = vpop.permute.xlu1 %4345 }
 0x841   :  { %v4348_v6 = vunpack.i.h.bf16 %v4346_v63  ;;  %v4347_v7 = vunpack.i.l.bf16 %v4346_v63  ;;  %v4441_v63 = vld [vmem:[#allocation16] sm:$0xff]  }
 0x842   :  { %4191 = vmatpush3.bf16.msra.mxu1 %v4441_v63 }
 0x843   :  { %v1478_v14 = vsel %vm1017_vm5, %v1477_v10, %v4348_v6  ;;  %v1018_v15 = vsel %vm1017_vm5, %v1016_v12, %v4347_v7  ;;  %4196 = vmatprep.subr.bf16.mxu1 %v4940_v5 }
 0x848   :  { %v4351_v9 = vpop.permute.xlu1 %4350 }
 0x849   :  { %v4353_v8 = vunpack.i.h.bf16 %v4351_v9  ;;  %v4352_v13 = vunpack.i.l.bf16 %v4351_v9 }
 0x84b   :  { %v1479_v17 = vsel %vm1019_vm6, %v1478_v14, %v4353_v8  ;;  %v1020_v18 = vsel %vm1019_vm6, %v1018_v15, %v4352_v13  ;;  %v3771_v13 = vld [vmem:[#allocation10] ss:$0 sm:$0xff] }
 0x84c   :  { %v1480_v19 = vpack.c.bf16 %v1479_v17, %v1020_v18  ;;  %v3772_v18 = vld [vmem:[#allocation11] ss:$0 sm:$0xff] }
 0x84e   :  { %4173 = vmatmul.mubr.bf16.vlgmr.msra.gmra.mxu0 %v1480_v19 }
 0x84f   :  { %1900 = vmatprep.mubr.bf16.mxu0 %v4941_v28  ;;  %1869 = vmatpush1.bf16.msra.mxu0 %v4409_v30 }
 0x850   :  { %1870 = vmatprep.subr.bf16.mxu0 %v4414_v32 }
 0x853   :  { %1871 = vmatpush1.bf16.msra.mxu0 %v4412_v11 }
 0x854   :  { %1872 = vmatprep.subr.bf16.mxu0 %v4417_v16 }
 0x857   :  { %1873 = vmatpush1.bf16.msra.mxu0 %v4415_v34 }
 0x858   :  { %1874 = vmatprep.subr.bf16.mxu0 %v4420_v35  ;;  %v3773_v35 = vld [vmem:[%s5641_s13] ss:$0 sm:$0xff] }
 0x85b   :  { %1875 = vmatpush1.bf16.msra.mxu0 %v4418_v36 }
 0x85c   :  { %1876 = vmatprep.subr.bf16.mxu0 %v4423_v37 }
 0x85f   :  { %1877 = vmatpush1.bf16.msra.mxu0 %v4421_v38 }
 0x860   :  { %1878 = vmatprep.subr.bf16.mxu0 %v4427_v47 }
 0x863   :  { %1879 = vmatpush1.bf16.msra.mxu0 %v4425_v48 }
 0x864   :  { %1880 = vmatprep.subr.bf16.mxu0 %v4431_v50 }
 0x867   :  { %1881 = vmatpush1.bf16.msra.mxu0 %v4429_v51 }
 0x868   :  { %1882 = vmatprep.subr.bf16.mxu0 %v4435_v53 }
 0x86b   :  { %1883 = vmatpush1.bf16.msra.mxu0 %v4433_v54 }
 0x86c   :  { %4226 = vmatprep.subr.bf16.mxu0 %v4940_v5 }
 0x86e   :  { %1901 = vmatmul.mubr.bf16.vlgmr.msra.gmra.mxu0 %v4437_v60 }
 0x86f   :  { %1910 = vmatprep.mubr.bf16.mxu0 %v4941_v28 }
 0x90e   :  { %v1586_v22 = vpop.f32.mrf.mxu0 }
 0x90f   :  { %v1587_v0 = vadd.f32 %v3762_v20, %v1586_v22 }
 0x910   :  { %v4174_v23 = vpop.f32.mrf.mxu0 }
 0x911   :  { %v5361_v24 = vadd.f32 %v5121_v1, %v1587_v0  ;;  %v1764_v23 = vld [vmem:[%s5643_s15] sm:$0x3] }
 0x912   :  { %v1589_v25 = vpop.f32.mrf.mxu0  ;;  %v5396_v16 = vrot.slane %v1764_v23, %v5159_v56 }
 0x913   :  { %v1590_v26 = vadd.f32 %v3762_v20, %v1589_v25  ;;  %1597 = vadd.xlane.f32.xlu1 %v5361_v24  ;;  %v5386_v25 = vrot.slane %v1764_v23, %v5165_v58 }
 0x914   :  { %v4175_v27 = vpop.f32.mrf.mxu0 }
 0x915   :  { %v5365_v29 = vadd.f32 %v5124_v2, %v1590_v26 }
 0x917   :  { %1599 = vadd.xlane.f32.xlu0 %v5365_v29 }
 0x92e   :  { %v1902_v26 = vpop.f32.mrf.mxu0 }
 0x92f   :  { %v1903_v30 = vadd.f32 %v1902_v26, %v5386_v25 }
 0x930   :  { %v1904_v27 = vpop.f32.mrf.mxu0 }
 0x931   :  { %v1905_v36 = vadd.f32 %v1904_v27, %v5396_v16 }
 0x932   :  { %v1906_v31 = vpop.f32.mrf.mxu0 }
 0x933   :  { %v1907_v32 = vadd.f32 %v1906_v31, %v5386_v25 }
 0x934   :  { %v1908_v34 = vpop.f32.mrf.mxu0 }
 0x935   :  { %v5390_v11 = vpack.c.bf16 %v1907_v32, %v1903_v30  ;;  %v1909_v37 = vadd.f32 %v1908_v34, %v5396_v16 }
 0x937   :  { %v1928_v33 = vsel %vm560_vm1, %v5390_v11, 0 }
 0x99c   :  { %v1598_v39 = vpop.xlane.xlu1 %1597 }
 0x99d   :  { %v1601_v40 = vmul.f32 0.0078125, %v1598_v39 }
 0x99f   :  { %v1603_v41 = vsub.f32 %v5361_v24, %v1601_v40 }
 0x9a0   :  { %v1600_v42 = vpop.xlane.xlu0 %1599 }
 0x9a1   :  { %v1602_v43 = vmul.f32 0.0078125, %v1600_v42  ;;  %v1605_v44 = vmul.f32 %v1603_v41, %v1603_v41  ;;  %v5403_v42 = vpack.c.bf16 %v1909_v37, %v1905_v36 }
 0x9a3   :  { %v1604_v45 = vsub.f32 %v5365_v29, %v1602_v43  ;;  %1607 = vadd.xlane.f32.xlu0 %v1605_v44 }
 0x9a5   :  { %v1606_v46 = vmul.f32 %v1604_v45, %v1604_v45 }
 0x9a7   :  { %1609 = vadd.xlane.f32.xlu0 %v1606_v46 }
 0xa2c   :  { %v1608_v3 = vpop.xlane.xlu0 %1607 }
 0xa2d   :  { %v1611_v4 = vmul.f32 0.0078125, %v1608_v3 }
 0xa2f   :  { %v1613_v6 = vadd.f32 1e-05, %v1611_v4 }
 0xa30   :  { %v1610_v7 = vpop.xlane.xlu0 %1609 }
 0xa31   :  { %4567 = vrsqrt.f32 %v1613_v6  ;;  %v1612_v9 = vmul.f32 0.0078125, %v1610_v7  ;;  %v4442_v6 = vld [vmem:[#allocation5 + $0x8] sm:$0xff]  }
 0xa32   :  { %1911 = vmatmul.mubr.bf16.gmra.mxu0 %v4442_v6 }
 0xa33   :  { %v1614_v10 = vadd.f32 1e-05, %v1612_v9  ;;  %4228 = vmatprep.mubr.msk.bf16.mxu0 %vm4942_vm0, %v4940_v5 }
 0xa35   :  { %4569 = vrsqrt.f32 %v1614_v10 }
 0xa3e   :  { %v4568_v12 = vpop.eup %4567 }
 0xa3f   :  { %v1617_v8 = vmul.f32 %v4568_v12, %v1603_v41 }
 0xa41   :  { %v1625_v17 = vmul.f32 %v3771_v13, %v1617_v8 }
 0xa42   :  { %v4570_v14 = vpop.eup %4569 }
 0xa43   :  { %v1618_v15 = vmul.f32 %v4570_v14, %v1604_v45  ;;  %v1633_v20 = vadd.f32 %v3772_v18, %v1625_v17 }
 0xa45   :  { %v1626_v19 = vmul.f32 %v3771_v13, %v1618_v15 }
 0xa47   :  { %v1634_v22 = vadd.f32 %v3772_v18, %v1626_v19 }
 0xa49   :  { %v1635_v0 = vpack.c.bf16 %v1634_v22, %v1633_v20 }
 0xa4b   :  { %4193 = vmatmul.mubr.bf16.vlgmr.msra.gmra.mxu1 %v1635_v0 }
 0xa4c   :  { %4198 = vmatprep.mubr.msk.bf16.mxu1 %vm4942_vm0, %v4940_v5  ;;  %4197 = vmatpush3.bf16.xpose.msra.mxu1 %v1928_v33 }
 0xa4d   :  { %4202 = vmatprep.subr.bf16.mxu1 %v4940_v5 }
 0xaf2   :  { %v1912_v27 = vpop.f32.mrf.mxu0 }
 0xaf3   :  { %v1913_v32 = vadd.f32 %v1912_v27, %v5386_v25 }
 0xaf4   :  { %v5439_v30 = vpop.f32.mrf.mxu0 }
 0xaf6   :  { %v1916_v31 = vpop.f32.mrf.mxu0 }
 0xaf7   :  { %v1917_v33 = vadd.f32 %v1916_v31, %v5386_v25 }
 0xaf9   :  { %v2369_v34 = vpack.c.bf16 %v1917_v33, %v1913_v32 }
 0xb0b   :  { %v1741_v38 = vpop.f32.mrf.mxu1 }
 0xb0c   :  { %v1742_v39 = vadd.f32 %v3773_v35, %v1741_v38 }
 0xb0d   :  { %v4194_v40 = vpop.f32.mrf.mxu1 }
 0xb0e   :  { %v1921_v41 = vpack.c.bf16 %v1742_v39, %v1742_v39 }
 0xb0f   :  { %v1744_v43 = vpop.f32.mrf.mxu1 }
 0xb10   :  { %v1745_v44 = vadd.f32 %v3773_v35, %v1744_v43  ;;  %4199 = vmatmul.mubr.msk.bf16.vlgmr.msra.gmra.mxu1 %vm560_vm1, %v1921_v41 }
 0xb11   :  { %4203 = vmatpush3.bf16.msra.mxu1 %v5403_v42  ;;  %v4195_v45 = vpop.f32.mrf.mxu1  ;;  %4204 = vmatprep.mubr.msk.bf16.mxu1 %vm4942_vm0, %v4940_v5 }
 0xb12   :  { %4208 = vmatprep.subr.bf16.mxu1 %v4940_v5  ;;  %v2368_v18 = vpack.c.bf16 %v1745_v44, %v1745_v44  ;;  %v2375_v44 = vsel %vm560_vm1, %v2369_v34, 0 }
 0xbd0   :  { %v1964_v46 = vpop.f32.mrf.mxu1 }
 0xbd1   :  { %v1971_v47 = vsel %vm1970_vm7, %v1964_v46, -inf }
 0xbd2   :  { %1972 = vmax.xlane.f32.xlu1 %v1971_v47  ;;  %v4200_v48 = vpop.f32.mrf.mxu1 }
 0xbd4   :  { %v1967_v49 = vpop.f32.mrf.mxu1 }
 0xbd6   :  { %v4201_v50 = vpop.f32.mrf.mxu1 }
 0xbe3   :  { %2030 = vrot.lane.b32.xlu1 %v5390_v11, %s4943_s9 }
 0xc5b   :  { %v1973_v51 = vpop.xlane.xlu1 %1972 }
 0xc5c   :  { %v1974_v52 = vsub.f32 %v1964_v46, %v1973_v51 }
 0xc5e   :  { %v1975_v53 = vmul.f32 1.442695, %v1974_v52 }
 0xc5f   :  { %v2031_v62 = vpop.permute.xlu1 %2030 }
 0xc60   :  { %4571 = vpow2.f32 %v1975_v53  ;;  %v2036_v3 = vsel %vm560_vm1, %v2031_v62, 0 }
 0xc6d   :  { %v4572_v54 = vpop.eup %4571 }
 0xc6e   :  { %v1977_v57 = vsel %vm1970_vm7, %v4572_v54, 0.0 }
 0xc6f   :  { %1978 = vadd.xlane.f32.xlu0 %v1977_v57 }
 0xc85   :  { %2027 = vrot.lane.b32.xlu0 %v1921_v41, %s4943_s9 }
 0xcf8   :  { %v1979_v60 = vpop.xlane.xlu0 %1978 }
 0xcf9   :  { %4573 = vrcp.f32 %v1979_v60 }
 0xcfc   :  { %v2028_v4 = vpop.permute.xlu0 %2027 }
 0xd06   :  { %v4574_v61 = vpop.eup %4573 }
 0xd07   :  { %v1981_v21 = vmul.f32 %v4574_v61, %v4572_v54 }
 0xd09   :  { %v1982_v63 = vpack.c.bf16 %v1981_v21, %v1981_v21 }
 0xd0b   :  { %4205 = vmatmul.mubr.msk.bf16.vlgmr.msra.gmra.mxu1 %vm1970_vm7, %v1982_v63 }
 0xd0c   :  { %4209 = vmatpush3.bf16.xpose.msra.mxu1 %v2036_v3  ;;  %4210 = vmatprep.mubr.msk.bf16.mxu1 %vm4942_vm0, %v4940_v5 }
 0xd0d   :  { %4214 = vmatprep.subr.bf16.mxu1 %v4940_v5 }
 0xd13   :  { %4211 = vmatmul.mubr.msk.bf16.vlgmr.msra.gmra.mxu1 %vm560_vm1, %v2028_v4 }
 0xd14   :  { %4216 = vmatprep.mubr.msk.bf16.mxu1 %vm4942_vm0, %v4940_v5 }
 0xdcb   :  { %v5425_v7 = vpop.f32.mrf.mxu1 }
 0xdcd   :  { %v4206_v9 = vpop.f32.mrf.mxu1 }
 0xdcf   :  { %v2023_v10 = vpop.f32.mrf.mxu1 }
 0xdd1   :  { %v4207_v12 = vpop.f32.mrf.mxu1 }
 0xdd3   :  { %v2072_v8 = vpop.f32.mrf.mxu1 }
 0xdd4   :  { %v2078_v13 = vsel %vm1970_vm7, %v2072_v8, -inf }
 0xdd5   :  { %2079 = vmax.xlane.f32.xlu1 %v2078_v13  ;;  %v4212_v14 = vpop.f32.mrf.mxu1 }
 0xdd7   :  { %v2075_v15 = vpop.f32.mrf.mxu1 }
 0xdd9   :  { %v4213_v17 = vpop.f32.mrf.mxu1 }
 0xde6   :  { %2091 = vrot.lane.b32.xlu1 %v5403_v42, %s4943_s9 }
 0xdea   :  { %2137 = vrot.lane.b32.xlu1 %v1921_v41, %s4921_s0 }
 0xdee   :  { %2247 = vrot.lane.b32.xlu1 %v5390_v11, %s4944_s23 }
 0xdf2   :  { %2245 = vrot.lane.b32.xlu1 %v1921_v41, %s4944_s23 }
 0xdf6   :  { %2473 = vrot.lane.b32.xlu1 %v2368_v18, %s4943_s9 }
 0xdfa   :  { %2583 = vrot.lane.b32.xlu1 %v2368_v18, %s4921_s0 }
 0xdfe   :  { %2691 = vrot.lane.b32.xlu1 %v2368_v18, %s4944_s23 }
 0xe5e   :  { %v2080_v19 = vpop.xlane.xlu1 %2079 }
 0xe5f   :  { %v2081_v20 = vsub.f32 %v2072_v8, %v2080_v19 }
 0xe61   :  { %v2082_v22 = vmul.f32 1.442695, %v2081_v20 }
 0xe62   :  { %v2092_v0 = vpop.permute.xlu1 %2091 }
 0xe63   :  { %4575 = vpow2.f32 %v2082_v22  ;;  %4215 = vmatpush3.bf16.msra.mxu1 %v2092_v0 }
 0xe64   :  { %4220 = vmatprep.subr.bf16.mxu1 %v4940_v5 }
 0xe66   :  { %v2138_v40 = vpop.permute.xlu1 %2137 }
 0xe6a   :  { %v2248_v25 = vpop.permute.xlu1 %2247 }
 0xe6e   :  { %v2246_v43 = vpop.permute.xlu1 %2245 }
 0xe70   :  { %v4576_v23 = vpop.eup %4575 }
 0xe71   :  { %v2084_v26 = vsel %vm1970_vm7, %v4576_v23, 0.0 }
 0xe72   :  { %2085 = vadd.xlane.f32.xlu0 %v2084_v26  ;;  %v2474_v47 = vpop.permute.xlu1 %2473 }
 0xe76   :  { %v2584_v51 = vpop.permute.xlu1 %2583 }
 0xe7a   :  { %v2692_v53 = vpop.permute.xlu1 %2691 }
 0xe88   :  { %2139 = vrot.lane.b32.xlu0 %v5390_v11, %s4921_s0  ;;  %v2253_v11 = vsel %vm560_vm1, %v2248_v25, 0 }
 0xe8c   :  { %2476 = vrot.lane.b32.xlu0 %v2369_v34, %s4943_s9 }
 0xe90   :  { %2585 = vrot.lane.b32.xlu0 %v2369_v34, %s4921_s0 }
 0xe94   :  { %2693 = vrot.lane.b32.xlu0 %v2369_v34, %s4944_s23 }
 0xefb   :  { %v2086_v35 = vpop.xlane.xlu0 %2085 }
 0xefc   :  { %4577 = vrcp.f32 %v2086_v35 }
 0xeff   :  { %v2140_v38 = vpop.permute.xlu0 %2139 }
 0xf00   :  { %v2145_v41 = vsel %vm560_vm1, %v2140_v38, 0 }
 0xf03   :  { %v2477_v45 = vpop.permute.xlu0 %2476 }
 0xf04   :  { %v2482_v46 = vsel %vm560_vm1, %v2477_v45, 0 }
 0xf07   :  { %v2586_v48 = vpop.permute.xlu0 %2585 }
 0xf08   :  { %v2591_v49 = vsel %vm560_vm1, %v2586_v48, 0 }
 0xf09   :  { %v4578_v36 = vpop.eup %4577 }
 0xf0a   :  { %v2088_v37 = vmul.f32 %v4578_v36, %v4576_v23 }
 0xf0b   :  { %v2694_v50 = vpop.permute.xlu0 %2693 }
 0xf0c   :  { %v2089_v39 = vpack.c.bf16 %v2088_v37, %v2088_v37  ;;  %v2699_v52 = vsel %vm560_vm1, %v2694_v50, 0 }
 0xf0e   :  { %4217 = vmatmul.mubr.msk.bf16.vlgmr.msra.gmra.mxu1 %vm1970_vm7, %v2089_v39 }
 0xf0f   :  { %4221 = vmatpush3.bf16.xpose.msra.mxu1 %v2145_v41  ;;  %4222 = vmatprep.mubr.msk.bf16.mxu1 %vm4942_vm0, %v4940_v5 }
 0xf10   :  { %4232 = vmatprep.subr.bf16.mxu1 %v4940_v5 }
 0xf16   :  { %4223 = vmatmul.mubr.msk.bf16.vlgmr.msra.gmra.mxu1 %vm560_vm1, %v2138_v40 }
 0xf17   :  { %4233 = vmatpush3.bf16.xpose.msra.mxu1 %v2253_v11  ;;  %4234 = vmatprep.mubr.msk.bf16.mxu1 %vm4942_vm0, %v4940_v5 }
 0xf18   :  { %4244 = vmatprep.subr.bf16.mxu1 %v4940_v5 }
 0xf1e   :  { %4235 = vmatmul.mubr.msk.bf16.vlgmr.msra.gmra.mxu1 %vm560_vm1, %v2246_v43 }
 0xf1f   :  { %4245 = vmatpush3.bf16.xpose.msra.mxu1 %v2375_v44  ;;  %4246 = vmatprep.mubr.msk.bf16.mxu1 %vm4942_vm0, %v4940_v5 }
 0xf20   :  { %4256 = vmatprep.subr.bf16.mxu1 %v4940_v5 }
 0xf26   :  { %4247 = vmatmul.mubr.msk.bf16.vlgmr.msra.gmra.mxu1 %vm560_vm1, %v2368_v18 }
 0xf27   :  { %4257 = vmatpush3.bf16.xpose.msra.mxu1 %v2482_v46  ;;  %4258 = vmatprep.mubr.msk.bf16.mxu1 %vm4942_vm0, %v4940_v5 }
 0xf28   :  { %4268 = vmatprep.subr.bf16.mxu1 %v4940_v5 }
 0xf2e   :  { %4259 = vmatmul.mubr.msk.bf16.vlgmr.msra.gmra.mxu1 %vm560_vm1, %v2474_v47 }
 0xf2f   :  { %4269 = vmatpush3.bf16.xpose.msra.mxu1 %v2591_v49  ;;  %4270 = vmatprep.mubr.msk.bf16.mxu1 %vm4942_vm0, %v4940_v5 }
 0xf30   :  { %4280 = vmatprep.subr.bf16.mxu1 %v4940_v5 }
 0xf36   :  { %4271 = vmatmul.mubr.msk.bf16.vlgmr.msra.gmra.mxu1 %vm560_vm1, %v2584_v51 }
 0xf37   :  { %4281 = vmatpush3.bf16.xpose.msra.mxu1 %v2699_v52  ;;  %4282 = vmatprep.mubr.msk.bf16.mxu1 %vm4942_vm0, %v4940_v5 }
 0xf38   :  { %4292 = vmatprep.subr.bf16.mxu1 %v4940_v5 }
 0xf3e   :  { %4283 = vmatmul.mubr.msk.bf16.vlgmr.msra.gmra.mxu1 %vm560_vm1, %v2692_v53 }
 0xf3f   :  { %4308 = vmatprep.mubr.msk.bf16.mxu1 %vm4942_vm0, %v4940_v5 }
 0xfce   :  { %v5481_v54 = vpop.f32.mrf.mxu1 }
 0xfd0   :  { %v4218_v57 = vpop.f32.mrf.mxu1 }
 0xfd2   :  { %v2134_v60 = vpop.f32.mrf.mxu1 }
 0xfd4   :  { %v4219_v61 = vpop.f32.mrf.mxu1 }
 0xfd6   :  { %v2181_v21 = vpop.f32.mrf.mxu1 }
 0xfd7   :  { %v2187_v62 = vsel %vm1970_vm7, %v2181_v21, -inf }
 0xfd8   :  { %2188 = vmax.xlane.f32.xlu0 %v2187_v62  ;;  %v4224_v63 = vpop.f32.mrf.mxu1 }
 0xfda   :  { %v2184_v3 = vpop.f32.mrf.mxu1 }
 0xfdc   :  { %v4225_v4 = vpop.f32.mrf.mxu1 }
 0xfde   :  { %v2289_v6 = vpop.f32.mrf.mxu1 }
 0xfdf   :  { %v2295_v9 = vsel %vm1970_vm7, %v2289_v6, -inf }
 0xfe0   :  { %2296 = vmax.xlane.f32.xlu1 %v2295_v9  ;;  %v4236_v10 = vpop.f32.mrf.mxu1  ;;  %v1918_v9 = vpop.f32.mrf.mxu0 }
 0xfe1   :  { %v1915_v10 = vadd.f32 %v5439_v30, %v5396_v16 }
 0xfe2   :  { %v2292_v12 = vpop.f32.mrf.mxu1 }
 0xfe3   :  { %v1919_v12 = vadd.f32 %v1918_v9, %v5396_v16 }
 0xfe4   :  { %v4237_v8 = vpop.f32.mrf.mxu1 }
 0xfe5   :  { %v2370_v8 = vpack.c.bf16 %v1919_v12, %v1915_v10  ;;  %v4444_v12 = vld [vmem:[#allocation19 + $0x30] sm:$0xff]  }
 0xfe6   :  { %v2411_v13 = vpop.f32.mrf.mxu1 }
 0xfe7   :  { %v2417_v14 = vsel %vm1970_vm7, %v2411_v13, -inf }
 0xfe8   :  { %2418 = vmax.xlane.f32.xlu0 %v2417_v14  ;;  %v4248_v15 = vpop.f32.mrf.mxu1 }
 0xfea   :  { %v2414_v17 = vpop.f32.mrf.mxu1 }
 0xfec   :  { %v4249_v18 = vpop.f32.mrf.mxu1 }
 0xfee   :  { %v2518_v19 = vpop.f32.mrf.mxu1 }
 0xfef   :  { %v2524_v20 = vsel %vm1970_vm7, %v2518_v19, -inf }
 0xff0   :  { %2525 = vmax.xlane.f32.xlu0 %v2524_v20  ;;  %v4260_v22 = vpop.f32.mrf.mxu1 }
 0xff2   :  { %v2521_v0 = vpop.f32.mrf.mxu1 }
 0xff4   :  { %v4261_v23 = vpop.f32.mrf.mxu1 }
 0xff6   :  { %v2627_v26 = vpop.f32.mrf.mxu1 }
 0xff7   :  { %v2633_v27 = vsel %vm1970_vm7, %v2627_v26, -inf }
 0xff8   :  { %2634 = vmax.xlane.f32.xlu0 %v2633_v27  ;;  %v4272_v31 = vpop.f32.mrf.mxu1 }
 0xffa   :  { %v2630_v32 = vpop.f32.mrf.mxu1 }
 0xffc   :  { %v4273_v33 = vpop.f32.mrf.mxu1 }
 0xffe   :  { %v2735_v34 = vpop.f32.mrf.mxu1 }
 0xfff   :  { %v2741_v35 = vsel %vm1970_vm7, %v2735_v34, -inf }
0x1000   :  { %2742 = vmax.xlane.f32.xlu1 %v2741_v35  ;;  %v4284_v36 = vpop.f32.mrf.mxu1 }
0x1002   :  { %v2738_v37 = vpop.f32.mrf.mxu1 }
0x1004   :  { %v4285_v38 = vpop.f32.mrf.mxu1 }
0x1061   :  { %v2189_v39 = vpop.xlane.xlu0 %2188 }
0x1062   :  { %v2190_v40 = vsub.f32 %v2181_v21, %v2189_v39 }
0x1064   :  { %v2191_v41 = vmul.f32 1.442695, %v2190_v40 }
0x1066   :  { %4579 = vpow2.f32 %v2191_v41 }
0x1069   :  { %v2297_v25 = vpop.xlane.xlu1 %2296 }
0x106a   :  { %v2298_v11 = vsub.f32 %v2289_v6, %v2297_v25 }
0x106c   :  { %v2299_v43 = vmul.f32 1.442695, %v2298_v11 }
0x106e   :  { %4581 = vpow2.f32 %v2299_v43 }
0x1071   :  { %v2419_v44 = vpop.xlane.xlu0 %2418 }
0x1072   :  { %v2420_v45 = vsub.f32 %v2411_v13, %v2419_v44 }
0x1073   :  { %v4580_v46 = vpop.eup %4579 }
0x1074   :  { %v2421_v47 = vmul.f32 1.442695, %v2420_v45  ;;  %v2193_v48 = vsel %vm1970_vm7, %v4580_v46, 0.0 }
0x1075   :  { %2194 = vadd.xlane.f32.xlu0 %v2193_v48 }
0x1076   :  { %4583 = vpow2.f32 %v2421_v47 }
0x1079   :  { %v2526_v49 = vpop.xlane.xlu0 %2525 }
0x107a   :  { %v2527_v50 = vsub.f32 %v2518_v19, %v2526_v49 }
0x107b   :  { %v4582_v51 = vpop.eup %4581 }
0x107c   :  { %v2528_v52 = vmul.f32 1.442695, %v2527_v50  ;;  %v2301_v53 = vsel %vm1970_vm7, %v4582_v51, 0.0 }
0x107d   :  { %2302 = vadd.xlane.f32.xlu1 %v2301_v53 }
0x107e   :  { %4585 = vpow2.f32 %v2528_v52 }
0x1081   :  { %v2635_v57 = vpop.xlane.xlu0 %2634 }
0x1082   :  { %v2636_v60 = vsub.f32 %v2627_v26, %v2635_v57 }
0x1083   :  { %v4584_v61 = vpop.eup %4583 }
0x1084   :  { %v2637_v21 = vmul.f32 1.442695, %v2636_v60  ;;  %v2423_v62 = vsel %vm1970_vm7, %v4584_v61, 0.0 }
0x1085   :  { %2424 = vadd.xlane.f32.xlu0 %v2423_v62 }
0x1086   :  { %4587 = vpow2.f32 %v2637_v21 }
0x1089   :  { %v2743_v13 = vpop.xlane.xlu1 %2742 }
0x108a   :  { %v2744_v14 = vsub.f32 %v2735_v34, %v2743_v13 }
0x108b   :  { %v4586_v63 = vpop.eup %4585 }
0x108c   :  { %v2530_v3 = vsel %vm1970_vm7, %v4586_v63, 0.0  ;;  %v2745_v15 = vmul.f32 1.442695, %v2744_v14  ;;  %v4445_v14 = vld [vmem:[#allocation19 + $0x28] sm:$0xff]  }
0x108d   :  { %2531 = vadd.xlane.f32.xlu1 %v2530_v3 }
0x108e   :  { %4589 = vpow2.f32 %v2745_v15 }
0x1093   :  { %v5493_v4 = vpop.eup %4587 }
0x1094   :  { %v2639_v6 = vsel %vm1970_vm7, %v5493_v4, 0.0 }
0x1095   :  { %2640 = vadd.xlane.f32.xlu1 %v2639_v6  ;;  %v4443_v6 = vld [vmem:[#allocation19 + $0x38] sm:$0xff]  }
0x1096   :  { %4293 = vmatpush3.bf16.msra.mxu1 %v4443_v6 }
0x1097   :  { %4294 = vmatprep.subr.bf16.mxu1 %v4940_v5 }
0x109a   :  { %4295 = vmatpush3.bf16.msra.mxu1 %v4444_v12  ;;  %v4457_v12 = vld [vmem:[#allocation20 + $0xc0] ss:$16 sps:$4 sm:$0xff]  }
0x109b   :  { %2199 = vrot.lane.b32.xlu0 %v5403_v42, %s4921_s0  ;;  %v4590_v30 = vpop.eup %4589  ;;  %4296 = vmatprep.subr.bf16.mxu1 %v4940_v5 }
0x109c   :  { %v2747_v16 = vsel %vm1970_vm7, %v4590_v30, 0.0 }
0x109e   :  { %4297 = vmatpush3.bf16.msra.mxu1 %v4445_v14  ;;  %v4468_v14 = vld [vmem:[#allocation20 + $0xac] ss:$16 sps:$4 sm:$0xff]  }
0x109f   :  { %2537 = vrot.lane.b32.xlu0 %v2370_v8, %s4943_s9  ;;  %4298 = vmatprep.subr.bf16.mxu1 %v4940_v5 }
0x10a3   :  { %2645 = vrot.lane.b32.xlu0 %v2370_v8, %s4921_s0 }
0x10a6   :  { %2307 = vrot.lane.b32.xlu1 %v5403_v42, %s4944_s23 }
0x10a7   :  { %2753 = vrot.lane.b32.xlu0 %v2370_v8, %s4944_s23 }
0x10ca   :  { %2748 = vadd.xlane.f32.xlu1 %v2747_v16 }
0x10fe   :  { %v2195_v17 = vpop.xlane.xlu0 %2194 }
0x10ff   :  { %4591 = vrcp.f32 %v2195_v17  ;;  %v4446_v17 = vld [vmem:[#allocation19 + $0x20] sm:$0xff]  }
0x1100   :  { %4299 = vmatpush3.bf16.msra.mxu1 %v4446_v17  ;;  %v4471_v17 = vld [vmem:[#allocation20 + $0x84] ss:$16 sps:$4 sm:$0xff]  }
0x1101   :  { %4300 = vmatprep.subr.bf16.mxu1 %v4940_v5 }
0x1106   :  { %v2303_v19 = vpop.xlane.xlu1 %2302 }
0x1107   :  { %4593 = vrcp.f32 %v2303_v19  ;;  %v4447_v19 = vld [vmem:[#allocation19 + $0x18] sm:$0xff]  }
0x1108   :  { %4301 = vmatpush3.bf16.msra.mxu1 %v4447_v19  ;;  %v4477_v19 = vld [vmem:[#allocation20 + $0x64] ss:$16 sps:$4 sm:$0xff]  }
0x1109   :  { %4302 = vmatprep.subr.bf16.mxu1 %v4940_v5 }
0x110c   :  { %v4592_v18 = vpop.eup %4591 }
0x110d   :  { %v2197_v22 = vmul.f32 %v4592_v18, %v4580_v46 }
0x110e   :  { %v2425_v20 = vpop.xlane.xlu0 %2424 }
0x110f   :  { %v2198_v42 = vpack.c.bf16 %v2197_v22, %v2197_v22  ;;  %4595 = vrcp.f32 %v2425_v20  ;;  %v4448_v20 = vld [vmem:[#allocation19 + $0x10] sm:$0xff]   ;;  %v4449_v22 = vld [vmem:[#allocation19 + $0x8] sm:$0xff]  }
0x1110   :  { %4303 = vmatpush3.bf16.msra.mxu1 %v4448_v20  ;;  %v4480_v20 = vld [vmem:[#allocation20 + $0x6c] ss:$16 sps:$4 sm:$0xff]  }
0x1111   :  { %4304 = vmatprep.subr.bf16.mxu1 %v4940_v5 }
0x1112   :  { %v2200_v0 = vpop.permute.xlu0 %2199 }
0x1113   :  { %4227 = vmatpush3.bf16.msra.mxu0 %v2200_v0  ;;  %v4450_v0 = vld [vmem:[#allocation19] sm:$0xff]  }
0x1114   :  { %4238 = vmatprep.subr.bf16.mxu0 %v4940_v5  ;;  %v4594_v26 = vpop.eup %4593  ;;  %4305 = vmatpush3.bf16.msra.mxu1 %v4449_v22  ;;  %v4475_v22 = vld [vmem:[#allocation20 + $0x60] ss:$16 sps:$4 sm:$0xff]  }
0x1115   :  { %v2305_v31 = vmul.f32 %v4594_v26, %v4582_v51  ;;  %4306 = vmatprep.subr.bf16.mxu1 %v4940_v5 }
0x1116   :  { %4229 = vmatmul.mubr.msk.bf16.vlgmr.msra.gmra.mxu0 %vm1970_vm7, %v2198_v42  ;;  %v2532_v23 = vpop.xlane.xlu1 %2531  ;;  %v2538_v38 = vpop.permute.xlu0 %2537 }
0x1117   :  { %4240 = vmatprep.mubr.msk.bf16.mxu0 %vm4942_vm0, %v4940_v5  ;;  %4597 = vrcp.f32 %v2532_v23  ;;  %v2306_v33 = vpack.c.bf16 %v2305_v31, %v2305_v31 }
0x1118   :  { %4307 = vmatpush3.bf16.msra.mxu1 %v4450_v0  ;;  %v4478_v0 = vld [vmem:[#allocation20 + $0x68] ss:$16 sps:$4 sm:$0xff]  }
0x111a   :  { %v2646_v25 = vpop.permute.xlu0 %2645 }
0x111c   :  { %v4596_v34 = vpop.eup %4595 }
0x111d   :  { %v2427_v35 = vmul.f32 %v4596_v34, %v4584_v61 }
0x111e   :  { %v2641_v27 = vpop.xlane.xlu1 %2640  ;;  %v2754_v44 = vpop.permute.xlu0 %2753 }
0x111f   :  { %4599 = vrcp.f32 %v2641_v27  ;;  %v2428_v36 = vpack.c.bf16 %v2427_v35, %v2427_v35 }
0x1122   :  { %v2308_v32 = vpop.permute.xlu1 %2307 }
0x1123   :  { %4239 = vmatpush3.bf16.msra.mxu0 %v2308_v32 }
0x1124   :  { %4250 = vmatprep.subr.bf16.mxu0 %v4940_v5  ;;  %v4598_v37 = vpop.eup %4597 }
0x1125   :  { %v2534_v39 = vmul.f32 %v4598_v37, %v4586_v63 }
0x1126   :  { %4241 = vmatmul.mubr.msk.bf16.vlgmr.msra.gmra.mxu0 %vm1970_vm7, %v2306_v33 }
0x1127   :  { %4251 = vmatpush3.bf16.msra.mxu0 %v2370_v8  ;;  %4252 = vmatprep.mubr.msk.bf16.mxu0 %vm4942_vm0, %v4940_v5  ;;  %v2535_v40 = vpack.c.bf16 %v2534_v39, %v2534_v39 }
0x1128   :  { %4262 = vmatprep.subr.bf16.mxu0 %v4940_v5 }
0x112c   :  { %v4600_v41 = vpop.eup %4599 }
0x112d   :  { %v2643_v11 = vmul.f32 %v4600_v41, %v5493_v4 }
0x112e   :  { %4253 = vmatmul.mubr.msk.bf16.vlgmr.msra.gmra.mxu0 %vm1970_vm7, %v2428_v36 }
0x112f   :  { %4263 = vmatpush3.bf16.msra.mxu0 %v2538_v38  ;;  %4264 = vmatprep.mubr.msk.bf16.mxu0 %vm4942_vm0, %v4940_v5  ;;  %v2644_v43 = vpack.c.bf16 %v2643_v11, %v2643_v11 }
0x1130   :  { %4274 = vmatprep.subr.bf16.mxu0 %v4940_v5 }
0x1136   :  { %4265 = vmatmul.mubr.msk.bf16.vlgmr.msra.gmra.mxu0 %vm1970_vm7, %v2535_v40 }
0x1137   :  { %4275 = vmatpush3.bf16.msra.mxu0 %v2646_v25  ;;  %4276 = vmatprep.mubr.msk.bf16.mxu0 %vm4942_vm0, %v4940_v5 }
0x1138   :  { %4286 = vmatprep.subr.bf16.mxu0 %v4940_v5 }
0x113e   :  { %4277 = vmatmul.mubr.msk.bf16.vlgmr.msra.gmra.mxu0 %vm1970_vm7, %v2644_v43 }
0x113f   :  { %4287 = vmatpush3.bf16.msra.mxu0 %v2754_v44  ;;  %4288 = vmatprep.mubr.msk.bf16.mxu0 %vm4942_vm0, %v4940_v5 }
0x1153   :  { %v2749_v45 = vpop.xlane.xlu1 %2748 }
0x1154   :  { %4601 = vrcp.f32 %v2749_v45 }
0x1161   :  { %v4602_v46 = vpop.eup %4601 }
0x1162   :  { %v2751_v47 = vmul.f32 %v4602_v46, %v4590_v30  ;;  %v3816_v46 = vld [vmem:[%s5645_s17] ss:$0 sm:$0xff] }
0x1164   :  { %v2752_v48 = vpack.c.bf16 %v2751_v47, %v2751_v47 }
0x1166   :  { %4289 = vmatmul.mubr.msk.bf16.vlgmr.msra.gmra.mxu0 %vm1970_vm7, %v2752_v48 }
0x1167   :  { %3216 = vmatprep.mubr.bf16.mxu0 %v4941_v28 }
0x11d6   :  { %v2239_v49 = vpop.f32.mrf.mxu0 }
0x11d8   :  { %v4230_v50 = vpop.f32.mrf.mxu0 }
0x11da   :  { %v2242_v51 = vpop.f32.mrf.mxu0 }
0x11dc   :  { %v4231_v52 = vpop.f32.mrf.mxu0 }
0x11e6   :  { %v2347_v53 = vpop.f32.mrf.mxu0 }
0x11e8   :  { %v4242_v57 = vpop.f32.mrf.mxu0 }
0x11e9   :  { %v4453_v57 = vld [vmem:[#allocation20 + $0xe4] ss:$16 sps:$4 sm:$0xff]  }
0x11ea   :  { %v2350_v60 = vpop.f32.mrf.mxu0  ;;  %3184 = vmatprep.subr.bf16.mxu0 %v4453_v57  ;;  %v4499_v57 = vld [vmem:[#allocation22 + $0x78] sm:$0xff]  }
0x11eb   :  { %v4454_v60 = vld [vmem:[#allocation20 + $0xe8] ss:$16 sps:$4 sm:$0xff]  }
0x11ec   :  { %v4243_v61 = vpop.f32.mrf.mxu0 }
0x11ed   :  { %v4456_v61 = vld [vmem:[#allocation20 + $0xec] ss:$16 sps:$4 sm:$0xff]  }
0x11ee   :  { %v2466_v21 = vpop.f32.mrf.mxu0  ;;  %3227 = vmatprep.subr.bf16.mxu1 %v4456_v61  ;;  %v4501_v61 = vld [vmem:[#allocation22 + $0x38] sm:$0xff]  }
0x11f0   :  { %v4254_v62 = vpop.f32.mrf.mxu0 }
0x11f2   :  { %v2469_v63 = vpop.f32.mrf.mxu0 }
0x11f4   :  { %v4255_v3 = vpop.f32.mrf.mxu0 }
0x11f6   :  { %v2577_v4 = vpop.f32.mrf.mxu0 }
0x11f7   :  { %v4354_v9 = vpack.i.bf16 %v2577_v4, %v5481_v54 }
0x11f8   :  { %v4266_v10 = vpop.f32.mrf.mxu0 }
0x11f9   :  { %4355 = vrot.lane.b32.xlu0 %v4354_v9, %s4944_s23  ;;  %v4459_v9 = vld [vmem:[#allocation20 + $0xc4] ss:$16 sps:$4 sm:$0xff]   ;;  %v4462_v10 = vld [vmem:[#allocation20 + $0xcc] ss:$16 sps:$4 sm:$0xff]  }
0x11fa   :  { %v2580_v8 = vpop.f32.mrf.mxu0 }
0x11fb   :  { %v4460_v8 = vld [vmem:[#allocation20 + $0xc8] ss:$16 sps:$4 sm:$0xff]  }
0x11fc   :  { %v4267_v13 = vpop.f32.mrf.mxu0 }
0x11fd   :  { %v4465_v13 = vld [vmem:[#allocation20 + $0xa4] ss:$16 sps:$4 sm:$0xff]  }
0x11fe   :  { %v2685_v15 = vpop.f32.mrf.mxu0 }
0x11ff   :  { %v4359_v30 = vpack.i.bf16 %v2685_v15, %v2239_v49  ;;  %v4463_v15 = vld [vmem:[#allocation20 + $0xa0] ss:$16 sps:$4 sm:$0xff]  }
0x1200   :  { %v4278_v16 = vpop.f32.mrf.mxu0 }
0x1201   :  { %4360 = vrot.lane.b32.xlu0 %v4359_v30, %s4921_s0  ;;  %v4466_v30 = vld [vmem:[#allocation20 + $0xa8] ss:$16 sps:$4 sm:$0xff]   ;;  %v4469_v16 = vld [vmem:[#allocation20 + $0x80] ss:$16 sps:$4 sm:$0xff]  }
0x1202   :  { %v2688_v54 = vpop.f32.mrf.mxu0 }
0x1203   :  { %v4472_v54 = vld [vmem:[#allocation20 + $0x88] ss:$16 sps:$4 sm:$0xff]  }
0x1204   :  { %v4279_v18 = vpop.f32.mrf.mxu0 }
0x1205   :  { %v4474_v18 = vld [vmem:[#allocation20 + $0x8c] ss:$16 sps:$4 sm:$0xff]  }
0x1226   :  { %v2793_v42 = vpop.f32.mrf.mxu0 }
0x1227   :  { %v4364_v23 = vpack.i.bf16 %v2793_v42, %v2347_v53  ;;  %v4483_v42 = vld [vmem:[#allocation20 + $0x44] ss:$16 sps:$4 sm:$0xff]  }
0x1228   :  { %v4290_v26 = vpop.f32.mrf.mxu0 }
0x1229   :  { %4365 = vrot.lane.b32.xlu0 %v4364_v23, %s4943_s9  ;;  %v4486_v23 = vld [vmem:[#allocation20 + $0x4c] ss:$16 sps:$4 sm:$0xff]   ;;  %v4481_v26 = vld [vmem:[#allocation20 + $0x40] ss:$16 sps:$4 sm:$0xff]  }
0x122a   :  { %v2796_v27 = vpop.f32.mrf.mxu0 }
0x122b   :  { %v4484_v27 = vld [vmem:[#allocation20 + $0x48] ss:$16 sps:$4 sm:$0xff]  }
0x122c   :  { %v4291_v31 = vpop.f32.mrf.mxu0 }
0x122d   :  { %v4489_v31 = vld [vmem:[#allocation20 + $0x24] ss:$16 sps:$4 sm:$0xff]  }
0x126b   :  { %v4356_v32 = vpop.permute.xlu0 %4355 }
0x126c   :  { %v4358_v34 = vunpack.i.h.bf16 %v4356_v32  ;;  %v4357_v35 = vunpack.i.l.bf16 %v4356_v32  ;;  %v4492_v32 = vld [vmem:[#allocation20 + $0x2c] ss:$16 sps:$4 sm:$0xff]  }
0x126e   :  { %v2811_v39 = vsel %vm560_vm1, %v2466_v21, %v4358_v34  ;;  %v2365_v5 = vsel %vm560_vm1, %v5425_v7, %v4357_v35  ;;  %v4490_v34 = vld [vmem:[#allocation20 + $0x28] ss:$16 sps:$4 sm:$0xff]   ;;  %v4495_v35 = vld [vmem:[#allocation20 + $0x4] ss:$16 sps:$4 sm:$0xff]  }
0x1273   :  { %v4361_v33 = vpop.permute.xlu0 %4360 }
0x1274   :  { %v4363_v36 = vunpack.i.h.bf16 %v4361_v33  ;;  %v4362_v37 = vunpack.i.l.bf16 %v4361_v33  ;;  %v4487_v33 = vld [vmem:[#allocation20 + $0x20] ss:$16 sps:$4 sm:$0xff]  }
0x1276   :  { %v2812_v25 = vsel %vm1017_vm5, %v2811_v39, %v4363_v36  ;;  %v2366_v11 = vsel %vm1017_vm5, %v2365_v5, %v4362_v37  ;;  %v4498_v36 = vld [vmem:[#allocation20 + $0xc] ss:$16 sps:$4 sm:$0xff]   ;;  %v4493_v37 = vld [vmem:[#allocation20] ss:$16 sps:$4 sm:$0xff]  }
0x129b   :  { %v4366_v38 = vpop.permute.xlu0 %4365 }
0x129c   :  { %v4368_v40 = vunpack.i.h.bf16 %v4366_v38  ;;  %v4367_v41 = vunpack.i.l.bf16 %v4366_v38  ;;  %v4496_v38 = vld [vmem:[#allocation20 + $0x8] ss:$16 sps:$4 sm:$0xff]  }
0x129e   :  { %v2813_v43 = vsel %vm1019_vm6, %v2812_v25, %v4368_v40  ;;  %v2367_v44 = vsel %vm1019_vm6, %v2366_v11, %v4367_v41 }
0x129f   :  { %v2814_v45 = vpack.c.bf16 %v2813_v43, %v2367_v44 }
0x12a1   :  { %4309 = vmatmul.mubr.bf16.vlgmr.msra.gmra.mxu1 %v2814_v45  ;;  %v3825_v45 = vld [vmem:[%s5667_s27] ss:$0 sm:$0xff] }
0x12a2   :  { %3259 = vmatprep.mubr.bf16.mxu1 %v4941_v28  ;;  %v4451_v28 = vld [vmem:[#allocation20 + $0xe0] ss:$16 sps:$4 sm:$0xff]   ;;  %3228 = vmatpush1.bf16.msra.mxu1 %v4454_v60  ;;  %v4500_v60 = vld [vmem:[#allocation22 + $0xf8] sm:$0xff]  }
0x12a3   :  { %3185 = vmatpush1.bf16.msra.mxu0 %v4451_v28  ;;  %3229 = vmatprep.subr.bf16.mxu1 %v4462_v10  ;;  %v4511_v10 = vld [vmem:[#allocation22 + $0x60] sm:$0xff]  }
0x12a4   :  { %3186 = vmatprep.subr.bf16.mxu0 %v4459_v9  ;;  %v4510_v9 = vld [vmem:[#allocation22 + $0xa8] sm:$0xff]  }
0x12a6   :  { %3230 = vmatpush1.bf16.msra.mxu1 %v4460_v8  ;;  %v4513_v8 = vld [vmem:[#allocation22 + $0x20] sm:$0xff]  }
0x12a7   :  { %3187 = vmatpush1.bf16.msra.mxu0 %v4457_v12  ;;  %3231 = vmatprep.subr.bf16.mxu1 %v4468_v14  ;;  %v4512_v12 = vld [vmem:[#allocation22 + $0xe0] sm:$0xff]   ;;  %v4515_v14 = vld [vmem:[#allocation22 + $0x58] sm:$0xff]  }
0x12a8   :  { %3188 = vmatprep.subr.bf16.mxu0 %v4465_v13  ;;  %v4514_v13 = vld [vmem:[#allocation22 + $0xa0] sm:$0xff]  }
0x12aa   :  { %3232 = vmatpush1.bf16.msra.mxu1 %v4466_v30  ;;  %v4517_v30 = vld [vmem:[#allocation22 + $0x18] sm:$0xff]  }
0x12ab   :  { %3189 = vmatpush1.bf16.msra.mxu0 %v4463_v15  ;;  %3233 = vmatprep.subr.bf16.mxu1 %v4474_v18  ;;  %v4516_v15 = vld [vmem:[#allocation22 + $0xd8] sm:$0xff]   ;;  %v4521_v18 = vld [vmem:[#allocation22 + $0x10] sm:$0xff]  }
0x12ac   :  { %3190 = vmatprep.subr.bf16.mxu0 %v4471_v17  ;;  %v4519_v17 = vld [vmem:[#allocation22 + $0x50] sm:$0xff]  }
0x12ae   :  { %3234 = vmatpush1.bf16.msra.mxu1 %v4472_v54  ;;  %v4520_v54 = vld [vmem:[#allocation22 + $0xd0] sm:$0xff]  }
0x12af   :  { %3191 = vmatpush1.bf16.msra.mxu0 %v4469_v16  ;;  %3235 = vmatprep.subr.bf16.mxu1 %v4480_v20  ;;  %v4518_v16 = vld [vmem:[#allocation22 + $0x98] sm:$0xff]   ;;  %v4523_v20 = vld [vmem:[#allocation22 + $0x48] sm:$0xff]  }
0x12b0   :  { %3192 = vmatprep.subr.bf16.mxu0 %v4477_v19  ;;  %v4522_v19 = vld [vmem:[#allocation22 + $0x90] sm:$0xff]  }
0x12b2   :  { %3236 = vmatpush1.bf16.msra.mxu1 %v4478_v0  ;;  %v4525_v0 = vld [vmem:[#allocation22 + $0x8] sm:$0xff]  }
0x12b3   :  { %3193 = vmatpush1.bf16.msra.mxu0 %v4475_v22  ;;  %3237 = vmatprep.subr.bf16.mxu1 %v4486_v23  ;;  %v4524_v22 = vld [vmem:[#allocation22 + $0xc8] sm:$0xff]   ;;  %v4527_v23 = vld [vmem:[#allocation22 + $0x40] sm:$0xff]  }
0x12b4   :  { %3194 = vmatprep.subr.bf16.mxu0 %v4483_v42  ;;  %v4526_v42 = vld [vmem:[#allocation22 + $0x88] sm:$0xff]  }
0x12b6   :  { %3238 = vmatpush1.bf16.msra.mxu1 %v4484_v27  ;;  %v4529_v27 = vld [vmem:[#allocation22] sm:$0xff]  }
0x12b7   :  { %3195 = vmatpush1.bf16.msra.mxu0 %v4481_v26  ;;  %3239 = vmatprep.subr.bf16.mxu1 %v4492_v32  ;;  %v4528_v26 = vld [vmem:[#allocation22 + $0xc0] sm:$0xff]  }
0x12b8   :  { %3196 = vmatprep.subr.bf16.mxu0 %v4489_v31  ;;  %v4530_v31 = vld [vmem:[#allocation22 + $0x80] sm:$0xff]  }
0x12b9   :  { %v3002_v32 = vld [vmem:[%s5647_s19] sm:$0xf] }
0x12ba   :  { %3240 = vmatpush1.bf16.msra.mxu1 %v4490_v34  ;;  %v3007_v34 = vrot.slane %v3002_v32, %v5165_v58 }
0x12bb   :  { %3197 = vmatpush1.bf16.msra.mxu0 %v4487_v33  ;;  %3241 = vmatprep.subr.bf16.mxu1 %v4498_v36  ;;  %v3018_v33 = vsub.s32 3, %v5156_v55  ;;  %v3011_v36 = vrot.slane %v3002_v32, %v5159_v56 }
0x12bc   :  { %3198 = vmatprep.subr.bf16.mxu0 %v4495_v35  ;;  %v3015_v35 = vrot.slane %v3002_v32, %v335_v59 }
0x12be   :  { %3242 = vmatpush1.bf16.msra.mxu1 %v4496_v38 }
0x12bf   :  { %3199 = vmatpush1.bf16.msra.mxu0 %v4493_v37  ;;  %4018 = vmatprep.subr.bf16.mxu1 %v4500_v60  ;;  %v3019_v37 = vrot.slane %v3002_v32, %v3018_v33 }
0x12c0   :  { %3996 = vmatprep.subr.bf16.mxu0 %v4499_v57 }
0x1361   :  { %v2920_v47 = vpop.f32.mrf.mxu1 }
0x1362   :  { %v2921_v7 = vadd.f32 %v3816_v46, %v2920_v47 }
0x1363   :  { %v4310_v48 = vpop.f32.mrf.mxu1 }
0x1364   :  { %v5554_v49 = vadd.f32 %v2921_v7, %v5361_v24  ;;  %v3826_v48 = vld [vmem:[%s5635_s7] ss:$0 sm:$0xff] }
0x1365   :  { %v2923_v50 = vpop.f32.mrf.mxu1 }
0x1366   :  { %v2924_v51 = vadd.f32 %v3816_v46, %v2923_v50  ;;  %2931 = vadd.xlane.f32.xlu0 %v5554_v49 }
0x1367   :  { %v4311_v52 = vpop.f32.mrf.mxu1 }
0x1368   :  { %v5558_v53 = vadd.f32 %v2924_v51, %v5365_v29 }
0x136a   :  { %2933 = vadd.xlane.f32.xlu1 %v5558_v53 }
0x13ef   :  { %v2932_v24 = vpop.xlane.xlu0 %2931 }
0x13f0   :  { %v2935_v21 = vmul.f32 0.0078125, %v2932_v24  ;;  %v4502_v24 = vld [vmem:[#allocation22 + $0xb8] sm:$0xff]  }
0x13f2   :  { %v5562_v62 = vsub.f32 %v5554_v49, %v2935_v21  ;;  %v4503_v21 = vld [vmem:[#allocation22 + $0x70] sm:$0xff]  }
0x13f3   :  { %v2934_v63 = vpop.xlane.xlu1 %2933 }
0x13f4   :  { %v2936_v3 = vmul.f32 0.0078125, %v2934_v63  ;;  %v2939_v29 = vmul.f32 %v5562_v62, %v5562_v62  ;;  %v4505_v63 = vld [vmem:[#allocation22 + $0x30] sm:$0xff]  }
0x13f6   :  { %v5567_v4 = vsub.f32 %v5558_v53, %v2936_v3  ;;  %2941 = vadd.xlane.f32.xlu1 %v2939_v29  ;;  %v4506_v3 = vld [vmem:[#allocation22 + $0xb0] sm:$0xff]   ;;  %v4507_v29 = vld [vmem:[#allocation22 + $0x68] sm:$0xff]  }
0x13f8   :  { %v2940_v6 = vmul.f32 %v5567_v4, %v5567_v4 }
0x13fa   :  { %2943 = vadd.xlane.f32.xlu1 %v2940_v6  ;;  %v4509_v6 = vld [vmem:[#allocation22 + $0x28] sm:$0xff]  }
0x147f   :  { %v2942_v39 = vpop.xlane.xlu1 %2941 }
0x1480   :  { %v2945_v5 = vmul.f32 0.0078125, %v2942_v39 }
0x1482   :  { %v2947_v40 = vadd.f32 1e-05, %v2945_v5 }
0x1483   :  { %v2944_v41 = vpop.xlane.xlu1 %2943 }
0x1484   :  { %4603 = vrsqrt.f32 %v2947_v40  ;;  %v2946_v25 = vmul.f32 0.0078125, %v2944_v41 }
0x1486   :  { %v2948_v11 = vadd.f32 1e-05, %v2946_v25 }
0x1488   :  { %4605 = vrsqrt.f32 %v2948_v11 }
0x1491   :  { %v4604_v43 = vpop.eup %4603 }
0x1492   :  { %v2951_v44 = vmul.f32 %v4604_v43, %v5562_v62  ;;  %v4504_v62 = vld [vmem:[#allocation22 + $0xf0] sm:$0xff]  }
0x1494   :  { %v2959_v7 = vmul.f32 %v3825_v45, %v2951_v44 }
0x1495   :  { %v4606_v46 = vpop.eup %4605 }
0x1496   :  { %v2952_v47 = vmul.f32 %v4606_v46, %v5567_v4  ;;  %v2967_v51 = vadd.f32 %v3826_v48, %v2959_v7  ;;  %v4508_v4 = vld [vmem:[#allocation22 + $0xe8] sm:$0xff]  }
0x1498   :  { %v2960_v50 = vmul.f32 %v3825_v45, %v2952_v47 }
0x149a   :  { %v2968_v52 = vadd.f32 %v3826_v48, %v2960_v50 }
0x149c   :  { %v2969_v28 = vpack.c.bf16 %v2968_v52, %v2967_v51 }
0x149e   :  { %3217 = vmatmul.mubr.bf16.vlgmr.msra.gmra.mxu0 %v2969_v28  ;;  %3260 = vmatmul.mubr.bf16.vlgmr.msra.gmra.mxu1 %v2969_v28 }
0x149f   :  { %3997 = vmatpush3.bf16.msra.mxu0 %v4501_v61  ;;  %4019 = vmatpush3.bf16.msra.mxu1 %v4502_v24 }
0x14a0   :  { %3998 = vmatprep.subr.bf16.mxu0 %v4503_v21  ;;  %4020 = vmatprep.subr.bf16.mxu1 %v4504_v62 }
0x14a3   :  { %3999 = vmatpush3.bf16.msra.mxu0 %v4505_v63  ;;  %4021 = vmatpush3.bf16.msra.mxu1 %v4506_v3 }
0x14a4   :  { %4000 = vmatprep.subr.bf16.mxu0 %v4507_v29  ;;  %4022 = vmatprep.subr.bf16.mxu1 %v4508_v4 }
0x14a7   :  { %4001 = vmatpush3.bf16.msra.mxu0 %v4509_v6  ;;  %4023 = vmatpush3.bf16.msra.mxu1 %v4510_v9 }
0x14a8   :  { %4002 = vmatprep.subr.bf16.mxu0 %v4511_v10  ;;  %4024 = vmatprep.subr.bf16.mxu1 %v4512_v12 }
0x14ab   :  { %4003 = vmatpush3.bf16.msra.mxu0 %v4513_v8  ;;  %4025 = vmatpush3.bf16.msra.mxu1 %v4514_v13 }
0x14ac   :  { %4004 = vmatprep.subr.bf16.mxu0 %v4515_v14  ;;  %4026 = vmatprep.subr.bf16.mxu1 %v4516_v15 }
0x14af   :  { %4005 = vmatpush3.bf16.msra.mxu0 %v4517_v30  ;;  %4027 = vmatpush3.bf16.msra.mxu1 %v4518_v16 }
0x14b0   :  { %4006 = vmatprep.subr.bf16.mxu0 %v4519_v17  ;;  %4028 = vmatprep.subr.bf16.mxu1 %v4520_v54 }
0x14b3   :  { %4007 = vmatpush3.bf16.msra.mxu0 %v4521_v18  ;;  %4029 = vmatpush3.bf16.msra.mxu1 %v4522_v19 }
0x14b4   :  { %4008 = vmatprep.subr.bf16.mxu0 %v4523_v20  ;;  %4030 = vmatprep.subr.bf16.mxu1 %v4524_v22 }
0x14b7   :  { %4009 = vmatpush3.bf16.msra.mxu0 %v4525_v0  ;;  %4031 = vmatpush3.bf16.msra.mxu1 %v4526_v42 }
0x14b8   :  { %4010 = vmatprep.subr.bf16.mxu0 %v4527_v23  ;;  %4032 = vmatprep.subr.bf16.mxu1 %v4528_v26 }
0x14bb   :  { %4011 = vmatpush3.bf16.msra.mxu0 %v4529_v27  ;;  %4033 = vmatpush3.bf16.msra.mxu1 %v4530_v31 }
0x155e   :  { %v3218_v38 = vpop.f32.mrf.mxu0  ;;  %v3261_v39 = vpop.f32.mrf.mxu1 }
0x155f   :  { %v5587_v5 = vadd.f32 %v3218_v38, %v3007_v34  ;;  %v5589_v40 = vadd.f32 %v3261_v39, %v3015_v35 }
0x1560   :  { %v3220_v41 = vpop.f32.mrf.mxu0  ;;  %v3263_v25 = vpop.f32.mrf.mxu1 }
0x1561   :  { %v3278_v11 = vmul.f32 0.044715, %v5587_v5  ;;  %v3280_v43 = vmul.f32 0.044715, %v5589_v40  ;;  %v3221_v44 = vadd.f32 %v3220_v41, %v3011_v36  ;;  %v5593_v58 = vadd.f32 %v3263_v25, %v3019_v37 }
0x1562   :  { %v3222_v55 = vpop.f32.mrf.mxu0  ;;  %v3265_v59 = vpop.f32.mrf.mxu1 }
0x1563   :  { %v3286_v56 = vmul.f32 %v3278_v11, %v5587_v5  ;;  %v3288_v45 = vmul.f32 %v3280_v43, %v5589_v40  ;;  %v3279_v46 = vmul.f32 0.044715, %v3221_v44  ;;  %v3281_v47 = vmul.f32 0.044715, %v5593_v58 }
0x1564   :  { %v3223_v7 = vadd.f32 %v3222_v55, %v3007_v34  ;;  %v5598_v48 = vadd.f32 %v3265_v59, %v3015_v35  ;;  %v3224_v50 = vpop.f32.mrf.mxu0  ;;  %v3267_v51 = vpop.f32.mrf.mxu1  ;;  %v3271_v41 = vmul.f32 0.5, %v3221_v44  ;;  %v3270_v11 = vmul.f32 0.5, %v5587_v5 }
0x1565   :  { %v3294_v52 = vmul.f32 %v3286_v56, %v5587_v5  ;;  %v3296_v28 = vmul.f32 %v3288_v45, %v5589_v40  ;;  %v3287_v57 = vmul.f32 %v3279_v46, %v3221_v44  ;;  %v3289_v60 = vmul.f32 %v3281_v47, %v5593_v58 }
0x1566   :  { %v3282_v61 = vmul.f32 0.044715, %v3223_v7  ;;  %v3284_v24 = vmul.f32 0.044715, %v5598_v48  ;;  %v3225_v21 = vadd.f32 %v3224_v50, %v3011_v36  ;;  %v3268_v62 = vadd.f32 %v3267_v51, %v3019_v37 }
0x1567   :  { %v3302_v63 = vadd.f32 %v3294_v52, %v5587_v5  ;;  %v3304_v3 = vadd.f32 %v3296_v28, %v5589_v40  ;;  %v3295_v29 = vmul.f32 %v3287_v57, %v3221_v44  ;;  %v3297_v4 = vmul.f32 %v3289_v60, %v5593_v58 }
0x1568   :  { %v3290_v6 = vmul.f32 %v3282_v61, %v3223_v7  ;;  %v3292_v9 = vmul.f32 %v3284_v24, %v5598_v48  ;;  %v3283_v10 = vmul.f32 0.044715, %v3225_v21  ;;  %v3285_v12 = vmul.f32 0.044715, %v3268_v62 }
0x1569   :  { %v3310_v8 = vmul.f32 0.7978846, %v3302_v63  ;;  %v3312_v13 = vmul.f32 0.7978846, %v3304_v3  ;;  %v3303_v14 = vadd.f32 %v3295_v29, %v3221_v44  ;;  %v3305_v18 = vadd.f32 %v3297_v4, %v5593_v58 }
0x156a   :  { %v3298_v15 = vmul.f32 %v3290_v6, %v3223_v7  ;;  %v3300_v30 = vmul.f32 %v3292_v9, %v5598_v48  ;;  %v3291_v16 = vmul.f32 %v3283_v10, %v3225_v21  ;;  %v3293_v17 = vmul.f32 %v3285_v12, %v3268_v62  ;;  %v3859_v12 = vld [vmem:[%s5649_s21] ss:$0 sm:$0xff]  ;;  %s3702_s21 = sshll.u32 %s4945_s3, 4  ;;  %s3703_s21 = int_to_ptr.vmem [resolvable:$true] %s3702_s21 }
0x156b   :  { %v3311_v54 = vmul.f32 0.7978846, %v3303_v14  ;;  %4607 = vtanh.f32 %v3310_v8  ;;  %v3313_v42 = vmul.f32 0.7978846, %v3305_v18  ;;  %v3274_v56 = vmul.f32 0.5, %v3223_v7  ;;  %s4883_s28 = scalar_lea.vmem %s3703_s21, 256  ;;  %p4888_p10 = scmp.lt.s32.totalorder %s3703_s21, %s3703_s21 }
0x156c   :  { %v3306_v19 = vadd.f32 %v3298_v15, %v3223_v7  ;;  %v3308_v20 = vadd.f32 %v3300_v30, %v5598_v48  ;;  %v3299_v22 = vmul.f32 %v3291_v16, %v3225_v21  ;;  %4609 = vtanh.f32 %v3312_v13  ;;  %p4884_p9 = scmp.ne.s32.totalorder %s3703_s21, %s4883_s28  ;;  %p4889_p11 = scmp.lt.s32.totalorder %s4883_s28, %s4883_s28 }
0x156d   :  { %v3301_v0 = vmul.f32 %v3293_v17, %v3268_v62  ;;  %4611 = vtanh.f32 %v3311_v54  ;;  %v3275_v50 = vmul.f32 0.5, %v3225_v21  ;;  %v3276_v52 = vmul.f32 0.5, %v5598_v48 }
0x156e   :  { %v3314_v23 = vmul.f32 0.7978846, %v3306_v19  ;;  %v3316_v26 = vmul.f32 0.7978846, %v3308_v20  ;;  %v3307_v27 = vadd.f32 %v3299_v22, %v3225_v21  ;;  %4613 = vtanh.f32 %v3313_v42  ;;  %p4890_p12 = por %p4889_p11, %p4888_p10 }
0x156f   :  { %v3309_v31 = vadd.f32 %v3301_v0, %v3268_v62  ;;  %v3273_v57 = vmul.f32 0.5, %v5593_v58  ;;  %v3277_v60 = vmul.f32 0.5, %v3268_v62  ;;  %v3272_v5 = vmul.f32 0.5, %v5589_v40 }
0x1570   :  { %4615 = vtanh.f32 %v3314_v23  ;;  %v3315_v32 = vmul.f32 0.7978846, %v3307_v27  ;;  %p4891_p13 = pnand %p4890_p12, %p4884_p9 }
0x1571   :  { %4617 = vtanh.f32 %v3316_v26  ;;  %v3317_v33 = vmul.f32 0.7978846, %v3309_v31 }
0x1572   :  { %4619 = vtanh.f32 %v3315_v32 }
0x1573   :  { %4621 = vtanh.f32 %v3317_v33 }
0x1578   :  { %v4608_v34 = vpop.eup %4607 }
0x1579   :  { %v4610_v35 = vpop.eup %4609  ;;  %v3326_v45 = vadd.f32 1.0, %v4608_v34 }
0x157a   :  { %v4612_v36 = vpop.eup %4611  ;;  %v3328_v28 = vadd.f32 1.0, %v4610_v35 }
0x157b   :  { %v4614_v37 = vpop.eup %4613  ;;  %v3327_v25 = vadd.f32 1.0, %v4612_v36  ;;  %v3334_v4 = vmul.f32 %v3326_v45, %v3270_v11 }
0x157c   :  { %v3329_v59 = vadd.f32 1.0, %v4614_v37  ;;  %v3336_v9 = vmul.f32 %v3328_v28, %v3272_v5 }
0x157d   :  { %v4616_v38 = vpop.eup %4615  ;;  %v3335_v24 = vmul.f32 %v3327_v25, %v3271_v41 }
0x157e   :  { %v4618_v39 = vpop.eup %4617  ;;  %v3330_v43 = vadd.f32 1.0, %v4616_v38  ;;  %v3337_v29 = vmul.f32 %v3329_v59, %v3273_v57 }
0x157f   :  { %v4620_v55 = vpop.eup %4619  ;;  %v3332_v46 = vadd.f32 1.0, %v4618_v39 }
0x1580   :  { %v4622_v47 = vpop.eup %4621  ;;  %v3331_v51 = vadd.f32 1.0, %v4620_v55  ;;  %v3338_v44 = vmul.f32 %v3330_v43, %v3274_v56 }
0x1581   :  { %v3333_v61 = vadd.f32 1.0, %v4622_v47  ;;  %v3340_v3 = vmul.f32 %v3332_v46, %v3276_v52 }
0x1582   :  { %v3339_v63 = vmul.f32 %v3331_v51, %v3275_v50  ;;  %v3342_v10 = vpack.c.bf16 %v3338_v44, %v3334_v4 }
0x1583   :  { %v3341_v7 = vmul.f32 %v3333_v61, %v3277_v60  ;;  %v3344_v48 = vpack.c.bf16 %v3340_v3, %v3336_v9 }
0x1584   :  { %v3343_v6 = vpack.c.bf16 %v3339_v63, %v3335_v24 }
0x1585   :  { %v3345_v21 = vpack.c.bf16 %v3341_v7, %v3337_v29 }
0x1586   :  { %3641 = vmatprep.mubr.bf16.mxu0 %v3343_v6 }
0x1587   :  { %3682 = vmatprep.mubr.bf16.mxu1 %v3345_v21  ;;  %3642 = vmatmul.mubr.bf16.vlgmr.msra.gmra.mxu0 %v3342_v10 }
0x1588   :  { %3683 = vmatmul.mubr.bf16.vlgmr.msra.gmra.mxu1 %v3344_v48 }
0x1647   :  { %v4012_v58 = vpop.f32.mrf.mxu0 }
0x1648   :  { %v4034_v62 = vpop.f32.mrf.mxu1 }
0x1649   :  { %v4013_v40 = vpop.f32.mrf.mxu0 }
0x164a   :  { %v4014_v8 = vadd.f32 %v4013_v40, %v4012_v58  ;;  %v4035_v13 = vpop.f32.mrf.mxu1 }
0x164b   :  { %v4015_v14 = vpop.f32.mrf.mxu0  ;;  %v4036_v30 = vadd.f32 %v4035_v13, %v4034_v62 }
0x164c   :  { %v3644_v15 = vadd.f32 %v4014_v8, %v3859_v12  ;;  %v4037_v16 = vpop.f32.mrf.mxu1 }
0x164d   :  { %v4016_v17 = vpop.f32.mrf.mxu0 }
0x164e   :  { %v3685_v54 = vadd.f32 %v4036_v30, %v3644_v15  ;;  %v4017_v18 = vadd.f32 %v4016_v17, %v4015_v14  ;;  %v4038_v19 = vpop.f32.mrf.mxu1 }
0x164f   :  { %v4039_v0 = vadd.f32 %v4038_v19, %v4037_v16 }
0x1650   :  { %v3691_v20 = vadd.f32 %v3685_v54, %v5554_v49  ;;  %v3647_v22 = vadd.f32 %v4017_v18, %v3859_v12 }
0x1652   :  { %v3688_v42 = vadd.f32 %v4039_v0, %v3647_v22  ;;  %v3693_v23 = vadd.f32 %v5121_v1, %v3691_v20 }
0x1654   :  { %v3692_v26 = vadd.f32 %v3688_v42, %v5558_v53  ;;  %3695 = vst [vmem:[#allocation23] sm:$0xff] %v3693_v23 }
0x1656   :  { %v3694_v27 = vadd.f32 %v5124_v2, %v3692_v26 }
0x1658   :  { %3696 = vst [vmem:[#allocation23 + $0x8] sm:$0xff] %v3694_v27 }
0x1659   :  { %4894 = shalt.err (!%p4891_p13)
}
0x165a   :  { %s5668_s14 = sld [smem:[#allocation39_spill]] }
0x1660   :  { %3708 = dma.vmem_to_hbm [thread:$0]  %s3703_s21, 256, %s5668_s14, [#allocation4], %s4926_s29, %s4926_s29, %s4927_s4  }
0x1661   :  { %4917 = dma.done.wait [#allocation4], 256  }
0x1662   :  { %4918 = vsyncadd [#allocation4], 4294967040 }
0x1663   :  { %3712 = vsyncpa [#allocation3], 1 }
0x1664   :  { %3713 = vsyncpa [#allocation6], 1 }
0x1665   :  { %3714 = vsyncpa [#allocation9], 1 }
0x1666   :  { %3715 = vsyncpa [#allocation12], 1 }
0x1667   :  { %3716 = vsyncpa [#allocation15], 1 }
0x1668   :  { %3717 = vsyncpa [#allocation18], 1 }
0x1669   :  { %3718 = vsyncpa [#allocation21], 1 }
0x166a   :  { %3719 = vsyncpa [#allocation4], 1 }

// kernel: tpu_custom_call.1
= control target key start
LH: loop header
LB: loop body
LE: loop exit
PB: predicated region body
PF: predicated region fallthrough
CT: control target
= control target key end

     0   :  { %s5628_s0 = inlined_call_operand.hbm [shape: bf16[2,8,128], index: 0, kind: input, shape index: {}]   ;;  %s5629_s1 = inlined_call_operand.hbm [shape: bf16[2,16,128], index: 1, kind: input, shape index: {}]   ;;  %s5630_s2 = inlined_call_operand.hbm [shape: f32[1,128], index: 2, kind: input, shape index: {}]   ;;  %s5631_s3 = inlined_call_operand.hbm [shape: f32[1,128], index: 3, kind: input, shape index: {}]   ;;  %s5632_s4 = inlined_call_operand.hbm [shape: f32[1,128], index: 4, kind: input, shape index: {}]   ;;  %s5633_s5 = inlined_call_operand.hbm [shape: f32[1,128], index: 5, kind: input, shape index: {}]   ;;  %s5634_s6 = inlined_call_operand.vmem [shape: f32[1,128], index: 6, kind: input, shape index: {}]   ;;  %s5635_s7 = inlined_call_operand.vmem [shape: f32[1,128], index: 7, kind: input, shape index: {}]   ;;  %s5636_s8 = inlined_call_operand.hbm [shape: bf16[128,384], index: 8, kind: input, shape index: {}]   ;;  %s5637_s9 = inlined_call_operand.vmem [shape: f32[1,384], index: 9, kind: input, shape index: {}]   ;;  %s5638_s10 = inlined_call_operand.hbm [shape: bf16[128,128], index: 10, kind: input, shape index: {}]   ;;  %s5639_s11 = inlined_call_operand.vmem [shape: f32[1,128], index: 11, kind: input, shape index: {}]   ;;  %s5640_s12 = inlined_call_operand.hbm [shape: bf16[128,128], index: 12, kind: input, shape index: {}]   ;;  %s5641_s13 = inlined_call_operand.vmem [shape: f32[1,128], index: 13, kind: input, shape index: {}]   ;;  %s5642_s14 = inlined_call_operand.hbm [shape: bf16[128,256], index: 14, kind: input, shape index: {}]   ;;  %s5643_s15 = inlined_call_operand.vmem [shape: f32[1,256], index: 15, kind: input, shape index: {}]   ;;  %s5644_s16 = inlined_call_operand.hbm [shape: bf16[128,128], index: 16, kind: input, shape index: {}]   ;;  %s5645_s17 = inlined_call_operand.vmem [shape: f32[1,128], index: 17, kind: input, shape index: {}]   ;;  %s5646_s18 = inlined_call_operand.hbm [shape: bf16[128,512], index: 18, kind: input, shape index: {}]   ;;  %s5647_s19 = inlined_call_operand.vmem [shape: f32[1,512], index: 19, kind: input, shape index: {}]   ;;  %s5648_s20 = inlined_call_operand.hbm [shape: bf16[512,128], index: 20, kind: input, shape index: {}]   ;;  %s5649_s21 = inlined_call_operand.vmem [shape: f32[1,128], index: 21, kind: input, shape index: {}]   ;;  %s5650_s22 = inlined_call_operand.hbm [shape: f32[2,8,128], index: 22, kind: output, shape index: {}]  }
   0x1   :  { %5651 = sst [smem:[#allocation32_spill]] %s5628_s0 }
   0x2   :  { %5652 = sst [smem:[#allocation33_spill]] %s5629_s1 }
   0x3   :  { %5653 = sst [smem:[#allocation34_spill]] %s5630_s2 }
   0x4   :  { %5654 = sst [smem:[#allocation35_spill]] %s5631_s3 }
   0x5   :  { %5655 = sst [smem:[#allocation36_spill]] %s5632_s4 }
   0x6   :  { %5656 = sst [smem:[#allocation37_spill]] %s5633_s5 }
   0x7   :  { %5657 = sst [smem:[#allocation38_spill]] %s5634_s6 }
   0x8   :  { %5658 = sst [smem:[#allocation39_spill]] %s5650_s22 }
   0x9   :  { %27 = vsyncpa [#allocation3], 0 }
   0xa   :  { %28 = vsyncpa [#allocation6], 0 }
   0xb   :  { %29 = vsyncpa [#allocation9], 0 }
   0xc   :  { %30 = vsyncpa [#allocation12], 0 }
   0xd   :  { %31 = vsyncpa [#allocation15], 0 }
   0xe   :  { %32 = vsyncpa [#allocation18], 0 }
   0xf   :  { %33 = vsyncpa [#allocation21], 0 }
  0x10   :  { %34 = vsyncpa [#allocation4], 0  ;;  %s4919_s3 = smov [#allocation5]   ;;  %s4920_s29 = smov [#allocation8]  }
  0x11   :  { %s52_s28 = sshll.u32 %s4919_s3, 4  ;;  %s75_s30 = sshll.u32 %s4920_s29, 4  ;;  %s53_s28 = int_to_ptr.vmem [resolvable:$true] %s52_s28  ;;  %s76_s30 = int_to_ptr.vmem [resolvable:$true] %s75_s30 }
  0x12   :  { %s4631_s4 = scalar_lea.vmem %s53_s28, 256  ;;  %p4636_p1 = scmp.lt.s32.totalorder %s53_s28, %s53_s28 }
  0x13   :  { %p4632_p0 = scmp.ne.s32.totalorder %s53_s28, %s4631_s4  ;;  %p4637_p2 = scmp.lt.s32.totalorder %s4631_s4, %s4631_s4 }
  0x15   :  { %p4638_p3 = por %p4637_p2, %p4636_p1 }
  0x17   :  { %p4639_p4 = pnand %p4638_p3, %p4632_p0 }
  0x19   :  { %4642 = shalt.err (!%p4639_p4)
}
  0x1a   :  { %s4921_s0 = smov 64   ;;  %s4922_s23 = smov 4  }
  0x1b   :  { %s5659_s24 = sld [smem:[#allocation33_spill]]  ;;  %s4651_s6 = scalar_lea.vmem %s76_s30, 16 }
  0x1c   :  { %p4652_p5 = scmp.ne.s32.totalorder %s76_s30, %s4651_s6  ;;  %s4655_s25 = scalar_lea.vmem %s76_s30, 32 }
  0x1d   :  { %p4656_p6 = scmp.lt.s32.totalorder %s76_s30, %s76_s30  ;;  %p4657_p7 = scmp.lt.s32.totalorder %s4655_s25, %s4651_s6 }
  0x1f   :  { %p4658_p8 = por %p4657_p7, %p4656_p6 }
  0x21   :  { %58 = dma.hbm_to_vmem [thread:$0]  %s5659_s24, 256, %s53_s28, [#allocation6], %s4921_s0, %s4921_s0, %s4922_s23  }
  0x22   :  { %p4659_p9 = pnand %p4658_p8, %p4652_p5 }
  0x24   :  { %4662 = shalt.err (!%p4659_p9)
}
  0x25   :  { %s5660_s27 = sld [smem:[#allocation35_spill]]  ;;  %s4923_s3 = smov [#allocation11]  }
  0x26   :  { %s95_s29 = sshll.u32 %s4923_s3, 4  ;;  %s4924_s4 = smov [#allocation14]   ;;  %s96_s29 = int_to_ptr.vmem [resolvable:$true] %s95_s29 }
  0x27   :  { %s122_s22 = sshll.u32 %s4924_s4, 4  ;;  %s4671_s1 = scalar_lea.vmem %s96_s29, 16  ;;  %s123_s22 = int_to_ptr.vmem [resolvable:$true] %s122_s22 }
  0x28   :  { %p4672_p10 = scmp.ne.s32.totalorder %s96_s29, %s4671_s1  ;;  %s4675_s28 = scalar_lea.vmem %s96_s29, 32 }
  0x29   :  { %p4676_p11 = scmp.lt.s32.totalorder %s96_s29, %s96_s29  ;;  %p4677_p12 = scmp.lt.s32.totalorder %s4675_s28, %s4671_s1 }
  0x2b   :  { %78 = dma.hbm_to_vmem [thread:$0]  %s5660_s27, 16, %s76_s30, [#allocation9]  }
  0x2c   :  { %p4678_p13 = por %p4677_p12, %p4676_p11 }
  0x2e   :  { %p4679_p0 = pnand %p4678_p13, %p4672_p10 }
  0x30   :  { %4682 = shalt.err (!%p4679_p0)
}
  0x31   :  { %s5661_s6 = sld [smem:[#allocation37_spill]]  ;;  %s4691_s25 = scalar_lea.vmem %s123_s22, 1024 }
  0x32   :  { %p4692_p1 = scmp.ne.s32.totalorder %s123_s22, %s4691_s25  ;;  %p4696_p2 = scmp.lt.s32.totalorder %s123_s22, %s123_s22 }
  0x33   :  { %p4697_p3 = scmp.lt.s32.totalorder %s4691_s25, %s4691_s25 }
  0x35   :  { %p4698_p4 = por %p4697_p3, %p4696_p2 }
  0x37   :  { %98 = dma.hbm_to_vmem [thread:$0]  %s5661_s6, 16, %s96_s29, [#allocation12]  }
  0x38   :  { %p4699_p5 = pnand %p4698_p4, %p4692_p1 }
  0x3a   :  { %4702 = shalt.err (!%p4699_p5)
}
  0x3b   :  { %128 = dma.hbm_to_vmem [thread:$0]  %s5638_s10, 1024, %s123_s22, [#allocation15], %s4921_s0, %s4921_s0, %s4922_s23  }
  0x3c   :  { %s4925_s2 = smov [#allocation17]  }
  0x3d   :  { %s150_s27 = sshll.u32 %s4925_s2, 4  ;;  %s151_s27 = int_to_ptr.vmem [resolvable:$true] %s150_s27 }
  0x3e   :  { %s4711_s3 = scalar_lea.vmem %s151_s27, 2048  ;;  %p4716_p7 = scmp.lt.s32.totalorder %s151_s27, %s151_s27 }
  0x3f   :  { %p4712_p6 = scmp.ne.s32.totalorder %s151_s27, %s4711_s3  ;;  %p4717_p8 = scmp.lt.s32.totalorder %s4711_s3, %s4711_s3 }
  0x41   :  { %p4718_p9 = por %p4717_p8, %p4716_p7 }
  0x43   :  { %p4719_p10 = pnand %p4718_p9, %p4712_p6 }
  0x45   :  { %4722 = shalt.err (!%p4719_p10)
}
  0x46   :  { %s4926_s29 = smov 128   ;;  %s4927_s4 = smov 8  }
  0x47   :  { %156 = dma.hbm_to_vmem [thread:$0]  %s5642_s14, 2048, %s151_s27, [#allocation18], %s4926_s29, %s4926_s29, %s4927_s4  }
  0x48   :  { %s4928_s10 = smov [#allocation20]  }
  0x49   :  { %s178_s22 = sshll.u32 %s4928_s10, 4  ;;  %s179_s22 = int_to_ptr.vmem [resolvable:$true] %s178_s22 }
  0x4a   :  { %s4731_s5 = scalar_lea.vmem %s179_s22, 4096  ;;  %p4736_p12 = scmp.lt.s32.totalorder %s179_s22, %s179_s22 }
  0x4b   :  { %p4732_p11 = scmp.ne.s32.totalorder %s179_s22, %s4731_s5  ;;  %p4737_p13 = scmp.lt.s32.totalorder %s4731_s5, %s4731_s5 }
  0x4d   :  { %p4738_p0 = por %p4737_p13, %p4736_p12 }
  0x4f   :  { %p4739_p1 = pnand %p4738_p0, %p4732_p11 }
  0x51   :  { %4742 = shalt.err (!%p4739_p1)
}
  0x52   :  { %s4929_s24 = smov 256   ;;  %s4930_s6 = smov 16  }
  0x53   :  { %184 = dma.hbm_to_vmem [thread:$0]  %s5646_s18, 4096, %s179_s22, [#allocation21], %s4929_s24, %s4929_s24, %s4930_s6  }
  0x54   :  { %s4931_s26 = smov [#allocation2]   ;;  %s4932_s3 = smov [#allocation7]  }
  0x55   :  { %s40_s2 = sshll.u32 %s4931_s26, 4  ;;  %s65_s14 = sshll.u32 %s4932_s3, 4  ;;  %s41_s2 = int_to_ptr.vmem [resolvable:$true] %s40_s2  ;;  %s66_s14 = int_to_ptr.vmem [resolvable:$true] %s65_s14 }
  0x56   :  { %s4751_s27 = scalar_lea.vmem %s41_s2, 128  ;;  %p4756_p3 = scmp.lt.s32.totalorder %s41_s2, %s41_s2 }
  0x57   :  { %p4752_p2 = scmp.ne.s32.totalorder %s41_s2, %s4751_s27  ;;  %p4757_p4 = scmp.lt.s32.totalorder %s4751_s27, %s4751_s27 }
  0x59   :  { %p4758_p5 = por %p4757_p4, %p4756_p3 }
  0x5b   :  { %p4759_p6 = pnand %p4758_p5, %p4752_p2 }
  0x5d   :  { %4762 = shalt.err (!%p4759_p6)
}
  0x5e   :  { %s5662_s10 = sld [smem:[#allocation32_spill]]  ;;  %s4771_s18 = scalar_lea.vmem %s66_s14, 16 }
  0x5f   :  { %p4772_p7 = scmp.ne.s32.totalorder %s66_s14, %s4771_s18  ;;  %s4775_s22 = scalar_lea.vmem %s66_s14, 32 }
  0x60   :  { %p4776_p8 = scmp.lt.s32.totalorder %s66_s14, %s66_s14  ;;  %p4777_p9 = scmp.lt.s32.totalorder %s4775_s22, %s4771_s18 }
  0x62   :  { %p4778_p10 = por %p4777_p9, %p4776_p8 }
  0x64   :  { %46 = dma.hbm_to_vmem [thread:$0]  %s5662_s10, 128, %s41_s2, [#allocation3], %s4921_s0, %s4921_s0, %s4922_s23  }
  0x65   :  { %p4779_p11 = pnand %p4778_p10, %p4772_p7 }
  0x67   :  { %4782 = shalt.err (!%p4779_p11)
}
  0x68   :  { %s5663_s6 = sld [smem:[#allocation34_spill]]  ;;  %s4933_s25 = smov [#allocation10]  }
  0x69   :  { %s85_s30 = sshll.u32 %s4933_s25, 4  ;;  %s4934_s26 = smov [#allocation13]   ;;  %s86_s30 = int_to_ptr.vmem [resolvable:$true] %s85_s30 }
  0x6a   :  { %s108_s3 = sshll.u32 %s4934_s26, 4  ;;  %s4791_s27 = scalar_lea.vmem %s86_s30, 16  ;;  %s109_s3 = int_to_ptr.vmem [resolvable:$true] %s108_s3 }
  0x6b   :  { %p4792_p12 = scmp.ne.s32.totalorder %s86_s30, %s4791_s27  ;;  %s4795_s2 = scalar_lea.vmem %s86_s30, 32 }
  0x6c   :  { %p4796_p13 = scmp.lt.s32.totalorder %s86_s30, %s86_s30  ;;  %p4797_p0 = scmp.lt.s32.totalorder %s4795_s2, %s4791_s27 }
  0x6e   :  { %68 = dma.hbm_to_vmem [thread:$0]  %s5663_s6, 16, %s66_s14, [#allocation6]  }
  0x6f   :  { %p4798_p1 = por %p4797_p0, %p4796_p13 }
  0x71   :  { %p4799_p2 = pnand %p4798_p1, %p4792_p12 }
  0x73   :  { %4802 = shalt.err (!%p4799_p2)
}
  0x74   :  { %s5664_s10 = sld [smem:[#allocation36_spill]]  ;;  %s4811_s18 = scalar_lea.vmem %s109_s3, 3072 }
  0x75   :  { %p4812_p3 = scmp.ne.s32.totalorder %s109_s3, %s4811_s18  ;;  %p4816_p4 = scmp.lt.s32.totalorder %s109_s3, %s109_s3 }
  0x76   :  { %p4817_p5 = scmp.lt.s32.totalorder %s4811_s18, %s4811_s18 }
  0x78   :  { %p4818_p6 = por %p4817_p5, %p4816_p4 }
  0x7a   :  { %88 = dma.hbm_to_vmem [thread:$0]  %s5664_s10, 16, %s86_s30, [#allocation9]  }
  0x7b   :  { %p4819_p7 = pnand %p4818_p6, %p4812_p3 }
  0x7d   :  { %4822 = shalt.err (!%p4819_p7)
}
  0x7e   :  { %s4935_s14 = smov 192   ;;  %s4936_s22 = smov 12  }
  0x7f   :  { %114 = dma.hbm_to_vmem [thread:$0]  %s5636_s8, 3072, %s109_s3, [#allocation12], %s4935_s14, %s4935_s14, %s4936_s22  }
  0x80   :  { %s4937_s6 = smov [#allocation16]   ;;  %s4938_s26 = smov [#allocation19]  }
  0x81   :  { %s136_s25 = sshll.u32 %s4937_s6, 4  ;;  %s164_s27 = sshll.u32 %s4938_s26, 4  ;;  %s137_s25 = int_to_ptr.vmem [resolvable:$true] %s136_s25  ;;  %s165_s27 = int_to_ptr.vmem [resolvable:$true] %s164_s27 }
  0x82   :  { %s4831_s30 = scalar_lea.vmem %s137_s25, 1024  ;;  %p4836_p9 = scmp.lt.s32.totalorder %s137_s25, %s137_s25 }
  0x83   :  { %p4832_p8 = scmp.ne.s32.totalorder %s137_s25, %s4831_s30  ;;  %p4837_p10 = scmp.lt.s32.totalorder %s4831_s30, %s4831_s30 }
  0x85   :  { %p4838_p11 = por %p4837_p10, %p4836_p9 }
  0x87   :  { %p4839_p12 = pnand %p4838_p11, %p4832_p8 }
  0x89   :  { %4842 = shalt.err (!%p4839_p12)
}
  0x8a   :  { %142 = dma.hbm_to_vmem [thread:$0]  %s5640_s12, 1024, %s137_s25, [#allocation15], %s4921_s0, %s4921_s0, %s4922_s23  }
  0x8b   :  { %s4851_s8 = scalar_lea.vmem %s165_s27, 1024  ;;  %p4856_p0 = scmp.lt.s32.totalorder %s165_s27, %s165_s27 }
  0x8c   :  { %p4852_p13 = scmp.ne.s32.totalorder %s165_s27, %s4851_s8  ;;  %p4857_p1 = scmp.lt.s32.totalorder %s4851_s8, %s4851_s8 }
  0x8e   :  { %p4858_p2 = por %p4857_p1, %p4856_p0 }
  0x90   :  { %p4859_p3 = pnand %p4858_p2, %p4852_p13 }
  0x92   :  { %4862 = shalt.err (!%p4859_p3)
}
  0x93   :  { %170 = dma.hbm_to_vmem [thread:$0]  %s5644_s16, 1024, %s165_s27, [#allocation18], %s4921_s0, %s4921_s0, %s4922_s23  }
  0x94   :  { %s4939_s10 = smov [#allocation22]  }
  0x95   :  { %s192_s18 = sshll.u32 %s4939_s10, 4  ;;  %s193_s18 = int_to_ptr.vmem [resolvable:$true] %s192_s18 }
  0x96   :  { %s4871_s14 = scalar_lea.vmem %s193_s18, 4096  ;;  %p4876_p5 = scmp.lt.s32.totalorder %s193_s18, %s193_s18 }
  0x97   :  { %p4872_p4 = scmp.ne.s32.totalorder %s193_s18, %s4871_s14  ;;  %p4877_p6 = scmp.lt.s32.totalorder %s4871_s14, %s4871_s14 }
  0x99   :  { %p4878_p7 = por %p4877_p6, %p4876_p5 }
  0x9b   :  { %p4879_p8 = pnand %p4878_p7, %p4872_p4 }
  0x9d   :  { %4882 = shalt.err (!%p4879_p8)
}
  0x9e   :  { %198 = dma.hbm_to_vmem [thread:$0]  %s5648_s20, 4096, %s193_s18, [#allocation21], %s4921_s0, %s4921_s0, %s4922_s23  }
  0x9f   :  { %4903 = dma.done.wait [#allocation3], 128  }
  0xa0   :  { %4904 = vsyncadd [#allocation3], 4294967168 }
  0xa1   :  { %4905 = dma.done.wait [#allocation6], 272  }
  0xa2   :  { %4906 = vsyncadd [#allocation6], 4294967024 }
  0xa3   :  { %4907 = dma.done.wait [#allocation9], 32  }
  0xa4   :  { %4908 = vsyncadd [#allocation9], 4294967264 }
  0xa5   :  { %4909 = dma.done.wait [#allocation12], 3088  }
  0xa6   :  { %4910 = vsyncadd [#allocation12], 4294964208 }
  0xa7   :  { %4911 = dma.done.wait [#allocation15], 2048  }
  0xa8   :  { %4912 = vsyncadd [#allocation15], 4294965248 }
  0xa9   :  { %4913 = dma.done.wait [#allocation18], 3072  }
  0xaa   :  { %4914 = vsyncadd [#allocation18], 4294964224 }
  0xab   :  { %4915 = dma.done.wait [#allocation21], 8192  }
  0xac   :  { %4916 = vsyncadd [#allocation21], 4294959104  ;;  %v3893_v0 = vld [vmem:[#allocation2] sm:$0xff]   ;;  %v4369_v3 = vld [vmem:[#allocation13 + $0xac] ss:$12 sps:$4 sm:$0xff]   ;;  %v4940_v5 = vmov 0.0   ;;  %v325_v54 = vlaneseq }
  0xad   :  { %v5121_v1 = vunpack.c.l.bf16 %v3893_v0  ;;  %v5124_v2 = vunpack.c.h.bf16 %v3893_v0  ;;  %v4371_v4 = vld [vmem:[#allocation13 + $0xa8] ss:$12 sps:$4 sm:$0xff]   ;;  %4040 = vmatprep.subr.bf16.mxu1 %v4940_v5  ;;  %v4372_v6 = vld [vmem:[#allocation13 + $0xb0] ss:$12 sps:$4 sm:$0xff]   ;;  %468 = vmatprep.subr.bf16.mxu0 %v4369_v3  ;;  %v4376_v17 = vld [vmem:[#allocation13 + $0x98] ss:$12 sps:$4 sm:$0xff]  }
  0xae   :  { %469 = vmatpush1.bf16.msra.mxu0 %v4371_v4  ;;  %4041 = vmatpush3.bf16.msra.mxu1 %v4372_v6  ;;  %v4373_v15 = vld [vmem:[#allocation13 + $0x94] ss:$12 sps:$4 sm:$0xff]   ;;  %v4375_v16 = vld [vmem:[#allocation13 + $0x90] ss:$12 sps:$4 sm:$0xff]   ;;  %v4379_v19 = vld [vmem:[#allocation13 + $0x78] ss:$12 sps:$4 sm:$0xff]  }
  0xaf   :  { %251 = vadd.xlane.f32.xlu0 %v5121_v1  ;;  %4042 = vmatprep.subr.bf16.mxu1 %v4940_v5  ;;  %v4377_v18 = vld [vmem:[#allocation13 + $0x7c] ss:$12 sps:$4 sm:$0xff]   ;;  %v4380_v20 = vld [vmem:[#allocation13 + $0x80] ss:$12 sps:$4 sm:$0xff]   ;;  %v4381_v21 = vld [vmem:[#allocation13 + $0x64] ss:$12 sps:$4 sm:$0xff]  }
  0xb0   :  { %470 = vmatprep.subr.bf16.mxu0 %v4373_v15  ;;  %v4383_v22 = vld [vmem:[#allocation13 + $0x60] ss:$12 sps:$4 sm:$0xff]   ;;  %v4384_v23 = vld [vmem:[#allocation13 + $0x68] ss:$12 sps:$4 sm:$0xff]   ;;  %v4388_v26 = vld [vmem:[#allocation13 + $0x50] ss:$12 sps:$4 sm:$0xff]  }
  0xb1   :  { %v4385_v24 = vld [vmem:[#allocation13 + $0x4c] ss:$12 sps:$4 sm:$0xff]   ;;  %v4387_v25 = vld [vmem:[#allocation13 + $0x48] ss:$12 sps:$4 sm:$0xff]   ;;  %v4941_v28 = vmov 0   ;;  %vm4942_vm0 = vmmov 0  }
  0xb2   :  { %471 = vmatpush1.bf16.msra.mxu0 %v4375_v16  ;;  %4043 = vmatpush3.bf16.msra.mxu1 %v4376_v17  ;;  %v4389_v27 = vld [vmem:[#allocation13 + $0x34] ss:$12 sps:$4 sm:$0xff]   ;;  %v4391_v29 = vld [vmem:[#allocation13 + $0x30] ss:$12 sps:$4 sm:$0xff]   ;;  %v4392_v30 = vld [vmem:[#allocation13 + $0x38] ss:$12 sps:$4 sm:$0xff]  }
  0xb3   :  { %253 = vadd.xlane.f32.xlu0 %v5124_v2  ;;  %4044 = vmatprep.subr.bf16.mxu1 %v4940_v5  ;;  %v4393_v31 = vld [vmem:[#allocation13 + $0x1c] ss:$12 sps:$4 sm:$0xff]   ;;  %v4395_v32 = vld [vmem:[#allocation13 + $0x18] ss:$12 sps:$4 sm:$0xff]   ;;  %v4396_v33 = vld [vmem:[#allocation13 + $0x20] ss:$12 sps:$4 sm:$0xff]  }
  0xb4   :  { %472 = vmatprep.subr.bf16.mxu0 %v4377_v18  ;;  %500 = vmatprep.mubr.bf16.mxu0 %v4941_v28  ;;  %v4397_v34 = vld [vmem:[#allocation13 + $0x4] ss:$12 sps:$4 sm:$0xff]   ;;  %v4399_v35 = vld [vmem:[#allocation13] ss:$12 sps:$4 sm:$0xff]   ;;  %v4400_v36 = vld [vmem:[#allocation13 + $0x8] ss:$12 sps:$4 sm:$0xff]  }
  0xb5   :  { %4056 = vmatprep.mubr.msk.bf16.mxu1 %vm4942_vm0, %v4940_v5  ;;  %v3720_v45 = vld [vmem:[#allocation7] ss:$0 sm:$0xff]  ;;  %v3721_v49 = vld [vmem:[#allocation8] ss:$0 sm:$0xff]  ;;  %v5156_v55 = vshrl.u32 %v325_v54, 7  ;;  %vm560_vm1 = vcmask 261120  }
  0xb6   :  { %473 = vmatpush1.bf16.msra.mxu0 %v4379_v19  ;;  %4045 = vmatpush3.bf16.msra.mxu1 %v4380_v20  ;;  %v323_v57 = vld [vmem:[%s5637_s9] sm:$0x7]  ;;  %vm624_vm2 = vcmask 1043456   ;;  %v555_v19 = vand.u32 127, %v325_v54  ;;  %vm608_vm4 = vcmask 64512   ;;  %s4943_s9 = smov 96  }
  0xb7   :  { %4046 = vmatprep.subr.bf16.mxu1 %v4940_v5  ;;  %474 = vmatprep.subr.bf16.mxu0 %v4381_v21  ;;  %v5159_v56 = vsub.s32 1, %v5156_v55  ;;  %v5165_v58 = vsub.s32 0, %v5156_v55  ;;  %v335_v59 = vsub.s32 2, %v5156_v55  ;;  %s4944_s23 = smov 32   ;;  %vm1017_vm5 = vcmask 523264   ;;  %s5667_s27 = sld [smem:[#allocation38_spill]] }
  0xb8   :  { %vm5185_vm3 = vcmp.ge.s32.totalorder %v5156_v55, %v555_v19  ;;  %vm1019_vm6 = vcmask 785408   ;;  %vm1970_vm7 = vcmask 130048   ;;  %s4945_s3 = smov [#allocation23]  }
  0xb9   :  { %v332_v60 = vrot.slane %v323_v57, %v5159_v56  ;;  %v328_v3 = vrot.slane %v323_v57, %v5165_v58  ;;  %v336_v4 = vrot.slane %v323_v57, %v335_v59 }
  0xba   :  { %475 = vmatpush1.bf16.msra.mxu0 %v4383_v22  ;;  %4047 = vmatpush3.bf16.msra.mxu1 %v4384_v23 }
  0xbb   :  { %476 = vmatprep.subr.bf16.mxu0 %v4385_v24  ;;  %4048 = vmatprep.subr.bf16.mxu1 %v4940_v5 }
  0xbe   :  { %477 = vmatpush1.bf16.msra.mxu0 %v4387_v25  ;;  %4049 = vmatpush3.bf16.msra.mxu1 %v4388_v26 }
  0xbf   :  { %478 = vmatprep.subr.bf16.mxu0 %v4389_v27  ;;  %4050 = vmatprep.subr.bf16.mxu1 %v4940_v5 }
  0xc2   :  { %479 = vmatpush1.bf16.msra.mxu0 %v4391_v29  ;;  %4051 = vmatpush3.bf16.msra.mxu1 %v4392_v30 }
  0xc3   :  { %480 = vmatprep.subr.bf16.mxu0 %v4393_v31  ;;  %4052 = vmatprep.subr.bf16.mxu1 %v4940_v5 }
  0xc6   :  { %481 = vmatpush1.bf16.msra.mxu0 %v4395_v32  ;;  %4053 = vmatpush3.bf16.msra.mxu1 %v4396_v33 }
  0xc7   :  { %482 = vmatprep.subr.bf16.mxu0 %v4397_v34  ;;  %4054 = vmatprep.subr.bf16.mxu1 %v4940_v5 }
  0xca   :  { %483 = vmatpush1.bf16.msra.mxu0 %v4399_v35  ;;  %4055 = vmatpush3.bf16.msra.mxu1 %v4400_v36 }
  0xcb   :  { %4060 = vmatprep.subr.bf16.mxu0 %v4940_v5  ;;  %4078 = vmatprep.subr.bf16.mxu1 %v4940_v5 }
 0x138   :  { %v252_v7 = vpop.xlane.xlu0 %251 }
 0x139   :  { %v256_v8 = vmul.f32 0.0078125, %v252_v7 }
 0x13b   :  { %v5130_v9 = vsub.f32 %v5121_v1, %v256_v8 }
 0x13c   :  { %v254_v10 = vpop.xlane.xlu0 %253 }
 0x13d   :  { %v257_v11 = vmul.f32 0.0078125, %v254_v10  ;;  %v260_v12 = vmul.f32 %v5130_v9, %v5130_v9 }
 0x13f   :  { %v5135_v13 = vsub.f32 %v5124_v2, %v257_v11  ;;  %262 = vadd.xlane.f32.xlu1 %v260_v12 }
 0x141   :  { %v261_v14 = vmul.f32 %v5135_v13, %v5135_v13 }
 0x143   :  { %264 = vadd.xlane.f32.xlu1 %v261_v14 }
 0x1c8   :  { %v263_v37 = vpop.xlane.xlu1 %262 }
 0x1c9   :  { %v266_v38 = vmul.f32 0.0078125, %v263_v37 }
 0x1cb   :  { %v268_v39 = vadd.f32 1e-05, %v266_v38 }
 0x1cc   :  { %v265_v40 = vpop.xlane.xlu1 %264 }
 0x1cd   :  { %4531 = vrsqrt.f32 %v268_v39  ;;  %v267_v41 = vmul.f32 0.0078125, %v265_v40 }
 0x1cf   :  { %v269_v42 = vadd.f32 1e-05, %v267_v41 }
 0x1d1   :  { %4533 = vrsqrt.f32 %v269_v42 }
 0x1da   :  { %v4532_v43 = vpop.eup %4531 }
 0x1db   :  { %v272_v44 = vmul.f32 %v4532_v43, %v5130_v9 }
 0x1dd   :  { %v280_v48 = vmul.f32 %v3720_v45, %v272_v44 }
 0x1de   :  { %v4534_v46 = vpop.eup %4533 }
 0x1df   :  { %v273_v47 = vmul.f32 %v4534_v46, %v5135_v13  ;;  %v288_v51 = vadd.f32 %v3721_v49, %v280_v48 }
 0x1e1   :  { %v281_v50 = vmul.f32 %v3720_v45, %v273_v47 }
 0x1e3   :  { %v289_v52 = vadd.f32 %v3721_v49, %v281_v50 }
 0x1e5   :  { %v290_v53 = vpack.c.bf16 %v289_v52, %v288_v51 }
 0x1e7   :  { %501 = vmatmul.mubr.bf16.vlgmr.msra.gmra.mxu0 %v290_v53  ;;  %4057 = vmatmul.mubr.bf16.vlgmr.msra.gmra.mxu1 %v290_v53 }
 0x1e8   :  { %4062 = vmatprep.mubr.msk.bf16.mxu0 %vm4942_vm0, %v4940_v5  ;;  %4080 = vmatprep.mubr.msk.bf16.mxu1 %vm4942_vm0, %v4940_v5 }
 0x2a7   :  { %v502_v61 = vpop.f32.mrf.mxu0  ;;  %v545_v62 = vpop.f32.mrf.mxu1 }
 0x2a8   :  { %v546_v13 = vadd.f32 %v545_v62, %v336_v4  ;;  %v503_v15 = vadd.f32 %v502_v61, %v328_v3 }
 0x2a9   :  { %v504_v63 = vpop.f32.mrf.mxu0  ;;  %v4058_v0 = vpop.f32.mrf.mxu1 }
 0x2aa   :  { %v505_v6 = vadd.f32 %v504_v63, %v332_v60  ;;  %v5176_v16 = vpack.c.bf16 %v546_v13, %v546_v13  ;;  %v557_v17 = vpack.c.bf16 %v503_v15, %v503_v15 }
 0x2ab   :  { %v506_v7 = vpop.f32.mrf.mxu0  ;;  %v548_v8 = vpop.f32.mrf.mxu1 }
 0x2ac   :  { %v558_v9 = vpack.c.bf16 %v505_v6, %v505_v6  ;;  %v507_v10 = vadd.f32 %v506_v7, %v328_v3  ;;  %v5172_v11 = vadd.f32 %v548_v8, %v336_v4  ;;  %v626_v18 = vsel %vm624_vm2, %v5176_v16, 0 }
 0x2ad   :  { %v4059_v12 = vpop.f32.mrf.mxu1  ;;  %v508_v20 = vpop.f32.mrf.mxu0 }
 0x2ae   :  { %v565_v14 = vsel %vm560_vm1, %v558_v9, 0  ;;  %v509_v29 = vadd.f32 %v508_v20, %v332_v60  ;;  %v1021_v36 = vpack.c.bf16 %v507_v10, %v507_v10 }
 0x2af   :  { %4061 = vmatpush3.bf16.xpose.msra.mxu0 %v565_v14 }
 0x2b0   :  { %4066 = vmatprep.subr.bf16.mxu0 %v4940_v5  ;;  %v1022_v30 = vpack.c.bf16 %v509_v29, %v509_v29 }
 0x2b2   :  { %v1028_v50 = vsel %vm560_vm1, %v1022_v30, 0 }
 0x2b6   :  { %4063 = vmatmul.mubr.msk.bf16.vlgmr.msra.gmra.mxu0 %vm560_vm1, %v557_v17 }
 0x2b7   :  { %4067 = vmatpush3.bf16.msra.mxu0 %v626_v18  ;;  %4068 = vmatprep.mubr.msk.bf16.mxu0 %vm4942_vm0, %v4940_v5 }
 0x2b8   :  { %4072 = vmatprep.subr.bf16.mxu0 %v4940_v5 }
 0x376   :  { %v601_v22 = vpop.f32.mrf.mxu0 }
 0x377   :  { %v607_v23 = vsel %vm5185_vm3, %v601_v22, -1e+30 }
 0x378   :  { %v4064_v24 = vpop.f32.mrf.mxu0  ;;  %v609_v25 = vsel %vm608_vm4, %v607_v23, -inf }
 0x379   :  { %610 = vmax.xlane.f32.xlu0 %v609_v25 }
 0x37a   :  { %v604_v26 = vpop.f32.mrf.mxu0 }
 0x37c   :  { %v4065_v27 = vpop.f32.mrf.mxu0 }
 0x38f   :  { %672 = vrot.lane.b32.xlu0 %v558_v9, %s4943_s9 }
 0x393   :  { %895 = vrot.lane.b32.xlu0 %v558_v9, %s4944_s23 }
 0x397   :  { %1133 = vrot.lane.b32.xlu0 %v1022_v30, %s4943_s9 }
 0x39b   :  { %1245 = vrot.lane.b32.xlu0 %v1022_v30, %s4921_s0 }
 0x39f   :  { %1356 = vrot.lane.b32.xlu0 %v1022_v30, %s4944_s23 }
 0x402   :  { %v611_v31 = vpop.xlane.xlu0 %610 }
 0x403   :  { %v612_v32 = vsub.f32 %v607_v23, %v611_v31 }
 0x405   :  { %v613_v33 = vmul.f32 1.442695, %v612_v32 }
 0x406   :  { %v673_v40 = vpop.permute.xlu0 %672 }
 0x407   :  { %4535 = vpow2.f32 %v613_v33  ;;  %v678_v43 = vsel %vm560_vm1, %v673_v40, 0 }
 0x40a   :  { %v896_v46 = vpop.permute.xlu0 %895 }
 0x40b   :  { %v901_v48 = vsel %vm560_vm1, %v896_v46, 0 }
 0x40e   :  { %v1134_v51 = vpop.permute.xlu0 %1133 }
 0x40f   :  { %v1139_v52 = vsel %vm560_vm1, %v1134_v51, 0 }
 0x412   :  { %v1246_v53 = vpop.permute.xlu0 %1245 }
 0x413   :  { %v1251_v57 = vsel %vm560_vm1, %v1246_v53, 0 }
 0x414   :  { %v4536_v34 = vpop.eup %4535 }
 0x415   :  { %v615_v35 = vsel %vm608_vm4, %v4536_v34, 0.0 }
 0x416   :  { %616 = vadd.xlane.f32.xlu1 %v615_v35  ;;  %v1357_v60 = vpop.permute.xlu0 %1356 }
 0x417   :  { %v1362_v62 = vsel %vm560_vm1, %v1357_v60, 0 }
 0x427   :  { %669 = vrot.lane.b32.xlu1 %v557_v17, %s4943_s9 }
 0x42b   :  { %784 = vrot.lane.b32.xlu1 %v558_v9, %s4921_s0 }
 0x42f   :  { %782 = vrot.lane.b32.xlu1 %v557_v17, %s4921_s0 }
 0x433   :  { %893 = vrot.lane.b32.xlu1 %v557_v17, %s4944_s23 }
 0x437   :  { %1130 = vrot.lane.b32.xlu1 %v1021_v36, %s4943_s9 }
 0x43b   :  { %1243 = vrot.lane.b32.xlu1 %v1021_v36, %s4921_s0 }
 0x43f   :  { %1354 = vrot.lane.b32.xlu1 %v1021_v36, %s4944_s23 }
 0x49f   :  { %v617_v37 = vpop.xlane.xlu1 %616 }
 0x4a0   :  { %4537 = vrcp.f32 %v617_v37 }
 0x4a3   :  { %v670_v42 = vpop.permute.xlu1 %669 }
 0x4a7   :  { %v785_v44 = vpop.permute.xlu1 %784 }
 0x4a8   :  { %v790_v45 = vsel %vm560_vm1, %v785_v44, 0 }
 0x4ab   :  { %v783_v47 = vpop.permute.xlu1 %782 }
 0x4ad   :  { %v4538_v38 = vpop.eup %4537 }
 0x4ae   :  { %v619_v39 = vmul.f32 %v4538_v38, %v4536_v34 }
 0x4af   :  { %v894_v49 = vpop.permute.xlu1 %893 }
 0x4b0   :  { %v620_v41 = vpack.c.bf16 %v619_v39, %v619_v39 }
 0x4b2   :  { %4069 = vmatmul.mubr.msk.bf16.vlgmr.msra.gmra.mxu0 %vm608_vm4, %v620_v41 }
 0x4b3   :  { %4073 = vmatpush3.bf16.xpose.msra.mxu0 %v678_v43  ;;  %4074 = vmatprep.mubr.msk.bf16.mxu0 %vm4942_vm0, %v4940_v5  ;;  %v1131_v54 = vpop.permute.xlu1 %1130 }
 0x4b4   :  { %4084 = vmatprep.subr.bf16.mxu0 %v4940_v5 }
 0x4b7   :  { %v1244_v61 = vpop.permute.xlu1 %1243 }
 0x4ba   :  { %4075 = vmatmul.mubr.msk.bf16.vlgmr.msra.gmra.mxu0 %vm560_vm1, %v670_v42 }
 0x4bb   :  { %4085 = vmatpush3.bf16.xpose.msra.mxu0 %v790_v45  ;;  %4086 = vmatprep.mubr.msk.bf16.mxu0 %vm4942_vm0, %v4940_v5  ;;  %v1355_v63 = vpop.permute.xlu1 %1354 }
 0x4bc   :  { %4096 = vmatprep.subr.bf16.mxu0 %v4940_v5 }
 0x4c2   :  { %4087 = vmatmul.mubr.msk.bf16.vlgmr.msra.gmra.mxu0 %vm560_vm1, %v783_v47 }
 0x4c3   :  { %4097 = vmatpush3.bf16.xpose.msra.mxu0 %v901_v48  ;;  %4098 = vmatprep.mubr.msk.bf16.mxu0 %vm4942_vm0, %v4940_v5 }
 0x4c4   :  { %4108 = vmatprep.subr.bf16.mxu0 %v4940_v5 }
 0x4ca   :  { %4099 = vmatmul.mubr.msk.bf16.vlgmr.msra.gmra.mxu0 %vm560_vm1, %v894_v49 }
 0x4cb   :  { %4109 = vmatpush3.bf16.xpose.msra.mxu0 %v1028_v50  ;;  %4110 = vmatprep.mubr.msk.bf16.mxu0 %vm4942_vm0, %v4940_v5 }
 0x4cc   :  { %4120 = vmatprep.subr.bf16.mxu0 %v4940_v5 }
 0x4d2   :  { %4111 = vmatmul.mubr.msk.bf16.vlgmr.msra.gmra.mxu0 %vm560_vm1, %v1021_v36 }
 0x4d3   :  { %4121 = vmatpush3.bf16.xpose.msra.mxu0 %v1139_v52  ;;  %4122 = vmatprep.mubr.msk.bf16.mxu0 %vm4942_vm0, %v4940_v5 }
 0x4d4   :  { %4132 = vmatprep.subr.bf16.mxu0 %v4940_v5 }
 0x4da   :  { %4123 = vmatmul.mubr.msk.bf16.vlgmr.msra.gmra.mxu0 %vm560_vm1, %v1131_v54 }
 0x4db   :  { %4133 = vmatpush3.bf16.xpose.msra.mxu0 %v1251_v57  ;;  %4134 = vmatprep.mubr.msk.bf16.mxu0 %vm4942_vm0, %v4940_v5 }
 0x4dc   :  { %4144 = vmatprep.subr.bf16.mxu0 %v4940_v5 }
 0x4e2   :  { %4135 = vmatmul.mubr.msk.bf16.vlgmr.msra.gmra.mxu0 %vm560_vm1, %v1244_v61 }
 0x4e3   :  { %4145 = vmatpush3.bf16.xpose.msra.mxu0 %v1362_v62  ;;  %4146 = vmatprep.mubr.msk.bf16.mxu0 %vm4942_vm0, %v4940_v5 }
 0x4e4   :  { %4156 = vmatprep.subr.bf16.mxu0 %v4940_v5 }
 0x4ea   :  { %4147 = vmatmul.mubr.msk.bf16.vlgmr.msra.gmra.mxu0 %vm560_vm1, %v1355_v63 }
 0x4eb   :  { %4172 = vmatprep.mubr.msk.bf16.mxu0 %vm4942_vm0, %v4940_v5 }
 0x572   :  { %v5243_v0 = vpop.f32.mrf.mxu0 }
 0x574   :  { %v4070_v3 = vpop.f32.mrf.mxu0 }
 0x576   :  { %v665_v4 = vpop.f32.mrf.mxu0 }
 0x578   :  { %v4071_v6 = vpop.f32.mrf.mxu0 }
 0x57a   :  { %v714_v7 = vpop.f32.mrf.mxu0 }
 0x57b   :  { %v720_v8 = vsel %vm5185_vm3, %v714_v7, -1e+30 }
 0x57c   :  { %v4076_v9 = vpop.f32.mrf.mxu0  ;;  %v721_v10 = vsel %vm608_vm4, %v720_v8, -inf }
 0x57d   :  { %722 = vmax.xlane.f32.xlu0 %v721_v10 }
 0x57e   :  { %v717_v12 = vpop.f32.mrf.mxu0 }
 0x580   :  { %v4077_v13 = vpop.f32.mrf.mxu0 }
 0x582   :  { %v826_v14 = vpop.f32.mrf.mxu0 }
 0x583   :  { %v832_v15 = vsel %vm5185_vm3, %v826_v14, -1e+30 }
 0x584   :  { %v4088_v17 = vpop.f32.mrf.mxu0  ;;  %v833_v18 = vsel %vm608_vm4, %v832_v15, -inf }
 0x585   :  { %834 = vmax.xlane.f32.xlu1 %v833_v18 }
 0x586   :  { %v829_v19 = vpop.f32.mrf.mxu0 }
 0x588   :  { %v4089_v20 = vpop.f32.mrf.mxu0 }
 0x58a   :  { %v937_v22 = vpop.f32.mrf.mxu0 }
 0x58b   :  { %v943_v23 = vsel %vm5185_vm3, %v937_v22, -1e+30  ;;  %v1023_v22 = vpack.c.bf16 %v5172_v11, %v5172_v11 }
 0x58c   :  { %v4100_v24 = vpop.f32.mrf.mxu0  ;;  %v944_v25 = vsel %vm608_vm4, %v943_v23, -inf }
 0x58d   :  { %945 = vmax.xlane.f32.xlu0 %v944_v25 }
 0x58e   :  { %v940_v26 = vpop.f32.mrf.mxu0 }
 0x590   :  { %v4101_v27 = vpop.f32.mrf.mxu0 }
 0x592   :  { %v1064_v29 = vpop.f32.mrf.mxu0 }
 0x593   :  { %v1070_v30 = vsel %vm5185_vm3, %v1064_v29, -1e+30 }
 0x594   :  { %v4112_v31 = vpop.f32.mrf.mxu0  ;;  %v1071_v32 = vsel %vm608_vm4, %v1070_v30, -inf }
 0x595   :  { %1072 = vmax.xlane.f32.xlu0 %v1071_v32 }
 0x596   :  { %v1067_v33 = vpop.f32.mrf.mxu0 }
 0x598   :  { %v4113_v34 = vpop.f32.mrf.mxu0 }
 0x59a   :  { %v1175_v35 = vpop.f32.mrf.mxu0 }
 0x59b   :  { %v5259_v36 = vsel %vm5185_vm3, %v1175_v35, -1e+30 }
 0x59c   :  { %v4124_v37 = vpop.f32.mrf.mxu0  ;;  %v1182_v38 = vsel %vm608_vm4, %v5259_v36, -inf }
 0x59d   :  { %1183 = vmax.xlane.f32.xlu0 %v1182_v38 }
 0x59e   :  { %v1178_v39 = vpop.f32.mrf.mxu0 }
 0x5a0   :  { %v4125_v40 = vpop.f32.mrf.mxu0 }
 0x5a2   :  { %v1287_v41 = vpop.f32.mrf.mxu0 }
 0x5a3   :  { %v1293_v42 = vsel %vm5185_vm3, %v1287_v41, -1e+30 }
 0x5a4   :  { %v4136_v43 = vpop.f32.mrf.mxu0  ;;  %v1294_v44 = vsel %vm608_vm4, %v1293_v42, -inf }
 0x5a5   :  { %1295 = vmax.xlane.f32.xlu1 %v1294_v44 }
 0x5a6   :  { %v1290_v45 = vpop.f32.mrf.mxu0 }
 0x5a8   :  { %v4137_v46 = vpop.f32.mrf.mxu0 }
 0x5aa   :  { %v1398_v47 = vpop.f32.mrf.mxu0 }
 0x5ab   :  { %v1404_v48 = vsel %vm5185_vm3, %v1398_v47, -1e+30 }
 0x5ac   :  { %v4148_v49 = vpop.f32.mrf.mxu0  ;;  %v1405_v50 = vsel %vm608_vm4, %v1404_v48, -inf }
 0x5ad   :  { %1406 = vmax.xlane.f32.xlu0 %v1405_v50 }
 0x5ae   :  { %v1401_v51 = vpop.f32.mrf.mxu0 }
 0x5b0   :  { %v4149_v52 = vpop.f32.mrf.mxu0 }
 0x5b6   :  { %734 = vrot.lane.b32.xlu1 %v5176_v16, %s4943_s9 }
 0x5c3   :  { %845 = vrot.lane.b32.xlu0 %v5176_v16, %s4921_s0 }
 0x606   :  { %v723_v53 = vpop.xlane.xlu0 %722 }
 0x607   :  { %v724_v54 = vsub.f32 %v720_v8, %v723_v53  ;;  %v1087_v53 = vsel %vm624_vm2, %v1023_v22, 0 }
 0x609   :  { %v725_v57 = vmul.f32 1.442695, %v724_v54 }
 0x60b   :  { %4539 = vpow2.f32 %v725_v57 }
 0x60e   :  { %v835_v60 = vpop.xlane.xlu1 %834 }
 0x60f   :  { %v836_v61 = vsub.f32 %v832_v15, %v835_v60 }
 0x611   :  { %v837_v21 = vmul.f32 1.442695, %v836_v61 }
 0x613   :  { %4541 = vpow2.f32 %v837_v21 }
 0x616   :  { %v946_v62 = vpop.xlane.xlu0 %945 }
 0x617   :  { %v947_v63 = vsub.f32 %v943_v23, %v946_v62 }
 0x618   :  { %v4540_v3 = vpop.eup %4539 }
 0x619   :  { %v948_v4 = vmul.f32 1.442695, %v947_v63  ;;  %v727_v6 = vsel %vm608_vm4, %v4540_v3, 0.0 }
 0x61a   :  { %728 = vadd.xlane.f32.xlu1 %v727_v6 }
 0x61b   :  { %4543 = vpow2.f32 %v948_v4 }
 0x61e   :  { %v1073_v7 = vpop.xlane.xlu0 %1072 }
 0x61f   :  { %v1074_v9 = vsub.f32 %v1070_v30, %v1073_v7 }
 0x620   :  { %v4542_v10 = vpop.eup %4541 }
 0x621   :  { %v1075_v12 = vmul.f32 1.442695, %v1074_v9  ;;  %v839_v8 = vsel %vm608_vm4, %v4542_v10, 0.0 }
 0x622   :  { %840 = vadd.xlane.f32.xlu0 %v839_v8 }
 0x623   :  { %4545 = vpow2.f32 %v1075_v12 }
 0x626   :  { %v1184_v25 = vpop.xlane.xlu0 %1183 }
 0x627   :  { %v1185_v26 = vsub.f32 %v5259_v36, %v1184_v25 }
 0x628   :  { %v5275_v13 = vpop.eup %4543 }
 0x629   :  { %v950_v14 = vsel %vm608_vm4, %v5275_v13, 0.0  ;;  %v1186_v29 = vmul.f32 1.442695, %v1185_v26 }
 0x62a   :  { %951 = vadd.xlane.f32.xlu1 %v950_v14 }
 0x62e   :  { %v1296_v15 = vpop.xlane.xlu1 %1295 }
 0x62f   :  { %v1297_v23 = vsub.f32 %v1293_v42, %v1296_v15 }
 0x630   :  { %v5279_v17 = vpop.eup %4545 }
 0x631   :  { %v1077_v18 = vsel %vm608_vm4, %v5279_v17, 0.0  ;;  %v1298_v24 = vmul.f32 1.442695, %v1297_v23  ;;  %v4403_v23 = vld [vmem:[#allocation14 + $0x28] sm:$0xff]  }
 0x632   :  { %v735_v19 = vpop.permute.xlu1 %734  ;;  %1078 = vadd.xlane.f32.xlu0 %v1077_v18 }
 0x633   :  { %v740_v20 = vsel %vm624_vm2, %v735_v19, 0  ;;  %4547 = vpow2.f32 %v1298_v24 }
 0x634   :  { %4079 = vmatpush3.bf16.msra.mxu1 %v740_v20  ;;  %4549 = vpow2.f32 %v1186_v29  ;;  %v4401_v20 = vld [vmem:[#allocation14 + $0x38] sm:$0xff]  }
 0x635   :  { %4090 = vmatprep.subr.bf16.mxu1 %v4940_v5  ;;  %4157 = vmatpush3.bf16.msra.mxu0 %v4401_v20  ;;  %v3762_v20 = vld [vmem:[%s5639_s11] ss:$0 sm:$0xff] }
 0x636   :  { %v1407_v27 = vpop.xlane.xlu0 %1406  ;;  %4158 = vmatprep.subr.bf16.mxu0 %v4940_v5 }
 0x637   :  { %v1408_v30 = vsub.f32 %v1404_v48, %v1407_v27 }
 0x639   :  { %v1409_v31 = vmul.f32 1.442695, %v1408_v30 }
 0x63a   :  { %v846_v37 = vpop.permute.xlu0 %845 }
 0x63b   :  { %1195 = vrot.lane.b32.xlu1 %v1023_v22, %s4943_s9  ;;  %4551 = vpow2.f32 %v1409_v31  ;;  %v851_v43 = vsel %vm624_vm2, %v846_v37, 0 }
 0x640   :  { %v5291_v32 = vpop.eup %4547 }
 0x641   :  { %v1300_v11 = vsel %vm608_vm4, %v5291_v32, 0.0  ;;  %v4550_v33 = vpop.eup %4549 }
 0x648   :  { %956 = vrot.lane.b32.xlu0 %v5176_v16, %s4944_s23  ;;  %v1188_v16 = vsel %vm608_vm4, %v4550_v33, 0.0  ;;  %v5296_v34 = vpop.eup %4551 }
 0x649   :  { %v1411_v35 = vsel %vm608_vm4, %v5296_v34, 0.0 }
 0x65f   :  { %1301 = vadd.xlane.f32.xlu1 %v1300_v11 }
 0x667   :  { %1189 = vadd.xlane.f32.xlu0 %v1188_v16 }
 0x66b   :  { %1412 = vadd.xlane.f32.xlu0 %v1411_v35 }
 0x670   :  { %1417 = vrot.lane.b32.xlu1 %v1023_v22, %s4944_s23 }
 0x681   :  { %1306 = vrot.lane.b32.xlu0 %v1023_v22, %s4921_s0  ;;  %v4402_v22 = vld [vmem:[#allocation14 + $0x30] sm:$0xff]  }
 0x682   :  { %4159 = vmatpush3.bf16.msra.mxu0 %v4402_v22 }
 0x683   :  { %4160 = vmatprep.subr.bf16.mxu0 %v4940_v5 }
 0x686   :  { %4161 = vmatpush3.bf16.msra.mxu0 %v4403_v23 }
 0x687   :  { %4162 = vmatprep.subr.bf16.mxu0 %v4940_v5 }
 0x6a3   :  { %v729_v36 = vpop.xlane.xlu1 %728 }
 0x6a4   :  { %4553 = vrcp.f32 %v729_v36 }
 0x6ab   :  { %v841_v38 = vpop.xlane.xlu0 %840 }
 0x6ac   :  { %4555 = vrcp.f32 %v841_v38 }
 0x6b1   :  { %v4554_v39 = vpop.eup %4553 }
 0x6b2   :  { %v731_v40 = vmul.f32 %v4554_v39, %v4540_v3  ;;  %v4404_v39 = vld [vmem:[#allocation14 + $0x20] sm:$0xff]  }
 0x6b3   :  { %v952_v41 = vpop.xlane.xlu1 %951  ;;  %4163 = vmatpush3.bf16.msra.mxu0 %v4404_v39 }
 0x6b4   :  { %4557 = vrcp.f32 %v952_v41  ;;  %v732_v42 = vpack.c.bf16 %v731_v40, %v731_v40  ;;  %v4405_v40 = vld [vmem:[#allocation14 + $0x18] sm:$0xff]   ;;  %4164 = vmatprep.subr.bf16.mxu0 %v4940_v5  ;;  %v4406_v41 = vld [vmem:[#allocation14 + $0x10] sm:$0xff]  }
 0x6b6   :  { %4081 = vmatmul.mubr.msk.bf16.vlgmr.msra.gmra.mxu1 %vm608_vm4, %v732_v42 }
 0x6b7   :  { %4091 = vmatpush3.bf16.msra.mxu1 %v851_v43  ;;  %4092 = vmatprep.mubr.msk.bf16.mxu1 %vm4942_vm0, %v4940_v5  ;;  %v1196_v60 = vpop.permute.xlu1 %1195 }
 0x6b8   :  { %4102 = vmatprep.subr.bf16.mxu1 %v4940_v5  ;;  %v1201_v21 = vsel %vm624_vm2, %v1196_v60, 0  ;;  %4165 = vmatpush3.bf16.msra.mxu0 %v4405_v40 }
 0x6b9   :  { %v4556_v44 = vpop.eup %4555  ;;  %4166 = vmatprep.subr.bf16.mxu0 %v4940_v5 }
 0x6ba   :  { %v843_v45 = vmul.f32 %v4556_v44, %v4542_v10  ;;  %v4407_v44 = vld [vmem:[#allocation14 + $0x8] sm:$0xff]  }
 0x6bb   :  { %v1079_v46 = vpop.xlane.xlu0 %1078 }
 0x6bc   :  { %4559 = vrcp.f32 %v1079_v46  ;;  %v844_v47 = vpack.c.bf16 %v843_v45, %v843_v45  ;;  %4167 = vmatpush3.bf16.msra.mxu0 %v4406_v41 }
 0x6bd   :  { %4168 = vmatprep.subr.bf16.mxu0 %v4940_v5 }
 0x6be   :  { %4093 = vmatmul.mubr.msk.bf16.vlgmr.msra.gmra.mxu1 %vm608_vm4, %v844_v47 }
 0x6bf   :  { %v957_v48 = vpop.permute.xlu0 %956  ;;  %4104 = vmatprep.mubr.msk.bf16.mxu1 %vm4942_vm0, %v4940_v5 }
 0x6c0   :  { %v962_v49 = vsel %vm624_vm2, %v957_v48, 0  ;;  %4169 = vmatpush3.bf16.msra.mxu0 %v4407_v44  ;;  %v4408_v48 = vld [vmem:[#allocation14] sm:$0xff]  }
 0x6c1   :  { %v4558_v50 = vpop.eup %4557  ;;  %4103 = vmatpush3.bf16.msra.mxu1 %v962_v49  ;;  %4170 = vmatprep.subr.bf16.mxu0 %v4940_v5 }
 0x6c2   :  { %4114 = vmatprep.subr.bf16.mxu1 %v4940_v5  ;;  %v954_v51 = vmul.f32 %v4558_v50, %v5275_v13 }
 0x6c4   :  { %v955_v52 = vpack.c.bf16 %v954_v51, %v954_v51  ;;  %4171 = vmatpush3.bf16.msra.mxu0 %v4408_v48  ;;  %v4425_v48 = vld [vmem:[#allocation17 + $0x20] ss:$8 sps:$4 sm:$0xff]  }
 0x6c6   :  { %4105 = vmatmul.mubr.msk.bf16.vlgmr.msra.gmra.mxu1 %vm608_vm4, %v955_v52 }
 0x6c7   :  { %4115 = vmatpush3.bf16.msra.mxu1 %v1087_v53  ;;  %4116 = vmatprep.mubr.msk.bf16.mxu1 %vm4942_vm0, %v4940_v5 }
 0x6c8   :  { %4126 = vmatprep.subr.bf16.mxu1 %v4940_v5 }
 0x6c9   :  { %v4560_v54 = vpop.eup %4559 }
 0x6ca   :  { %v1081_v57 = vmul.f32 %v4560_v54, %v5279_v17 }
 0x6cc   :  { %v1082_v61 = vpack.c.bf16 %v1081_v57, %v1081_v57 }
 0x6ce   :  { %4117 = vmatmul.mubr.msk.bf16.vlgmr.msra.gmra.mxu1 %vm608_vm4, %v1082_v61 }
 0x6cf   :  { %4127 = vmatpush3.bf16.msra.mxu1 %v1201_v21  ;;  %4128 = vmatprep.mubr.msk.bf16.mxu1 %vm4942_vm0, %v4940_v5 }
 0x6d0   :  { %4138 = vmatprep.subr.bf16.mxu1 %v4940_v5 }
 0x6e8   :  { %v1302_v63 = vpop.xlane.xlu1 %1301 }
 0x6ec   :  { %v1418_v13 = vpop.permute.xlu1 %1417 }
 0x6ed   :  { %v1423_v17 = vsel %vm624_vm2, %v1418_v13, 0 }
 0x6f0   :  { %v1190_v62 = vpop.xlane.xlu0 %1189 }
 0x6f1   :  { %4561 = vrcp.f32 %v1190_v62 }
 0x6f2   :  { %4563 = vrcp.f32 %v1302_v63 }
 0x6f4   :  { %v1413_v3 = vpop.xlane.xlu0 %1412 }
 0x6f5   :  { %4565 = vrcp.f32 %v1413_v3 }
 0x6f8   :  { %v1307_v7 = vpop.permute.xlu0 %1306 }
 0x6f9   :  { %v1312_v12 = vsel %vm624_vm2, %v1307_v7, 0 }
 0x6fe   :  { %v4562_v4 = vpop.eup %4561 }
 0x6ff   :  { %v1192_v6 = vmul.f32 %v4562_v4, %v4550_v33  ;;  %v4564_v10 = vpop.eup %4563 }
 0x700   :  { %v1304_v8 = vmul.f32 %v4564_v10, %v5291_v32 }
 0x701   :  { %v1193_v9 = vpack.c.bf16 %v1192_v6, %v1192_v6 }
 0x702   :  { %v1305_v14 = vpack.c.bf16 %v1304_v8, %v1304_v8  ;;  %v4566_v15 = vpop.eup %4565 }
 0x703   :  { %4129 = vmatmul.mubr.msk.bf16.vlgmr.msra.gmra.mxu1 %vm608_vm4, %v1193_v9  ;;  %v1415_v18 = vmul.f32 %v4566_v15, %v5296_v34 }
 0x704   :  { %4139 = vmatpush3.bf16.msra.mxu1 %v1312_v12  ;;  %4140 = vmatprep.mubr.msk.bf16.mxu1 %vm4942_vm0, %v4940_v5 }
 0x705   :  { %4150 = vmatprep.subr.bf16.mxu1 %v4940_v5  ;;  %v1416_v19 = vpack.c.bf16 %v1415_v18, %v1415_v18 }
 0x70b   :  { %4141 = vmatmul.mubr.msk.bf16.vlgmr.msra.gmra.mxu1 %vm608_vm4, %v1305_v14 }
 0x70c   :  { %4151 = vmatpush3.bf16.msra.mxu1 %v1423_v17  ;;  %4152 = vmatprep.mubr.msk.bf16.mxu1 %vm4942_vm0, %v4940_v5 }
 0x70d   :  { %4176 = vmatprep.subr.bf16.mxu1 %v4940_v5 }
 0x713   :  { %4153 = vmatmul.mubr.msk.bf16.vlgmr.msra.gmra.mxu1 %vm608_vm4, %v1416_v19 }
 0x714   :  { %4192 = vmatprep.mubr.msk.bf16.mxu1 %vm4942_vm0, %v4940_v5 }
 0x776   :  { %v776_v24 = vpop.f32.mrf.mxu1 }
 0x778   :  { %v4082_v25 = vpop.f32.mrf.mxu1 }
 0x77a   :  { %v779_v26 = vpop.f32.mrf.mxu1 }
 0x77c   :  { %v4083_v27 = vpop.f32.mrf.mxu1 }
 0x77e   :  { %v887_v29 = vpop.f32.mrf.mxu1 }
 0x780   :  { %v4094_v30 = vpop.f32.mrf.mxu1 }
 0x781   :  { %v4409_v30 = vld [vmem:[#allocation17 + $0x70] ss:$8 sps:$4 sm:$0xff]  }
 0x782   :  { %v890_v31 = vpop.f32.mrf.mxu1 }
 0x783   :  { %v4411_v31 = vld [vmem:[#allocation17 + $0x74] ss:$8 sps:$4 sm:$0xff]  }
 0x784   :  { %v4095_v32 = vpop.f32.mrf.mxu1  ;;  %1868 = vmatprep.subr.bf16.mxu0 %v4411_v31 }
 0x785   :  { %v4414_v32 = vld [vmem:[#allocation17 + $0x64] ss:$8 sps:$4 sm:$0xff]  }
 0x786   :  { %v998_v11 = vpop.f32.mrf.mxu1 }
 0x788   :  { %v4106_v33 = vpop.f32.mrf.mxu1 }
 0x789   :  { %v4424_v33 = vld [vmem:[#allocation16 + $0x38] sm:$0xff]  }
 0x78a   :  { %v1001_v16 = vpop.f32.mrf.mxu1  ;;  %4177 = vmatpush3.bf16.msra.mxu1 %v4424_v33 }
 0x78b   :  { %v4417_v16 = vld [vmem:[#allocation17 + $0x54] ss:$8 sps:$4 sm:$0xff]   ;;  %4178 = vmatprep.subr.bf16.mxu1 %v4940_v5 }
 0x78c   :  { %v4107_v34 = vpop.f32.mrf.mxu1 }
 0x78d   :  { %v4415_v34 = vld [vmem:[#allocation17 + $0x50] ss:$8 sps:$4 sm:$0xff]  }
 0x78e   :  { %v1123_v35 = vpop.f32.mrf.mxu1 }
 0x790   :  { %v4118_v36 = vpop.f32.mrf.mxu1 }
 0x791   :  { %v4418_v36 = vld [vmem:[#allocation17 + $0x40] ss:$8 sps:$4 sm:$0xff]  }
 0x792   :  { %v1126_v37 = vpop.f32.mrf.mxu1 }
 0x793   :  { %v4423_v37 = vld [vmem:[#allocation17 + $0x34] ss:$8 sps:$4 sm:$0xff]  }
 0x794   :  { %v4119_v38 = vpop.f32.mrf.mxu1 }
 0x795   :  { %v4421_v38 = vld [vmem:[#allocation17 + $0x30] ss:$8 sps:$4 sm:$0xff]  }
 0x7c3   :  { %v1237_v42 = vpop.f32.mrf.mxu1 }
 0x7c4   :  { %v4339_v43 = vpack.i.bf16 %v1237_v42, %v776_v24 }
 0x7c5   :  { %v4130_v45 = vpop.f32.mrf.mxu1 }
 0x7c6   :  { %4340 = vrot.lane.b32.xlu1 %v4339_v43, %s4944_s23 }
 0x7c7   :  { %v1240_v46 = vpop.f32.mrf.mxu1 }
 0x7c9   :  { %v4131_v47 = vpop.f32.mrf.mxu1 }
 0x7ca   :  { %v4427_v47 = vld [vmem:[#allocation17 + $0x24] ss:$8 sps:$4 sm:$0xff]  }
 0x7cb   :  { %v1348_v49 = vpop.f32.mrf.mxu1 }
 0x7cc   :  { %v4344_v50 = vpack.i.bf16 %v1348_v49, %v887_v29  ;;  %v4428_v49 = vld [vmem:[#allocation16 + $0x30] sm:$0xff]  }
 0x7cd   :  { %v4142_v51 = vpop.f32.mrf.mxu1  ;;  %4179 = vmatpush3.bf16.msra.mxu1 %v4428_v49 }
 0x7ce   :  { %4345 = vrot.lane.b32.xlu1 %v4344_v50, %s4921_s0  ;;  %v4431_v50 = vld [vmem:[#allocation17 + $0x14] ss:$8 sps:$4 sm:$0xff]   ;;  %v4429_v51 = vld [vmem:[#allocation17 + $0x10] ss:$8 sps:$4 sm:$0xff]   ;;  %4180 = vmatprep.subr.bf16.mxu1 %v4940_v5 }
 0x7cf   :  { %v1351_v52 = vpop.f32.mrf.mxu1 }
 0x7d0   :  { %v4432_v52 = vld [vmem:[#allocation16 + $0x28] sm:$0xff]  }
 0x7d1   :  { %v4143_v53 = vpop.f32.mrf.mxu1  ;;  %4181 = vmatpush3.bf16.msra.mxu1 %v4432_v52 }
 0x7d2   :  { %v4435_v53 = vld [vmem:[#allocation17 + $0x4] ss:$8 sps:$4 sm:$0xff]   ;;  %4182 = vmatprep.subr.bf16.mxu1 %v4940_v5 }
 0x7d3   :  { %v1459_v54 = vpop.f32.mrf.mxu1 }
 0x7d4   :  { %v4349_v57 = vpack.i.bf16 %v1459_v54, %v998_v11  ;;  %v4412_v11 = vld [vmem:[#allocation17 + $0x60] ss:$8 sps:$4 sm:$0xff]  }
 0x7d5   :  { %v4154_v60 = vpop.f32.mrf.mxu1  ;;  %v4433_v54 = vld [vmem:[#allocation17] ss:$8 sps:$4 sm:$0xff]  }
 0x7d6   :  { %4350 = vrot.lane.b32.xlu1 %v4349_v57, %s4943_s9  ;;  %v4436_v57 = vld [vmem:[#allocation16 + $0x20] sm:$0xff]   ;;  %v4437_v60 = vld [vmem:[#allocation5] sm:$0xff]  }
 0x7d7   :  { %v1462_v61 = vpop.f32.mrf.mxu1  ;;  %4183 = vmatpush3.bf16.msra.mxu1 %v4436_v57 }
 0x7d8   :  { %v4438_v61 = vld [vmem:[#allocation16 + $0x18] sm:$0xff]   ;;  %4184 = vmatprep.subr.bf16.mxu1 %v4940_v5 }
 0x7d9   :  { %v4155_v21 = vpop.f32.mrf.mxu1 }
 0x7da   :  { %v4439_v21 = vld [vmem:[#allocation16 + $0x10] sm:$0xff]  }
 0x7db   :  { %4185 = vmatpush3.bf16.msra.mxu1 %v4438_v61 }
 0x7dc   :  { %4186 = vmatprep.subr.bf16.mxu1 %v4940_v5 }
 0x7df   :  { %4187 = vmatpush3.bf16.msra.mxu1 %v4439_v21 }
 0x7e0   :  { %4188 = vmatprep.subr.bf16.mxu1 %v4940_v5 }
 0x838   :  { %v4341_v62 = vpop.permute.xlu1 %4340 }
 0x839   :  { %v4343_v3 = vunpack.i.h.bf16 %v4341_v62  ;;  %v4342_v4 = vunpack.i.l.bf16 %v4341_v62  ;;  %v4440_v62 = vld [vmem:[#allocation16 + $0x8] sm:$0xff]  }
 0x83a   :  { %4189 = vmatpush3.bf16.msra.mxu1 %v4440_v62 }
 0x83b   :  { %v1477_v10 = vsel %vm560_vm1, %v1123_v35, %v4343_v3  ;;  %v1016_v12 = vsel %vm560_vm1, %v5243_v0, %v4342_v4  ;;  %v4420_v35 = vld [vmem:[#allocation17 + $0x44] ss:$8 sps:$4 sm:$0xff]   ;;  %4190 = vmatprep.subr.bf16.mxu1 %v4940_v5 }
 0x840   :  { %v4346_v63 = vpop.permute.xlu1 %4345 }
 0x841   :  { %v4348_v6 = vunpack.i.h.bf16 %v4346_v63  ;;  %v4347_v7 = vunpack.i.l.bf16 %v4346_v63  ;;  %v4441_v63 = vld [vmem:[#allocation16] sm:$0xff]  }
 0x842   :  { %4191 = vmatpush3.bf16.msra.mxu1 %v4441_v63 }
 0x843   :  { %v1478_v14 = vsel %vm1017_vm5, %v1477_v10, %v4348_v6  ;;  %v1018_v15 = vsel %vm1017_vm5, %v1016_v12, %v4347_v7  ;;  %4196 = vmatprep.subr.bf16.mxu1 %v4940_v5 }
 0x848   :  { %v4351_v9 = vpop.permute.xlu1 %4350 }
 0x849   :  { %v4353_v8 = vunpack.i.h.bf16 %v4351_v9  ;;  %v4352_v13 = vunpack.i.l.bf16 %v4351_v9 }
 0x84b   :  { %v1479_v17 = vsel %vm1019_vm6, %v1478_v14, %v4353_v8  ;;  %v1020_v18 = vsel %vm1019_vm6, %v1018_v15, %v4352_v13  ;;  %v3771_v13 = vld [vmem:[#allocation10] ss:$0 sm:$0xff] }
 0x84c   :  { %v1480_v19 = vpack.c.bf16 %v1479_v17, %v1020_v18  ;;  %v3772_v18 = vld [vmem:[#allocation11] ss:$0 sm:$0xff] }
 0x84e   :  { %4173 = vmatmul.mubr.bf16.vlgmr.msra.gmra.mxu0 %v1480_v19 }
 0x84f   :  { %1900 = vmatprep.mubr.bf16.mxu0 %v4941_v28  ;;  %1869 = vmatpush1.bf16.msra.mxu0 %v4409_v30 }
 0x850   :  { %1870 = vmatprep.subr.bf16.mxu0 %v4414_v32 }
 0x853   :  { %1871 = vmatpush1.bf16.msra.mxu0 %v4412_v11 }
 0x854   :  { %1872 = vmatprep.subr.bf16.mxu0 %v4417_v16 }
 0x857   :  { %1873 = vmatpush1.bf16.msra.mxu0 %v4415_v34 }
 0x858   :  { %1874 = vmatprep.subr.bf16.mxu0 %v4420_v35  ;;  %v3773_v35 = vld [vmem:[%s5641_s13] ss:$0 sm:$0xff] }
 0x85b   :  { %1875 = vmatpush1.bf16.msra.mxu0 %v4418_v36 }
 0x85c   :  { %1876 = vmatprep.subr.bf16.mxu0 %v4423_v37 }
 0x85f   :  { %1877 = vmatpush1.bf16.msra.mxu0 %v4421_v38 }
 0x860   :  { %1878 = vmatprep.subr.bf16.mxu0 %v4427_v47 }
 0x863   :  { %1879 = vmatpush1.bf16.msra.mxu0 %v4425_v48 }
 0x864   :  { %1880 = vmatprep.subr.bf16.mxu0 %v4431_v50 }
 0x867   :  { %1881 = vmatpush1.bf16.msra.mxu0 %v4429_v51 }
 0x868   :  { %1882 = vmatprep.subr.bf16.mxu0 %v4435_v53 }
 0x86b   :  { %1883 = vmatpush1.bf16.msra.mxu0 %v4433_v54 }
 0x86c   :  { %4226 = vmatprep.subr.bf16.mxu0 %v4940_v5 }
 0x86e   :  { %1901 = vmatmul.mubr.bf16.vlgmr.msra.gmra.mxu0 %v4437_v60 }
 0x86f   :  { %1910 = vmatprep.mubr.bf16.mxu0 %v4941_v28 }
 0x90e   :  { %v1586_v22 = vpop.f32.mrf.mxu0 }
 0x90f   :  { %v1587_v0 = vadd.f32 %v3762_v20, %v1586_v22 }
 0x910   :  { %v4174_v23 = vpop.f32.mrf.mxu0 }
 0x911   :  { %v5361_v24 = vadd.f32 %v5121_v1, %v1587_v0  ;;  %v1764_v23 = vld [vmem:[%s5643_s15] sm:$0x3] }
 0x912   :  { %v1589_v25 = vpop.f32.mrf.mxu0  ;;  %v5396_v16 = vrot.slane %v1764_v23, %v5159_v56 }
 0x913   :  { %v1590_v26 = vadd.f32 %v3762_v20, %v1589_v25  ;;  %1597 = vadd.xlane.f32.xlu1 %v5361_v24  ;;  %v5386_v25 = vrot.slane %v1764_v23, %v5165_v58 }
 0x914   :  { %v4175_v27 = vpop.f32.mrf.mxu0 }
 0x915   :  { %v5365_v29 = vadd.f32 %v5124_v2, %v1590_v26 }
 0x917   :  { %1599 = vadd.xlane.f32.xlu0 %v5365_v29 }
 0x92e   :  { %v1902_v26 = vpop.f32.mrf.mxu0 }
 0x92f   :  { %v1903_v30 = vadd.f32 %v1902_v26, %v5386_v25 }
 0x930   :  { %v1904_v27 = vpop.f32.mrf.mxu0 }
 0x931   :  { %v1905_v36 = vadd.f32 %v1904_v27, %v5396_v16 }
 0x932   :  { %v1906_v31 = vpop.f32.mrf.mxu0 }
 0x933   :  { %v1907_v32 = vadd.f32 %v1906_v31, %v5386_v25 }
 0x934   :  { %v1908_v34 = vpop.f32.mrf.mxu0 }
 0x935   :  { %v5390_v11 = vpack.c.bf16 %v1907_v32, %v1903_v30  ;;  %v1909_v37 = vadd.f32 %v1908_v34, %v5396_v16 }
 0x937   :  { %v1928_v33 = vsel %vm560_vm1, %v5390_v11, 0 }
 0x99c   :  { %v1598_v39 = vpop.xlane.xlu1 %1597 }
 0x99d   :  { %v1601_v40 = vmul.f32 0.0078125, %v1598_v39 }
 0x99f   :  { %v1603_v41 = vsub.f32 %v5361_v24, %v1601_v40 }
 0x9a0   :  { %v1600_v42 = vpop.xlane.xlu0 %1599 }
 0x9a1   :  { %v1602_v43 = vmul.f32 0.0078125, %v1600_v42  ;;  %v1605_v44 = vmul.f32 %v1603_v41, %v1603_v41  ;;  %v5403_v42 = vpack.c.bf16 %v1909_v37, %v1905_v36 }
 0x9a3   :  { %v1604_v45 = vsub.f32 %v5365_v29, %v1602_v43  ;;  %1607 = vadd.xlane.f32.xlu0 %v1605_v44 }
 0x9a5   :  { %v1606_v46 = vmul.f32 %v1604_v45, %v1604_v45 }
 0x9a7   :  { %1609 = vadd.xlane.f32.xlu0 %v1606_v46 }
 0xa2c   :  { %v1608_v3 = vpop.xlane.xlu0 %1607 }
 0xa2d   :  { %v1611_v4 = vmul.f32 0.0078125, %v1608_v3 }
 0xa2f   :  { %v1613_v6 = vadd.f32 1e-05, %v1611_v4 }
 0xa30   :  { %v1610_v7 = vpop.xlane.xlu0 %1609 }
 0xa31   :  { %4567 = vrsqrt.f32 %v1613_v6  ;;  %v1612_v9 = vmul.f32 0.0078125, %v1610_v7  ;;  %v4442_v6 = vld [vmem:[#allocation5 + $0x8] sm:$0xff]  }
 0xa32   :  { %1911 = vmatmul.mubr.bf16.gmra.mxu0 %v4442_v6 }
 0xa33   :  { %v1614_v10 = vadd.f32 1e-05, %v1612_v9  ;;  %4228 = vmatprep.mubr.msk.bf16.mxu0 %vm4942_vm0, %v4940_v5 }
 0xa35   :  { %4569 = vrsqrt.f32 %v1614_v10 }
 0xa3e   :  { %v4568_v12 = vpop.eup %4567 }
 0xa3f   :  { %v1617_v8 = vmul.f32 %v4568_v12, %v1603_v41 }
 0xa41   :  { %v1625_v17 = vmul.f32 %v3771_v13, %v1617_v8 }
 0xa42   :  { %v4570_v14 = vpop.eup %4569 }
 0xa43   :  { %v1618_v15 = vmul.f32 %v4570_v14, %v1604_v45  ;;  %v1633_v20 = vadd.f32 %v3772_v18, %v1625_v17 }
 0xa45   :  { %v1626_v19 = vmul.f32 %v3771_v13, %v1618_v15 }
 0xa47   :  { %v1634_v22 = vadd.f32 %v3772_v18, %v1626_v19 }
 0xa49   :  { %v1635_v0 = vpack.c.bf16 %v1634_v22, %v1633_v20 }
 0xa4b   :  { %4193 = vmatmul.mubr.bf16.vlgmr.msra.gmra.mxu1 %v1635_v0 }
 0xa4c   :  { %4198 = vmatprep.mubr.msk.bf16.mxu1 %vm4942_vm0, %v4940_v5  ;;  %4197 = vmatpush3.bf16.xpose.msra.mxu1 %v1928_v33 }
 0xa4d   :  { %4202 = vmatprep.subr.bf16.mxu1 %v4940_v5 }
 0xaf2   :  { %v1912_v27 = vpop.f32.mrf.mxu0 }
 0xaf3   :  { %v1913_v32 = vadd.f32 %v1912_v27, %v5386_v25 }
 0xaf4   :  { %v5439_v30 = vpop.f32.mrf.mxu0 }
 0xaf6   :  { %v1916_v31 = vpop.f32.mrf.mxu0 }
 0xaf7   :  { %v1917_v33 = vadd.f32 %v1916_v31, %v5386_v25 }
 0xaf9   :  { %v2369_v34 = vpack.c.bf16 %v1917_v33, %v1913_v32 }
 0xb0b   :  { %v1741_v38 = vpop.f32.mrf.mxu1 }
 0xb0c   :  { %v1742_v39 = vadd.f32 %v3773_v35, %v1741_v38 }
 0xb0d   :  { %v4194_v40 = vpop.f32.mrf.mxu1 }
 0xb0e   :  { %v1921_v41 = vpack.c.bf16 %v1742_v39, %v1742_v39 }
 0xb0f   :  { %v1744_v43 = vpop.f32.mrf.mxu1 }
 0xb10   :  { %v1745_v44 = vadd.f32 %v3773_v35, %v1744_v43  ;;  %4199 = vmatmul.mubr.msk.bf16.vlgmr.msra.gmra.mxu1 %vm560_vm1, %v1921_v41 }
 0xb11   :  { %4203 = vmatpush3.bf16.msra.mxu1 %v5403_v42  ;;  %v4195_v45 = vpop.f32.mrf.mxu1  ;;  %4204 = vmatprep.mubr.msk.bf16.mxu1 %vm4942_vm0, %v4940_v5 }
 0xb12   :  { %4208 = vmatprep.subr.bf16.mxu1 %v4940_v5  ;;  %v2368_v18 = vpack.c.bf16 %v1745_v44, %v1745_v44  ;;  %v2375_v44 = vsel %vm560_vm1, %v2369_v34, 0 }
 0xbd0   :  { %v1964_v46 = vpop.f32.mrf.mxu1 }
 0xbd1   :  { %v1971_v47 = vsel %vm1970_vm7, %v1964_v46, -inf }
 0xbd2   :  { %1972 = vmax.xlane.f32.xlu1 %v1971_v47  ;;  %v4200_v48 = vpop.f32.mrf.mxu1 }
 0xbd4   :  { %v1967_v49 = vpop.f32.mrf.mxu1 }
 0xbd6   :  { %v4201_v50 = vpop.f32.mrf.mxu1 }
 0xbe3   :  { %2030 = vrot.lane.b32.xlu1 %v5390_v11, %s4943_s9 }
 0xc5b   :  { %v1973_v51 = vpop.xlane.xlu1 %1972 }
 0xc5c   :  { %v1974_v52 = vsub.f32 %v1964_v46, %v1973_v51 }
 0xc5e   :  { %v1975_v53 = vmul.f32 1.442695, %v1974_v52 }
 0xc5f   :  { %v2031_v62 = vpop.permute.xlu1 %2030 }
 0xc60   :  { %4571 = vpow2.f32 %v1975_v53  ;;  %v2036_v3 = vsel %vm560_vm1, %v2031_v62, 0 }
 0xc6d   :  { %v4572_v54 = vpop.eup %4571 }
 0xc6e   :  { %v1977_v57 = vsel %vm1970_vm7, %v4572_v54, 0.0 }
 0xc6f   :  { %1978 = vadd.xlane.f32.xlu0 %v1977_v57 }
 0xc85   :  { %2027 = vrot.lane.b32.xlu0 %v1921_v41, %s4943_s9 }
 0xcf8   :  { %v1979_v60 = vpop.xlane.xlu0 %1978 }
 0xcf9   :  { %4573 = vrcp.f32 %v1979_v60 }
 0xcfc   :  { %v2028_v4 = vpop.permute.xlu0 %2027 }
 0xd06   :  { %v4574_v61 = vpop.eup %4573 }
 0xd07   :  { %v1981_v21 = vmul.f32 %v4574_v61, %v4572_v54 }
 0xd09   :  { %v1982_v63 = vpack.c.bf16 %v1981_v21, %v1981_v21 }
 0xd0b   :  { %4205 = vmatmul.mubr.msk.bf16.vlgmr.msra.gmra.mxu1 %vm1970_vm7, %v1982_v63 }
 0xd0c   :  { %4209 = vmatpush3.bf16.xpose.msra.mxu1 %v2036_v3  ;;  %4210 = vmatprep.mubr.msk.bf16.mxu1 %vm4942_vm0, %v4940_v5 }
 0xd0d   :  { %4214 = vmatprep.subr.bf16.mxu1 %v4940_v5 }
 0xd13   :  { %4211 = vmatmul.mubr.msk.bf16.vlgmr.msra.gmra.mxu1 %vm560_vm1, %v2028_v4 }
 0xd14   :  { %4216 = vmatprep.mubr.msk.bf16.mxu1 %vm4942_vm0, %v4940_v5 }
 0xdcb   :  { %v5425_v7 = vpop.f32.mrf.mxu1 }
 0xdcd   :  { %v4206_v9 = vpop.f32.mrf.mxu1 }
 0xdcf   :  { %v2023_v10 = vpop.f32.mrf.mxu1 }
 0xdd1   :  { %v4207_v12 = vpop.f32.mrf.mxu1 }
 0xdd3   :  { %v2072_v8 = vpop.f32.mrf.mxu1 }
 0xdd4   :  { %v2078_v13 = vsel %vm1970_vm7, %v2072_v8, -inf }
 0xdd5   :  { %2079 = vmax.xlane.f32.xlu1 %v2078_v13  ;;  %v4212_v14 = vpop.f32.mrf.mxu1 }
 0xdd7   :  { %v2075_v15 = vpop.f32.mrf.mxu1 }
 0xdd9   :  { %v4213_v17 = vpop.f32.mrf.mxu1 }
 0xde6   :  { %2091 = vrot.lane.b32.xlu1 %v5403_v42, %s4943_s9 }
 0xdea   :  { %2137 = vrot.lane.b32.xlu1 %v1921_v41, %s4921_s0 }
 0xdee   :  { %2247 = vrot.lane.b32.xlu1 %v5390_v11, %s4944_s23 }
 0xdf2   :  { %2245 = vrot.lane.b32.xlu1 %v1921_v41, %s4944_s23 }
 0xdf6   :  { %2473 = vrot.lane.b32.xlu1 %v2368_v18, %s4943_s9 }
 0xdfa   :  { %2583 = vrot.lane.b32.xlu1 %v2368_v18, %s4921_s0 }
 0xdfe   :  { %2691 = vrot.lane.b32.xlu1 %v2368_v18, %s4944_s23 }
 0xe5e   :  { %v2080_v19 = vpop.xlane.xlu1 %2079 }
 0xe5f   :  { %v2081_v20 = vsub.f32 %v2072_v8, %v2080_v19 }
 0xe61   :  { %v2082_v22 = vmul.f32 1.442695, %v2081_v20 }
 0xe62   :  { %v2092_v0 = vpop.permute.xlu1 %2091 }
 0xe63   :  { %4575 = vpow2.f32 %v2082_v22  ;;  %4215 = vmatpush3.bf16.msra.mxu1 %v2092_v0 }
 0xe64   :  { %4220 = vmatprep.subr.bf16.mxu1 %v4940_v5 }
 0xe66   :  { %v2138_v40 = vpop.permute.xlu1 %2137 }
 0xe6a   :  { %v2248_v25 = vpop.permute.xlu1 %2247 }
 0xe6e   :  { %v2246_v43 = vpop.permute.xlu1 %2245 }
 0xe70   :  { %v4576_v23 = vpop.eup %4575 }
 0xe71   :  { %v2084_v26 = vsel %vm1970_vm7, %v4576_v23, 0.0 }
 0xe72   :  { %2085 = vadd.xlane.f32.xlu0 %v2084_v26  ;;  %v2474_v47 = vpop.permute.xlu1 %2473 }
 0xe76   :  { %v2584_v51 = vpop.permute.xlu1 %2583 }
 0xe7a   :  { %v2692_v53 = vpop.permute.xlu1 %2691 }
 0xe88   :  { %2139 = vrot.lane.b32.xlu0 %v5390_v11, %s4921_s0  ;;  %v2253_v11 = vsel %vm560_vm1, %v2248_v25, 0 }
 0xe8c   :  { %2476 = vrot.lane.b32.xlu0 %v2369_v34, %s4943_s9 }
 0xe90   :  { %2585 = vrot.lane.b32.xlu0 %v2369_v34, %s4921_s0 }
 0xe94   :  { %2693 = vrot.lane.b32.xlu0 %v2369_v34, %s4944_s23 }
 0xefb   :  { %v2086_v35 = vpop.xlane.xlu0 %2085 }
 0xefc   :  { %4577 = vrcp.f32 %v2086_v35 }
 0xeff   :  { %v2140_v38 = vpop.permute.xlu0 %2139 }
 0xf00   :  { %v2145_v41 = vsel %vm560_vm1, %v2140_v38, 0 }
 0xf03   :  { %v2477_v45 = vpop.permute.xlu0 %2476 }
 0xf04   :  { %v2482_v46 = vsel %vm560_vm1, %v2477_v45, 0 }
 0xf07   :  { %v2586_v48 = vpop.permute.xlu0 %2585 }
 0xf08   :  { %v2591_v49 = vsel %vm560_vm1, %v2586_v48, 0 }
 0xf09   :  { %v4578_v36 = vpop.eup %4577 }
 0xf0a   :  { %v2088_v37 = vmul.f32 %v4578_v36, %v4576_v23 }
 0xf0b   :  { %v2694_v50 = vpop.permute.xlu0 %2693 }
 0xf0c   :  { %v2089_v39 = vpack.c.bf16 %v2088_v37, %v2088_v37  ;;  %v2699_v52 = vsel %vm560_vm1, %v2694_v50, 0 }
 0xf0e   :  { %4217 = vmatmul.mubr.msk.bf16.vlgmr.msra.gmra.mxu1 %vm1970_vm7, %v2089_v39 }
 0xf0f   :  { %4221 = vmatpush3.bf16.xpose.msra.mxu1 %v2145_v41  ;;  %4222 = vmatprep.mubr.msk.bf16.mxu1 %vm4942_vm0, %v4940_v5 }
 0xf10   :  { %4232 = vmatprep.subr.bf16.mxu1 %v4940_v5 }
 0xf16   :  { %4223 = vmatmul.mubr.msk.bf16.vlgmr.msra.gmra.mxu1 %vm560_vm1, %v2138_v40 }
 0xf17   :  { %4233 = vmatpush3.bf16.xpose.msra.mxu1 %v2253_v11  ;;  %4234 = vmatprep.mubr.msk.bf16.mxu1 %vm4942_vm0, %v4940_v5 }
 0xf18   :  { %4244 = vmatprep.subr.bf16.mxu1 %v4940_v5 }
 0xf1e   :  { %4235 = vmatmul.mubr.msk.bf16.vlgmr.msra.gmra.mxu1 %vm560_vm1, %v2246_v43 }
 0xf1f   :  { %4245 = vmatpush3.bf16.xpose.msra.mxu1 %v2375_v44  ;;  %4246 = vmatprep.mubr.msk.bf16.mxu1 %vm4942_vm0, %v4940_v5 }
 0xf20   :  { %4256 = vmatprep.subr.bf16.mxu1 %v4940_v5 }
 0xf26   :  { %4247 = vmatmul.mubr.msk.bf16.vlgmr.msra.gmra.mxu1 %vm560_vm1, %v2368_v18 }
 0xf27   :  { %4257 = vmatpush3.bf16.xpose.msra.mxu1 %v2482_v46  ;;  %4258 = vmatprep.mubr.msk.bf16.mxu1 %vm4942_vm0, %v4940_v5 }
 0xf28   :  { %4268 = vmatprep.subr.bf16.mxu1 %v4940_v5 }
 0xf2e   :  { %4259 = vmatmul.mubr.msk.bf16.vlgmr.msra.gmra.mxu1 %vm560_vm1, %v2474_v47 }
 0xf2f   :  { %4269 = vmatpush3.bf16.xpose.msra.mxu1 %v2591_v49  ;;  %4270 = vmatprep.mubr.msk.bf16.mxu1 %vm4942_vm0, %v4940_v5 }
 0xf30   :  { %4280 = vmatprep.subr.bf16.mxu1 %v4940_v5 }
 0xf36   :  { %4271 = vmatmul.mubr.msk.bf16.vlgmr.msra.gmra.mxu1 %vm560_vm1, %v2584_v51 }
 0xf37   :  { %4281 = vmatpush3.bf16.xpose.msra.mxu1 %v2699_v52  ;;  %4282 = vmatprep.mubr.msk.bf16.mxu1 %vm4942_vm0, %v4940_v5 }
 0xf38   :  { %4292 = vmatprep.subr.bf16.mxu1 %v4940_v5 }
 0xf3e   :  { %4283 = vmatmul.mubr.msk.bf16.vlgmr.msra.gmra.mxu1 %vm560_vm1, %v2692_v53 }
 0xf3f   :  { %4308 = vmatprep.mubr.msk.bf16.mxu1 %vm4942_vm0, %v4940_v5 }
 0xfce   :  { %v5481_v54 = vpop.f32.mrf.mxu1 }
 0xfd0   :  { %v4218_v57 = vpop.f32.mrf.mxu1 }
 0xfd2   :  { %v2134_v60 = vpop.f32.mrf.mxu1 }
 0xfd4   :  { %v4219_v61 = vpop.f32.mrf.mxu1 }
 0xfd6   :  { %v2181_v21 = vpop.f32.mrf.mxu1 }
 0xfd7   :  { %v2187_v62 = vsel %vm1970_vm7, %v2181_v21, -inf }
 0xfd8   :  { %2188 = vmax.xlane.f32.xlu0 %v2187_v62  ;;  %v4224_v63 = vpop.f32.mrf.mxu1 }
 0xfda   :  { %v2184_v3 = vpop.f32.mrf.mxu1 }
 0xfdc   :  { %v4225_v4 = vpop.f32.mrf.mxu1 }
 0xfde   :  { %v2289_v6 = vpop.f32.mrf.mxu1 }
 0xfdf   :  { %v2295_v9 = vsel %vm1970_vm7, %v2289_v6, -inf }
 0xfe0   :  { %2296 = vmax.xlane.f32.xlu1 %v2295_v9  ;;  %v4236_v10 = vpop.f32.mrf.mxu1  ;;  %v1918_v9 = vpop.f32.mrf.mxu0 }
 0xfe1   :  { %v1915_v10 = vadd.f32 %v5439_v30, %v5396_v16 }
 0xfe2   :  { %v2292_v12 = vpop.f32.mrf.mxu1 }
 0xfe3   :  { %v1919_v12 = vadd.f32 %v1918_v9, %v5396_v16 }
 0xfe4   :  { %v4237_v8 = vpop.f32.mrf.mxu1 }
 0xfe5   :  { %v2370_v8 = vpack.c.bf16 %v1919_v12, %v1915_v10  ;;  %v4444_v12 = vld [vmem:[#allocation19 + $0x30] sm:$0xff]  }
 0xfe6   :  { %v2411_v13 = vpop.f32.mrf.mxu1 }
 0xfe7   :  { %v2417_v14 = vsel %vm1970_vm7, %v2411_v13, -inf }
 0xfe8   :  { %2418 = vmax.xlane.f32.xlu0 %v2417_v14  ;;  %v4248_v15 = vpop.f32.mrf.mxu1 }
 0xfea   :  { %v2414_v17 = vpop.f32.mrf.mxu1 }
 0xfec   :  { %v4249_v18 = vpop.f32.mrf.mxu1 }
 0xfee   :  { %v2518_v19 = vpop.f32.mrf.mxu1 }
 0xfef   :  { %v2524_v20 = vsel %vm1970_vm7, %v2518_v19, -inf }
 0xff0   :  { %2525 = vmax.xlane.f32.xlu0 %v2524_v20  ;;  %v4260_v22 = vpop.f32.mrf.mxu1 }
 0xff2   :  { %v2521_v0 = vpop.f32.mrf.mxu1 }
 0xff4   :  { %v4261_v23 = vpop.f32.mrf.mxu1 }
 0xff6   :  { %v2627_v26 = vpop.f32.mrf.mxu1 }
 0xff7   :  { %v2633_v27 = vsel %vm1970_vm7, %v2627_v26, -inf }
 0xff8   :  { %2634 = vmax.xlane.f32.xlu0 %v2633_v27  ;;  %v4272_v31 = vpop.f32.mrf.mxu1 }
 0xffa   :  { %v2630_v32 = vpop.f32.mrf.mxu1 }
 0xffc   :  { %v4273_v33 = vpop.f32.mrf.mxu1 }
 0xffe   :  { %v2735_v34 = vpop.f32.mrf.mxu1 }
 0xfff   :  { %v2741_v35 = vsel %vm1970_vm7, %v2735_v34, -inf }
0x1000   :  { %2742 = vmax.xlane.f32.xlu1 %v2741_v35  ;;  %v4284_v36 = vpop.f32.mrf.mxu1 }
0x1002   :  { %v2738_v37 = vpop.f32.mrf.mxu1 }
0x1004   :  { %v4285_v38 = vpop.f32.mrf.mxu1 }
0x1061   :  { %v2189_v39 = vpop.xlane.xlu0 %2188 }
0x1062   :  { %v2190_v40 = vsub.f32 %v2181_v21, %v2189_v39 }
0x1064   :  { %v2191_v41 = vmul.f32 1.442695, %v2190_v40 }
0x1066   :  { %4579 = vpow2.f32 %v2191_v41 }
0x1069   :  { %v2297_v25 = vpop.xlane.xlu1 %2296 }
0x106a   :  { %v2298_v11 = vsub.f32 %v2289_v6, %v2297_v25 }
0x106c   :  { %v2299_v43 = vmul.f32 1.442695, %v2298_v11 }
0x106e   :  { %4581 = vpow2.f32 %v2299_v43 }
0x1071   :  { %v2419_v44 = vpop.xlane.xlu0 %2418 }
0x1072   :  { %v2420_v45 = vsub.f32 %v2411_v13, %v2419_v44 }
0x1073   :  { %v4580_v46 = vpop.eup %4579 }
0x1074   :  { %v2421_v47 = vmul.f32 1.442695, %v2420_v45  ;;  %v2193_v48 = vsel %vm1970_vm7, %v4580_v46, 0.0 }
0x1075   :  { %2194 = vadd.xlane.f32.xlu0 %v2193_v48 }
0x1076   :  { %4583 = vpow2.f32 %v2421_v47 }
0x1079   :  { %v2526_v49 = vpop.xlane.xlu0 %2525 }
0x107a   :  { %v2527_v50 = vsub.f32 %v2518_v19, %v2526_v49 }
0x107b   :  { %v4582_v51 = vpop.eup %4581 }
0x107c   :  { %v2528_v52 = vmul.f32 1.442695, %v2527_v50  ;;  %v2301_v53 = vsel %vm1970_vm7, %v4582_v51, 0.0 }
0x107d   :  { %2302 = vadd.xlane.f32.xlu1 %v2301_v53 }
0x107e   :  { %4585 = vpow2.f32 %v2528_v52 }
0x1081   :  { %v2635_v57 = vpop.xlane.xlu0 %2634 }
0x1082   :  { %v2636_v60 = vsub.f32 %v2627_v26, %v2635_v57 }
0x1083   :  { %v4584_v61 = vpop.eup %4583 }
0x1084   :  { %v2637_v21 = vmul.f32 1.442695, %v2636_v60  ;;  %v2423_v62 = vsel %vm1970_vm7, %v4584_v61, 0.0 }
0x1085   :  { %2424 = vadd.xlane.f32.xlu0 %v2423_v62 }
0x1086   :  { %4587 = vpow2.f32 %v2637_v21 }
0x1089   :  { %v2743_v13 = vpop.xlane.xlu1 %2742 }
0x108a   :  { %v2744_v14 = vsub.f32 %v2735_v34, %v2743_v13 }
0x108b   :  { %v4586_v63 = vpop.eup %4585 }
0x108c   :  { %v2530_v3 = vsel %vm1970_vm7, %v4586_v63, 0.0  ;;  %v2745_v15 = vmul.f32 1.442695, %v2744_v14  ;;  %v4445_v14 = vld [vmem:[#allocation19 + $0x28] sm:$0xff]  }
0x108d   :  { %2531 = vadd.xlane.f32.xlu1 %v2530_v3 }
0x108e   :  { %4589 = vpow2.f32 %v2745_v15 }
0x1093   :  { %v5493_v4 = vpop.eup %4587 }
0x1094   :  { %v2639_v6 = vsel %vm1970_vm7, %v5493_v4, 0.0 }
0x1095   :  { %2640 = vadd.xlane.f32.xlu1 %v2639_v6  ;;  %v4443_v6 = vld [vmem:[#allocation19 + $0x38] sm:$0xff]  }
0x1096   :  { %4293 = vmatpush3.bf16.msra.mxu1 %v4443_v6 }
0x1097   :  { %4294 = vmatprep.subr.bf16.mxu1 %v4940_v5 }
0x109a   :  { %4295 = vmatpush3.bf16.msra.mxu1 %v4444_v12  ;;  %v4457_v12 = vld [vmem:[#allocation20 + $0xc0] ss:$16 sps:$4 sm:$0xff]  }
0x109b   :  { %2199 = vrot.lane.b32.xlu0 %v5403_v42, %s4921_s0  ;;  %v4590_v30 = vpop.eup %4589  ;;  %4296 = vmatprep.subr.bf16.mxu1 %v4940_v5 }
0x109c   :  { %v2747_v16 = vsel %vm1970_vm7, %v4590_v30, 0.0 }
0x109e   :  { %4297 = vmatpush3.bf16.msra.mxu1 %v4445_v14  ;;  %v4468_v14 = vld [vmem:[#allocation20 + $0xac] ss:$16 sps:$4 sm:$0xff]  }
0x109f   :  { %2537 = vrot.lane.b32.xlu0 %v2370_v8, %s4943_s9  ;;  %4298 = vmatprep.subr.bf16.mxu1 %v4940_v5 }
0x10a3   :  { %2645 = vrot.lane.b32.xlu0 %v2370_v8, %s4921_s0 }
0x10a6   :  { %2307 = vrot.lane.b32.xlu1 %v5403_v42, %s4944_s23 }
0x10a7   :  { %2753 = vrot.lane.b32.xlu0 %v2370_v8, %s4944_s23 }
0x10ca   :  { %2748 = vadd.xlane.f32.xlu1 %v2747_v16 }
0x10fe   :  { %v2195_v17 = vpop.xlane.xlu0 %2194 }
0x10ff   :  { %4591 = vrcp.f32 %v2195_v17  ;;  %v4446_v17 = vld [vmem:[#allocation19 + $0x20] sm:$0xff]  }
0x1100   :  { %4299 = vmatpush3.bf16.msra.mxu1 %v4446_v17  ;;  %v4471_v17 = vld [vmem:[#allocation20 + $0x84] ss:$16 sps:$4 sm:$0xff]  }
0x1101   :  { %4300 = vmatprep.subr.bf16.mxu1 %v4940_v5 }
0x1106   :  { %v2303_v19 = vpop.xlane.xlu1 %2302 }
0x1107   :  { %4593 = vrcp.f32 %v2303_v19  ;;  %v4447_v19 = vld [vmem:[#allocation19 + $0x18] sm:$0xff]  }
0x1108   :  { %4301 = vmatpush3.bf16.msra.mxu1 %v4447_v19  ;;  %v4477_v19 = vld [vmem:[#allocation20 + $0x64] ss:$16 sps:$4 sm:$0xff]  }
0x1109   :  { %4302 = vmatprep.subr.bf16.mxu1 %v4940_v5 }
0x110c   :  { %v4592_v18 = vpop.eup %4591 }
0x110d   :  { %v2197_v22 = vmul.f32 %v4592_v18, %v4580_v46 }
0x110e   :  { %v2425_v20 = vpop.xlane.xlu0 %2424 }
0x110f   :  { %v2198_v42 = vpack.c.bf16 %v2197_v22, %v2197_v22  ;;  %4595 = vrcp.f32 %v2425_v20  ;;  %v4448_v20 = vld [vmem:[#allocation19 + $0x10] sm:$0xff]   ;;  %v4449_v22 = vld [vmem:[#allocation19 + $0x8] sm:$0xff]  }
0x1110   :  { %4303 = vmatpush3.bf16.msra.mxu1 %v4448_v20  ;;  %v4480_v20 = vld [vmem:[#allocation20 + $0x6c] ss:$16 sps:$4 sm:$0xff]  }
0x1111   :  { %4304 = vmatprep.subr.bf16.mxu1 %v4940_v5 }
0x1112   :  { %v2200_v0 = vpop.permute.xlu0 %2199 }
0x1113   :  { %4227 = vmatpush3.bf16.msra.mxu0 %v2200_v0  ;;  %v4450_v0 = vld [vmem:[#allocation19] sm:$0xff]  }
0x1114   :  { %4238 = vmatprep.subr.bf16.mxu0 %v4940_v5  ;;  %v4594_v26 = vpop.eup %4593  ;;  %4305 = vmatpush3.bf16.msra.mxu1 %v4449_v22  ;;  %v4475_v22 = vld [vmem:[#allocation20 + $0x60] ss:$16 sps:$4 sm:$0xff]  }
0x1115   :  { %v2305_v31 = vmul.f32 %v4594_v26, %v4582_v51  ;;  %4306 = vmatprep.subr.bf16.mxu1 %v4940_v5 }
0x1116   :  { %4229 = vmatmul.mubr.msk.bf16.vlgmr.msra.gmra.mxu0 %vm1970_vm7, %v2198_v42  ;;  %v2532_v23 = vpop.xlane.xlu1 %2531  ;;  %v2538_v38 = vpop.permute.xlu0 %2537 }
0x1117   :  { %4240 = vmatprep.mubr.msk.bf16.mxu0 %vm4942_vm0, %v4940_v5  ;;  %4597 = vrcp.f32 %v2532_v23  ;;  %v2306_v33 = vpack.c.bf16 %v2305_v31, %v2305_v31 }
0x1118   :  { %4307 = vmatpush3.bf16.msra.mxu1 %v4450_v0  ;;  %v4478_v0 = vld [vmem:[#allocation20 + $0x68] ss:$16 sps:$4 sm:$0xff]  }
0x111a   :  { %v2646_v25 = vpop.permute.xlu0 %2645 }
0x111c   :  { %v4596_v34 = vpop.eup %4595 }
0x111d   :  { %v2427_v35 = vmul.f32 %v4596_v34, %v4584_v61 }
0x111e   :  { %v2641_v27 = vpop.xlane.xlu1 %2640  ;;  %v2754_v44 = vpop.permute.xlu0 %2753 }
0x111f   :  { %4599 = vrcp.f32 %v2641_v27  ;;  %v2428_v36 = vpack.c.bf16 %v2427_v35, %v2427_v35 }
0x1122   :  { %v2308_v32 = vpop.permute.xlu1 %2307 }
0x1123   :  { %4239 = vmatpush3.bf16.msra.mxu0 %v2308_v32 }
0x1124   :  { %4250 = vmatprep.subr.bf16.mxu0 %v4940_v5  ;;  %v4598_v37 = vpop.eup %4597 }
0x1125   :  { %v2534_v39 = vmul.f32 %v4598_v37, %v4586_v63 }
0x1126   :  { %4241 = vmatmul.mubr.msk.bf16.vlgmr.msra.gmra.mxu0 %vm1970_vm7, %v2306_v33 }
0x1127   :  { %4251 = vmatpush3.bf16.msra.mxu0 %v2370_v8  ;;  %4252 = vmatprep.mubr.msk.bf16.mxu0 %vm4942_vm0, %v4940_v5  ;;  %v2535_v40 = vpack.c.bf16 %v2534_v39, %v2534_v39 }
0x1128   :  { %4262 = vmatprep.subr.bf16.mxu0 %v4940_v5 }
0x112c   :  { %v4600_v41 = vpop.eup %4599 }
0x112d   :  { %v2643_v11 = vmul.f32 %v4600_v41, %v5493_v4 }
0x112e   :  { %4253 = vmatmul.mubr.msk.bf16.vlgmr.msra.gmra.mxu0 %vm1970_vm7, %v2428_v36 }
0x112f   :  { %4263 = vmatpush3.bf16.msra.mxu0 %v2538_v38  ;;  %4264 = vmatprep.mubr.msk.bf16.mxu0 %vm4942_vm0, %v4940_v5  ;;  %v2644_v43 = vpack.c.bf16 %v2643_v11, %v2643_v11 }
0x1130   :  { %4274 = vmatprep.subr.bf16.mxu0 %v4940_v5 }
0x1136   :  { %4265 = vmatmul.mubr.msk.bf16.vlgmr.msra.gmra.mxu0 %vm1970_vm7, %v2535_v40 }
0x1137   :  { %4275 = vmatpush3.bf16.msra.mxu0 %v2646_v25  ;;  %4276 = vmatprep.mubr.msk.bf16.mxu0 %vm4942_vm0, %v4940_v5 }
0x1138   :  { %4286 = vmatprep.subr.bf16.mxu0 %v4940_v5 }
0x113e   :  { %4277 = vmatmul.mubr.msk.bf16.vlgmr.msra.gmra.mxu0 %vm1970_vm7, %v2644_v43 }
0x113f   :  { %4287 = vmatpush3.bf16.msra.mxu0 %v2754_v44  ;;  %4288 = vmatprep.mubr.msk.bf16.mxu0 %vm4942_vm0, %v4940_v5 }
0x1153   :  { %v2749_v45 = vpop.xlane.xlu1 %2748 }
0x1154   :  { %4601 = vrcp.f32 %v2749_v45 }
0x1161   :  { %v4602_v46 = vpop.eup %4601 }
0x1162   :  { %v2751_v47 = vmul.f32 %v4602_v46, %v4590_v30  ;;  %v3816_v46 = vld [vmem:[%s5645_s17] ss:$0 sm:$0xff] }
0x1164   :  { %v2752_v48 = vpack.c.bf16 %v2751_v47, %v2751_v47 }
0x1166   :  { %4289 = vmatmul.mubr.msk.bf16.vlgmr.msra.gmra.mxu0 %vm1970_vm7, %v2752_v48 }
0x1167   :  { %3216 = vmatprep.mubr.bf16.mxu0 %v4941_v28 }
0x11d6   :  { %v2239_v49 = vpop.f32.mrf.mxu0 }
0x11d8   :  { %v4230_v50 = vpop.f32.mrf.mxu0 }
0x11da   :  { %v2242_v51 = vpop.f32.mrf.mxu0 }
0x11dc   :  { %v4231_v52 = vpop.f32.mrf.mxu0 }
0x11e6   :  { %v2347_v53 = vpop.f32.mrf.mxu0 }
0x11e8   :  { %v4242_v57 = vpop.f32.mrf.mxu0 }
0x11e9   :  { %v4453_v57 = vld [vmem:[#allocation20 + $0xe4] ss:$16 sps:$4 sm:$0xff]  }
0x11ea   :  { %v2350_v60 = vpop.f32.mrf.mxu0  ;;  %3184 = vmatprep.subr.bf16.mxu0 %v4453_v57  ;;  %v4499_v57 = vld [vmem:[#allocation22 + $0x78] sm:$0xff]  }
0x11eb   :  { %v4454_v60 = vld [vmem:[#allocation20 + $0xe8] ss:$16 sps:$4 sm:$0xff]  }
0x11ec   :  { %v4243_v61 = vpop.f32.mrf.mxu0 }
0x11ed   :  { %v4456_v61 = vld [vmem:[#allocation20 + $0xec] ss:$16 sps:$4 sm:$0xff]  }
0x11ee   :  { %v2466_v21 = vpop.f32.mrf.mxu0  ;;  %3227 = vmatprep.subr.bf16.mxu1 %v4456_v61  ;;  %v4501_v61 = vld [vmem:[#allocation22 + $0x38] sm:$0xff]  }
0x11f0   :  { %v4254_v62 = vpop.f32.mrf.mxu0 }
0x11f2   :  { %v2469_v63 = vpop.f32.mrf.mxu0 }
0x11f4   :  { %v4255_v3 = vpop.f32.mrf.mxu0 }
0x11f6   :  { %v2577_v4 = vpop.f32.mrf.mxu0 }
0x11f7   :  { %v4354_v9 = vpack.i.bf16 %v2577_v4, %v5481_v54 }
0x11f8   :  { %v4266_v10 = vpop.f32.mrf.mxu0 }
0x11f9   :  { %4355 = vrot.lane.b32.xlu0 %v4354_v9, %s4944_s23  ;;  %v4459_v9 = vld [vmem:[#allocation20 + $0xc4] ss:$16 sps:$4 sm:$0xff]   ;;  %v4462_v10 = vld [vmem:[#allocation20 + $0xcc] ss:$16 sps:$4 sm:$0xff]  }
0x11fa   :  { %v2580_v8 = vpop.f32.mrf.mxu0 }
0x11fb   :  { %v4460_v8 = vld [vmem:[#allocation20 + $0xc8] ss:$16 sps:$4 sm:$0xff]  }
0x11fc   :  { %v4267_v13 = vpop.f32.mrf.mxu0 }
0x11fd   :  { %v4465_v13 = vld [vmem:[#allocation20 + $0xa4] ss:$16 sps:$4 sm:$0xff]  }
0x11fe   :  { %v2685_v15 = vpop.f32.mrf.mxu0 }
0x11ff   :  { %v4359_v30 = vpack.i.bf16 %v2685_v15, %v2239_v49  ;;  %v4463_v15 = vld [vmem:[#allocation20 + $0xa0] ss:$16 sps:$4 sm:$0xff]  }
0x1200   :  { %v4278_v16 = vpop.f32.mrf.mxu0 }
0x1201   :  { %4360 = vrot.lane.b32.xlu0 %v4359_v30, %s4921_s0  ;;  %v4466_v30 = vld [vmem:[#allocation20 + $0xa8] ss:$16 sps:$4 sm:$0xff]   ;;  %v4469_v16 = vld [vmem:[#allocation20 + $0x80] ss:$16 sps:$4 sm:$0xff]  }
0x1202   :  { %v2688_v54 = vpop.f32.mrf.mxu0 }
0x1203   :  { %v4472_v54 = vld [vmem:[#allocation20 + $0x88] ss:$16 sps:$4 sm:$0xff]  }
0x1204   :  { %v4279_v18 = vpop.f32.mrf.mxu0 }
0x1205   :  { %v4474_v18 = vld [vmem:[#allocation20 + $0x8c] ss:$16 sps:$4 sm:$0xff]  }
0x1226   :  { %v2793_v42 = vpop.f32.mrf.mxu0 }
0x1227   :  { %v4364_v23 = vpack.i.bf16 %v2793_v42, %v2347_v53  ;;  %v4483_v42 = vld [vmem:[#allocation20 + $0x44] ss:$16 sps:$4 sm:$0xff]  }
0x1228   :  { %v4290_v26 = vpop.f32.mrf.mxu0 }
0x1229   :  { %4365 = vrot.lane.b32.xlu0 %v4364_v23, %s4943_s9  ;;  %v4486_v23 = vld [vmem:[#allocation20 + $0x4c] ss:$16 sps:$4 sm:$0xff]   ;;  %v4481_v26 = vld [vmem:[#allocation20 + $0x40] ss:$16 sps:$4 sm:$0xff]  }
0x122a   :  { %v2796_v27 = vpop.f32.mrf.mxu0 }
0x122b   :  { %v4484_v27 = vld [vmem:[#allocation20 + $0x48] ss:$16 sps:$4 sm:$0xff]  }
0x122c   :  { %v4291_v31 = vpop.f32.mrf.mxu0 }
0x122d   :  { %v4489_v31 = vld [vmem:[#allocation20 + $0x24] ss:$16 sps:$4 sm:$0xff]  }
0x126b   :  { %v4356_v32 = vpop.permute.xlu0 %4355 }
0x126c   :  { %v4358_v34 = vunpack.i.h.bf16 %v4356_v32  ;;  %v4357_v35 = vunpack.i.l.bf16 %v4356_v32  ;;  %v4492_v32 = vld [vmem:[#allocation20 + $0x2c] ss:$16 sps:$4 sm:$0xff]  }
0x126e   :  { %v2811_v39 = vsel %vm560_vm1, %v2466_v21, %v4358_v34  ;;  %v2365_v5 = vsel %vm560_vm1, %v5425_v7, %v4357_v35  ;;  %v4490_v34 = vld [vmem:[#allocation20 + $0x28] ss:$16 sps:$4 sm:$0xff]   ;;  %v4495_v35 = vld [vmem:[#allocation20 + $0x4] ss:$16 sps:$4 sm:$0xff]  }
0x1273   :  { %v4361_v33 = vpop.permute.xlu0 %4360 }
0x1274   :  { %v4363_v36 = vunpack.i.h.bf16 %v4361_v33  ;;  %v4362_v37 = vunpack.i.l.bf16 %v4361_v33  ;;  %v4487_v33 = vld [vmem:[#allocation20 + $0x20] ss:$16 sps:$4 sm:$0xff]  }
0x1276   :  { %v2812_v25 = vsel %vm1017_vm5, %v2811_v39, %v4363_v36  ;;  %v2366_v11 = vsel %vm1017_vm5, %v2365_v5, %v4362_v37  ;;  %v4498_v36 = vld [vmem:[#allocation20 + $0xc] ss:$16 sps:$4 sm:$0xff]   ;;  %v4493_v37 = vld [vmem:[#allocation20] ss:$16 sps:$4 sm:$0xff]  }
0x129b   :  { %v4366_v38 = vpop.permute.xlu0 %4365 }
0x129c   :  { %v4368_v40 = vunpack.i.h.bf16 %v4366_v38  ;;  %v4367_v41 = vunpack.i.l.bf16 %v4366_v38  ;;  %v4496_v38 = vld [vmem:[#allocation20 + $0x8] ss:$16 sps:$4 sm:$0xff]  }
0x129e   :  { %v2813_v43 = vsel %vm1019_vm6, %v2812_v25, %v4368_v40  ;;  %v2367_v44 = vsel %vm1019_vm6, %v2366_v11, %v4367_v41 }
0x129f   :  { %v2814_v45 = vpack.c.bf16 %v2813_v43, %v2367_v44 }
0x12a1   :  { %4309 = vmatmul.mubr.bf16.vlgmr.msra.gmra.mxu1 %v2814_v45  ;;  %v3825_v45 = vld [vmem:[%s5667_s27] ss:$0 sm:$0xff] }
0x12a2   :  { %3259 = vmatprep.mubr.bf16.mxu1 %v4941_v28  ;;  %v4451_v28 = vld [vmem:[#allocation20 + $0xe0] ss:$16 sps:$4 sm:$0xff]   ;;  %3228 = vmatpush1.bf16.msra.mxu1 %v4454_v60  ;;  %v4500_v60 = vld [vmem:[#allocation22 + $0xf8] sm:$0xff]  }
0x12a3   :  { %3185 = vmatpush1.bf16.msra.mxu0 %v4451_v28  ;;  %3229 = vmatprep.subr.bf16.mxu1 %v4462_v10  ;;  %v4511_v10 = vld [vmem:[#allocation22 + $0x60] sm:$0xff]  }
0x12a4   :  { %3186 = vmatprep.subr.bf16.mxu0 %v4459_v9  ;;  %v4510_v9 = vld [vmem:[#allocation22 + $0xa8] sm:$0xff]  }
0x12a6   :  { %3230 = vmatpush1.bf16.msra.mxu1 %v4460_v8  ;;  %v4513_v8 = vld [vmem:[#allocation22 + $0x20] sm:$0xff]  }
0x12a7   :  { %3187 = vmatpush1.bf16.msra.mxu0 %v4457_v12  ;;  %3231 = vmatprep.subr.bf16.mxu1 %v4468_v14  ;;  %v4512_v12 = vld [vmem:[#allocation22 + $0xe0] sm:$0xff]   ;;  %v4515_v14 = vld [vmem:[#allocation22 + $0x58] sm:$0xff]  }
0x12a8   :  { %3188 = vmatprep.subr.bf16.mxu0 %v4465_v13  ;;  %v4514_v13 = vld [vmem:[#allocation22 + $0xa0] sm:$0xff]  }
0x12aa   :  { %3232 = vmatpush1.bf16.msra.mxu1 %v4466_v30  ;;  %v4517_v30 = vld [vmem:[#allocation22 + $0x18] sm:$0xff]  }
0x12ab   :  { %3189 = vmatpush1.bf16.msra.mxu0 %v4463_v15  ;;  %3233 = vmatprep.subr.bf16.mxu1 %v4474_v18  ;;  %v4516_v15 = vld [vmem:[#allocation22 + $0xd8] sm:$0xff]   ;;  %v4521_v18 = vld [vmem:[#allocation22 + $0x10] sm:$0xff]  }
0x12ac   :  { %3190 = vmatprep.subr.bf16.mxu0 %v4471_v17  ;;  %v4519_v17 = vld [vmem:[#allocation22 + $0x50] sm:$0xff]  }
0x12ae   :  { %3234 = vmatpush1.bf16.msra.mxu1 %v4472_v54  ;;  %v4520_v54 = vld [vmem:[#allocation22 + $0xd0] sm:$0xff]  }
0x12af   :  { %3191 = vmatpush1.bf16.msra.mxu0 %v4469_v16  ;;  %3235 = vmatprep.subr.bf16.mxu1 %v4480_v20  ;;  %v4518_v16 = vld [vmem:[#allocation22 + $0x98] sm:$0xff]   ;;  %v4523_v20 = vld [vmem:[#allocation22 + $0x48] sm:$0xff]  }
0x12b0   :  { %3192 = vmatprep.subr.bf16.mxu0 %v4477_v19  ;;  %v4522_v19 = vld [vmem:[#allocation22 + $0x90] sm:$0xff]  }
0x12b2   :  { %3236 = vmatpush1.bf16.msra.mxu1 %v4478_v0  ;;  %v4525_v0 = vld [vmem:[#allocation22 + $0x8] sm:$0xff]  }
0x12b3   :  { %3193 = vmatpush1.bf16.msra.mxu0 %v4475_v22  ;;  %3237 = vmatprep.subr.bf16.mxu1 %v4486_v23  ;;  %v4524_v22 = vld [vmem:[#allocation22 + $0xc8] sm:$0xff]   ;;  %v4527_v23 = vld [vmem:[#allocation22 + $0x40] sm:$0xff]  }
0x12b4   :  { %3194 = vmatprep.subr.bf16.mxu0 %v4483_v42  ;;  %v4526_v42 = vld [vmem:[#allocation22 + $0x88] sm:$0xff]  }
0x12b6   :  { %3238 = vmatpush1.bf16.msra.mxu1 %v4484_v27  ;;  %v4529_v27 = vld [vmem:[#allocation22] sm:$0xff]  }
0x12b7   :  { %3195 = vmatpush1.bf16.msra.mxu0 %v4481_v26  ;;  %3239 = vmatprep.subr.bf16.mxu1 %v4492_v32  ;;  %v4528_v26 = vld [vmem:[#allocation22 + $0xc0] sm:$0xff]  }
0x12b8   :  { %3196 = vmatprep.subr.bf16.mxu0 %v4489_v31  ;;  %v4530_v31 = vld [vmem:[#allocation22 + $0x80] sm:$0xff]  }
0x12b9   :  { %v3002_v32 = vld [vmem:[%s5647_s19] sm:$0xf] }
0x12ba   :  { %3240 = vmatpush1.bf16.msra.mxu1 %v4490_v34  ;;  %v3007_v34 = vrot.slane %v3002_v32, %v5165_v58 }
0x12bb   :  { %3197 = vmatpush1.bf16.msra.mxu0 %v4487_v33  ;;  %3241 = vmatprep.subr.bf16.mxu1 %v4498_v36  ;;  %v3018_v33 = vsub.s32 3, %v5156_v55  ;;  %v3011_v36 = vrot.slane %v3002_v32, %v5159_v56 }
0x12bc   :  { %3198 = vmatprep.subr.bf16.mxu0 %v4495_v35  ;;  %v3015_v35 = vrot.slane %v3002_v32, %v335_v59 }
0x12be   :  { %3242 = vmatpush1.bf16.msra.mxu1 %v4496_v38 }
0x12bf   :  { %3199 = vmatpush1.bf16.msra.mxu0 %v4493_v37  ;;  %4018 = vmatprep.subr.bf16.mxu1 %v4500_v60  ;;  %v3019_v37 = vrot.slane %v3002_v32, %v3018_v33 }
0x12c0   :  { %3996 = vmatprep.subr.bf16.mxu0 %v4499_v57 }
0x1361   :  { %v2920_v47 = vpop.f32.mrf.mxu1 }
0x1362   :  { %v2921_v7 = vadd.f32 %v3816_v46, %v2920_v47 }
0x1363   :  { %v4310_v48 = vpop.f32.mrf.mxu1 }
0x1364   :  { %v5554_v49 = vadd.f32 %v2921_v7, %v5361_v24  ;;  %v3826_v48 = vld [vmem:[%s5635_s7] ss:$0 sm:$0xff] }
0x1365   :  { %v2923_v50 = vpop.f32.mrf.mxu1 }
0x1366   :  { %v2924_v51 = vadd.f32 %v3816_v46, %v2923_v50  ;;  %2931 = vadd.xlane.f32.xlu0 %v5554_v49 }
0x1367   :  { %v4311_v52 = vpop.f32.mrf.mxu1 }
0x1368   :  { %v5558_v53 = vadd.f32 %v2924_v51, %v5365_v29 }
0x136a   :  { %2933 = vadd.xlane.f32.xlu1 %v5558_v53 }
0x13ef   :  { %v2932_v24 = vpop.xlane.xlu0 %2931 }
0x13f0   :  { %v2935_v21 = vmul.f32 0.0078125, %v2932_v24  ;;  %v4502_v24 = vld [vmem:[#allocation22 + $0xb8] sm:$0xff]  }
0x13f2   :  { %v5562_v62 = vsub.f32 %v5554_v49, %v2935_v21  ;;  %v4503_v21 = vld [vmem:[#allocation22 + $0x70] sm:$0xff]  }
0x13f3   :  { %v2934_v63 = vpop.xlane.xlu1 %2933 }
0x13f4   :  { %v2936_v3 = vmul.f32 0.0078125, %v2934_v63  ;;  %v2939_v29 = vmul.f32 %v5562_v62, %v5562_v62  ;;  %v4505_v63 = vld [vmem:[#allocation22 + $0x30] sm:$0xff]  }
0x13f6   :  { %v5567_v4 = vsub.f32 %v5558_v53, %v2936_v3  ;;  %2941 = vadd.xlane.f32.xlu1 %v2939_v29  ;;  %v4506_v3 = vld [vmem:[#allocation22 + $0xb0] sm:$0xff]   ;;  %v4507_v29 = vld [vmem:[#allocation22 + $0x68] sm:$0xff]  }
0x13f8   :  { %v2940_v6 = vmul.f32 %v5567_v4, %v5567_v4 }
0x13fa   :  { %2943 = vadd.xlane.f32.xlu1 %v2940_v6  ;;  %v4509_v6 = vld [vmem:[#allocation22 + $0x28] sm:$0xff]  }
0x147f   :  { %v2942_v39 = vpop.xlane.xlu1 %2941 }
0x1480   :  { %v2945_v5 = vmul.f32 0.0078125, %v2942_v39 }
0x1482   :  { %v2947_v40 = vadd.f32 1e-05, %v2945_v5 }
0x1483   :  { %v2944_v41 = vpop.xlane.xlu1 %2943 }
0x1484   :  { %4603 = vrsqrt.f32 %v2947_v40  ;;  %v2946_v25 = vmul.f32 0.0078125, %v2944_v41 }
0x1486   :  { %v2948_v11 = vadd.f32 1e-05, %v2946_v25 }
0x1488   :  { %4605 = vrsqrt.f32 %v2948_v11 }
0x1491   :  { %v4604_v43 = vpop.eup %4603 }
0x1492   :  { %v2951_v44 = vmul.f32 %v4604_v43, %v5562_v62  ;;  %v4504_v62 = vld [vmem:[#allocation22 + $0xf0] sm:$0xff]  }
0x1494   :  { %v2959_v7 = vmul.f32 %v3825_v45, %v2951_v44 }
0x1495   :  { %v4606_v46 = vpop.eup %4605 }
0x1496   :  { %v2952_v47 = vmul.f32 %v4606_v46, %v5567_v4  ;;  %v2967_v51 = vadd.f32 %v3826_v48, %v2959_v7  ;;  %v4508_v4 = vld [vmem:[#allocation22 + $0xe8] sm:$0xff]  }
0x1498   :  { %v2960_v50 = vmul.f32 %v3825_v45, %v2952_v47 }
0x149a   :  { %v2968_v52 = vadd.f32 %v3826_v48, %v2960_v50 }
0x149c   :  { %v2969_v28 = vpack.c.bf16 %v2968_v52, %v2967_v51 }
0x149e   :  { %3217 = vmatmul.mubr.bf16.vlgmr.msra.gmra.mxu0 %v2969_v28  ;;  %3260 = vmatmul.mubr.bf16.vlgmr.msra.gmra.mxu1 %v2969_v28 }
0x149f   :  { %3997 = vmatpush3.bf16.msra.mxu0 %v4501_v61  ;;  %4019 = vmatpush3.bf16.msra.mxu1 %v4502_v24 }
0x14a0   :  { %3998 = vmatprep.subr.bf16.mxu0 %v4503_v21  ;;  %4020 = vmatprep.subr.bf16.mxu1 %v4504_v62 }
0x14a3   :  { %3999 = vmatpush3.bf16.msra.mxu0 %v4505_v63  ;;  %4021 = vmatpush3.bf16.msra.mxu1 %v4506_v3 }
0x14a4   :  { %4000 = vmatprep.subr.bf16.mxu0 %v4507_v29  ;;  %4022 = vmatprep.subr.bf16.mxu1 %v4508_v4 }
0x14a7   :  { %4001 = vmatpush3.bf16.msra.mxu0 %v4509_v6  ;;  %4023 = vmatpush3.bf16.msra.mxu1 %v4510_v9 }
0x14a8   :  { %4002 = vmatprep.subr.bf16.mxu0 %v4511_v10  ;;  %4024 = vmatprep.subr.bf16.mxu1 %v4512_v12 }
0x14ab   :  { %4003 = vmatpush3.bf16.msra.mxu0 %v4513_v8  ;;  %4025 = vmatpush3.bf16.msra.mxu1 %v4514_v13 }
0x14ac   :  { %4004 = vmatprep.subr.bf16.mxu0 %v4515_v14  ;;  %4026 = vmatprep.subr.bf16.mxu1 %v4516_v15 }
0x14af   :  { %4005 = vmatpush3.bf16.msra.mxu0 %v4517_v30  ;;  %4027 = vmatpush3.bf16.msra.mxu1 %v4518_v16 }
0x14b0   :  { %4006 = vmatprep.subr.bf16.mxu0 %v4519_v17  ;;  %4028 = vmatprep.subr.bf16.mxu1 %v4520_v54 }
0x14b3   :  { %4007 = vmatpush3.bf16.msra.mxu0 %v4521_v18  ;;  %4029 = vmatpush3.bf16.msra.mxu1 %v4522_v19 }
0x14b4   :  { %4008 = vmatprep.subr.bf16.mxu0 %v4523_v20  ;;  %4030 = vmatprep.subr.bf16.mxu1 %v4524_v22 }
0x14b7   :  { %4009 = vmatpush3.bf16.msra.mxu0 %v4525_v0  ;;  %4031 = vmatpush3.bf16.msra.mxu1 %v4526_v42 }
0x14b8   :  { %4010 = vmatprep.subr.bf16.mxu0 %v4527_v23  ;;  %4032 = vmatprep.subr.bf16.mxu1 %v4528_v26 }
0x14bb   :  { %4011 = vmatpush3.bf16.msra.mxu0 %v4529_v27  ;;  %4033 = vmatpush3.bf16.msra.mxu1 %v4530_v31 }
0x155e   :  { %v3218_v38 = vpop.f32.mrf.mxu0  ;;  %v3261_v39 = vpop.f32.mrf.mxu1 }
0x155f   :  { %v5587_v5 = vadd.f32 %v3218_v38, %v3007_v34  ;;  %v5589_v40 = vadd.f32 %v3261_v39, %v3015_v35 }
0x1560   :  { %v3220_v41 = vpop.f32.mrf.mxu0  ;;  %v3263_v25 = vpop.f32.mrf.mxu1 }
0x1561   :  { %v3278_v11 = vmul.f32 0.044715, %v5587_v5  ;;  %v3280_v43 = vmul.f32 0.044715, %v5589_v40  ;;  %v3221_v44 = vadd.f32 %v3220_v41, %v3011_v36  ;;  %v5593_v58 = vadd.f32 %v3263_v25, %v3019_v37 }
0x1562   :  { %v3222_v55 = vpop.f32.mrf.mxu0  ;;  %v3265_v59 = vpop.f32.mrf.mxu1 }
0x1563   :  { %v3286_v56 = vmul.f32 %v3278_v11, %v5587_v5  ;;  %v3288_v45 = vmul.f32 %v3280_v43, %v5589_v40  ;;  %v3279_v46 = vmul.f32 0.044715, %v3221_v44  ;;  %v3281_v47 = vmul.f32 0.044715, %v5593_v58 }
0x1564   :  { %v3223_v7 = vadd.f32 %v3222_v55, %v3007_v34  ;;  %v5598_v48 = vadd.f32 %v3265_v59, %v3015_v35  ;;  %v3224_v50 = vpop.f32.mrf.mxu0  ;;  %v3267_v51 = vpop.f32.mrf.mxu1  ;;  %v3271_v41 = vmul.f32 0.5, %v3221_v44  ;;  %v3270_v11 = vmul.f32 0.5, %v5587_v5 }
0x1565   :  { %v3294_v52 = vmul.f32 %v3286_v56, %v5587_v5  ;;  %v3296_v28 = vmul.f32 %v3288_v45, %v5589_v40  ;;  %v3287_v57 = vmul.f32 %v3279_v46, %v3221_v44  ;;  %v3289_v60 = vmul.f32 %v3281_v47, %v5593_v58 }
0x1566   :  { %v3282_v61 = vmul.f32 0.044715, %v3223_v7  ;;  %v3284_v24 = vmul.f32 0.044715, %v5598_v48  ;;  %v3225_v21 = vadd.f32 %v3224_v50, %v3011_v36  ;;  %v3268_v62 = vadd.f32 %v3267_v51, %v3019_v37 }
0x1567   :  { %v3302_v63 = vadd.f32 %v3294_v52, %v5587_v5  ;;  %v3304_v3 = vadd.f32 %v3296_v28, %v5589_v40  ;;  %v3295_v29 = vmul.f32 %v3287_v57, %v3221_v44  ;;  %v3297_v4 = vmul.f32 %v3289_v60, %v5593_v58 }
0x1568   :  { %v3290_v6 = vmul.f32 %v3282_v61, %v3223_v7  ;;  %v3292_v9 = vmul.f32 %v3284_v24, %v5598_v48  ;;  %v3283_v10 = vmul.f32 0.044715, %v3225_v21  ;;  %v3285_v12 = vmul.f32 0.044715, %v3268_v62 }
0x1569   :  { %v3310_v8 = vmul.f32 0.7978846, %v3302_v63  ;;  %v3312_v13 = vmul.f32 0.7978846, %v3304_v3  ;;  %v3303_v14 = vadd.f32 %v3295_v29, %v3221_v44  ;;  %v3305_v18 = vadd.f32 %v3297_v4, %v5593_v58 }
0x156a   :  { %v3298_v15 = vmul.f32 %v3290_v6, %v3223_v7  ;;  %v3300_v30 = vmul.f32 %v3292_v9, %v5598_v48  ;;  %v3291_v16 = vmul.f32 %v3283_v10, %v3225_v21  ;;  %v3293_v17 = vmul.f32 %v3285_v12, %v3268_v62  ;;  %v3859_v12 = vld [vmem:[%s5649_s21] ss:$0 sm:$0xff]  ;;  %s3702_s21 = sshll.u32 %s4945_s3, 4  ;;  %s3703_s21 = int_to_ptr.vmem [resolvable:$true] %s3702_s21 }
0x156b   :  { %v3311_v54 = vmul.f32 0.7978846, %v3303_v14  ;;  %4607 = vtanh.f32 %v3310_v8  ;;  %v3313_v42 = vmul.f32 0.7978846, %v3305_v18  ;;  %v3274_v56 = vmul.f32 0.5, %v3223_v7  ;;  %s4883_s28 = scalar_lea.vmem %s3703_s21, 256  ;;  %p4888_p10 = scmp.lt.s32.totalorder %s3703_s21, %s3703_s21 }
0x156c   :  { %v3306_v19 = vadd.f32 %v3298_v15, %v3223_v7  ;;  %v3308_v20 = vadd.f32 %v3300_v30, %v5598_v48  ;;  %v3299_v22 = vmul.f32 %v3291_v16, %v3225_v21  ;;  %4609 = vtanh.f32 %v3312_v13  ;;  %p4884_p9 = scmp.ne.s32.totalorder %s3703_s21, %s4883_s28  ;;  %p4889_p11 = scmp.lt.s32.totalorder %s4883_s28, %s4883_s28 }
0x156d   :  { %v3301_v0 = vmul.f32 %v3293_v17, %v3268_v62  ;;  %4611 = vtanh.f32 %v3311_v54  ;;  %v3275_v50 = vmul.f32 0.5, %v3225_v21  ;;  %v3276_v52 = vmul.f32 0.5, %v5598_v48 }
0x156e   :  { %v3314_v23 = vmul.f32 0.7978846, %v3306_v19  ;;  %v3316_v26 = vmul.f32 0.7978846, %v3308_v20  ;;  %v3307_v27 = vadd.f32 %v3299_v22, %v3225_v21  ;;  %4613 = vtanh.f32 %v3313_v42  ;;  %p4890_p12 = por %p4889_p11, %p4888_p10 }
0x156f   :  { %v3309_v31 = vadd.f32 %v3301_v0, %v3268_v62  ;;  %v3273_v57 = vmul.f32 0.5, %v5593_v58  ;;  %v3277_v60 = vmul.f32 0.5, %v3268_v62  ;;  %v3272_v5 = vmul.f32 0.5, %v5589_v40 }
0x1570   :  { %4615 = vtanh.f32 %v3314_v23  ;;  %v3315_v32 = vmul.f32 0.7978846, %v3307_v27  ;;  %p4891_p13 = pnand %p4890_p12, %p4884_p9 }
0x1571   :  { %4617 = vtanh.f32 %v3316_v26  ;;  %v3317_v33 = vmul.f32 0.7978846, %v3309_v31 }
0x1572   :  { %4619 = vtanh.f32 %v3315_v32 }
0x1573   :  { %4621 = vtanh.f32 %v3317_v33 }
0x1578   :  { %v4608_v34 = vpop.eup %4607 }
0x1579   :  { %v4610_v35 = vpop.eup %4609  ;;  %v3326_v45 = vadd.f32 1.0, %v4608_v34 }
0x157a   :  { %v4612_v36 = vpop.eup %4611  ;;  %v3328_v28 = vadd.f32 1.0, %v4610_v35 }
0x157b   :  { %v4614_v37 = vpop.eup %4613  ;;  %v3327_v25 = vadd.f32 1.0, %v4612_v36  ;;  %v3334_v4 = vmul.f32 %v3326_v45, %v3270_v11 }
0x157c   :  { %v3329_v59 = vadd.f32 1.0, %v4614_v37  ;;  %v3336_v9 = vmul.f32 %v3328_v28, %v3272_v5 }
0x157d   :  { %v4616_v38 = vpop.eup %4615  ;;  %v3335_v24 = vmul.f32 %v3327_v25, %v3271_v41 }
0x157e   :  { %v4618_v39 = vpop.eup %4617  ;;  %v3330_v43 = vadd.f32 1.0, %v4616_v38  ;;  %v3337_v29 = vmul.f32 %v3329_v59, %v3273_v57 }
0x157f   :  { %v4620_v55 = vpop.eup %4619  ;;  %v3332_v46 = vadd.f32 1.0, %v4618_v39 }
0x1580   :  { %v4622_v47 = vpop.eup %4621  ;;  %v3331_v51 = vadd.f32 1.0, %v4620_v55  ;;  %v3338_v44 = vmul.f32 %v3330_v43, %v3274_v56 }
0x1581   :  { %v3333_v61 = vadd.f32 1.0, %v4622_v47  ;;  %v3340_v3 = vmul.f32 %v3332_v46, %v3276_v52 }
0x1582   :  { %v3339_v63 = vmul.f32 %v3331_v51, %v3275_v50  ;;  %v3342_v10 = vpack.c.bf16 %v3338_v44, %v3334_v4 }
0x1583   :  { %v3341_v7 = vmul.f32 %v3333_v61, %v3277_v60  ;;  %v3344_v48 = vpack.c.bf16 %v3340_v3, %v3336_v9 }
0x1584   :  { %v3343_v6 = vpack.c.bf16 %v3339_v63, %v3335_v24 }
0x1585   :  { %v3345_v21 = vpack.c.bf16 %v3341_v7, %v3337_v29 }
0x1586   :  { %3641 = vmatprep.mubr.bf16.mxu0 %v3343_v6 }
0x1587   :  { %3682 = vmatprep.mubr.bf16.mxu1 %v3345_v21  ;;  %3642 = vmatmul.mubr.bf16.vlgmr.msra.gmra.mxu0 %v3342_v10 }
0x1588   :  { %3683 = vmatmul.mubr.bf16.vlgmr.msra.gmra.mxu1 %v3344_v48 }
0x1647   :  { %v4012_v58 = vpop.f32.mrf.mxu0 }
0x1648   :  { %v4034_v62 = vpop.f32.mrf.mxu1 }
0x1649   :  { %v4013_v40 = vpop.f32.mrf.mxu0 }
0x164a   :  { %v4014_v8 = vadd.f32 %v4013_v40, %v4012_v58  ;;  %v4035_v13 = vpop.f32.mrf.mxu1 }
0x164b   :  { %v4015_v14 = vpop.f32.mrf.mxu0  ;;  %v4036_v30 = vadd.f32 %v4035_v13, %v4034_v62 }
0x164c   :  { %v3644_v15 = vadd.f32 %v4014_v8, %v3859_v12  ;;  %v4037_v16 = vpop.f32.mrf.mxu1 }
0x164d   :  { %v4016_v17 = vpop.f32.mrf.mxu0 }
0x164e   :  { %v3685_v54 = vadd.f32 %v4036_v30, %v3644_v15  ;;  %v4017_v18 = vadd.f32 %v4016_v17, %v4015_v14  ;;  %v4038_v19 = vpop.f32.mrf.mxu1 }
0x164f   :  { %v4039_v0 = vadd.f32 %v4038_v19, %v4037_v16 }
0x1650   :  { %v3691_v20 = vadd.f32 %v3685_v54, %v5554_v49  ;;  %v3647_v22 = vadd.f32 %v4017_v18, %v3859_v12 }
0x1652   :  { %v3688_v42 = vadd.f32 %v4039_v0, %v3647_v22  ;;  %v3693_v23 = vadd.f32 %v5121_v1, %v3691_v20 }
0x1654   :  { %v3692_v26 = vadd.f32 %v3688_v42, %v5558_v53  ;;  %3695 = vst [vmem:[#allocation23] sm:$0xff] %v3693_v23 }
0x1656   :  { %v3694_v27 = vadd.f32 %v5124_v2, %v3692_v26 }
0x1658   :  { %3696 = vst [vmem:[#allocation23 + $0x8] sm:$0xff] %v3694_v27 }
0x1659   :  { %4894 = shalt.err (!%p4891_p13)
}
0x165a   :  { %s5668_s14 = sld [smem:[#allocation39_spill]] }
0x1660   :  { %3708 = dma.vmem_to_hbm [thread:$0]  %s3703_s21, 256, %s5668_s14, [#allocation4], %s4926_s29, %s4926_s29, %s4927_s4  }
0x1661   :  { %4917 = dma.done.wait [#allocation4], 256  }
0x1662   :  { %4918 = vsyncadd [#allocation4], 4294967040 }
0x1663   :  { %3712 = vsyncpa [#allocation3], 1 }
0x1664   :  { %3713 = vsyncpa [#allocation6], 1 }
0x1665   :  { %3714 = vsyncpa [#allocation9], 1 }
0x1666   :  { %3715 = vsyncpa [#allocation12], 1 }
0x1667   :  { %3716 = vsyncpa [#allocation15], 1 }
0x1668   :  { %3717 = vsyncpa [#allocation18], 1 }
0x1669   :  { %3718 = vsyncpa [#allocation21], 1 }
0x166a   :  { %3719 = vsyncpa [#allocation4], 1 }

</bundles_post_ra>
